<compile_context>
chip_gen: v7x
topology: tpu7x:2x2x1
jax: 0.10.0
libtpu: 0.0.40
codegen_flags: <defaults>
</compile_context>

<pallas_src>
import functools

import jax
import jax.numpy as jnp
from jax import lax
from jax.experimental import pallas as pl
from jax.experimental.pallas import tpu as pltpu

ACT_DTYPE = jnp.bfloat16          # inter-kernel activation dtype (HBM traffic)
WGT_DTYPE = jnp.bfloat16          # MXU operand dtype (fp32 accumulation)
DILATIONS = (1, 2, 4, 8)          # fixed by the PyTorch module
MAX_PAD = max(DILATIONS)          # single max-pad works for all dilations


@functools.lru_cache(maxsize=None)
def _vmem_limit_bytes():
    # v5e/v6e have 128 MiB physical VMEM -> allow ~100 MiB; v7x has 64 MiB ->
    # stay at 48 MiB. Fall back to the safe 48 MiB if the query is unavailable.
    try:
        cap = int(pltpu.get_tpu_info().vmem_capacity_bytes)
    except Exception:
        cap = 64 * 1024 * 1024
    if cap >= 100 * 1024 * 1024:
        return 100 * 1024 * 1024
    return 48 * 1024 * 1024


def _row_tile(m):
    # Big tiles amortize the ~0.35us/step overhead; keep >=2 blocks when
    # possible so the parallel M axis can use both TensorCores on v7x.
    for t in (1024, 512, 256, 128):
        if m >= 2 * t:
            return t
    return 128


def _pad_rows(x, tm):
    m = x.shape[0]
    mp = pl.cdiv(m, tm) * tm
    if mp == m:
        return x
    return jnp.pad(x, ((0, mp - m), (0, 0)))


# ----------------------------- Pallas kernels ------------------------------

def _branch1x1_kernel(x_ref, w_ref, s_ref, t_ref, o_ref):
    # Fused: four 1x1 convs (weights concatenated along cout) + folded BN + ReLU.
    # bf16 x bf16 -> fp32 accumulate.
    acc = jnp.dot(x_ref[...], w_ref[...], preferred_element_type=jnp.float32)
    o_ref[...] = jnp.maximum(acc * s_ref[...] + t_ref[...], 0.0).astype(o_ref.dtype)


def branch1x1(x, w, scale, shift):
    m, cin = x.shape
    cout = w.shape[1]
    tm = _row_tile(m)
    xp = _pad_rows(x, tm)
    mp = xp.shape[0]
    y = pl.pallas_call(
        _branch1x1_kernel,
        out_shape=jax.ShapeDtypeStruct((mp, cout), ACT_DTYPE),
        grid_spec=pltpu.PrefetchScalarGridSpec(
            num_scalar_prefetch=0,
            grid=(mp // tm,),
            in_specs=[
                pl.BlockSpec((tm, cin), lambda i: (i, 0)),
                pl.BlockSpec((cin, cout), lambda i: (0, 0)),
                pl.BlockSpec((1, cout), lambda i: (0, 0)),
                pl.BlockSpec((1, cout), lambda i: (0, 0)),
            ],
            out_specs=pl.BlockSpec((tm, cout), lambda i: (i, 0)),
        ),
        compiler_params=pltpu.CompilerParams(
            dimension_semantics=("parallel",),
            vmem_limit_bytes=_vmem_limit_bytes()),
    )(xp, w, scale, shift)
    return y[:m]


def _dilated_kernel(x_ref, w_ref, s_ref, t_ref, o_ref, slab_ref, *, H, W, c4):
    # One unpadded image block -> zero-padded bf16 slab in VMEM scratch ->
    # 36 per-(branch, tap) bf16 matmuls accumulated in fp32 (no im2col buffer,
    # no block-diagonal zeros) -> folded BN + ReLU + in-kernel residuals.
    P = MAX_PAD
    x = x_ref[0]                                      # (H, W, 4*c4) bf16

    # Build the max-padded slab: zero the halo + interior, then write interior.
    slab_ref[...] = jnp.zeros_like(slab_ref)
    slab_ref[P:P + H, P:P + W, :] = x
    slab = slab_ref[...]                              # (H+2P, W+2P, 4*c4) bf16

    # Residual sources come straight from the (already loaded) centre block.
    xf = x.reshape(H * W, 4 * c4).astype(jnp.float32)
    r12 = xf[:, 0 * c4:1 * c4] + xf[:, 1 * c4:2 * c4]
    r34 = xf[:, 2 * c4:3 * c4] + xf[:, 3 * c4:4 * c4]
    res = (r12, r12, r34, r34)

    scale = s_ref[...]                                # (1, 4*c4) fp32
    shift = t_ref[...]

    outs = []
    for b, d in enumerate(DILATIONS):
        acc = None
        for ky in range(3):
            for kx in range(3):
                r0 = P + d * (ky - 1)
                c0 = P + d * (kx - 1)
                view = slab[r0:r0 + H, c0:c0 + W, b * c4:(b + 1) * c4]
                view = view.reshape(H * W, c4)        # bf16
                contrib = jnp.dot(view, w_ref[b * 9 + ky * 3 + kx],
                                  preferred_element_type=jnp.float32)
                acc = contrib if acc is None else acc + contrib
        yb = jnp.maximum(acc * scale[:, b * c4:(b + 1) * c4]
                         + shift[:, b * c4:(b + 1) * c4], 0.0)
        outs.append(yb + res[b])
    o_ref[0] = jnp.concatenate(outs, axis=-1).astype(o_ref.dtype)


def dilated_branches(x_nhwc, w_taps, scale, shift):
    # TODO(synk): at large H*W this holds one whole padded image per grid step;
    # switch to manual-DMA row-slab + halo tiling to bound per-step VMEM.
    N, H, W, c4all = x_nhwc.shape
    c4 = c4all // 4
    P = MAX_PAD
    Hp, Wp = H + 2 * P, W + 2 * P
    kern = functools.partial(_dilated_kernel, H=H, W=W, c4=c4)
    return pl.pallas_call(
        kern,
        out_shape=jax.ShapeDtypeStruct((N, H * W, c4all), ACT_DTYPE),
        grid_spec=pltpu.PrefetchScalarGridSpec(
            num_scalar_prefetch=0,
            grid=(N,),
            in_specs=[
                pl.BlockSpec((1, H, W, c4all), lambda n: (n, 0, 0, 0)),
                pl.BlockSpec((36, c4, c4), lambda n: (0, 0, 0)),   # resident
                pl.BlockSpec((1, c4all), lambda n: (0, 0)),
                pl.BlockSpec((1, c4all), lambda n: (0, 0)),
            ],
            out_specs=pl.BlockSpec((1, H * W, c4all), lambda n: (n, 0, 0)),
            scratch_shapes=[pltpu.VMEM((Hp, Wp, c4all), ACT_DTYPE)],
        ),
        compiler_params=pltpu.CompilerParams(
            dimension_semantics=("parallel",),
            vmem_limit_bytes=_vmem_limit_bytes()),
    )(x_nhwc, w_taps, scale, shift)


def _tail_kernel(x_ref, w1_ref, s1_ref, t1_ref, wf_ref, sf_ref, tf_ref, o_ref):
    # Fused tail: [out1|out2] as one block-diagonal matmul + BN + ReLU, then
    # the final 1x1 conv + BN + ReLU.  bf16 MXU operands, fp32 accumulate.
    z = jnp.dot(x_ref[...], w1_ref[...], preferred_element_type=jnp.float32)
    z = jnp.maximum(z * s1_ref[...] + t1_ref[...], 0.0)
    y = jnp.dot(z.astype(WGT_DTYPE), wf_ref[...],
                preferred_element_type=jnp.float32)
    y = jnp.maximum(y * sf_ref[...] + tf_ref[...], 0.0)
    o_ref[...] = y.astype(o_ref.dtype)


def tail1x1(x, w1, s1, t1, wf, sf, tf, out_dtype):
    m, c = x.shape
    tm = _row_tile(m)
    xp = _pad_rows(x, tm)
    mp = xp.shape[0]
    y = pl.pallas_call(
        _tail_kernel,
        out_shape=jax.ShapeDtypeStruct((mp, c), out_dtype),
        grid_spec=pltpu.PrefetchScalarGridSpec(
            num_scalar_prefetch=0,
            grid=(mp // tm,),
            in_specs=[
                pl.BlockSpec((tm, c), lambda i: (i, 0)),
                pl.BlockSpec((c, c), lambda i: (0, 0)),
                pl.BlockSpec((1, c), lambda i: (0, 0)),
                pl.BlockSpec((1, c), lambda i: (0, 0)),
                pl.BlockSpec((c, c), lambda i: (0, 0)),
                pl.BlockSpec((1, c), lambda i: (0, 0)),
                pl.BlockSpec((1, c), lambda i: (0, 0)),
            ],
            out_specs=pl.BlockSpec((tm, c), lambda i: (i, 0)),
        ),
        compiler_params=pltpu.CompilerParams(
            dimension_semantics=("parallel",),
            vmem_limit_bytes=_vmem_limit_bytes()),
    )(xp, w1, s1, t1, wf, sf, tf)
    return y[:m]


# --------------------------- parameters (PyTorch layout) ---------------------

def init_raw_params(key, in_channels, out_channels):
    c4 = out_channels // 4
    c2 = out_channels // 2
    keys = iter(jax.random.split(key, 80))

    def conv_w(cout, cin, kh=1, kw=1):
        return 0.1 * jax.random.normal(next(keys), (cout, cin, kh, kw), jnp.float32)

    def conv_b(cout):
        return 0.1 * jax.random.normal(next(keys), (cout,), jnp.float32)

    def bn(c):
        return dict(
            gamma=1.0 + 0.1 * jax.random.normal(next(keys), (c,), jnp.float32),
            beta=0.1 * jax.random.normal(next(keys), (c,), jnp.float32),
            mean=0.1 * jax.random.normal(next(keys), (c,), jnp.float32),
            var=jnp.abs(1.0 + 0.1 * jax.random.normal(next(keys), (c,), jnp.float32)))

    p = {}
    for i in range(1, 5):
        p[f'conv1x1_{i}_w'] = conv_w(c4, in_channels)
        p[f'conv1x1_{i}_b'] = conv_b(c4)
        p[f'bn1_{i}'] = bn(c4)
        p[f'conv3x3_{i}_w'] = conv_w(c4, c4, 3, 3)       # bias=False in module
        p[f'bn2_{i}'] = bn(c4)
    p['out1_w'] = conv_w(c2, c2); p['out1_b'] = conv_b(c2); p['bn_out1'] = bn(c2)
    p['out2_w'] = conv_w(c2, c2); p['out2_b'] = conv_b(c2); p['bn_out2'] = bn(c2)
    p['final_w'] = conv_w(out_channels, out_channels)
    p['final_b'] = conv_b(out_channels)
    p['bn_final'] = bn(out_channels)
    return p


def _fold_bn(bn, bias=None, eps=1e-5):
    scale = bn['gamma'] / jnp.sqrt(bn['var'] + eps)
    shift = bn['beta'] - bn['mean'] * scale
    if bias is not None:                       # fold the conv bias into the shift
        shift = shift + bias * scale
    return scale.reshape(1, -1), shift.reshape(1, -1)


def fold_params(raw, out_channels):
    c4 = out_channels // 4
    c2 = out_channels // 2
    kp = {}
    # Stage A: four branch 1x1 convs fused into one (Cin, 4*c4) bf16 matmul.
    ws, ss, ts = [], [], []
    for i in range(1, 5):
        w = raw[f'conv1x1_{i}_w'][:, :, 0, 0]                       # (c4, cin)
        s, t = _fold_bn(raw[f'bn1_{i}'], raw[f'conv1x1_{i}_b'])
        ws.append(w.T); ss.append(s); ts.append(t)
    kp['wa'] = jnp.concatenate(ws, axis=1).astype(WGT_DTYPE)
    kp['sa'] = jnp.concatenate(ss, axis=1)
    kp['ta'] = jnp.concatenate(ts, axis=1)
    # Stage B: per-(branch, ky, kx) tap weights, (36, c4, c4), each tap (cin, cout).
    taps, ss, ts = [], [], []
    for b in range(4):
        w = raw[f'conv3x3_{b + 1}_w']                               # (co, ci, 3, 3)
        for ky in range(3):
            for kx in range(3):
                taps.append(jnp.transpose(w[:, :, ky, kx]))          # (ci, co)
        s, t = _fold_bn(raw[f'bn2_{b + 1}'])
        ss.append(s); ts.append(t)
    kp['wb'] = jnp.stack(taps, axis=0).astype(WGT_DTYPE)             # (36, c4, c4)
    kp['sb'] = jnp.concatenate(ss, axis=1)
    kp['tb'] = jnp.concatenate(ts, axis=1)
    # Stage C: out1/out2 fused into one block-diagonal matmul, then final 1x1.
    w1 = jnp.zeros((out_channels, out_channels), jnp.float32)
    w1 = w1.at[:c2, :c2].set(raw['out1_w'][:, :, 0, 0].T)
    w1 = w1.at[c2:, c2:].set(raw['out2_w'][:, :, 0, 0].T)
    s1a, t1a = _fold_bn(raw['bn_out1'], raw['out1_b'])
    s1b, t1b = _fold_bn(raw['bn_out2'], raw['out2_b'])
    kp['w1'] = w1.astype(WGT_DTYPE)
    kp['s1'] = jnp.concatenate([s1a, s1b], axis=1)
    kp['t1'] = jnp.concatenate([t1a, t1b], axis=1)
    kp['wf'] = raw['final_w'][:, :, 0, 0].T.astype(WGT_DTYPE)
    kp['sf'], kp['tf'] = _fold_bn(raw['bn_final'], raw['final_b'])
    return kp


# ------------------------------- forward pass -------------------------------

def paspp_forward(x_nchw, kp):
    N, Cin, H, W = x_nchw.shape
    M = N * H * W
    c4all = kp['wa'].shape[1]
    # Cast to bf16 once: stage A streams bf16 from HBM and feeds the MXU bf16.
    x = jnp.transpose(x_nchw, (0, 2, 3, 1)).reshape(M, Cin).astype(ACT_DTYPE)
    xb = branch1x1(x, kp['wa'], kp['sa'], kp['ta'])            # (M, 4*c4) packed x1..x4
    yb = dilated_branches(xb.reshape(N, H, W, c4all),
                          kp['wb'], kp['sb'], kp['tb'])        # (N, H*W, 4*c4) packed y1..y4
    y = tail1x1(yb.reshape(M, c4all), kp['w1'], kp['s1'], kp['t1'],
                kp['wf'], kp['sf'], kp['tf'], out_dtype=x_nchw.dtype)
    Cout = y.shape[1]
    return jnp.transpose(y.reshape(N, H, W, Cout), (0, 3, 1, 2))   # back to NCHW


# ------------------------- pure-JAX reference (check) ------------------------

def reference_forward(x, raw, eps=1e-5):
    def bn(v, p):
        g = p['gamma'][None, :, None, None]; b = p['beta'][None, :, None, None]
        m = p['mean'][None, :, None, None]; s = p['var'][None, :, None, None]
        return (v - m) / jnp.sqrt(s + eps) * g + b

    def conv1x1(v, w, b):
        return jnp.einsum('nchw,oc->nohw', v, w[:, :, 0, 0]) + b[None, :, None, None]

    def conv3x3(v, w, d):
        return lax.conv_general_dilated(
            v, w, window_strides=(1, 1), padding=((d, d), (d, d)),
            rhs_dilation=(d, d), dimension_numbers=('NCHW', 'OIHW', 'NCHW'))

    relu = jax.nn.relu
    x1 = relu(bn(conv1x1(x, raw['conv1x1_1_w'], raw['conv1x1_1_b']), raw['bn1_1']))
    x2 = relu(bn(conv1x1(x, raw['conv1x1_2_w'], raw['conv1x1_2_b']), raw['bn1_2']))
    x3 = relu(bn(conv1x1(x, raw['conv1x1_3_w'], raw['conv1x1_3_b']), raw['bn1_3']))
    x4 = relu(bn(conv1x1(x, raw['conv1x1_4_w'], raw['conv1x1_4_b']), raw['bn1_4']))
    x1_2 = x1 + x2
    x3_4 = x3 + x4
    x1 = relu(bn(conv3x3(x1, raw['conv3x3_1_w'], 1), raw['bn2_1'])) + x1_2
    x2 = relu(bn(conv3x3(x2, raw['conv3x3_2_w'], 2), raw['bn2_2'])) + x1_2
    x3 = relu(bn(conv3x3(x3, raw['conv3x3_3_w'], 4), raw['bn2_3'])) + x3_4
    x4 = relu(bn(conv3x3(x4, raw['conv3x3_4_w'], 8), raw['bn2_4'])) + x3_4
    x1_2 = relu(bn(conv1x1(jnp.concatenate([x1, x2], 1), raw['out1_w'], raw['out1_b']),
                   raw['bn_out1']))
    x3_4 = relu(bn(conv1x1(jnp.concatenate([x3, x4], 1), raw['out2_w'], raw['out2_b']),
                   raw['bn_out2']))
    y = jnp.concatenate([x1_2, x3_4], 1)
    return relu(bn(conv1x1(y, raw['final_w'], raw['final_b']), raw['bn_final']))


if __name__ == "__main__":
    key = jax.random.PRNGKey(0)
    kx, kparam = jax.random.split(key)
    N, Cin, H, W = 2, 4, 16, 16
    out_channels = 16

    x = jax.random.normal(kx, (N, Cin, H, W), dtype=jnp.float32)
    raw = init_raw_params(kparam, Cin, out_channels)
    kp = fold_params(raw, out_channels)

    y = jax.jit(paspp_forward)(x, kp)
    jax.block_until_ready(y)
    assert y.shape == (N, out_channels, H, W), y.shape
    assert bool(jnp.all(jnp.isfinite(y)))

    y_ref = reference_forward(x, raw)
    err = float(jnp.max(jnp.abs(y.astype(jnp.float32) - y_ref)))
    assert err < 7.5e-2, f"max abs err vs reference: {err}"
    print("KERNEL_OK")
</pallas_src>

<mosaic_0001>
module attributes {stable_mosaic.version = 11 : i64} {
  func.func @_branch1x1_kernel(%arg0: i32, %arg1: memref<256x4xbf16, #tpu.memory_space<vmem>>, %arg2: memref<4x16xbf16, #tpu.memory_space<vmem>>, %arg3: memref<1x16xf32, #tpu.memory_space<vmem>>, %arg4: memref<1x16xf32, #tpu.memory_space<vmem>>, %arg5: memref<256x16xbf16, #tpu.memory_space<vmem>>) attributes {dimension_semantics = [#tpu.dimension_semantics<parallel>], iteration_bounds = array<i64: 2>, scalar_prefetch = 0 : i64, scratch_operands = 0 : i64, tpu.core_type = #tpu.core_type<tc>, window_params = [{transform_indices = @transform_0, window_bounds = array<i64: 256, 4>}, {pipeline_mode = #tpu.pipeline_mode<synchronous>, transform_indices = @transform_1, window_bounds = array<i64: 4, 16>}, {pipeline_mode = #tpu.pipeline_mode<synchronous>, transform_indices = @transform_2, window_bounds = array<i64: 1, 16>}, {pipeline_mode = #tpu.pipeline_mode<synchronous>, transform_indices = @transform_3, window_bounds = array<i64: 1, 16>}, {transform_indices = @transform_4, window_bounds = array<i64: 256, 16>}]} {
    %c0 = arith.constant 0 : index
    %c0_0 = arith.constant 0 : index
    %0 = vector.load %arg1[%c0, %c0_0] : memref<256x4xbf16, #tpu.memory_space<vmem>>, vector<256x4xbf16>
    %c0_1 = arith.constant 0 : index
    %c0_2 = arith.constant 0 : index
    %1 = vector.load %arg2[%c0_1, %c0_2] : memref<4x16xbf16, #tpu.memory_space<vmem>>, vector<4x16xbf16>
    %cst = arith.constant dense<0.000000e+00> : vector<256x16xf32>
    %2 = tpu.matmul %0, %1, %cst {dimension_numbers = #tpu.dot_dimension_numbers<[1], [0], [0], [1], [0, 0, 1, 1], [], []>} : vector<256x4xbf16>, vector<4x16xbf16>, vector<256x16xf32> -> vector<256x16xf32>
    %c0_3 = arith.constant 0 : index
    %c0_4 = arith.constant 0 : index
    %3 = vector.load %arg3[%c0_3, %c0_4] : memref<1x16xf32, #tpu.memory_space<vmem>>, vector<1x16xf32>
    %4 = vector.broadcast %3 : vector<1x16xf32> to vector<256x16xf32>
    %5 = arith.mulf %2, %4 : vector<256x16xf32>
    %c0_5 = arith.constant 0 : index
    %c0_6 = arith.constant 0 : index
    %6 = vector.load %arg4[%c0_5, %c0_6] : memref<1x16xf32, #tpu.memory_space<vmem>>, vector<1x16xf32>
    %7 = vector.broadcast %6 : vector<1x16xf32> to vector<256x16xf32>
    %8 = arith.addf %5, %7 : vector<256x16xf32>
    %cst_7 = arith.constant 0.000000e+00 : f32
    %9 = vector.broadcast %cst_7 : f32 to vector<256x16xf32>
    %10 = arith.maximumf %8, %9 : vector<256x16xf32>
    %11 = arith.truncf %10 : vector<256x16xf32> to vector<256x16xbf16>
    %c0_8 = arith.constant 0 : index
    %c0_9 = arith.constant 0 : index
    %12 = vector.load %arg5[%c0_8, %c0_9] : memref<256x16xbf16, #tpu.memory_space<vmem>>, vector<256x16xbf16>
    tpu.vector_store %arg5[%c0_8, %c0_9], %11 {strides = array<i32>} : memref<256x16xbf16, #tpu.memory_space<vmem>>, vector<256x16xbf16>,
    return
  }
  func.func @transform_0(%arg0: i32) -> (i32, i32) {
    %c0_i32 = arith.constant 0 : i32
    %c0_i32_0 = arith.constant 0 : i32
    return %arg0, %c0_i32 : i32, i32
  }
  func.func @transform_1(%arg0: i32) -> (i32, i32) {
    %c0_i32 = arith.constant 0 : i32
    %c0_i32_0 = arith.constant 0 : i32
    %c0_i32_1 = arith.constant 0 : i32
    return %c0_i32, %c0_i32_0 : i32, i32
  }
  func.func @transform_2(%arg0: i32) -> (i32, i32) {
    %c0_i32 = arith.constant 0 : i32
    %c0_i32_0 = arith.constant 0 : i32
    %c0_i32_1 = arith.constant 0 : i32
    return %c0_i32, %c0_i32_0 : i32, i32
  }
  func.func @transform_3(%arg0: i32) -> (i32, i32) {
    %c0_i32 = arith.constant 0 : i32
    %c0_i32_0 = arith.constant 0 : i32
    %c0_i32_1 = arith.constant 0 : i32
    return %c0_i32, %c0_i32_0 : i32, i32
  }
  func.func @transform_4(%arg0: i32) -> (i32, i32) {
    %c0_i32 = arith.constant 0 : i32
    %c0_i32_0 = arith.constant 0 : i32
    return %arg0, %c0_i32 : i32, i32
  }
}

module attributes {stable_mosaic.version = 11 : i64} {
  func.func @_tail_kernel(%arg0: i32, %arg1: memref<256x16xbf16, #tpu.memory_space<vmem>>, %arg2: memref<16x16xbf16, #tpu.memory_space<vmem>>, %arg3: memref<1x16xf32, #tpu.memory_space<vmem>>, %arg4: memref<1x16xf32, #tpu.memory_space<vmem>>, %arg5: memref<16x16xbf16, #tpu.memory_space<vmem>>, %arg6: memref<1x16xf32, #tpu.memory_space<vmem>>, %arg7: memref<1x16xf32, #tpu.memory_space<vmem>>, %arg8: memref<256x16xf32, #tpu.memory_space<vmem>>) attributes {dimension_semantics = [#tpu.dimension_semantics<parallel>], iteration_bounds = array<i64: 2>, scalar_prefetch = 0 : i64, scratch_operands = 0 : i64, tpu.core_type = #tpu.core_type<tc>, window_params = [{transform_indices = @transform_0, window_bounds = array<i64: 256, 16>}, {pipeline_mode = #tpu.pipeline_mode<synchronous>, transform_indices = @transform_1, window_bounds = array<i64: 16, 16>}, {pipeline_mode = #tpu.pipeline_mode<synchronous>, transform_indices = @transform_2, window_bounds = array<i64: 1, 16>}, {pipeline_mode = #tpu.pipeline_mode<synchronous>, transform_indices = @transform_3, window_bounds = array<i64: 1, 16>}, {pipeline_mode = #tpu.pipeline_mode<synchronous>, transform_indices = @transform_4, window_bounds = array<i64: 16, 16>}, {pipeline_mode = #tpu.pipeline_mode<synchronous>, transform_indices = @transform_5, window_bounds = array<i64: 1, 16>}, {pipeline_mode = #tpu.pipeline_mode<synchronous>, transform_indices = @transform_6, window_bounds = array<i64: 1, 16>}, {transform_indices = @transform_7, window_bounds = array<i64: 256, 16>}]} {
    %c0 = arith.constant 0 : index
    %c0_0 = arith.constant 0 : index
    %0 = vector.load %arg1[%c0, %c0_0] : memref<256x16xbf16, #tpu.memory_space<vmem>>, vector<256x16xbf16>
    %c0_1 = arith.constant 0 : index
    %c0_2 = arith.constant 0 : index
    %1 = vector.load %arg2[%c0_1, %c0_2] : memref<16x16xbf16, #tpu.memory_space<vmem>>, vector<16x16xbf16>
    %cst = arith.constant dense<0.000000e+00> : vector<256x16xf32>
    %2 = tpu.matmul %0, %1, %cst {dimension_numbers = #tpu.dot_dimension_numbers<[1], [0], [0], [1], [0, 0, 1, 1], [], []>} : vector<256x16xbf16>, vector<16x16xbf16>, vector<256x16xf32> -> vector<256x16xf32>
    %c0_3 = arith.constant 0 : index
    %c0_4 = arith.constant 0 : index
    %3 = vector.load %arg3[%c0_3, %c0_4] : memref<1x16xf32, #tpu.memory_space<vmem>>, vector<1x16xf32>
    %4 = vector.broadcast %3 : vector<1x16xf32> to vector<256x16xf32>
    %5 = arith.mulf %2, %4 : vector<256x16xf32>
    %c0_5 = arith.constant 0 : index
    %c0_6 = arith.constant 0 : index
    %6 = vector.load %arg4[%c0_5, %c0_6] : memref<1x16xf32, #tpu.memory_space<vmem>>, vector<1x16xf32>
    %7 = vector.broadcast %6 : vector<1x16xf32> to vector<256x16xf32>
    %8 = arith.addf %5, %7 : vector<256x16xf32>
    %cst_7 = arith.constant 0.000000e+00 : f32
    %9 = vector.broadcast %cst_7 : f32 to vector<256x16xf32>
    %10 = arith.maximumf %8, %9 : vector<256x16xf32>
    %11 = arith.truncf %10 : vector<256x16xf32> to vector<256x16xbf16>
    %c0_8 = arith.constant 0 : index
    %c0_9 = arith.constant 0 : index
    %12 = vector.load %arg5[%c0_8, %c0_9] : memref<16x16xbf16, #tpu.memory_space<vmem>>, vector<16x16xbf16>
    %cst_10 = arith.constant dense<0.000000e+00> : vector<256x16xf32>
    %13 = tpu.matmul %11, %12, %cst_10 {dimension_numbers = #tpu.dot_dimension_numbers<[1], [0], [0], [1], [0, 0, 1, 1], [], []>} : vector<256x16xbf16>, vector<16x16xbf16>, vector<256x16xf32> -> vector<256x16xf32>
    %c0_11 = arith.constant 0 : index
    %c0_12 = arith.constant 0 : index
    %14 = vector.load %arg6[%c0_11, %c0_12] : memref<1x16xf32, #tpu.memory_space<vmem>>, vector<1x16xf32>
    %15 = vector.broadcast %14 : vector<1x16xf32> to vector<256x16xf32>
    %16 = arith.mulf %13, %15 : vector<256x16xf32>
    %c0_13 = arith.constant 0 : index
    %c0_14 = arith.constant 0 : index
    %17 = vector.load %arg7[%c0_13, %c0_14] : memref<1x16xf32, #tpu.memory_space<vmem>>, vector<1x16xf32>
    %18 = vector.broadcast %17 : vector<1x16xf32> to vector<256x16xf32>
    %19 = arith.addf %16, %18 : vector<256x16xf32>
    %cst_15 = arith.constant 0.000000e+00 : f32
    %20 = vector.broadcast %cst_15 : f32 to vector<256x16xf32>
    %21 = arith.maximumf %19, %20 : vector<256x16xf32>
    %c0_16 = arith.constant 0 : index
    %c0_17 = arith.constant 0 : index
    %22 = vector.load %arg8[%c0_16, %c0_17] : memref<256x16xf32, #tpu.memory_space<vmem>>, vector<256x16xf32>
    tpu.vector_store %arg8[%c0_16, %c0_17], %21 {strides = array<i32>} : memref<256x16xf32, #tpu.memory_space<vmem>>, vector<256x16xf32>,
    return
  }
  func.func @transform_0(%arg0: i32) -> (i32, i32) {
    %c0_i32 = arith.constant 0 : i32
    %c0_i32_0 = arith.constant 0 : i32
    return %arg0, %c0_i32 : i32, i32
  }
  func.func @transform_1(%arg0: i32) -> (i32, i32) {
    %c0_i32 = arith.constant 0 : i32
    %c0_i32_0 = arith.constant 0 : i32
    %c0_i32_1 = arith.constant 0 : i32
    return %c0_i32, %c0_i32_0 : i32, i32
  }
  func.func @transform_2(%arg0: i32) -> (i32, i32) {
    %c0_i32 = arith.constant 0 : i32
    %c0_i32_0 = arith.constant 0 : i32
    %c0_i32_1 = arith.constant 0 : i32
    return %c0_i32, %c0_i32_0 : i32, i32
  }
  func.func @transform_3(%arg0: i32) -> (i32, i32) {
    %c0_i32 = arith.constant 0 : i32
    %c0_i32_0 = arith.constant 0 : i32
    %c0_i32_1 = arith.constant 0 : i32
    return %c0_i32, %c0_i32_0 : i32, i32
  }
  func.func @transform_4(%arg0: i32) -> (i32, i32) {
    %c0_i32 = arith.constant 0 : i32
    %c0_i32_0 = arith.constant 0 : i32
    %c0_i32_1 = arith.constant 0 : i32
    return %c0_i32, %c0_i32_0 : i32, i32
  }
  func.func @transform_5(%arg0: i32) -> (i32, i32) {
    %c0_i32 = arith.constant 0 : i32
    %c0_i32_0 = arith.constant 0 : i32
    %c0_i32_1 = arith.constant 0 : i32
    return %c0_i32, %c0_i32_0 : i32, i32
  }
  func.func @transform_6(%arg0: i32) -> (i32, i32) {
    %c0_i32 = arith.constant 0 : i32
    %c0_i32_0 = arith.constant 0 : i32
    %c0_i32_1 = arith.constant 0 : i32
    return %c0_i32, %c0_i32_0 : i32, i32
  }
  func.func @transform_7(%arg0: i32) -> (i32, i32) {
    %c0_i32 = arith.constant 0 : i32
    %c0_i32_0 = arith.constant 0 : i32
    return %arg0, %c0_i32 : i32, i32
  }
}

module attributes {stable_mosaic.version = 11 : i64} {
  func.func @_dilated_kernel(%arg0: i32, %arg1: memref<1x16x16x16xbf16, #tpu.memory_space<vmem>>, %arg2: memref<36x4x4xbf16, #tpu.memory_space<vmem>>, %arg3: memref<1x16xf32, #tpu.memory_space<vmem>>, %arg4: memref<1x16xf32, #tpu.memory_space<vmem>>, %arg5: memref<1x256x16xbf16, #tpu.memory_space<vmem>>, %arg6: memref<32x32x16xbf16, #tpu.memory_space<vmem>>) attributes {dimension_semantics = [#tpu.dimension_semantics<parallel>], iteration_bounds = array<i64: 2>, scalar_prefetch = 0 : i64, scratch_operands = 1 : i64, tpu.core_type = #tpu.core_type<tc>, window_params = [{transform_indices = @transform_0, window_bounds = array<i64: 1, 16, 16, 16>}, {pipeline_mode = #tpu.pipeline_mode<synchronous>, transform_indices = @transform_1, window_bounds = array<i64: 36, 4, 4>}, {pipeline_mode = #tpu.pipeline_mode<synchronous>, transform_indices = @transform_2, window_bounds = array<i64: 1, 16>}, {pipeline_mode = #tpu.pipeline_mode<synchronous>, transform_indices = @transform_3, window_bounds = array<i64: 1, 16>}, {transform_indices = @transform_4, window_bounds = array<i64: 1, 256, 16>}]} {
    %c0 = arith.constant 0 : index
    %c0_0 = arith.constant 0 : index
    %c0_1 = arith.constant 0 : index
    %c0_2 = arith.constant 0 : index
    %0 = vector.load %arg1[%c0, %c0_0, %c0_1, %c0_2] : memref<1x16x16x16xbf16, #tpu.memory_space<vmem>>, vector<1x16x16x16xbf16>
    %1 = vector.shape_cast %0 : vector<1x16x16x16xbf16> to vector<16x16x16xbf16>
    %cst = arith.constant 0.000000e+00 : bf16
    %2 = vector.broadcast %cst : bf16 to vector<32x32x16xbf16>
    %c0_3 = arith.constant 0 : index
    %c0_4 = arith.constant 0 : index
    %c0_5 = arith.constant 0 : index
    %3 = vector.load %arg6[%c0_3, %c0_4, %c0_5] : memref<32x32x16xbf16, #tpu.memory_space<vmem>>, vector<32x32x16xbf16>
    tpu.vector_store %arg6[%c0_3, %c0_4, %c0_5], %2 {strides = array<i32>} : memref<32x32x16xbf16, #tpu.memory_space<vmem>>, vector<32x32x16xbf16>,
    %c8 = arith.constant 8 : index
    %c8_6 = arith.constant 8 : index
    %c0_7 = arith.constant 0 : index
    %4 = vector.load %arg6[%c8, %c8_6, %c0_7] : memref<32x32x16xbf16, #tpu.memory_space<vmem>>, vector<16x16x16xbf16>
    tpu.vector_store %arg6[%c8, %c8_6, %c0_7], %1 {strides = array<i32>} : memref<32x32x16xbf16, #tpu.memory_space<vmem>>, vector<16x16x16xbf16>,
    %c0_8 = arith.constant 0 : index
    %c0_9 = arith.constant 0 : index
    %c0_10 = arith.constant 0 : index
    %5 = vector.load %arg6[%c0_8, %c0_9, %c0_10] : memref<32x32x16xbf16, #tpu.memory_space<vmem>>, vector<32x32x16xbf16>
    %6 = vector.shape_cast %1 : vector<16x16x16xbf16> to vector<256x16xbf16>
    %7 = arith.extf %6 : vector<256x16xbf16> to vector<256x16xf32>
    %8 = vector.extract_strided_slice %7 {offsets = [0, 0], sizes = [256, 4], strides = [1, 1]} : vector<256x16xf32> to vector<256x4xf32>
    %9 = vector.extract_strided_slice %7 {offsets = [0, 4], sizes = [256, 4], strides = [1, 1]} : vector<256x16xf32> to vector<256x4xf32>
    %10 = arith.addf %8, %9 : vector<256x4xf32>
    %11 = vector.extract_strided_slice %7 {offsets = [0, 8], sizes = [256, 4], strides = [1, 1]} : vector<256x16xf32> to vector<256x4xf32>
    %12 = vector.extract_strided_slice %7 {offsets = [0, 12], sizes = [256, 4], strides = [1, 1]} : vector<256x16xf32> to vector<256x4xf32>
    %13 = arith.addf %11, %12 : vector<256x4xf32>
    %c0_11 = arith.constant 0 : index
    %c0_12 = arith.constant 0 : index
    %14 = vector.load %arg3[%c0_11, %c0_12] : memref<1x16xf32, #tpu.memory_space<vmem>>, vector<1x16xf32>
    %c0_13 = arith.constant 0 : index
    %c0_14 = arith.constant 0 : index
    %15 = vector.load %arg4[%c0_13, %c0_14] : memref<1x16xf32, #tpu.memory_space<vmem>>, vector<1x16xf32>
    %16 = vector.extract_strided_slice %5 {offsets = [7, 7, 0], sizes = [16, 16, 4], strides = [1, 1, 1]} : vector<32x32x16xbf16> to vector<16x16x4xbf16>
    %17 = vector.shape_cast %16 : vector<16x16x4xbf16> to vector<256x4xbf16>
    %c0_15 = arith.constant 0 : index
    %c0_16 = arith.constant 0 : index
    %c0_17 = arith.constant 0 : index
    %18 = vector.load %arg2[%c0_15, %c0_16, %c0_17] : memref<36x4x4xbf16, #tpu.memory_space<vmem>>, vector<1x4x4xbf16>
    %19 = vector.shape_cast %18 : vector<1x4x4xbf16> to vector<4x4xbf16>
    %cst_18 = arith.constant dense<0.000000e+00> : vector<256x4xf32>
    %20 = tpu.matmul %17, %19, %cst_18 {dimension_numbers = #tpu.dot_dimension_numbers<[1], [0], [0], [1], [0, 0, 1, 1], [], []>} : vector<256x4xbf16>, vector<4x4xbf16>, vector<256x4xf32> -> vector<256x4xf32>
    %21 = vector.extract_strided_slice %5 {offsets = [7, 8, 0], sizes = [16, 16, 4], strides = [1, 1, 1]} : vector<32x32x16xbf16> to vector<16x16x4xbf16>
    %22 = vector.shape_cast %21 : vector<16x16x4xbf16> to vector<256x4xbf16>
    %c1 = arith.constant 1 : index
    %c0_19 = arith.constant 0 : index
    %c0_20 = arith.constant 0 : index
    %23 = vector.load %arg2[%c1, %c0_19, %c0_20] : memref<36x4x4xbf16, #tpu.memory_space<vmem>>, vector<1x4x4xbf16>
    %24 = vector.shape_cast %23 : vector<1x4x4xbf16> to vector<4x4xbf16>
    %cst_21 = arith.constant dense<0.000000e+00> : vector<256x4xf32>
    %25 = tpu.matmul %22, %24, %cst_21 {dimension_numbers = #tpu.dot_dimension_numbers<[1], [0], [0], [1], [0, 0, 1, 1], [], []>} : vector<256x4xbf16>, vector<4x4xbf16>, vector<256x4xf32> -> vector<256x4xf32>
    %26 = arith.addf %20, %25 : vector<256x4xf32>
    %27 = vector.extract_strided_slice %5 {offsets = [7, 9, 0], sizes = [16, 16, 4], strides = [1, 1, 1]} : vector<32x32x16xbf16> to vector<16x16x4xbf16>
    %28 = vector.shape_cast %27 : vector<16x16x4xbf16> to vector<256x4xbf16>
    %c2 = arith.constant 2 : index
    %c0_22 = arith.constant 0 : index
    %c0_23 = arith.constant 0 : index
    %29 = vector.load %arg2[%c2, %c0_22, %c0_23] : memref<36x4x4xbf16, #tpu.memory_space<vmem>>, vector<1x4x4xbf16>
    %30 = vector.shape_cast %29 : vector<1x4x4xbf16> to vector<4x4xbf16>
    %cst_24 = arith.constant dense<0.000000e+00> : vector<256x4xf32>
    %31 = tpu.matmul %28, %30, %cst_24 {dimension_numbers = #tpu.dot_dimension_numbers<[1], [0], [0], [1], [0, 0, 1, 1], [], []>} : vector<256x4xbf16>, vector<4x4xbf16>, vector<256x4xf32> -> vector<256x4xf32>
    %32 = arith.addf %26, %31 : vector<256x4xf32>
    %33 = vector.extract_strided_slice %5 {offsets = [8, 7, 0], sizes = [16, 16, 4], strides = [1, 1, 1]} : vector<32x32x16xbf16> to vector<16x16x4xbf16>
    %34 = vector.shape_cast %33 : vector<16x16x4xbf16> to vector<256x4xbf16>
    %c3 = arith.constant 3 : index
    %c0_25 = arith.constant 0 : index
    %c0_26 = arith.constant 0 : index
    %35 = vector.load %arg2[%c3, %c0_25, %c0_26] : memref<36x4x4xbf16, #tpu.memory_space<vmem>>, vector<1x4x4xbf16>
    %36 = vector.shape_cast %35 : vector<1x4x4xbf16> to vector<4x4xbf16>
    %cst_27 = arith.constant dense<0.000000e+00> : vector<256x4xf32>
    %37 = tpu.matmul %34, %36, %cst_27 {dimension_numbers = #tpu.dot_dimension_numbers<[1], [0], [0], [1], [0, 0, 1, 1], [], []>} : vector<256x4xbf16>, vector<4x4xbf16>, vector<256x4xf32> -> vector<256x4xf32>
    %38 = arith.addf %32, %37 : vector<256x4xf32>
    %39 = vector.extract_strided_slice %5 {offsets = [8, 8, 0], sizes = [16, 16, 4], strides = [1, 1, 1]} : vector<32x32x16xbf16> to vector<16x16x4xbf16>
    %40 = vector.shape_cast %39 : vector<16x16x4xbf16> to vector<256x4xbf16>
    %c4 = arith.constant 4 : index
    %c0_28 = arith.constant 0 : index
    %c0_29 = arith.constant 0 : index
    %41 = vector.load %arg2[%c4, %c0_28, %c0_29] : memref<36x4x4xbf16, #tpu.memory_space<vmem>>, vector<1x4x4xbf16>
    %42 = vector.shape_cast %41 : vector<1x4x4xbf16> to vector<4x4xbf16>
    %cst_30 = arith.constant dense<0.000000e+00> : vector<256x4xf32>
    %43 = tpu.matmul %40, %42, %cst_30 {dimension_numbers = #tpu.dot_dimension_numbers<[1], [0], [0], [1], [0, 0, 1, 1], [], []>} : vector<256x4xbf16>, vector<4x4xbf16>, vector<256x4xf32> -> vector<256x4xf32>
    %44 = arith.addf %38, %43 : vector<256x4xf32>
    %45 = vector.extract_strided_slice %5 {offsets = [8, 9, 0], sizes = [16, 16, 4], strides = [1, 1, 1]} : vector<32x32x16xbf16> to vector<16x16x4xbf16>
    %46 = vector.shape_cast %45 : vector<16x16x4xbf16> to vector<256x4xbf16>
    %c5 = arith.constant 5 : index
    %c0_31 = arith.constant 0 : index
    %c0_32 = arith.constant 0 : index
    %47 = vector.load %arg2[%c5, %c0_31, %c0_32] : memref<36x4x4xbf16, #tpu.memory_space<vmem>>, vector<1x4x4xbf16>
    %48 = vector.shape_cast %47 : vector<1x4x4xbf16> to vector<4x4xbf16>
    %cst_33 = arith.constant dense<0.000000e+00> : vector<256x4xf32>
    %49 = tpu.matmul %46, %48, %cst_33 {dimension_numbers = #tpu.dot_dimension_numbers<[1], [0], [0], [1], [0, 0, 1, 1], [], []>} : vector<256x4xbf16>, vector<4x4xbf16>, vector<256x4xf32> -> vector<256x4xf32>
    %50 = arith.addf %44, %49 : vector<256x4xf32>
    %51 = vector.extract_strided_slice %5 {offsets = [9, 7, 0], sizes = [16, 16, 4], strides = [1, 1, 1]} : vector<32x32x16xbf16> to vector<16x16x4xbf16>
    %52 = vector.shape_cast %51 : vector<16x16x4xbf16> to vector<256x4xbf16>
    %c6 = arith.constant 6 : index
    %c0_34 = arith.constant 0 : index
    %c0_35 = arith.constant 0 : index
    %53 = vector.load %arg2[%c6, %c0_34, %c0_35] : memref<36x4x4xbf16, #tpu.memory_space<vmem>>, vector<1x4x4xbf16>
    %54 = vector.shape_cast %53 : vector<1x4x4xbf16> to vector<4x4xbf16>
    %cst_36 = arith.constant dense<0.000000e+00> : vector<256x4xf32>
    %55 = tpu.matmul %52, %54, %cst_36 {dimension_numbers = #tpu.dot_dimension_numbers<[1], [0], [0], [1], [0, 0, 1, 1], [], []>} : vector<256x4xbf16>, vector<4x4xbf16>, vector<256x4xf32> -> vector<256x4xf32>
    %56 = arith.addf %50, %55 : vector<256x4xf32>
    %57 = vector.extract_strided_slice %5 {offsets = [9, 8, 0], sizes = [16, 16, 4], strides = [1, 1, 1]} : vector<32x32x16xbf16> to vector<16x16x4xbf16>
    %58 = vector.shape_cast %57 : vector<16x16x4xbf16> to vector<256x4xbf16>
    %c7 = arith.constant 7 : index
    %c0_37 = arith.constant 0 : index
    %c0_38 = arith.constant 0 : index
    %59 = vector.load %arg2[%c7, %c0_37, %c0_38] : memref<36x4x4xbf16, #tpu.memory_space<vmem>>, vector<1x4x4xbf16>
    %60 = vector.shape_cast %59 : vector<1x4x4xbf16> to vector<4x4xbf16>
    %cst_39 = arith.constant dense<0.000000e+00> : vector<256x4xf32>
    %61 = tpu.matmul %58, %60, %cst_39 {dimension_numbers = #tpu.dot_dimension_numbers<[1], [0], [0], [1], [0, 0, 1, 1], [], []>} : vector<256x4xbf16>, vector<4x4xbf16>, vector<256x4xf32> -> vector<256x4xf32>
    %62 = arith.addf %56, %61 : vector<256x4xf32>
    %63 = vector.extract_strided_slice %5 {offsets = [9, 9, 0], sizes = [16, 16, 4], strides = [1, 1, 1]} : vector<32x32x16xbf16> to vector<16x16x4xbf16>
    %64 = vector.shape_cast %63 : vector<16x16x4xbf16> to vector<256x4xbf16>
    %c8_40 = arith.constant 8 : index
    %c0_41 = arith.constant 0 : index
    %c0_42 = arith.constant 0 : index
    %65 = vector.load %arg2[%c8_40, %c0_41, %c0_42] : memref<36x4x4xbf16, #tpu.memory_space<vmem>>, vector<1x4x4xbf16>
    %66 = vector.shape_cast %65 : vector<1x4x4xbf16> to vector<4x4xbf16>
    %cst_43 = arith.constant dense<0.000000e+00> : vector<256x4xf32>
    %67 = tpu.matmul %64, %66, %cst_43 {dimension_numbers = #tpu.dot_dimension_numbers<[1], [0], [0], [1], [0, 0, 1, 1], [], []>} : vector<256x4xbf16>, vector<4x4xbf16>, vector<256x4xf32> -> vector<256x4xf32>
    %68 = arith.addf %62, %67 : vector<256x4xf32>
    %69 = vector.extract_strided_slice %14 {offsets = [0, 0], sizes = [1, 4], strides = [1, 1]} : vector<1x16xf32> to vector<1x4xf32>
    %70 = vector.broadcast %69 : vector<1x4xf32> to vector<256x4xf32>
    %71 = arith.mulf %68, %70 : vector<256x4xf32>
    %72 = vector.extract_strided_slice %15 {offsets = [0, 0], sizes = [1, 4], strides = [1, 1]} : vector<1x16xf32> to vector<1x4xf32>
    %73 = vector.broadcast %72 : vector<1x4xf32> to vector<256x4xf32>
    %74 = arith.addf %71, %73 : vector<256x4xf32>
    %cst_44 = arith.constant 0.000000e+00 : f32
    %75 = vector.broadcast %cst_44 : f32 to vector<256x4xf32>
    %76 = arith.maximumf %74, %75 : vector<256x4xf32>
    %77 = arith.addf %76, %10 : vector<256x4xf32>
    %78 = vector.extract_strided_slice %5 {offsets = [6, 6, 4], sizes = [16, 16, 4], strides = [1, 1, 1]} : vector<32x32x16xbf16> to vector<16x16x4xbf16>
    %79 = vector.shape_cast %78 : vector<16x16x4xbf16> to vector<256x4xbf16>
    %c9 = arith.constant 9 : index
    %c0_45 = arith.constant 0 : index
    %c0_46 = arith.constant 0 : index
    %80 = vector.load %arg2[%c9, %c0_45, %c0_46] : memref<36x4x4xbf16, #tpu.memory_space<vmem>>, vector<1x4x4xbf16>
    %81 = vector.shape_cast %80 : vector<1x4x4xbf16> to vector<4x4xbf16>
    %cst_47 = arith.constant dense<0.000000e+00> : vector<256x4xf32>
    %82 = tpu.matmul %79, %81, %cst_47 {dimension_numbers = #tpu.dot_dimension_numbers<[1], [0], [0], [1], [0, 0, 1, 1], [], []>} : vector<256x4xbf16>, vector<4x4xbf16>, vector<256x4xf32> -> vector<256x4xf32>
    %83 = vector.extract_strided_slice %5 {offsets = [6, 8, 4], sizes = [16, 16, 4], strides = [1, 1, 1]} : vector<32x32x16xbf16> to vector<16x16x4xbf16>
    %84 = vector.shape_cast %83 : vector<16x16x4xbf16> to vector<256x4xbf16>
    %c10 = arith.constant 10 : index
    %c0_48 = arith.constant 0 : index
    %c0_49 = arith.constant 0 : index
    %85 = vector.load %arg2[%c10, %c0_48, %c0_49] : memref<36x4x4xbf16, #tpu.memory_space<vmem>>, vector<1x4x4xbf16>
    %86 = vector.shape_cast %85 : vector<1x4x4xbf16> to vector<4x4xbf16>
    %cst_50 = arith.constant dense<0.000000e+00> : vector<256x4xf32>
    %87 = tpu.matmul %84, %86, %cst_50 {dimension_numbers = #tpu.dot_dimension_numbers<[1], [0], [0], [1], [0, 0, 1, 1], [], []>} : vector<256x4xbf16>, vector<4x4xbf16>, vector<256x4xf32> -> vector<256x4xf32>
    %88 = arith.addf %82, %87 : vector<256x4xf32>
    %89 = vector.extract_strided_slice %5 {offsets = [6, 10, 4], sizes = [16, 16, 4], strides = [1, 1, 1]} : vector<32x32x16xbf16> to vector<16x16x4xbf16>
    %90 = vector.shape_cast %89 : vector<16x16x4xbf16> to vector<256x4xbf16>
    %c11 = arith.constant 11 : index
    %c0_51 = arith.constant 0 : index
    %c0_52 = arith.constant 0 : index
    %91 = vector.load %arg2[%c11, %c0_51, %c0_52] : memref<36x4x4xbf16, #tpu.memory_space<vmem>>, vector<1x4x4xbf16>
    %92 = vector.shape_cast %91 : vector<1x4x4xbf16> to vector<4x4xbf16>
    %cst_53 = arith.constant dense<0.000000e+00> : vector<256x4xf32>
    %93 = tpu.matmul %90, %92, %cst_53 {dimension_numbers = #tpu.dot_dimension_numbers<[1], [0], [0], [1], [0, 0, 1, 1], [], []>} : vector<256x4xbf16>, vector<4x4xbf16>, vector<256x4xf32> -> vector<256x4xf32>
    %94 = arith.addf %88, %93 : vector<256x4xf32>
    %95 = vector.extract_strided_slice %5 {offsets = [8, 6, 4], sizes = [16, 16, 4], strides = [1, 1, 1]} : vector<32x32x16xbf16> to vector<16x16x4xbf16>
    %96 = vector.shape_cast %95 : vector<16x16x4xbf16> to vector<256x4xbf16>
    %c12 = arith.constant 12 : index
    %c0_54 = arith.constant 0 : index
    %c0_55 = arith.constant 0 : index
    %97 = vector.load %arg2[%c12, %c0_54, %c0_55] : memref<36x4x4xbf16, #tpu.memory_space<vmem>>, vector<1x4x4xbf16>
    %98 = vector.shape_cast %97 : vector<1x4x4xbf16> to vector<4x4xbf16>
    %cst_56 = arith.constant dense<0.000000e+00> : vector<256x4xf32>
    %99 = tpu.matmul %96, %98, %cst_56 {dimension_numbers = #tpu.dot_dimension_numbers<[1], [0], [0], [1], [0, 0, 1, 1], [], []>} : vector<256x4xbf16>, vector<4x4xbf16>, vector<256x4xf32> -> vector<256x4xf32>
    %100 = arith.addf %94, %99 : vector<256x4xf32>
    %101 = vector.extract_strided_slice %5 {offsets = [8, 8, 4], sizes = [16, 16, 4], strides = [1, 1, 1]} : vector<32x32x16xbf16> to vector<16x16x4xbf16>
    %102 = vector.shape_cast %101 : vector<16x16x4xbf16> to vector<256x4xbf16>
    %c13 = arith.constant 13 : index
    %c0_57 = arith.constant 0 : index
    %c0_58 = arith.constant 0 : index
    %103 = vector.load %arg2[%c13, %c0_57, %c0_58] : memref<36x4x4xbf16, #tpu.memory_space<vmem>>, vector<1x4x4xbf16>
    %104 = vector.shape_cast %103 : vector<1x4x4xbf16> to vector<4x4xbf16>
    %cst_59 = arith.constant dense<0.000000e+00> : vector<256x4xf32>
    %105 = tpu.matmul %102, %104, %cst_59 {dimension_numbers = #tpu.dot_dimension_numbers<[1], [0], [0], [1], [0, 0, 1, 1], [], []>} : vector<256x4xbf16>, vector<4x4xbf16>, vector<256x4xf32> -> vector<256x4xf32>
    %106 = arith.addf %100, %105 : vector<256x4xf32>
    %107 = vector.extract_strided_slice %5 {offsets = [8, 10, 4], sizes = [16, 16, 4], strides = [1, 1, 1]} : vector<32x32x16xbf16> to vector<16x16x4xbf16>
    %108 = vector.shape_cast %107 : vector<16x16x4xbf16> to vector<256x4xbf16>
    %c14 = arith.constant 14 : index
    %c0_60 = arith.constant 0 : index
    %c0_61 = arith.constant 0 : index
    %109 = vector.load %arg2[%c14, %c0_60, %c0_61] : memref<36x4x4xbf16, #tpu.memory_space<vmem>>, vector<1x4x4xbf16>
    %110 = vector.shape_cast %109 : vector<1x4x4xbf16> to vector<4x4xbf16>
    %cst_62 = arith.constant dense<0.000000e+00> : vector<256x4xf32>
    %111 = tpu.matmul %108, %110, %cst_62 {dimension_numbers = #tpu.dot_dimension_numbers<[1], [0], [0], [1], [0, 0, 1, 1], [], []>} : vector<256x4xbf16>, vector<4x4xbf16>, vector<256x4xf32> -> vector<256x4xf32>
    %112 = arith.addf %106, %111 : vector<256x4xf32>
    %113 = vector.extract_strided_slice %5 {offsets = [10, 6, 4], sizes = [16, 16, 4], strides = [1, 1, 1]} : vector<32x32x16xbf16> to vector<16x16x4xbf16>
    %114 = vector.shape_cast %113 : vector<16x16x4xbf16> to vector<256x4xbf16>
    %c15 = arith.constant 15 : index
    %c0_63 = arith.constant 0 : index
    %c0_64 = arith.constant 0 : index
    %115 = vector.load %arg2[%c15, %c0_63, %c0_64] : memref<36x4x4xbf16, #tpu.memory_space<vmem>>, vector<1x4x4xbf16>
    %116 = vector.shape_cast %115 : vector<1x4x4xbf16> to vector<4x4xbf16>
    %cst_65 = arith.constant dense<0.000000e+00> : vector<256x4xf32>
    %117 = tpu.matmul %114, %116, %cst_65 {dimension_numbers = #tpu.dot_dimension_numbers<[1], [0], [0], [1], [0, 0, 1, 1], [], []>} : vector<256x4xbf16>, vector<4x4xbf16>, vector<256x4xf32> -> vector<256x4xf32>
    %118 = arith.addf %112, %117 : vector<256x4xf32>
    %119 = vector.extract_strided_slice %5 {offsets = [10, 8, 4], sizes = [16, 16, 4], strides = [1, 1, 1]} : vector<32x32x16xbf16> to vector<16x16x4xbf16>
    %120 = vector.shape_cast %119 : vector<16x16x4xbf16> to vector<256x4xbf16>
    %c16 = arith.constant 16 : index
    %c0_66 = arith.constant 0 : index
    %c0_67 = arith.constant 0 : index
    %121 = vector.load %arg2[%c16, %c0_66, %c0_67] : memref<36x4x4xbf16, #tpu.memory_space<vmem>>, vector<1x4x4xbf16>
    %122 = vector.shape_cast %121 : vector<1x4x4xbf16> to vector<4x4xbf16>
    %cst_68 = arith.constant dense<0.000000e+00> : vector<256x4xf32>
    %123 = tpu.matmul %120, %122, %cst_68 {dimension_numbers = #tpu.dot_dimension_numbers<[1], [0], [0], [1], [0, 0, 1, 1], [], []>} : vector<256x4xbf16>, vector<4x4xbf16>, vector<256x4xf32> -> vector<256x4xf32>
    %124 = arith.addf %118, %123 : vector<256x4xf32>
    %125 = vector.extract_strided_slice %5 {offsets = [10, 10, 4], sizes = [16, 16, 4], strides = [1, 1, 1]} : vector<32x32x16xbf16> to vector<16x16x4xbf16>
    %126 = vector.shape_cast %125 : vector<16x16x4xbf16> to vector<256x4xbf16>
    %c17 = arith.constant 17 : index
    %c0_69 = arith.constant 0 : index
    %c0_70 = arith.constant 0 : index
    %127 = vector.load %arg2[%c17, %c0_69, %c0_70] : memref<36x4x4xbf16, #tpu.memory_space<vmem>>, vector<1x4x4xbf16>
    %128 = vector.shape_cast %127 : vector<1x4x4xbf16> to vector<4x4xbf16>
    %cst_71 = arith.constant dense<0.000000e+00> : vector<256x4xf32>
    %129 = tpu.matmul %126, %128, %cst_71 {dimension_numbers = #tpu.dot_dimension_numbers<[1], [0], [0], [1], [0, 0, 1, 1], [], []>} : vector<256x4xbf16>, vector<4x4xbf16>, vector<256x4xf32> -> vector<256x4xf32>
    %130 = arith.addf %124, %129 : vector<256x4xf32>
    %131 = vector.extract_strided_slice %14 {offsets = [0, 4], sizes = [1, 4], strides = [1, 1]} : vector<1x16xf32> to vector<1x4xf32>
    %132 = vector.broadcast %131 : vector<1x4xf32> to vector<256x4xf32>
    %133 = arith.mulf %130, %132 : vector<256x4xf32>
    %134 = vector.extract_strided_slice %15 {offsets = [0, 4], sizes = [1, 4], strides = [1, 1]} : vector<1x16xf32> to vector<1x4xf32>
    %135 = vector.broadcast %134 : vector<1x4xf32> to vector<256x4xf32>
    %136 = arith.addf %133, %135 : vector<256x4xf32>
    %cst_72 = arith.constant 0.000000e+00 : f32
    %137 = vector.broadcast %cst_72 : f32 to vector<256x4xf32>
    %138 = arith.maximumf %136, %137 : vector<256x4xf32>
    %139 = arith.addf %138, %10 : vector<256x4xf32>
    %140 = vector.extract_strided_slice %5 {offsets = [4, 4, 8], sizes = [16, 16, 4], strides = [1, 1, 1]} : vector<32x32x16xbf16> to vector<16x16x4xbf16>
    %141 = vector.shape_cast %140 : vector<16x16x4xbf16> to vector<256x4xbf16>
    %c18 = arith.constant 18 : index
    %c0_73 = arith.constant 0 : index
    %c0_74 = arith.constant 0 : index
    %142 = vector.load %arg2[%c18, %c0_73, %c0_74] : memref<36x4x4xbf16, #tpu.memory_space<vmem>>, vector<1x4x4xbf16>
    %143 = vector.shape_cast %142 : vector<1x4x4xbf16> to vector<4x4xbf16>
    %cst_75 = arith.constant dense<0.000000e+00> : vector<256x4xf32>
    %144 = tpu.matmul %141, %143, %cst_75 {dimension_numbers = #tpu.dot_dimension_numbers<[1], [0], [0], [1], [0, 0, 1, 1], [], []>} : vector<256x4xbf16>, vector<4x4xbf16>, vector<256x4xf32> -> vector<256x4xf32>
    %145 = vector.extract_strided_slice %5 {offsets = [4, 8, 8], sizes = [16, 16, 4], strides = [1, 1, 1]} : vector<32x32x16xbf16> to vector<16x16x4xbf16>
    %146 = vector.shape_cast %145 : vector<16x16x4xbf16> to vector<256x4xbf16>
    %c19 = arith.constant 19 : index
    %c0_76 = arith.constant 0 : index
    %c0_77 = arith.constant 0 : index
    %147 = vector.load %arg2[%c19, %c0_76, %c0_77] : memref<36x4x4xbf16, #tpu.memory_space<vmem>>, vector<1x4x4xbf16>
    %148 = vector.shape_cast %147 : vector<1x4x4xbf16> to vector<4x4xbf16>
    %cst_78 = arith.constant dense<0.000000e+00> : vector<256x4xf32>
    %149 = tpu.matmul %146, %148, %cst_78 {dimension_numbers = #tpu.dot_dimension_numbers<[1], [0], [0], [1], [0, 0, 1, 1], [], []>} : vector<256x4xbf16>, vector<4x4xbf16>, vector<256x4xf32> -> vector<256x4xf32>
    %150 = arith.addf %144, %149 : vector<256x4xf32>
    %151 = vector.extract_strided_slice %5 {offsets = [4, 12, 8], sizes = [16, 16, 4], strides = [1, 1, 1]} : vector<32x32x16xbf16> to vector<16x16x4xbf16>
    %152 = vector.shape_cast %151 : vector<16x16x4xbf16> to vector<256x4xbf16>
    %c20 = arith.constant 20 : index
    %c0_79 = arith.constant 0 : index
    %c0_80 = arith.constant 0 : index
    %153 = vector.load %arg2[%c20, %c0_79, %c0_80] : memref<36x4x4xbf16, #tpu.memory_space<vmem>>, vector<1x4x4xbf16>
    %154 = vector.shape_cast %153 : vector<1x4x4xbf16> to vector<4x4xbf16>
    %cst_81 = arith.constant dense<0.000000e+00> : vector<256x4xf32>
    %155 = tpu.matmul %152, %154, %cst_81 {dimension_numbers = #tpu.dot_dimension_numbers<[1], [0], [0], [1], [0, 0, 1, 1], [], []>} : vector<256x4xbf16>, vector<4x4xbf16>, vector<256x4xf32> -> vector<256x4xf32>
    %156 = arith.addf %150, %155 : vector<256x4xf32>
    %157 = vector.extract_strided_slice %5 {offsets = [8, 4, 8], sizes = [16, 16, 4], strides = [1, 1, 1]} : vector<32x32x16xbf16> to vector<16x16x4xbf16>
    %158 = vector.shape_cast %157 : vector<16x16x4xbf16> to vector<256x4xbf16>
    %c21 = arith.constant 21 : index
    %c0_82 = arith.constant 0 : index
    %c0_83 = arith.constant 0 : index
    %159 = vector.load %arg2[%c21, %c0_82, %c0_83] : memref<36x4x4xbf16, #tpu.memory_space<vmem>>, vector<1x4x4xbf16>
    %160 = vector.shape_cast %159 : vector<1x4x4xbf16> to vector<4x4xbf16>
    %cst_84 = arith.constant dense<0.000000e+00> : vector<256x4xf32>
    %161 = tpu.matmul %158, %160, %cst_84 {dimension_numbers = #tpu.dot_dimension_numbers<[1], [0], [0], [1], [0, 0, 1, 1], [], []>} : vector<256x4xbf16>, vector<4x4xbf16>, vector<256x4xf32> -> vector<256x4xf32>
    %162 = arith.addf %156, %161 : vector<256x4xf32>
    %163 = vector.extract_strided_slice %5 {offsets = [8, 8, 8], sizes = [16, 16, 4], strides = [1, 1, 1]} : vector<32x32x16xbf16> to vector<16x16x4xbf16>
    %164 = vector.shape_cast %163 : vector<16x16x4xbf16> to vector<256x4xbf16>
    %c22 = arith.constant 22 : index
    %c0_85 = arith.constant 0 : index
    %c0_86 = arith.constant 0 : index
    %165 = vector.load %arg2[%c22, %c0_85, %c0_86] : memref<36x4x4xbf16, #tpu.memory_space<vmem>>, vector<1x4x4xbf16>
    %166 = vector.shape_cast %165 : vector<1x4x4xbf16> to vector<4x4xbf16>
    %cst_87 = arith.constant dense<0.000000e+00> : vector<256x4xf32>
    %167 = tpu.matmul %164, %166, %cst_87 {dimension_numbers = #tpu.dot_dimension_numbers<[1], [0], [0], [1], [0, 0, 1, 1], [], []>} : vector<256x4xbf16>, vector<4x4xbf16>, vector<256x4xf32> -> vector<256x4xf32>
    %168 = arith.addf %162, %167 : vector<256x4xf32>
    %169 = vector.extract_strided_slice %5 {offsets = [8, 12, 8], sizes = [16, 16, 4], strides = [1, 1, 1]} : vector<32x32x16xbf16> to vector<16x16x4xbf16>
    %170 = vector.shape_cast %169 : vector<16x16x4xbf16> to vector<256x4xbf16>
    %c23 = arith.constant 23 : index
    %c0_88 = arith.constant 0 : index
    %c0_89 = arith.constant 0 : index
    %171 = vector.load %arg2[%c23, %c0_88, %c0_89] : memref<36x4x4xbf16, #tpu.memory_space<vmem>>, vector<1x4x4xbf16>
    %172 = vector.shape_cast %171 : vector<1x4x4xbf16> to vector<4x4xbf16>
    %cst_90 = arith.constant dense<0.000000e+00> : vector<256x4xf32>
    %173 = tpu.matmul %170, %172, %cst_90 {dimension_numbers = #tpu.dot_dimension_numbers<[1], [0], [0], [1], [0, 0, 1, 1], [], []>} : vector<256x4xbf16>, vector<4x4xbf16>, vector<256x4xf32> -> vector<256x4xf32>
    %174 = arith.addf %168, %173 : vector<256x4xf32>
    %175 = vector.extract_strided_slice %5 {offsets = [12, 4, 8], sizes = [16, 16, 4], strides = [1, 1, 1]} : vector<32x32x16xbf16> to vector<16x16x4xbf16>
    %176 = vector.shape_cast %175 : vector<16x16x4xbf16> to vector<256x4xbf16>
    %c24 = arith.constant 24 : index
    %c0_91 = arith.constant 0 : index
    %c0_92 = arith.constant 0 : index
    %177 = vector.load %arg2[%c24, %c0_91, %c0_92] : memref<36x4x4xbf16, #tpu.memory_space<vmem>>, vector<1x4x4xbf16>
    %178 = vector.shape_cast %177 : vector<1x4x4xbf16> to vector<4x4xbf16>
    %cst_93 = arith.constant dense<0.000000e+00> : vector<256x4xf32>
    %179 = tpu.matmul %176, %178, %cst_93 {dimension_numbers = #tpu.dot_dimension_numbers<[1], [0], [0], [1], [0, 0, 1, 1], [], []>} : vector<256x4xbf16>, vector<4x4xbf16>, vector<256x4xf32> -> vector<256x4xf32>
    %180 = arith.addf %174, %179 : vector<256x4xf32>
    %181 = vector.extract_strided_slice %5 {offsets = [12, 8, 8], sizes = [16, 16, 4], strides = [1, 1, 1]} : vector<32x32x16xbf16> to vector<16x16x4xbf16>
    %182 = vector.shape_cast %181 : vector<16x16x4xbf16> to vector<256x4xbf16>
    %c25 = arith.constant 25 : index
    %c0_94 = arith.constant 0 : index
    %c0_95 = arith.constant 0 : index
    %183 = vector.load %arg2[%c25, %c0_94, %c0_95] : memref<36x4x4xbf16, #tpu.memory_space<vmem>>, vector<1x4x4xbf16>
    %184 = vector.shape_cast %183 : vector<1x4x4xbf16> to vector<4x4xbf16>
    %cst_96 = arith.constant dense<0.000000e+00> : vector<256x4xf32>
    %185 = tpu.matmul %182, %184, %cst_96 {dimension_numbers = #tpu.dot_dimension_numbers<[1], [0], [0], [1], [0, 0, 1, 1], [], []>} : vector<256x4xbf16>, vector<4x4xbf16>, vector<256x4xf32> -> vector<256x4xf32>
    %186 = arith.addf %180, %185 : vector<256x4xf32>
    %187 = vector.extract_strided_slice %5 {offsets = [12, 12, 8], sizes = [16, 16, 4], strides = [1, 1, 1]} : vector<32x32x16xbf16> to vector<16x16x4xbf16>
    %188 = vector.shape_cast %187 : vector<16x16x4xbf16> to vector<256x4xbf16>
    %c26 = arith.constant 26 : index
    %c0_97 = arith.constant 0 : index
    %c0_98 = arith.constant 0 : index
    %189 = vector.load %arg2[%c26, %c0_97, %c0_98] : memref<36x4x4xbf16, #tpu.memory_space<vmem>>, vector<1x4x4xbf16>
    %190 = vector.shape_cast %189 : vector<1x4x4xbf16> to vector<4x4xbf16>
    %cst_99 = arith.constant dense<0.000000e+00> : vector<256x4xf32>
    %191 = tpu.matmul %188, %190, %cst_99 {dimension_numbers = #tpu.dot_dimension_numbers<[1], [0], [0], [1], [0, 0, 1, 1], [], []>} : vector<256x4xbf16>, vector<4x4xbf16>, vector<256x4xf32> -> vector<256x4xf32>
    %192 = arith.addf %186, %191 : vector<256x4xf32>
    %193 = vector.extract_strided_slice %14 {offsets = [0, 8], sizes = [1, 4], strides = [1, 1]} : vector<1x16xf32> to vector<1x4xf32>
    %194 = vector.broadcast %193 : vector<1x4xf32> to vector<256x4xf32>
    %195 = arith.mulf %192, %194 : vector<256x4xf32>
    %196 = vector.extract_strided_slice %15 {offsets = [0, 8], sizes = [1, 4], strides = [1, 1]} : vector<1x16xf32> to vector<1x4xf32>
    %197 = vector.broadcast %196 : vector<1x4xf32> to vector<256x4xf32>
    %198 = arith.addf %195, %197 : vector<256x4xf32>
    %cst_100 = arith.constant 0.000000e+00 : f32
    %199 = vector.broadcast %cst_100 : f32 to vector<256x4xf32>
    %200 = arith.maximumf %198, %199 : vector<256x4xf32>
    %201 = arith.addf %200, %13 : vector<256x4xf32>
    %202 = vector.extract_strided_slice %5 {offsets = [0, 0, 12], sizes = [16, 16, 4], strides = [1, 1, 1]} : vector<32x32x16xbf16> to vector<16x16x4xbf16>
    %203 = vector.shape_cast %202 : vector<16x16x4xbf16> to vector<256x4xbf16>
    %c27 = arith.constant 27 : index
    %c0_101 = arith.constant 0 : index
    %c0_102 = arith.constant 0 : index
    %204 = vector.load %arg2[%c27, %c0_101, %c0_102] : memref<36x4x4xbf16, #tpu.memory_space<vmem>>, vector<1x4x4xbf16>
    %205 = vector.shape_cast %204 : vector<1x4x4xbf16> to vector<4x4xbf16>
    %cst_103 = arith.constant dense<0.000000e+00> : vector<256x4xf32>
    %206 = tpu.matmul %203, %205, %cst_103 {dimension_numbers = #tpu.dot_dimension_numbers<[1], [0], [0], [1], [0, 0, 1, 1], [], []>} : vector<256x4xbf16>, vector<4x4xbf16>, vector<256x4xf32> -> vector<256x4xf32>
    %207 = vector.extract_strided_slice %5 {offsets = [0, 8, 12], sizes = [16, 16, 4], strides = [1, 1, 1]} : vector<32x32x16xbf16> to vector<16x16x4xbf16>
    %208 = vector.shape_cast %207 : vector<16x16x4xbf16> to vector<256x4xbf16>
    %c28 = arith.constant 28 : index
    %c0_104 = arith.constant 0 : index
    %c0_105 = arith.constant 0 : index
    %209 = vector.load %arg2[%c28, %c0_104, %c0_105] : memref<36x4x4xbf16, #tpu.memory_space<vmem>>, vector<1x4x4xbf16>
    %210 = vector.shape_cast %209 : vector<1x4x4xbf16> to vector<4x4xbf16>
    %cst_106 = arith.constant dense<0.000000e+00> : vector<256x4xf32>
    %211 = tpu.matmul %208, %210, %cst_106 {dimension_numbers = #tpu.dot_dimension_numbers<[1], [0], [0], [1], [0, 0, 1, 1], [], []>} : vector<256x4xbf16>, vector<4x4xbf16>, vector<256x4xf32> -> vector<256x4xf32>
    %212 = arith.addf %206, %211 : vector<256x4xf32>
    %213 = vector.extract_strided_slice %5 {offsets = [0, 16, 12], sizes = [16, 16, 4], strides = [1, 1, 1]} : vector<32x32x16xbf16> to vector<16x16x4xbf16>
    %214 = vector.shape_cast %213 : vector<16x16x4xbf16> to vector<256x4xbf16>
    %c29 = arith.constant 29 : index
    %c0_107 = arith.constant 0 : index
    %c0_108 = arith.constant 0 : index
    %215 = vector.load %arg2[%c29, %c0_107, %c0_108] : memref<36x4x4xbf16, #tpu.memory_space<vmem>>, vector<1x4x4xbf16>
    %216 = vector.shape_cast %215 : vector<1x4x4xbf16> to vector<4x4xbf16>
    %cst_109 = arith.constant dense<0.000000e+00> : vector<256x4xf32>
    %217 = tpu.matmul %214, %216, %cst_109 {dimension_numbers = #tpu.dot_dimension_numbers<[1], [0], [0], [1], [0, 0, 1, 1], [], []>} : vector<256x4xbf16>, vector<4x4xbf16>, vector<256x4xf32> -> vector<256x4xf32>
    %218 = arith.addf %212, %217 : vector<256x4xf32>
    %219 = vector.extract_strided_slice %5 {offsets = [8, 0, 12], sizes = [16, 16, 4], strides = [1, 1, 1]} : vector<32x32x16xbf16> to vector<16x16x4xbf16>
    %220 = vector.shape_cast %219 : vector<16x16x4xbf16> to vector<256x4xbf16>
    %c30 = arith.constant 30 : index
    %c0_110 = arith.constant 0 : index
    %c0_111 = arith.constant 0 : index
    %221 = vector.load %arg2[%c30, %c0_110, %c0_111] : memref<36x4x4xbf16, #tpu.memory_space<vmem>>, vector<1x4x4xbf16>
    %222 = vector.shape_cast %221 : vector<1x4x4xbf16> to vector<4x4xbf16>
    %cst_112 = arith.constant dense<0.000000e+00> : vector<256x4xf32>
    %223 = tpu.matmul %220, %222, %cst_112 {dimension_numbers = #tpu.dot_dimension_numbers<[1], [0], [0], [1], [0, 0, 1, 1], [], []>} : vector<256x4xbf16>, vector<4x4xbf16>, vector<256x4xf32> -> vector<256x4xf32>
    %224 = arith.addf %218, %223 : vector<256x4xf32>
    %225 = vector.extract_strided_slice %5 {offsets = [8, 8, 12], sizes = [16, 16, 4], strides = [1, 1, 1]} : vector<32x32x16xbf16> to vector<16x16x4xbf16>
    %226 = vector.shape_cast %225 : vector<16x16x4xbf16> to vector<256x4xbf16>
    %c31 = arith.constant 31 : index
    %c0_113 = arith.constant 0 : index
    %c0_114 = arith.constant 0 : index
    %227 = vector.load %arg2[%c31, %c0_113, %c0_114] : memref<36x4x4xbf16, #tpu.memory_space<vmem>>, vector<1x4x4xbf16>
    %228 = vector.shape_cast %227 : vector<1x4x4xbf16> to vector<4x4xbf16>
    %cst_115 = arith.constant dense<0.000000e+00> : vector<256x4xf32>
    %229 = tpu.matmul %226, %228, %cst_115 {dimension_numbers = #tpu.dot_dimension_numbers<[1], [0], [0], [1], [0, 0, 1, 1], [], []>} : vector<256x4xbf16>, vector<4x4xbf16>, vector<256x4xf32> -> vector<256x4xf32>
    %230 = arith.addf %224, %229 : vector<256x4xf32>
    %231 = vector.extract_strided_slice %5 {offsets = [8, 16, 12], sizes = [16, 16, 4], strides = [1, 1, 1]} : vector<32x32x16xbf16> to vector<16x16x4xbf16>
    %232 = vector.shape_cast %231 : vector<16x16x4xbf16> to vector<256x4xbf16>
    %c32 = arith.constant 32 : index
    %c0_116 = arith.constant 0 : index
    %c0_117 = arith.constant 0 : index
    %233 = vector.load %arg2[%c32, %c0_116, %c0_117] : memref<36x4x4xbf16, #tpu.memory_space<vmem>>, vector<1x4x4xbf16>
    %234 = vector.shape_cast %233 : vector<1x4x4xbf16> to vector<4x4xbf16>
    %cst_118 = arith.constant dense<0.000000e+00> : vector<256x4xf32>
    %235 = tpu.matmul %232, %234, %cst_118 {dimension_numbers = #tpu.dot_dimension_numbers<[1], [0], [0], [1], [0, 0, 1, 1], [], []>} : vector<256x4xbf16>, vector<4x4xbf16>, vector<256x4xf32> -> vector<256x4xf32>
    %236 = arith.addf %230, %235 : vector<256x4xf32>
    %237 = vector.extract_strided_slice %5 {offsets = [16, 0, 12], sizes = [16, 16, 4], strides = [1, 1, 1]} : vector<32x32x16xbf16> to vector<16x16x4xbf16>
    %238 = vector.shape_cast %237 : vector<16x16x4xbf16> to vector<256x4xbf16>
    %c33 = arith.constant 33 : index
    %c0_119 = arith.constant 0 : index
    %c0_120 = arith.constant 0 : index
    %239 = vector.load %arg2[%c33, %c0_119, %c0_120] : memref<36x4x4xbf16, #tpu.memory_space<vmem>>, vector<1x4x4xbf16>
    %240 = vector.shape_cast %239 : vector<1x4x4xbf16> to vector<4x4xbf16>
    %cst_121 = arith.constant dense<0.000000e+00> : vector<256x4xf32>
    %241 = tpu.matmul %238, %240, %cst_121 {dimension_numbers = #tpu.dot_dimension_numbers<[1], [0], [0], [1], [0, 0, 1, 1], [], []>} : vector<256x4xbf16>, vector<4x4xbf16>, vector<256x4xf32> -> vector<256x4xf32>
    %242 = arith.addf %236, %241 : vector<256x4xf32>
    %243 = vector.extract_strided_slice %5 {offsets = [16, 8, 12], sizes = [16, 16, 4], strides = [1, 1, 1]} : vector<32x32x16xbf16> to vector<16x16x4xbf16>
    %244 = vector.shape_cast %243 : vector<16x16x4xbf16> to vector<256x4xbf16>
    %c34 = arith.constant 34 : index
    %c0_122 = arith.constant 0 : index
    %c0_123 = arith.constant 0 : index
    %245 = vector.load %arg2[%c34, %c0_122, %c0_123] : memref<36x4x4xbf16, #tpu.memory_space<vmem>>, vector<1x4x4xbf16>
    %246 = vector.shape_cast %245 : vector<1x4x4xbf16> to vector<4x4xbf16>
    %cst_124 = arith.constant dense<0.000000e+00> : vector<256x4xf32>
    %247 = tpu.matmul %244, %246, %cst_124 {dimension_numbers = #tpu.dot_dimension_numbers<[1], [0], [0], [1], [0, 0, 1, 1], [], []>} : vector<256x4xbf16>, vector<4x4xbf16>, vector<256x4xf32> -> vector<256x4xf32>
    %248 = arith.addf %242, %247 : vector<256x4xf32>
    %249 = vector.extract_strided_slice %5 {offsets = [16, 16, 12], sizes = [16, 16, 4], strides = [1, 1, 1]} : vector<32x32x16xbf16> to vector<16x16x4xbf16>
    %250 = vector.shape_cast %249 : vector<16x16x4xbf16> to vector<256x4xbf16>
    %c35 = arith.constant 35 : index
    %c0_125 = arith.constant 0 : index
    %c0_126 = arith.constant 0 : index
    %251 = vector.load %arg2[%c35, %c0_125, %c0_126] : memref<36x4x4xbf16, #tpu.memory_space<vmem>>, vector<1x4x4xbf16>
    %252 = vector.shape_cast %251 : vector<1x4x4xbf16> to vector<4x4xbf16>
    %cst_127 = arith.constant dense<0.000000e+00> : vector<256x4xf32>
    %253 = tpu.matmul %250, %252, %cst_127 {dimension_numbers = #tpu.dot_dimension_numbers<[1], [0], [0], [1], [0, 0, 1, 1], [], []>} : vector<256x4xbf16>, vector<4x4xbf16>, vector<256x4xf32> -> vector<256x4xf32>
    %254 = arith.addf %248, %253 : vector<256x4xf32>
    %255 = vector.extract_strided_slice %14 {offsets = [0, 12], sizes = [1, 4], strides = [1, 1]} : vector<1x16xf32> to vector<1x4xf32>
    %256 = vector.broadcast %255 : vector<1x4xf32> to vector<256x4xf32>
    %257 = arith.mulf %254, %256 : vector<256x4xf32>
    %258 = vector.extract_strided_slice %15 {offsets = [0, 12], sizes = [1, 4], strides = [1, 1]} : vector<1x16xf32> to vector<1x4xf32>
    %259 = vector.broadcast %258 : vector<1x4xf32> to vector<256x4xf32>
    %260 = arith.addf %257, %259 : vector<256x4xf32>
    %cst_128 = arith.constant 0.000000e+00 : f32
    %261 = vector.broadcast %cst_128 : f32 to vector<256x4xf32>
    %262 = arith.maximumf %260, %261 : vector<256x4xf32>
    %263 = arith.addf %262, %13 : vector<256x4xf32>
    %264 = tpu.concatenate %77, %139, %201, %263 in 1 : vector<256x4xf32>, vector<256x4xf32>, vector<256x4xf32>, vector<256x4xf32> -> vector<256x16xf32>
    %265 = arith.truncf %264 : vector<256x16xf32> to vector<256x16xbf16>
    %c0_129 = arith.constant 0 : index
    %c0_130 = arith.constant 0 : index
    %c0_131 = arith.constant 0 : index
    %266 = vector.load %arg5[%c0_129, %c0_130, %c0_131] : memref<1x256x16xbf16, #tpu.memory_space<vmem>>, vector<1x256x16xbf16>
    %267 = vector.shape_cast %266 : vector<1x256x16xbf16> to vector<256x16xbf16>
    %268 = vector.shape_cast %265 : vector<256x16xbf16> to vector<1x256x16xbf16>
    tpu.vector_store %arg5[%c0_129, %c0_130, %c0_131], %268 {strides = array<i32>} : memref<1x256x16xbf16, #tpu.memory_space<vmem>>, vector<1x256x16xbf16>,
    return
  }
  func.func @transform_0(%arg0: i32) -> (i32, i32, i32, i32) {
    %c0_i32 = arith.constant 0 : i32
    %c0_i32_0 = arith.constant 0 : i32
    %c0_i32_1 = arith.constant 0 : i32
    %c0_i32_2 = arith.constant 0 : i32
    return %arg0, %c0_i32, %c0_i32_0, %c0_i32_1 : i32, i32, i32, i32
  }
  func.func @transform_1(%arg0: i32) -> (i32, i32, i32) {
    %c0_i32 = arith.constant 0 : i32
    %c0_i32_0 = arith.constant 0 : i32
    %c0_i32_1 = arith.constant 0 : i32
    %c0_i32_2 = arith.constant 0 : i32
    return %c0_i32, %c0_i32_0, %c0_i32_1 : i32, i32, i32
  }
  func.func @transform_2(%arg0: i32) -> (i32, i32) {
    %c0_i32 = arith.constant 0 : i32
    %c0_i32_0 = arith.constant 0 : i32
    %c0_i32_1 = arith.constant 0 : i32
    return %c0_i32, %c0_i32_0 : i32, i32
  }
  func.func @transform_3(%arg0: i32) -> (i32, i32) {
    %c0_i32 = arith.constant 0 : i32
    %c0_i32_0 = arith.constant 0 : i32
    %c0_i32_1 = arith.constant 0 : i32
    return %c0_i32, %c0_i32_0 : i32, i32
  }
  func.func @transform_4(%arg0: i32) -> (i32, i32, i32) {
    %c0_i32 = arith.constant 0 : i32
    %c0_i32_0 = arith.constant 0 : i32
    %c0_i32_1 = arith.constant 0 : i32
    return %arg0, %c0_i32, %c0_i32_0 : i32, i32, i32
  }
}

</mosaic_0001>

<bundles_post_ra>
// kernel: paspp_forward.3
= control target key start
LH: loop header
LB: loop body
LE: loop exit
PB: predicated region body
PF: predicated region fallthrough
CT: control target
= control target key end

     0   :  { %s1077_s15 = smov 0   ;;  %s1278_s0 = inlined_call_operand.vmem [shape: bf16[512,4], index: 0, kind: input, shape index: {}]   ;;  %s1279_s1 = inlined_call_operand.vmem [shape: bf16[4,16], index: 1, kind: input, shape index: {}]   ;;  %s1280_s2 = inlined_call_operand.vmem [shape: f32[1,16], index: 2, kind: input, shape index: {}]   ;;  %s1281_s3 = inlined_call_operand.vmem [shape: f32[1,16], index: 3, kind: input, shape index: {}]   ;;  %s1282_s4 = inlined_call_operand.vmem [shape: bf16[512,16], index: 4, kind: output, shape index: {}]  }
   0x1 LB: > { %s856_s16 = sadd.s32 4294967295, %s1050_s15   ;;  %p860_p0 = scmp.ge.s32.totalorder %s1050_s15, 1  ;;  %s1050_s15 = sphi %s1077_s15, %s14_s15  }
   0x2   : > { %p163_p1 = scmp.lt.s32.totalorder %s1050_s15, 3 }
   0x4   : > { %p164_p2 = pnand %p860_p0, %p163_p1 }
   0x5   : > { %v234_v0 = vld [vmem:[%s1279_s1] sm:$0x3] (!%p164_p2)  ;;  %vm364_vm0 = vcmask (!%p164_p2), 1041408   ;;  %s861_s19 = sshll.u32 (!%p164_p2), %s856_s16, 5  ;;  %vm315_vm1 = vcmask (!%p164_p2), 31744   ;;  %vm767_vm2 = vcmask (!%p164_p2), 125952  }
   0x6   : > { %167 = sbr.rel (%p164_p2) target bundleno = 269 (0x10d), region = 36  ;;  %1018 = vmatprep.subr.msk.bf16.mxu0 (!%p164_p2), %vm364_vm0, %v234_v0  ;;  %1019 = vmatprep.subr.msk.bf16.mxu1 (!%p164_p2), %vm364_vm0, %v234_v0  ;;  %v366_v1 = vsel (!%p164_p2), %vm364_vm0, %v234_v0, 0  ;;  %p190_p3 = scmp.lt.s32.totalorder (!%p164_p2), %s861_s19, 63  ;;  %v1133_v18 = vld [vmem:[%s1280_s2] ss:$0 sm:$0xff] (!%p164_p2) }
   0x7   : > { %983 = vmatpush3.bf16.msra.mxu0 (!%p164_p2), %v366_v1  ;;  %1017 = vmatpush3.bf16.msra.mxu1 (!%p164_p2), %v366_v1  ;;  %v1138_v20 = vld [vmem:[%s1281_s3] ss:$0 sm:$0xff] (!%p164_p2) }
   0xd   : > { %s1284_s19 = smov (!%p190_p3, %s861_s19), 63 }
   0xe   : > { %s862_s20 = sshll.u32 %s1284_s19, 2 }
   0xf   : > { %s1096_s23 = scalar_lea.vmem %s1278_s0, %s862_s20  ;;  %s1158_s30 = scalar_lea.vmem %s1282_s4, %s862_s20 }
  0x10   : > { %v1028_v2 = vld [vmem:[%s1096_s23] sm:$0xff]   ;;  %v1030_v4 = vld [vmem:[%s1096_s23 + $0x8] sm:$0xff]   ;;  %v1032_v6 = vld [vmem:[%s1096_s23 + $0x10] sm:$0xff]  }
  0x11   : > { %v1029_v3 = vld [vmem:[%s1096_s23 + $0x40] sm:$0xff]   ;;  %984 = vmatprep.mubr.msk.bf16.mxu0 %vm315_vm1, %v1028_v2  ;;  %v1031_v5 = vld [vmem:[%s1096_s23 + $0x48] sm:$0xff]   ;;  %v1033_v7 = vld [vmem:[%s1096_s23 + $0x50] sm:$0xff]  }
  0x12   : > { %1000 = vmatprep.mubr.msk.bf16.mxu1 %vm315_vm1, %v1029_v3  ;;  %985 = vmatmul.mubr.msk.bf16.vlgmr.msra.gmra.mrb[0].mxu0 %vm315_vm1, %v1030_v4  ;;  %v1034_v8 = vld [vmem:[%s1096_s23 + $0x18] sm:$0xff]   ;;  %v1036_v10 = vld [vmem:[%s1096_s23 + $0x20] sm:$0xff]   ;;  %v1038_v12 = vld [vmem:[%s1096_s23 + $0x28] sm:$0xff]  }
  0x13   : > { %1001 = vmatmul.mubr.msk.bf16.vlgmr.msra.gmra.mrb[0].mxu1 %vm315_vm1, %v1031_v5  ;;  %988 = vmatprep.mubr.msk.bf16.mxu0 %vm315_vm1, %v1032_v6  ;;  %v1035_v9 = vld [vmem:[%s1096_s23 + $0x58] sm:$0xff]   ;;  %v1037_v11 = vld [vmem:[%s1096_s23 + $0x60] sm:$0xff]   ;;  %v1039_v13 = vld [vmem:[%s1096_s23 + $0x68] sm:$0xff]  }
  0x14   : > { %1004 = vmatprep.mubr.msk.bf16.mxu1 %vm315_vm1, %v1033_v7  ;;  %v1040_v14 = vld [vmem:[%s1096_s23 + $0x30] sm:$0xff]   ;;  %v1042_v16 = vld [vmem:[%s1096_s23 + $0x38] sm:$0xff]  }
  0x15   : > { %v1041_v15 = vld [vmem:[%s1096_s23 + $0x70] sm:$0xff]   ;;  %v1043_v17 = vld [vmem:[%s1096_s23 + $0x78] sm:$0xff]  }
  0x1a   : > { %989 = vmatmul.mubr.msk.bf16.gmra.mrb[4].mxu0 %vm315_vm1, %v1034_v8 }
  0x1b   : > { %1005 = vmatmul.mubr.msk.bf16.gmra.mrb[4].mxu1 %vm315_vm1, %v1035_v9  ;;  %992 = vmatprep.mubr.msk.bf16.mxu0 %vm315_vm1, %v1036_v10 }
  0x1c   : > { %1008 = vmatprep.mubr.msk.bf16.mxu1 %vm315_vm1, %v1037_v11 }
  0x22   : > { %993 = vmatmul.mubr.msk.bf16.gmra.mrb[8].mxu0 %vm315_vm1, %v1038_v12 }
  0x23   : > { %1009 = vmatmul.mubr.msk.bf16.gmra.mrb[8].mxu1 %vm315_vm1, %v1039_v13  ;;  %996 = vmatprep.mubr.msk.bf16.mxu0 %vm315_vm1, %v1040_v14 }
  0x24   : > { %1012 = vmatprep.mubr.msk.bf16.mxu1 %vm315_vm1, %v1041_v15 }
  0x2a   : > { %997 = vmatmul.mubr.msk.bf16.gmra.mrb[12].mxu0 %vm315_vm1, %v1042_v16 }
  0x2b   : > { %1013 = vmatmul.mubr.msk.bf16.gmra.mrb[12].mxu1 %vm315_vm1, %v1043_v17 }
  0xe5   : > { %v986_v19 = vpop.f32.mrb[0].mxu0 }
  0xe6   : > { %v538_v21 = vmul.f32 %v986_v19, %v1133_v18  ;;  %v1002_v22 = vpop.f32.mrb[0].mxu1  ;;  %v402_v23 = vpop.f32.mrb[1].mxu0 }
  0xe7   : > { %v554_v24 = vmul.f32 %v1002_v22, %v1133_v18  ;;  %v536_v25 = vmul.f32 %v1133_v18, %v402_v23  ;;  %v466_v26 = vpop.f32.mrb[1].mxu1  ;;  %v987_v27 = vpop.f32.mrb[2].mxu0 }
  0xe8   : > { %v577_v28 = vadd.f32 %v1138_v20, %v538_v21  ;;  %v552_v29 = vmul.f32 %v1133_v18, %v466_v26  ;;  %v539_v30 = vmul.f32 %v987_v27, %v1133_v18  ;;  %v1003_v31 = vpop.f32.mrb[2].mxu1  ;;  %v405_v32 = vpop.f32.mrb[3].mxu0 }
  0xe9   : > { %v593_v33 = vadd.f32 %v1138_v20, %v554_v24  ;;  %v575_v34 = vadd.f32 %v1138_v20, %v536_v25  ;;  %v555_v35 = vmul.f32 %v1003_v31, %v1133_v18  ;;  %v537_v36 = vmul.f32 %v1133_v18, %v405_v32  ;;  %v469_v37 = vpop.f32.mrb[3].mxu1 }
  0xea   : > { %v609_v38 = vmax.f32 %v577_v28, 0.0  ;;  %v591_v39 = vadd.f32 %v1138_v20, %v552_v29  ;;  %v578_v40 = vadd.f32 %v1138_v20, %v539_v30  ;;  %v553_v41 = vmul.f32 %v1133_v18, %v469_v37 }
  0xeb   : > { %v625_v42 = vmax.f32 %v593_v33, 0.0  ;;  %v607_v43 = vmax.f32 %v575_v34, 0.0  ;;  %v594_v44 = vadd.f32 %v1138_v20, %v555_v35  ;;  %v576_v45 = vadd.f32 %v1138_v20, %v537_v36 }
  0xec   : > { %v935_v46 = vpack.c.bf16 %v609_v38, %v609_v38  ;;  %v623_v47 = vmax.f32 %v591_v39, 0.0  ;;  %v610_v48 = vmax.f32 %v578_v40, 0.0  ;;  %v592_v49 = vadd.f32 %v1138_v20, %v553_v41 }
  0xed   : > { %v951_v50 = vpack.c.bf16 %v625_v42, %v625_v42  ;;  %v933_v51 = vpack.c.bf16 %v607_v43, %v607_v43  ;;  %v626_v52 = vmax.f32 %v594_v44, 0.0  ;;  %v608_v53 = vmax.f32 %v576_v45, 0.0  ;;  %v990_v54 = vpop.f32.mrb[4].mxu0 }
  0xee   : > { %770 = vst.msk [vmem:[%s1158_s30 + $0x8] sm:$0xf] %vm767_vm2, %v935_v46  ;;  %v949_v55 = vpack.c.bf16 %v623_v47, %v623_v47  ;;  %v936_v56 = vpack.c.bf16 %v610_v48, %v610_v48  ;;  %v624_v57 = vmax.f32 %v592_v49, 0.0  ;;  %v542_v58 = vmul.f32 %v990_v54, %v1133_v18  ;;  %v1006_v59 = vpop.f32.mrb[4].mxu1  ;;  %v418_v60 = vpop.f32.mrb[5].mxu0 }
  0xef   : > { %786 = vst.msk [vmem:[%s1158_s30 + $0x48] sm:$0xf] %vm767_vm2, %v951_v50  ;;  %768 = vst.msk [vmem:[%s1158_s30] sm:$0xf] %vm767_vm2, %v933_v51  ;;  %v952_v61 = vpack.c.bf16 %v626_v52, %v626_v52  ;;  %v934_v62 = vpack.c.bf16 %v608_v53, %v608_v53  ;;  %v558_v63 = vmul.f32 %v1006_v59, %v1133_v18  ;;  %v482_v1 = vpop.f32.mrb[5].mxu1  ;;  %v991_v2 = vpop.f32.mrb[6].mxu0 }
  0xf0   : > { %v540_v0 = vmul.f32 %v1133_v18, %v418_v60  ;;  %784 = vst.msk [vmem:[%s1158_s30 + $0x40] sm:$0xf] %vm767_vm2, %v949_v55  ;;  %771 = vst.msk [vmem:[%s1158_s30 + $0xc] sm:$0xf] %vm767_vm2, %v936_v56  ;;  %v950_v3 = vpack.c.bf16 %v624_v57, %v624_v57  ;;  %v581_v4 = vadd.f32 %v1138_v20, %v542_v58  ;;  %v1007_v7 = vpop.f32.mrb[6].mxu1  ;;  %v421_v8 = vpop.f32.mrb[7].mxu0 }
  0xf1   : > { %v556_v5 = vmul.f32 %v1133_v18, %v482_v1  ;;  %v543_v6 = vmul.f32 %v991_v2, %v1133_v18  ;;  %787 = vst.msk [vmem:[%s1158_s30 + $0x4c] sm:$0xf] %vm767_vm2, %v952_v61  ;;  %769 = vst.msk [vmem:[%s1158_s30 + $0x4] sm:$0xf] %vm767_vm2, %v934_v62  ;;  %v597_v9 = vadd.f32 %v1138_v20, %v558_v63  ;;  %v485_v13 = vpop.f32.mrb[7].mxu1 }
  0xf2   : > { %v579_v10 = vadd.f32 %v1138_v20, %v540_v0  ;;  %v559_v11 = vmul.f32 %v1007_v7, %v1133_v18  ;;  %v541_v12 = vmul.f32 %v1133_v18, %v421_v8  ;;  %785 = vst.msk [vmem:[%s1158_s30 + $0x44] sm:$0xf] %vm767_vm2, %v950_v3  ;;  %v613_v14 = vmax.f32 %v581_v4, 0.0 }
  0xf3   : > { %v595_v15 = vadd.f32 %v1138_v20, %v556_v5  ;;  %v582_v16 = vadd.f32 %v1138_v20, %v543_v6  ;;  %v557_v17 = vmul.f32 %v1133_v18, %v485_v13  ;;  %v629_v19 = vmax.f32 %v597_v9, 0.0 }
  0xf4   : > { %v611_v21 = vmax.f32 %v579_v10, 0.0  ;;  %v598_v22 = vadd.f32 %v1138_v20, %v559_v11  ;;  %v580_v23 = vadd.f32 %v1138_v20, %v541_v12  ;;  %v939_v24 = vpack.c.bf16 %v613_v14, %v613_v14 }
  0xf5   : > { %v627_v25 = vmax.f32 %v595_v15, 0.0  ;;  %v614_v26 = vmax.f32 %v582_v16, 0.0  ;;  %v596_v27 = vadd.f32 %v1138_v20, %v557_v17  ;;  %v955_v28 = vpack.c.bf16 %v629_v19, %v629_v19  ;;  %v994_v32 = vpop.f32.mrb[8].mxu0 }
  0xf6   : > { %v937_v29 = vpack.c.bf16 %v611_v21, %v611_v21  ;;  %v630_v30 = vmax.f32 %v598_v22, 0.0  ;;  %v612_v31 = vmax.f32 %v580_v23, 0.0  ;;  %774 = vst.msk [vmem:[%s1158_s30 + $0x18] sm:$0xf] %vm767_vm2, %v939_v24  ;;  %v546_v36 = vmul.f32 %v994_v32, %v1133_v18  ;;  %v1010_v37 = vpop.f32.mrb[8].mxu1  ;;  %v434_v38 = vpop.f32.mrb[9].mxu0 }
  0xf7   : > { %v953_v33 = vpack.c.bf16 %v627_v25, %v627_v25  ;;  %v940_v34 = vpack.c.bf16 %v614_v26, %v614_v26  ;;  %v628_v35 = vmax.f32 %v596_v27, 0.0  ;;  %790 = vst.msk [vmem:[%s1158_s30 + $0x58] sm:$0xf] %vm767_vm2, %v955_v28  ;;  %v562_v41 = vmul.f32 %v1010_v37, %v1133_v18  ;;  %v498_v43 = vpop.f32.mrb[9].mxu1  ;;  %v995_v44 = vpop.f32.mrb[10].mxu0 }
  0xf8   : > { %772 = vst.msk [vmem:[%s1158_s30 + $0x10] sm:$0xf] %vm767_vm2, %v937_v29  ;;  %v956_v39 = vpack.c.bf16 %v630_v30, %v630_v30  ;;  %v938_v40 = vpack.c.bf16 %v612_v31, %v612_v31  ;;  %v544_v42 = vmul.f32 %v1133_v18, %v434_v38  ;;  %v585_v46 = vadd.f32 %v1138_v20, %v546_v36  ;;  %v1011_v49 = vpop.f32.mrb[10].mxu1  ;;  %v437_v50 = vpop.f32.mrb[11].mxu0 }
  0xf9   : > { %788 = vst.msk [vmem:[%s1158_s30 + $0x50] sm:$0xf] %vm767_vm2, %v953_v33  ;;  %775 = vst.msk [vmem:[%s1158_s30 + $0x1c] sm:$0xf] %vm767_vm2, %v940_v34  ;;  %v954_v45 = vpack.c.bf16 %v628_v35, %v628_v35  ;;  %v560_v47 = vmul.f32 %v1133_v18, %v498_v43  ;;  %v547_v48 = vmul.f32 %v995_v44, %v1133_v18  ;;  %v501_v55 = vpop.f32.mrb[11].mxu1 }
  0xfa   : > { %791 = vst.msk [vmem:[%s1158_s30 + $0x5c] sm:$0xf] %vm767_vm2, %v956_v39  ;;  %773 = vst.msk [vmem:[%s1158_s30 + $0x14] sm:$0xf] %vm767_vm2, %v938_v40  ;;  %v601_v51 = vadd.f32 %v1138_v20, %v562_v41  ;;  %v583_v52 = vadd.f32 %v1138_v20, %v544_v42  ;;  %v563_v53 = vmul.f32 %v1011_v49, %v1133_v18  ;;  %v617_v56 = vmax.f32 %v585_v46, 0.0 }
  0xfb   : > { %v545_v54 = vmul.f32 %v1133_v18, %v437_v50  ;;  %789 = vst.msk [vmem:[%s1158_s30 + $0x54] sm:$0xf] %vm767_vm2, %v954_v45  ;;  %v599_v57 = vadd.f32 %v1138_v20, %v560_v47  ;;  %v586_v58 = vadd.f32 %v1138_v20, %v547_v48  ;;  %v561_v59 = vmul.f32 %v1133_v18, %v501_v55 }
  0xfc   : > { %v633_v60 = vmax.f32 %v601_v51, 0.0  ;;  %v615_v61 = vmax.f32 %v583_v52, 0.0  ;;  %v602_v62 = vadd.f32 %v1138_v20, %v563_v53  ;;  %v943_v0 = vpack.c.bf16 %v617_v56, %v617_v56 }
  0xfd   : > { %v584_v63 = vadd.f32 %v1138_v20, %v545_v54  ;;  %v631_v1 = vmax.f32 %v599_v57, 0.0  ;;  %v618_v2 = vmax.f32 %v586_v58, 0.0  ;;  %v600_v3 = vadd.f32 %v1138_v20, %v561_v59  ;;  %v998_v8 = vpop.f32.mrb[12].mxu0 }
  0xfe   : > { %v959_v4 = vpack.c.bf16 %v633_v60, %v633_v60  ;;  %v941_v5 = vpack.c.bf16 %v615_v61, %v615_v61  ;;  %v634_v6 = vmax.f32 %v602_v62, 0.0  ;;  %778 = vst.msk [vmem:[%s1158_s30 + $0x28] sm:$0xf] %vm767_vm2, %v943_v0  ;;  %v550_v12 = vmul.f32 %v998_v8, %v1133_v18  ;;  %v1014_v13 = vpop.f32.mrb[12].mxu1  ;;  %v450_v14 = vpop.f32.mrb[13].mxu0 }
  0xff   : > { %v616_v7 = vmax.f32 %v584_v63, 0.0  ;;  %v957_v9 = vpack.c.bf16 %v631_v1, %v631_v1  ;;  %v944_v10 = vpack.c.bf16 %v618_v2, %v618_v2  ;;  %v632_v11 = vmax.f32 %v600_v3, 0.0  ;;  %v514_v21 = vpop.f32.mrb[13].mxu1  ;;  %v999_v22 = vpop.f32.mrb[14].mxu0 }
 0x100   : > { %794 = vst.msk [vmem:[%s1158_s30 + $0x68] sm:$0xf] %vm767_vm2, %v959_v4  ;;  %776 = vst.msk [vmem:[%s1158_s30 + $0x20] sm:$0xf] %vm767_vm2, %v941_v5  ;;  %v960_v15 = vpack.c.bf16 %v634_v6, %v634_v6  ;;  %v566_v17 = vmul.f32 %v1014_v13, %v1133_v18  ;;  %v548_v19 = vmul.f32 %v1133_v18, %v450_v14  ;;  %v1015_v27 = vpop.f32.mrb[14].mxu1  ;;  %v453_v28 = vpop.f32.mrb[15].mxu0 }
 0x101   : > { %v942_v16 = vpack.c.bf16 %v616_v7, %v616_v7  ;;  %792 = vst.msk [vmem:[%s1158_s30 + $0x60] sm:$0xf] %vm767_vm2, %v957_v9  ;;  %779 = vst.msk [vmem:[%s1158_s30 + $0x2c] sm:$0xf] %vm767_vm2, %v944_v10  ;;  %v958_v23 = vpack.c.bf16 %v632_v11, %v632_v11  ;;  %v589_v24 = vadd.f32 %v1138_v20, %v550_v12  ;;  %v517_v33 = vpop.f32.mrb[15].mxu1 }
 0x102   : > { %v564_v25 = vmul.f32 %v1133_v18, %v514_v21  ;;  %v551_v26 = vmul.f32 %v999_v22, %v1133_v18  ;;  %795 = vst.msk [vmem:[%s1158_s30 + $0x6c] sm:$0xf] %vm767_vm2, %v960_v15  ;;  %v605_v29 = vadd.f32 %v1138_v20, %v566_v17  ;;  %v587_v30 = vadd.f32 %v1138_v20, %v548_v19 }
 0x103   : > { %777 = vst.msk [vmem:[%s1158_s30 + $0x24] sm:$0xf] %vm767_vm2, %v942_v16  ;;  %v567_v31 = vmul.f32 %v1015_v27, %v1133_v18  ;;  %v549_v32 = vmul.f32 %v1133_v18, %v453_v28  ;;  %793 = vst.msk [vmem:[%s1158_s30 + $0x64] sm:$0xf] %vm767_vm2, %v958_v23  ;;  %v621_v34 = vmax.f32 %v589_v24, 0.0  ;;  %v565_v37 = vmul.f32 %v1133_v18, %v517_v33 }
 0x104   : > { %v603_v35 = vadd.f32 %v1138_v20, %v564_v25  ;;  %v590_v36 = vadd.f32 %v1138_v20, %v551_v26  ;;  %v637_v38 = vmax.f32 %v605_v29, 0.0  ;;  %v619_v39 = vmax.f32 %v587_v30, 0.0 }
 0x105   : > { %v606_v40 = vadd.f32 %v1138_v20, %v567_v31  ;;  %v588_v41 = vadd.f32 %v1138_v20, %v549_v32  ;;  %v947_v42 = vpack.c.bf16 %v621_v34, %v621_v34  ;;  %v604_v45 = vadd.f32 %v1138_v20, %v565_v37 }
 0x106   : > { %v635_v43 = vmax.f32 %v603_v35, 0.0  ;;  %v622_v44 = vmax.f32 %v590_v36, 0.0  ;;  %v963_v46 = vpack.c.bf16 %v637_v38, %v637_v38  ;;  %v945_v47 = vpack.c.bf16 %v619_v39, %v619_v39 }
 0x107   : > { %v638_v18 = vmax.f32 %v606_v40, 0.0  ;;  %v620_v48 = vmax.f32 %v588_v41, 0.0  ;;  %782 = vst.msk [vmem:[%s1158_s30 + $0x38] sm:$0xf] %vm767_vm2, %v947_v42  ;;  %v636_v51 = vmax.f32 %v604_v45, 0.0 }
 0x108   : > { %v961_v49 = vpack.c.bf16 %v635_v43, %v635_v43  ;;  %v948_v50 = vpack.c.bf16 %v622_v44, %v622_v44  ;;  %798 = vst.msk [vmem:[%s1158_s30 + $0x78] sm:$0xf] %vm767_vm2, %v963_v46  ;;  %780 = vst.msk [vmem:[%s1158_s30 + $0x30] sm:$0xf] %vm767_vm2, %v945_v47 }
 0x109   : > { %v964_v52 = vpack.c.bf16 %v638_v18, %v638_v18  ;;  %v946_v53 = vpack.c.bf16 %v620_v48, %v620_v48  ;;  %v962_v20 = vpack.c.bf16 %v636_v51, %v636_v51 }
 0x10a   : > { %796 = vst.msk [vmem:[%s1158_s30 + $0x70] sm:$0xf] %vm767_vm2, %v961_v49  ;;  %783 = vst.msk [vmem:[%s1158_s30 + $0x3c] sm:$0xf] %vm767_vm2, %v948_v50 }
 0x10b   : > { %799 = vst.msk [vmem:[%s1158_s30 + $0x7c] sm:$0xf] %vm767_vm2, %v964_v52  ;;  %781 = vst.msk [vmem:[%s1158_s30 + $0x34] sm:$0xf] %vm767_vm2, %v946_v53 }
 0x10c   : > { %797 = vst.msk [vmem:[%s1158_s30 + $0x74] sm:$0xf] %vm767_vm2, %v962_v20 }
 0x10d PF: > { %s14_s15 = sadd.s32 1, %s1050_s15  }
 0x10e   : > { %p11_p4 = scmp.ge.s32.totalorder %s14_s15, 4  }
 0x110   :  { %13 = sbr.rel (!%p11_p4) target bundleno = 1 (0x1), region = 66 }

// kernel: paspp_forward.5
= control target key start
LH: loop header
LB: loop body
LE: loop exit
PB: predicated region body
PF: predicated region fallthrough
CT: control target
= control target key end

     0   :  { %s1395_s24 = smov 0   ;;  %s1686_s0 = inlined_call_operand.vmem [shape: bf16[512,16], index: 0, kind: input, shape index: {}]   ;;  %s1687_s1 = inlined_call_operand.vmem [shape: bf16[16,16], index: 1, kind: input, shape index: {}]   ;;  %s1688_s2 = inlined_call_operand.vmem [shape: f32[1,16], index: 2, kind: input, shape index: {}]   ;;  %s1689_s3 = inlined_call_operand.vmem [shape: f32[1,16], index: 3, kind: input, shape index: {}]   ;;  %s1690_s4 = inlined_call_operand.vmem [shape: bf16[16,16], index: 4, kind: input, shape index: {}]   ;;  %s1691_s5 = inlined_call_operand.vmem [shape: f32[1,16], index: 5, kind: input, shape index: {}]   ;;  %s1692_s6 = inlined_call_operand.vmem [shape: f32[1,16], index: 6, kind: input, shape index: {}]   ;;  %s1693_s7 = inlined_call_operand.vmem [shape: f32[512,16], index: 7, kind: output, shape index: {}]  }
   0x1 LB: > { %s1154_s25 = sadd.s32 4294967295, %s1353_s24   ;;  %p1158_p0 = scmp.ge.s32.totalorder %s1353_s24, 1  ;;  %s1353_s24 = sphi %s1395_s24, %s17_s24  }
   0x2   : > { %p238_p1 = scmp.lt.s32.totalorder %s1353_s24, 3 }
   0x4   : > { %p239_p2 = pnand %p1158_p0, %p238_p1 }
   0x5   : > { %v1329_v0 = vld [vmem:[%s1687_s1] sm:$0xff] (!%p239_p2)   ;;  %s1159_s28 = sshll.u32 (!%p239_p2), %s1154_s25, 5  ;;  %vm403_vm0 = vcmask (!%p239_p2), 130048  }
   0x6   : > { %242 = sbr.rel (%p239_p2) target bundleno = 520 (0x208), region = 48  ;;  %p271_p3 = scmp.lt.s32.totalorder (!%p239_p2), %s1159_s28, 63  ;;  %1253 = vmatprep.subr.bf16.mxu0 (!%p239_p2), %v1329_v0  ;;  %v1346_v17 = vld [vmem:[%s1690_s4] sm:$0xff] (!%p239_p2)  }
   0x7   : > { %1254 = vmatpush3.bf16.msra.mxu0 (!%p239_p2), %v1329_v0  ;;  %1287 = vmatprep.subr.bf16.mxu1 (!%p239_p2), %v1346_v17  ;;  %v1452_v18 = vld [vmem:[%s1688_s2] ss:$0 sm:$0xff] (!%p239_p2) }
   0x8   : > { %1288 = vmatpush3.bf16.msra.mxu1 (!%p239_p2), %v1346_v17  ;;  %v1457_v20 = vld [vmem:[%s1689_s3] ss:$0 sm:$0xff] (!%p239_p2) }
   0xd   : > { %s1695_s28 = smov (!%p271_p3, %s1159_s28), 63 }
   0xe   : > { %s1160_s29 = sshll.u32 %s1695_s28, 2  ;;  %s1162_s20 = sshll.u32 %s1695_s28, 3 }
   0xf   : > { %s1412_s9 = scalar_lea.vmem %s1686_s0, %s1160_s29  ;;  %s1557_s23 = scalar_lea.vmem %s1693_s7, %s1162_s20 }
  0x10   : > { %v1330_v1 = vld [vmem:[%s1412_s9] sm:$0xff]   ;;  %v1331_v2 = vld [vmem:[%s1412_s9 + $0x8] sm:$0xff]   ;;  %v1332_v3 = vld [vmem:[%s1412_s9 + $0x10] sm:$0xff]  }
  0x11   : > { %1255 = vmatprep.mubr.msk.bf16.mxu0 %vm403_vm0, %v1330_v1  ;;  %v1333_v4 = vld [vmem:[%s1412_s9 + $0x18] sm:$0xff]   ;;  %v1334_v5 = vld [vmem:[%s1412_s9 + $0x20] sm:$0xff]   ;;  %v1335_v6 = vld [vmem:[%s1412_s9 + $0x28] sm:$0xff]  }
  0x12   : > { %1256 = vmatmul.mubr.msk.bf16.vlgmr.msra.gmra.mrb[0].mxu0 %vm403_vm0, %v1331_v2  ;;  %v1336_v7 = vld [vmem:[%s1412_s9 + $0x30] sm:$0xff]   ;;  %v1337_v8 = vld [vmem:[%s1412_s9 + $0x38] sm:$0xff]   ;;  %v1338_v9 = vld [vmem:[%s1412_s9 + $0x40] sm:$0xff]  }
  0x13   : > { %1259 = vmatprep.mubr.msk.bf16.mxu0 %vm403_vm0, %v1332_v3  ;;  %v1339_v10 = vld [vmem:[%s1412_s9 + $0x48] sm:$0xff]   ;;  %v1340_v11 = vld [vmem:[%s1412_s9 + $0x50] sm:$0xff]   ;;  %v1341_v12 = vld [vmem:[%s1412_s9 + $0x58] sm:$0xff]  }
  0x14   : > { %v1342_v13 = vld [vmem:[%s1412_s9 + $0x60] sm:$0xff]   ;;  %v1343_v14 = vld [vmem:[%s1412_s9 + $0x68] sm:$0xff]   ;;  %v1344_v15 = vld [vmem:[%s1412_s9 + $0x70] sm:$0xff]  }
  0x15   : > { %v1345_v16 = vld [vmem:[%s1412_s9 + $0x78] sm:$0xff]  }
  0x1a   : > { %1260 = vmatmul.mubr.msk.bf16.gmra.mrb[4].mxu0 %vm403_vm0, %v1333_v4 }
  0x1b   : > { %1263 = vmatprep.mubr.msk.bf16.mxu0 %vm403_vm0, %v1334_v5 }
  0x22   : > { %1264 = vmatmul.mubr.msk.bf16.gmra.mrb[8].mxu0 %vm403_vm0, %v1335_v6 }
  0x23   : > { %1267 = vmatprep.mubr.msk.bf16.mxu0 %vm403_vm0, %v1336_v7 }
  0x2a   : > { %1268 = vmatmul.mubr.msk.bf16.gmra.mrb[12].mxu0 %vm403_vm0, %v1337_v8 }
  0x2b   : > { %1271 = vmatprep.mubr.msk.bf16.mxu0 %vm403_vm0, %v1338_v9 }
  0x32   : > { %1272 = vmatmul.mubr.msk.bf16.gmra.mrb[16].mxu0 %vm403_vm0, %v1339_v10 }
  0x33   : > { %1275 = vmatprep.mubr.msk.bf16.mxu0 %vm403_vm0, %v1340_v11 }
  0x3a   : > { %1276 = vmatmul.mubr.msk.bf16.gmra.mrb[20].mxu0 %vm403_vm0, %v1341_v12 }
  0x3b   : > { %1279 = vmatprep.mubr.msk.bf16.mxu0 %vm403_vm0, %v1342_v13 }
  0x42   : > { %1280 = vmatmul.mubr.msk.bf16.gmra.mrb[24].mxu0 %vm403_vm0, %v1343_v14 }
  0x43   : > { %1283 = vmatprep.mubr.msk.bf16.mxu0 %vm403_vm0, %v1344_v15 }
  0x4a   : > { %1284 = vmatmul.mubr.msk.bf16.gmra.mrb[28].mxu0 %vm403_vm0, %v1345_v16 }
  0xe5   : > { %v1257_v19 = vpop.f32.mrb[0].mxu0 }
  0xe6   : > { %v622_v21 = vmul.f32 %v1257_v19, %v1452_v18  ;;  %v486_v22 = vpop.f32.mrb[1].mxu0 }
  0xe7   : > { %v620_v23 = vmul.f32 %v1452_v18, %v486_v22  ;;  %v1258_v24 = vpop.f32.mrb[2].mxu0 }
  0xe8   : > { %v661_v25 = vadd.f32 %v1457_v20, %v622_v21  ;;  %v623_v26 = vmul.f32 %v1258_v24, %v1452_v18  ;;  %v489_v27 = vpop.f32.mrb[3].mxu0 }
  0xe9   : > { %v659_v28 = vadd.f32 %v1457_v20, %v620_v23  ;;  %v621_v29 = vmul.f32 %v1452_v18, %v489_v27 }
  0xea   : > { %v662_v30 = vadd.f32 %v1457_v20, %v623_v26  ;;  %v693_v32 = vmax.f32 %v661_v25, 0.0 }
  0xeb   : > { %v660_v31 = vadd.f32 %v1457_v20, %v621_v29  ;;  %v691_v34 = vmax.f32 %v659_v28, 0.0 }
  0xec   : > { %v694_v33 = vmax.f32 %v662_v30, 0.0 }
  0xed   : > { %v692_v35 = vmax.f32 %v660_v31, 0.0  ;;  %v1261_v36 = vpop.f32.mrb[4].mxu0 }
  0xee   : > { %v724_v37 = vpack.c.bf16 %v694_v33, %v693_v32  ;;  %v626_v38 = vmul.f32 %v1261_v36, %v1452_v18  ;;  %v502_v39 = vpop.f32.mrb[5].mxu0 }
  0xef   : > { %v624_v40 = vmul.f32 %v1452_v18, %v502_v39  ;;  %v1262_v41 = vpop.f32.mrb[6].mxu0  ;;  %v723_v42 = vpack.c.bf16 %v692_v35, %v691_v34 }
  0xf0   : > { %v665_v43 = vadd.f32 %v1457_v20, %v626_v38  ;;  %v627_v44 = vmul.f32 %v1262_v41, %v1452_v18  ;;  %v505_v45 = vpop.f32.mrb[7].mxu0 }
  0xf1   : > { %v663_v46 = vadd.f32 %v1457_v20, %v624_v40  ;;  %v625_v47 = vmul.f32 %v1452_v18, %v505_v45  ;;  %1289 = vmatprep.mubr.msk.bf16.mxu1 %vm403_vm0, %v723_v42 }
  0xf2   : > { %v666_v48 = vadd.f32 %v1457_v20, %v627_v44  ;;  %1290 = vmatmul.mubr.msk.bf16.vlgmr.msra.gmra.mrb[0].mxu1 %vm403_vm0, %v724_v37  ;;  %v697_v50 = vmax.f32 %v665_v43, 0.0 }
  0xf3   : > { %v664_v49 = vadd.f32 %v1457_v20, %v625_v47  ;;  %v695_v52 = vmax.f32 %v663_v46, 0.0 }
  0xf4   : > { %v698_v51 = vmax.f32 %v666_v48, 0.0 }
  0xf5   : > { %v696_v53 = vmax.f32 %v664_v49, 0.0  ;;  %v1265_v54 = vpop.f32.mrb[8].mxu0 }
  0xf6   : > { %v726_v55 = vpack.c.bf16 %v698_v51, %v697_v50  ;;  %v630_v56 = vmul.f32 %v1265_v54, %v1452_v18  ;;  %v518_v57 = vpop.f32.mrb[9].mxu0 }
  0xf7   : > { %v725_v58 = vpack.c.bf16 %v696_v53, %v695_v52  ;;  %v628_v59 = vmul.f32 %v1452_v18, %v518_v57  ;;  %v1266_v60 = vpop.f32.mrb[10].mxu0 }
  0xf8   : > { %v669_v61 = vadd.f32 %v1457_v20, %v630_v56  ;;  %v631_v62 = vmul.f32 %v1266_v60, %v1452_v18  ;;  %v521_v63 = vpop.f32.mrb[11].mxu0 }
  0xf9   : > { %v667_v0 = vadd.f32 %v1457_v20, %v628_v59  ;;  %v629_v1 = vmul.f32 %v1452_v18, %v521_v63  ;;  %1293 = vmatprep.mubr.msk.bf16.mxu1 %vm403_vm0, %v725_v58 }
  0xfa   : > { %v670_v2 = vadd.f32 %v1457_v20, %v631_v62  ;;  %1294 = vmatmul.mubr.msk.bf16.gmra.mrb[4].mxu1 %vm403_vm0, %v726_v55  ;;  %v701_v4 = vmax.f32 %v669_v61, 0.0 }
  0xfb   : > { %v668_v3 = vadd.f32 %v1457_v20, %v629_v1  ;;  %v699_v6 = vmax.f32 %v667_v0, 0.0 }
  0xfc   : > { %v702_v5 = vmax.f32 %v670_v2, 0.0 }
  0xfd   : > { %v700_v7 = vmax.f32 %v668_v3, 0.0  ;;  %v1269_v8 = vpop.f32.mrb[12].mxu0 }
  0xfe   : > { %v728_v9 = vpack.c.bf16 %v702_v5, %v701_v4  ;;  %v634_v10 = vmul.f32 %v1269_v8, %v1452_v18  ;;  %v534_v11 = vpop.f32.mrb[13].mxu0 }
  0xff   : > { %v727_v12 = vpack.c.bf16 %v700_v7, %v699_v6  ;;  %v632_v13 = vmul.f32 %v1452_v18, %v534_v11  ;;  %v1270_v14 = vpop.f32.mrb[14].mxu0 }
 0x100   : > { %v673_v15 = vadd.f32 %v1457_v20, %v634_v10  ;;  %v635_v16 = vmul.f32 %v1270_v14, %v1452_v18  ;;  %v537_v17 = vpop.f32.mrb[15].mxu0 }
 0x101   : > { %v671_v19 = vadd.f32 %v1457_v20, %v632_v13  ;;  %v633_v21 = vmul.f32 %v1452_v18, %v537_v17  ;;  %1297 = vmatprep.mubr.msk.bf16.mxu1 %vm403_vm0, %v727_v12 }
 0x102   : > { %v674_v22 = vadd.f32 %v1457_v20, %v635_v16  ;;  %1298 = vmatmul.mubr.msk.bf16.gmra.mrb[8].mxu1 %vm403_vm0, %v728_v9  ;;  %v705_v24 = vmax.f32 %v673_v15, 0.0 }
 0x103   : > { %v672_v23 = vadd.f32 %v1457_v20, %v633_v21  ;;  %v703_v26 = vmax.f32 %v671_v19, 0.0 }
 0x104   : > { %v706_v25 = vmax.f32 %v674_v22, 0.0 }
 0x105   : > { %v704_v27 = vmax.f32 %v672_v23, 0.0  ;;  %v1273_v28 = vpop.f32.mrb[16].mxu0 }
 0x106   : > { %v730_v29 = vpack.c.bf16 %v706_v25, %v705_v24  ;;  %v638_v30 = vmul.f32 %v1273_v28, %v1452_v18  ;;  %v550_v31 = vpop.f32.mrb[17].mxu0 }
 0x107   : > { %v729_v32 = vpack.c.bf16 %v704_v27, %v703_v26  ;;  %v636_v33 = vmul.f32 %v1452_v18, %v550_v31  ;;  %v1274_v34 = vpop.f32.mrb[18].mxu0 }
 0x108   : > { %v677_v35 = vadd.f32 %v1457_v20, %v638_v30  ;;  %v639_v36 = vmul.f32 %v1274_v34, %v1452_v18  ;;  %v553_v37 = vpop.f32.mrb[19].mxu0 }
 0x109   : > { %v675_v38 = vadd.f32 %v1457_v20, %v636_v33  ;;  %v637_v39 = vmul.f32 %v1452_v18, %v553_v37  ;;  %1301 = vmatprep.mubr.msk.bf16.mxu1 %vm403_vm0, %v729_v32 }
 0x10a   : > { %v678_v40 = vadd.f32 %v1457_v20, %v639_v36  ;;  %1302 = vmatmul.mubr.msk.bf16.gmra.mrb[12].mxu1 %vm403_vm0, %v730_v29  ;;  %v709_v42 = vmax.f32 %v677_v35, 0.0 }
 0x10b   : > { %v676_v41 = vadd.f32 %v1457_v20, %v637_v39  ;;  %v707_v44 = vmax.f32 %v675_v38, 0.0 }
 0x10c   : > { %v710_v43 = vmax.f32 %v678_v40, 0.0 }
 0x10d   : > { %v708_v45 = vmax.f32 %v676_v41, 0.0  ;;  %v1277_v46 = vpop.f32.mrb[20].mxu0 }
 0x10e   : > { %v732_v47 = vpack.c.bf16 %v710_v43, %v709_v42  ;;  %v642_v48 = vmul.f32 %v1277_v46, %v1452_v18  ;;  %v566_v49 = vpop.f32.mrb[21].mxu0 }
 0x10f   : > { %v731_v50 = vpack.c.bf16 %v708_v45, %v707_v44  ;;  %v640_v51 = vmul.f32 %v1452_v18, %v566_v49  ;;  %v1278_v52 = vpop.f32.mrb[22].mxu0 }
 0x110   : > { %v681_v53 = vadd.f32 %v1457_v20, %v642_v48  ;;  %v643_v54 = vmul.f32 %v1278_v52, %v1452_v18  ;;  %v569_v55 = vpop.f32.mrb[23].mxu0 }
 0x111   : > { %v679_v56 = vadd.f32 %v1457_v20, %v640_v51  ;;  %v641_v57 = vmul.f32 %v1452_v18, %v569_v55  ;;  %1305 = vmatprep.mubr.msk.bf16.mxu1 %vm403_vm0, %v731_v50 }
 0x112   : > { %v682_v58 = vadd.f32 %v1457_v20, %v643_v54  ;;  %1306 = vmatmul.mubr.msk.bf16.gmra.mrb[16].mxu1 %vm403_vm0, %v732_v47  ;;  %v713_v60 = vmax.f32 %v681_v53, 0.0 }
 0x113   : > { %v680_v59 = vadd.f32 %v1457_v20, %v641_v57  ;;  %v711_v62 = vmax.f32 %v679_v56, 0.0 }
 0x114   : > { %v714_v61 = vmax.f32 %v682_v58, 0.0 }
 0x115   : > { %v712_v63 = vmax.f32 %v680_v59, 0.0  ;;  %v1281_v0 = vpop.f32.mrb[24].mxu0 }
 0x116   : > { %v734_v1 = vpack.c.bf16 %v714_v61, %v713_v60  ;;  %v646_v2 = vmul.f32 %v1281_v0, %v1452_v18  ;;  %v582_v3 = vpop.f32.mrb[25].mxu0 }
 0x117   : > { %v733_v4 = vpack.c.bf16 %v712_v63, %v711_v62  ;;  %v644_v5 = vmul.f32 %v1452_v18, %v582_v3  ;;  %v1282_v6 = vpop.f32.mrb[26].mxu0 }
 0x118   : > { %v685_v7 = vadd.f32 %v1457_v20, %v646_v2  ;;  %v647_v8 = vmul.f32 %v1282_v6, %v1452_v18  ;;  %v585_v9 = vpop.f32.mrb[27].mxu0 }
 0x119   : > { %v683_v10 = vadd.f32 %v1457_v20, %v644_v5  ;;  %v645_v11 = vmul.f32 %v1452_v18, %v585_v9  ;;  %1309 = vmatprep.mubr.msk.bf16.mxu1 %vm403_vm0, %v733_v4 }
 0x11a   : > { %v686_v12 = vadd.f32 %v1457_v20, %v647_v8  ;;  %1310 = vmatmul.mubr.msk.bf16.gmra.mrb[20].mxu1 %vm403_vm0, %v734_v1  ;;  %v717_v14 = vmax.f32 %v685_v7, 0.0 }
 0x11b   : > { %v684_v13 = vadd.f32 %v1457_v20, %v645_v11  ;;  %v715_v16 = vmax.f32 %v683_v10, 0.0 }
 0x11c   : > { %v718_v15 = vmax.f32 %v686_v12, 0.0 }
 0x11d   : > { %v716_v17 = vmax.f32 %v684_v13, 0.0  ;;  %v1285_v19 = vpop.f32.mrb[28].mxu0 }
 0x11e   : > { %v736_v21 = vpack.c.bf16 %v718_v15, %v717_v14  ;;  %v650_v22 = vmul.f32 %v1285_v19, %v1452_v18  ;;  %v598_v23 = vpop.f32.mrb[29].mxu0 }
 0x11f   : > { %v735_v24 = vpack.c.bf16 %v716_v17, %v715_v16  ;;  %v648_v25 = vmul.f32 %v1452_v18, %v598_v23  ;;  %v1286_v26 = vpop.f32.mrb[30].mxu0 }
 0x120   : > { %v689_v27 = vadd.f32 %v1457_v20, %v650_v22  ;;  %v651_v28 = vmul.f32 %v1286_v26, %v1452_v18  ;;  %v601_v29 = vpop.f32.mrb[31].mxu0 }
 0x121   : > { %v687_v30 = vadd.f32 %v1457_v20, %v648_v25  ;;  %v649_v31 = vmul.f32 %v1452_v18, %v601_v29  ;;  %1313 = vmatprep.mubr.msk.bf16.mxu1 %vm403_vm0, %v735_v24  ;;  %v1542_v18 = vld [vmem:[%s1691_s5] ss:$0 sm:$0xff] }
 0x122   : > { %v690_v32 = vadd.f32 %v1457_v20, %v651_v28  ;;  %1314 = vmatmul.mubr.msk.bf16.gmra.mrb[24].mxu1 %vm403_vm0, %v736_v21  ;;  %v721_v34 = vmax.f32 %v689_v27, 0.0 }
 0x123   : > { %v688_v33 = vadd.f32 %v1457_v20, %v649_v31  ;;  %v719_v36 = vmax.f32 %v687_v30, 0.0  ;;  %v1547_v20 = vld [vmem:[%s1692_s6] ss:$0 sm:$0xff] }
 0x124   : > { %v722_v35 = vmax.f32 %v690_v32, 0.0 }
 0x125   : > { %v720_v37 = vmax.f32 %v688_v33, 0.0 }
 0x126   : > { %v738_v38 = vpack.c.bf16 %v722_v35, %v721_v34 }
 0x127   : > { %v737_v39 = vpack.c.bf16 %v720_v37, %v719_v36 }
 0x129   : > { %1317 = vmatprep.mubr.msk.bf16.mxu1 %vm403_vm0, %v737_v39 }
 0x12a   : > { %1318 = vmatmul.mubr.msk.bf16.gmra.mrb[28].mxu1 %vm403_vm0, %v738_v38 }
 0x1c5   : > { %v1291_v40 = vpop.f32.mrb[0].mxu1 }
 0x1c6   : > { %v965_v41 = vmul.f32 %v1291_v40, %v1542_v18  ;;  %v829_v42 = vpop.f32.mrb[1].mxu1 }
 0x1c7   : > { %v963_v43 = vmul.f32 %v1542_v18, %v829_v42  ;;  %v1292_v44 = vpop.f32.mrb[2].mxu1 }
 0x1c8   : > { %v1004_v45 = vadd.f32 %v1547_v20, %v965_v41  ;;  %v966_v46 = vmul.f32 %v1292_v44, %v1542_v18  ;;  %v832_v47 = vpop.f32.mrb[3].mxu1 }
 0x1c9   : > { %v1002_v48 = vadd.f32 %v1547_v20, %v963_v43  ;;  %v964_v49 = vmul.f32 %v1542_v18, %v832_v47 }
 0x1ca   : > { %v1036_v50 = vmax.f32 %v1004_v45, 0.0  ;;  %v1005_v51 = vadd.f32 %v1547_v20, %v966_v46 }
 0x1cb   : > { %v1034_v52 = vmax.f32 %v1002_v48, 0.0  ;;  %v1003_v53 = vadd.f32 %v1547_v20, %v964_v49 }
 0x1cc   : > { %1068 = vst.msk [vmem:[%s1557_s23 + $0x10] sm:$0xff] %vm403_vm0, %v1036_v50  ;;  %v1037_v54 = vmax.f32 %v1005_v51, 0.0 }
 0x1cd   : > { %1066 = vst.msk [vmem:[%s1557_s23] sm:$0xff] %vm403_vm0, %v1034_v52  ;;  %v1035_v55 = vmax.f32 %v1003_v53, 0.0  ;;  %v1295_v56 = vpop.f32.mrb[4].mxu1 }
 0x1ce   : > { %1069 = vst.msk [vmem:[%s1557_s23 + $0x18] sm:$0xff] %vm403_vm0, %v1037_v54  ;;  %v969_v57 = vmul.f32 %v1295_v56, %v1542_v18  ;;  %v845_v58 = vpop.f32.mrb[5].mxu1 }
 0x1cf   : > { %1067 = vst.msk [vmem:[%s1557_s23 + $0x8] sm:$0xff] %vm403_vm0, %v1035_v55  ;;  %v967_v59 = vmul.f32 %v1542_v18, %v845_v58  ;;  %v1296_v60 = vpop.f32.mrb[6].mxu1 }
 0x1d0   : > { %v1008_v61 = vadd.f32 %v1547_v20, %v969_v57  ;;  %v970_v62 = vmul.f32 %v1296_v60, %v1542_v18  ;;  %v848_v63 = vpop.f32.mrb[7].mxu1 }
 0x1d1   : > { %v1006_v0 = vadd.f32 %v1547_v20, %v967_v59  ;;  %v968_v1 = vmul.f32 %v1542_v18, %v848_v63 }
 0x1d2   : > { %v1040_v2 = vmax.f32 %v1008_v61, 0.0  ;;  %v1009_v3 = vadd.f32 %v1547_v20, %v970_v62 }
 0x1d3   : > { %v1038_v4 = vmax.f32 %v1006_v0, 0.0  ;;  %v1007_v5 = vadd.f32 %v1547_v20, %v968_v1 }
 0x1d4   : > { %1072 = vst.msk [vmem:[%s1557_s23 + $0x30] sm:$0xff] %vm403_vm0, %v1040_v2  ;;  %v1041_v6 = vmax.f32 %v1009_v3, 0.0 }
 0x1d5   : > { %1070 = vst.msk [vmem:[%s1557_s23 + $0x20] sm:$0xff] %vm403_vm0, %v1038_v4  ;;  %v1039_v7 = vmax.f32 %v1007_v5, 0.0  ;;  %v1299_v8 = vpop.f32.mrb[8].mxu1 }
 0x1d6   : > { %1073 = vst.msk [vmem:[%s1557_s23 + $0x38] sm:$0xff] %vm403_vm0, %v1041_v6  ;;  %v973_v9 = vmul.f32 %v1299_v8, %v1542_v18  ;;  %v861_v10 = vpop.f32.mrb[9].mxu1 }
 0x1d7   : > { %1071 = vst.msk [vmem:[%s1557_s23 + $0x28] sm:$0xff] %vm403_vm0, %v1039_v7  ;;  %v971_v11 = vmul.f32 %v1542_v18, %v861_v10  ;;  %v1300_v12 = vpop.f32.mrb[10].mxu1 }
 0x1d8   : > { %v1012_v13 = vadd.f32 %v1547_v20, %v973_v9  ;;  %v974_v14 = vmul.f32 %v1300_v12, %v1542_v18  ;;  %v864_v15 = vpop.f32.mrb[11].mxu1 }
 0x1d9   : > { %v1010_v16 = vadd.f32 %v1547_v20, %v971_v11  ;;  %v972_v17 = vmul.f32 %v1542_v18, %v864_v15 }
 0x1da   : > { %v1044_v19 = vmax.f32 %v1012_v13, 0.0  ;;  %v1013_v21 = vadd.f32 %v1547_v20, %v974_v14 }
 0x1db   : > { %v1042_v22 = vmax.f32 %v1010_v16, 0.0  ;;  %v1011_v23 = vadd.f32 %v1547_v20, %v972_v17 }
 0x1dc   : > { %1076 = vst.msk [vmem:[%s1557_s23 + $0x50] sm:$0xff] %vm403_vm0, %v1044_v19  ;;  %v1045_v24 = vmax.f32 %v1013_v21, 0.0 }
 0x1dd   : > { %1074 = vst.msk [vmem:[%s1557_s23 + $0x40] sm:$0xff] %vm403_vm0, %v1042_v22  ;;  %v1043_v25 = vmax.f32 %v1011_v23, 0.0  ;;  %v1303_v26 = vpop.f32.mrb[12].mxu1 }
 0x1de   : > { %1077 = vst.msk [vmem:[%s1557_s23 + $0x58] sm:$0xff] %vm403_vm0, %v1045_v24  ;;  %v977_v27 = vmul.f32 %v1303_v26, %v1542_v18  ;;  %v877_v28 = vpop.f32.mrb[13].mxu1 }
 0x1df   : > { %1075 = vst.msk [vmem:[%s1557_s23 + $0x48] sm:$0xff] %vm403_vm0, %v1043_v25  ;;  %v975_v29 = vmul.f32 %v1542_v18, %v877_v28  ;;  %v1304_v30 = vpop.f32.mrb[14].mxu1 }
 0x1e0   : > { %v1016_v31 = vadd.f32 %v1547_v20, %v977_v27  ;;  %v978_v32 = vmul.f32 %v1304_v30, %v1542_v18  ;;  %v880_v33 = vpop.f32.mrb[15].mxu1 }
 0x1e1   : > { %v1014_v34 = vadd.f32 %v1547_v20, %v975_v29  ;;  %v976_v35 = vmul.f32 %v1542_v18, %v880_v33 }
 0x1e2   : > { %v1048_v36 = vmax.f32 %v1016_v31, 0.0  ;;  %v1017_v37 = vadd.f32 %v1547_v20, %v978_v32 }
 0x1e3   : > { %v1046_v38 = vmax.f32 %v1014_v34, 0.0  ;;  %v1015_v39 = vadd.f32 %v1547_v20, %v976_v35 }
 0x1e4   : > { %1080 = vst.msk [vmem:[%s1557_s23 + $0x70] sm:$0xff] %vm403_vm0, %v1048_v36  ;;  %v1049_v40 = vmax.f32 %v1017_v37, 0.0 }
 0x1e5   : > { %1078 = vst.msk [vmem:[%s1557_s23 + $0x60] sm:$0xff] %vm403_vm0, %v1046_v38  ;;  %v1047_v41 = vmax.f32 %v1015_v39, 0.0  ;;  %v1307_v42 = vpop.f32.mrb[16].mxu1 }
 0x1e6   : > { %1081 = vst.msk [vmem:[%s1557_s23 + $0x78] sm:$0xff] %vm403_vm0, %v1049_v40  ;;  %v981_v43 = vmul.f32 %v1307_v42, %v1542_v18  ;;  %v893_v44 = vpop.f32.mrb[17].mxu1 }
 0x1e7   : > { %1079 = vst.msk [vmem:[%s1557_s23 + $0x68] sm:$0xff] %vm403_vm0, %v1047_v41  ;;  %v979_v45 = vmul.f32 %v1542_v18, %v893_v44  ;;  %v1308_v46 = vpop.f32.mrb[18].mxu1 }
 0x1e8   : > { %v1020_v47 = vadd.f32 %v1547_v20, %v981_v43  ;;  %v982_v48 = vmul.f32 %v1308_v46, %v1542_v18  ;;  %v896_v49 = vpop.f32.mrb[19].mxu1 }
 0x1e9   : > { %v1018_v50 = vadd.f32 %v1547_v20, %v979_v45  ;;  %v980_v51 = vmul.f32 %v1542_v18, %v896_v49 }
 0x1ea   : > { %v1052_v52 = vmax.f32 %v1020_v47, 0.0  ;;  %v1021_v53 = vadd.f32 %v1547_v20, %v982_v48 }
 0x1eb   : > { %v1050_v54 = vmax.f32 %v1018_v50, 0.0  ;;  %v1019_v55 = vadd.f32 %v1547_v20, %v980_v51 }
 0x1ec   : > { %1084 = vst.msk [vmem:[%s1557_s23 + $0x90] sm:$0xff] %vm403_vm0, %v1052_v52  ;;  %v1053_v56 = vmax.f32 %v1021_v53, 0.0 }
 0x1ed   : > { %1082 = vst.msk [vmem:[%s1557_s23 + $0x80] sm:$0xff] %vm403_vm0, %v1050_v54  ;;  %v1051_v57 = vmax.f32 %v1019_v55, 0.0  ;;  %v1311_v58 = vpop.f32.mrb[20].mxu1 }
 0x1ee   : > { %1085 = vst.msk [vmem:[%s1557_s23 + $0x98] sm:$0xff] %vm403_vm0, %v1053_v56  ;;  %v985_v59 = vmul.f32 %v1311_v58, %v1542_v18  ;;  %v909_v60 = vpop.f32.mrb[21].mxu1 }
 0x1ef   : > { %1083 = vst.msk [vmem:[%s1557_s23 + $0x88] sm:$0xff] %vm403_vm0, %v1051_v57  ;;  %v983_v61 = vmul.f32 %v1542_v18, %v909_v60  ;;  %v1312_v62 = vpop.f32.mrb[22].mxu1 }
 0x1f0   : > { %v1024_v63 = vadd.f32 %v1547_v20, %v985_v59  ;;  %v986_v0 = vmul.f32 %v1312_v62, %v1542_v18  ;;  %v912_v1 = vpop.f32.mrb[23].mxu1 }
 0x1f1   : > { %v1022_v2 = vadd.f32 %v1547_v20, %v983_v61  ;;  %v984_v3 = vmul.f32 %v1542_v18, %v912_v1 }
 0x1f2   : > { %v1056_v4 = vmax.f32 %v1024_v63, 0.0  ;;  %v1025_v5 = vadd.f32 %v1547_v20, %v986_v0 }
 0x1f3   : > { %v1054_v6 = vmax.f32 %v1022_v2, 0.0  ;;  %v1023_v7 = vadd.f32 %v1547_v20, %v984_v3 }
 0x1f4   : > { %1088 = vst.msk [vmem:[%s1557_s23 + $0xb0] sm:$0xff] %vm403_vm0, %v1056_v4  ;;  %v1057_v8 = vmax.f32 %v1025_v5, 0.0 }
 0x1f5   : > { %1086 = vst.msk [vmem:[%s1557_s23 + $0xa0] sm:$0xff] %vm403_vm0, %v1054_v6  ;;  %v1055_v9 = vmax.f32 %v1023_v7, 0.0  ;;  %v1315_v10 = vpop.f32.mrb[24].mxu1 }
 0x1f6   : > { %1089 = vst.msk [vmem:[%s1557_s23 + $0xb8] sm:$0xff] %vm403_vm0, %v1057_v8  ;;  %v989_v11 = vmul.f32 %v1315_v10, %v1542_v18  ;;  %v925_v12 = vpop.f32.mrb[25].mxu1 }
 0x1f7   : > { %1087 = vst.msk [vmem:[%s1557_s23 + $0xa8] sm:$0xff] %vm403_vm0, %v1055_v9  ;;  %v987_v13 = vmul.f32 %v1542_v18, %v925_v12  ;;  %v1316_v14 = vpop.f32.mrb[26].mxu1 }
 0x1f8   : > { %v1028_v15 = vadd.f32 %v1547_v20, %v989_v11  ;;  %v990_v16 = vmul.f32 %v1316_v14, %v1542_v18  ;;  %v928_v17 = vpop.f32.mrb[27].mxu1 }
 0x1f9   : > { %v1026_v19 = vadd.f32 %v1547_v20, %v987_v13  ;;  %v988_v21 = vmul.f32 %v1542_v18, %v928_v17 }
 0x1fa   : > { %v1060_v22 = vmax.f32 %v1028_v15, 0.0  ;;  %v1029_v23 = vadd.f32 %v1547_v20, %v990_v16 }
 0x1fb   : > { %v1058_v24 = vmax.f32 %v1026_v19, 0.0  ;;  %v1027_v25 = vadd.f32 %v1547_v20, %v988_v21 }
 0x1fc   : > { %1092 = vst.msk [vmem:[%s1557_s23 + $0xd0] sm:$0xff] %vm403_vm0, %v1060_v22  ;;  %v1061_v26 = vmax.f32 %v1029_v23, 0.0 }
 0x1fd   : > { %1090 = vst.msk [vmem:[%s1557_s23 + $0xc0] sm:$0xff] %vm403_vm0, %v1058_v24  ;;  %v1059_v27 = vmax.f32 %v1027_v25, 0.0  ;;  %v1319_v28 = vpop.f32.mrb[28].mxu1 }
 0x1fe   : > { %1093 = vst.msk [vmem:[%s1557_s23 + $0xd8] sm:$0xff] %vm403_vm0, %v1061_v26  ;;  %v993_v29 = vmul.f32 %v1319_v28, %v1542_v18  ;;  %v941_v30 = vpop.f32.mrb[29].mxu1 }
 0x1ff   : > { %1091 = vst.msk [vmem:[%s1557_s23 + $0xc8] sm:$0xff] %vm403_vm0, %v1059_v27  ;;  %v991_v31 = vmul.f32 %v1542_v18, %v941_v30  ;;  %v1320_v32 = vpop.f32.mrb[30].mxu1 }
 0x200   : > { %v1032_v33 = vadd.f32 %v1547_v20, %v993_v29  ;;  %v994_v34 = vmul.f32 %v1320_v32, %v1542_v18  ;;  %v944_v35 = vpop.f32.mrb[31].mxu1 }
 0x201   : > { %v1030_v36 = vadd.f32 %v1547_v20, %v991_v31  ;;  %v992_v37 = vmul.f32 %v1542_v18, %v944_v35 }
 0x202   : > { %v1064_v38 = vmax.f32 %v1032_v33, 0.0  ;;  %v1033_v39 = vadd.f32 %v1547_v20, %v994_v34 }
 0x203   : > { %v1062_v40 = vmax.f32 %v1030_v36, 0.0  ;;  %v1031_v41 = vadd.f32 %v1547_v20, %v992_v37 }
 0x204   : > { %1096 = vst.msk [vmem:[%s1557_s23 + $0xf0] sm:$0xff] %vm403_vm0, %v1064_v38  ;;  %v1065_v42 = vmax.f32 %v1033_v39, 0.0 }
 0x205   : > { %1094 = vst.msk [vmem:[%s1557_s23 + $0xe0] sm:$0xff] %vm403_vm0, %v1062_v40  ;;  %v1063_v43 = vmax.f32 %v1031_v41, 0.0 }
 0x206   : > { %1097 = vst.msk [vmem:[%s1557_s23 + $0xf8] sm:$0xff] %vm403_vm0, %v1065_v42 }
 0x207   : > { %1095 = vst.msk [vmem:[%s1557_s23 + $0xe8] sm:$0xff] %vm403_vm0, %v1063_v43 }
 0x208 PF: > { %s17_s24 = sadd.s32 1, %s1353_s24  }
 0x209   : > { %p14_p4 = scmp.ge.s32.totalorder %s17_s24, 4  }
 0x20b   :  { %16 = sbr.rel (!%p14_p4) target bundleno = 1 (0x1), region = 78 }

// kernel: paspp_forward.4
= control target key start
LH: loop header
LB: loop body
LE: loop exit
PB: predicated region body
PF: predicated region fallthrough
CT: control target
= control target key end

     0   :  { %s15256_s15 = smov 0   ;;  %s20260_s0 = inlined_call_operand.vmem [shape: bf16[2,16,16,16], index: 0, kind: input, shape index: {}]   ;;  %s20261_s1 = inlined_call_operand.vmem [shape: bf16[36,4,4], index: 1, kind: input, shape index: {}]   ;;  %s20262_s2 = inlined_call_operand.vmem [shape: f32[1,16], index: 2, kind: input, shape index: {}]   ;;  %s20263_s3 = inlined_call_operand.vmem [shape: f32[1,16], index: 3, kind: input, shape index: {}]   ;;  %s20264_s4 = inlined_call_operand.vmem [shape: bf16[2,256,16], index: 4, kind: output, shape index: {}]  }
   0x1 LB: > { %s11122_s16 = sadd.s32 4294967295, %s15222_s15   ;;  %p11126_p0 = scmp.ge.s32.totalorder %s15222_s15, 1  ;;  %s15222_s15 = sphi %s15256_s15, %s14_s15  }
   0x2   : > { %p162_p1 = scmp.lt.s32.totalorder %s15222_s15, 3 }
   0x4   : > { %p163_p2 = pnand %p11126_p0, %p162_p1 }
   0x6   : > { %166 = sbr.rel (%p163_p2) target bundleno = 1670 (0x686), region = 36 }
   0xd   : > { %vm231_vm0 = vcmask 130048   ;;  %v15267_v0 = vld [vmem:[%s20261_s1 + $0x2] sm:$0x3]  ;;  %v15224_v1 = vmov 0   ;;  %vm1123_vm1 = vcmask 1041408   ;;  %p188_p3 = scmp.lt.s32.totalorder %s11122_s16, 1 }
   0xe   : > { %244 = vst.msk [vmem:[#allocation2 + $0x60] sm:$0xff] %vm231_vm0, %v15224_v1  ;;  %245 = vst.msk [vmem:[#allocation2 + $0x68] sm:$0xff] %vm231_vm0, %v15224_v1  ;;  %14704 = vmatprep.subr.msk.bf16.mxu0 %vm1123_vm1, %v15267_v0  ;;  %v1125_v2 = vsel %vm1123_vm1, %v15267_v0, 0  ;;  %v15406_v3 = vld [vmem:[%s20261_s1] sm:$0x3]  ;;  %vm425_vm2 = vcmask 130052  }
   0xf   : > { %232 = vst.msk [vmem:[#allocation2] sm:$0xff] %vm231_vm0, %v15224_v1  ;;  %233 = vst.msk [vmem:[#allocation2 + $0x8] sm:$0xff] %vm231_vm0, %v15224_v1  ;;  %12457 = vmatpush3.bf16.msra.mxu0 %v1125_v2  ;;  %s21708_s16 = smov (!%p188_p3, %s11122_s16), 1  ;;  %v11318_v4 = vld [vmem:[%s20261_s1 + $0x14] sm:$0x3]  ;;  %vm427_vm3 = vcmask 125952  }
  0x10   : > { %234 = vst.msk [vmem:[#allocation2 + $0x10] sm:$0xff] %vm231_vm0, %v15224_v1  ;;  %235 = vst.msk [vmem:[#allocation2 + $0x18] sm:$0xff] %vm231_vm0, %v15224_v1  ;;  %v11317_v5 = vld [vmem:[%s20261_s1 + $0x12] sm:$0x3]  ;;  %14705 = vmatprep.subr.msk.bf16.mxu0 %vm1123_vm1, %v15406_v3  ;;  %14713 = vmatprep.subr.msk.bf16.mxu1 %vm1123_vm1, %v11318_v4  ;;  %v3402_v6 = vsel %vm1123_vm1, %v11318_v4, 0  ;;  %s11810_s25 = sshll.u32 %s21708_s16, 7 }
  0x11   : > { %236 = vst.msk [vmem:[#allocation2 + $0x20] sm:$0xff] %vm231_vm0, %v15224_v1  ;;  %237 = vst.msk [vmem:[#allocation2 + $0x28] sm:$0xff] %vm231_vm0, %v15224_v1  ;;  %12763 = vmatpush3.bf16.msra.mxu1 %v3402_v6  ;;  %s15428_s28 = scalar_lea.vmem %s20260_s0, %s11810_s25  ;;  %vm1023_vm4 = vcmask 1043456   ;;  %vm1074_vm5 = vcmask 31744   ;;  %s15225_s29 = smov 124   ;;  %vm3265_vm6 = vcmask 1044480  }
  0x12   : > { %238 = vst.msk [vmem:[#allocation2 + $0x30] sm:$0xff] %vm231_vm0, %v15224_v1  ;;  %239 = vst.msk [vmem:[#allocation2 + $0x38] sm:$0xff] %vm231_vm0, %v15224_v1  ;;  %14714 = vmatprep.subr.msk.bf16.mxu1 %vm1123_vm1, %v11317_v5  ;;  %v199_v7 = vld [vmem:[%s15428_s28] sm:$0xf]  ;;  %v200_v8 = vld [vmem:[%s15428_s28 + $0x4] sm:$0xf]  ;;  %s20055_s26 = scalar_lea.vmem %s20264_s4, %s11810_s25 }
  0x13   : > { %240 = vst.msk [vmem:[#allocation2 + $0x40] sm:$0xff] %vm231_vm0, %v15224_v1  ;;  %241 = vst.msk [vmem:[#allocation2 + $0x48] sm:$0xff] %vm231_vm0, %v15224_v1  ;;  %v201_v9 = vld [vmem:[%s15428_s28 + $0x8] sm:$0xf]  ;;  %v11131_v13 = vcombine.low %v199_v7, %v199_v7  ;;  %v11132_v14 = vcombine.low %v200_v8, %v200_v8  ;;  %v202_v20 = vld [vmem:[%s15428_s28 + $0xc] sm:$0xf] }
  0x14   : > { %242 = vst.msk [vmem:[#allocation2 + $0x50] sm:$0xff] %vm231_vm0, %v15224_v1  ;;  %243 = vst.msk [vmem:[#allocation2 + $0x58] sm:$0xff] %vm231_vm0, %v15224_v1  ;;  %v11133_v15 = vcombine.low %v201_v9, %v201_v9  ;;  %v11134_v22 = vcombine.low %v202_v20, %v202_v20  ;;  %v203_v23 = vld [vmem:[%s15428_s28 + $0x10] sm:$0xf]  ;;  %v204_v24 = vld [vmem:[%s15428_s28 + $0x14] sm:$0xf] }
  0x15   : > { %246 = vst.msk [vmem:[#allocation2 + $0x70] sm:$0xff] %vm231_vm0, %v15224_v1  ;;  %247 = vst.msk [vmem:[#allocation2 + $0x78] sm:$0xff] %vm231_vm0, %v15224_v1  ;;  %v15434_v10 = vld [vmem:[#allocation2 + $0x60] sm:$0xff]  ;;  %v15436_v11 = vld [vmem:[#allocation2 + $0x68] sm:$0xff]  ;;  %v11135_v26 = vcombine.low %v203_v23, %v203_v23  ;;  %v11136_v27 = vcombine.low %v204_v24, %v204_v24  ;;  %vm717_vm7 = vsmask.f32 4352 }
  0x16   : > { %248 = vst.msk [vmem:[#allocation2 + $0x80] sm:$0xff] %vm231_vm0, %v15224_v1  ;;  %249 = vst.msk [vmem:[#allocation2 + $0x88] sm:$0xff] %vm231_vm0, %v15224_v1  ;;  %v3316_v16 = vrot.slane %v15434_v10, 4  ;;  %v3317_v17 = vrot.slane %v15436_v11, 4  ;;  %v205_v28 = vld [vmem:[%s15428_s28 + $0x18] sm:$0xf] }
  0x17   : > { %250 = vst.msk [vmem:[#allocation2 + $0x90] sm:$0xff] %vm231_vm0, %v15224_v1  ;;  %251 = vst.msk [vmem:[#allocation2 + $0x98] sm:$0xff] %vm231_vm0, %v15224_v1  ;;  %v206_v29 = vld [vmem:[%s15428_s28 + $0x1c] sm:$0xf]  ;;  %v207_v30 = vld [vmem:[%s15428_s28 + $0x20] sm:$0xf]  ;;  %v11137_v32 = vcombine.low %v205_v28, %v205_v28 }
  0x18   : > { %252 = vst.msk [vmem:[#allocation2 + $0xa0] sm:$0xff] %vm231_vm0, %v15224_v1  ;;  %253 = vst.msk [vmem:[#allocation2 + $0xa8] sm:$0xff] %vm231_vm0, %v15224_v1  ;;  %v15453_v25 = vsel %vm1023_vm4, %v3316_v16, %v3317_v17  ;;  %v11138_v33 = vcombine.low %v206_v29, %v206_v29  ;;  %v208_v34 = vld [vmem:[%s15428_s28 + $0x24] sm:$0xf]  ;;  %v11139_v35 = vcombine.low %v207_v30, %v207_v30  ;;  %v209_v36 = vld [vmem:[%s15428_s28 + $0x28] sm:$0xf] }
  0x19   : > { %254 = vst.msk [vmem:[#allocation2 + $0xb0] sm:$0xff] %vm231_vm0, %v15224_v1  ;;  %255 = vst.msk [vmem:[#allocation2 + $0xb8] sm:$0xff] %vm231_vm0, %v15224_v1  ;;  %3321 = vrot.lane.b32.xlu0 %v15453_v25, %s15225_s29  ;;  %v210_v37 = vld [vmem:[%s15428_s28 + $0x2c] sm:$0xf]  ;;  %v11140_v38 = vcombine.low %v208_v34, %v208_v34  ;;  %v11141_v39 = vcombine.low %v209_v36, %v209_v36  ;;  %v211_v41 = vld [vmem:[%s15428_s28 + $0x30] sm:$0xf] }
  0x1a   : > { %256 = vst.msk [vmem:[#allocation2 + $0xc0] sm:$0xff] %vm231_vm0, %v15224_v1  ;;  %257 = vst.msk [vmem:[#allocation2 + $0xc8] sm:$0xff] %vm231_vm0, %v15224_v1  ;;  %v11142_v40 = vcombine.low %v210_v37, %v210_v37  ;;  %v212_v42 = vld [vmem:[%s15428_s28 + $0x34] sm:$0xf]  ;;  %v213_v43 = vld [vmem:[%s15428_s28 + $0x38] sm:$0xf]  ;;  %v11143_v44 = vcombine.low %v211_v41, %v211_v41 }
  0x1b   : > { %258 = vst.msk [vmem:[#allocation2 + $0xd0] sm:$0xff] %vm231_vm0, %v15224_v1  ;;  %259 = vst.msk [vmem:[#allocation2 + $0xd8] sm:$0xff] %vm231_vm0, %v15224_v1  ;;  %v11144_v45 = vcombine.low %v212_v42, %v212_v42  ;;  %v214_v46 = vld [vmem:[%s15428_s28 + $0x3c] sm:$0xf]  ;;  %v11145_v47 = vcombine.low %v213_v43, %v213_v43  ;;  %v215_v48 = vld [vmem:[%s15428_s28 + $0x40] sm:$0xf] }
  0x1c   : > { %260 = vst.msk [vmem:[#allocation2 + $0xe0] sm:$0xff] %vm231_vm0, %v15224_v1  ;;  %261 = vst.msk [vmem:[#allocation2 + $0xe8] sm:$0xff] %vm231_vm0, %v15224_v1  ;;  %v15438_v12 = vld [vmem:[#allocation2 + $0x70] sm:$0xff]  ;;  %v15442_v18 = vld [vmem:[#allocation2 + $0x78] sm:$0xff]  ;;  %v11146_v50 = vcombine.low %v214_v46, %v214_v46  ;;  %v11147_v51 = vcombine.low %v215_v48, %v215_v48  ;;  %v1337_v16 = vsel %vm1123_vm1, %v15406_v3, 0  ;;  %v3267_v48 = vrot.slane %v15436_v11, 3 }
  0x1d   : > { %262 = vst.msk [vmem:[#allocation2 + $0xf0] sm:$0xff] %vm231_vm0, %v15224_v1  ;;  %263 = vst.msk [vmem:[#allocation2 + $0xf8] sm:$0xff] %vm231_vm0, %v15224_v1  ;;  %v1024_v19 = vrot.slane %v15438_v12, 4  ;;  %v1025_v21 = vrot.slane %v15442_v18, 4  ;;  %v216_v49 = vld [vmem:[%s15428_s28 + $0x44] sm:$0xf] }
  0x1e   : > { %264 = vst.msk [vmem:[#allocation2 + $0x100] sm:$0xff] %vm231_vm0, %v15224_v1  ;;  %265 = vst.msk [vmem:[#allocation2 + $0x108] sm:$0xff] %vm231_vm0, %v15224_v1  ;;  %v11148_v52 = vcombine.low %v216_v49, %v216_v49  ;;  %v217_v53 = vld [vmem:[%s15428_s28 + $0x48] sm:$0xf]  ;;  %v218_v54 = vld [vmem:[%s15428_s28 + $0x4c] sm:$0xf] }
  0x1f   : > { %266 = vst.msk [vmem:[#allocation2 + $0x110] sm:$0xff] %vm231_vm0, %v15224_v1  ;;  %267 = vst.msk [vmem:[#allocation2 + $0x118] sm:$0xff] %vm231_vm0, %v15224_v1  ;;  %v15461_v31 = vsel %vm1023_vm4, %v1024_v19, %v1025_v21  ;;  %v219_v55 = vld [vmem:[%s15428_s28 + $0x50] sm:$0xf]  ;;  %v11149_v56 = vcombine.low %v217_v53, %v217_v53  ;;  %v11150_v57 = vcombine.low %v218_v54, %v218_v54  ;;  %v220_v58 = vld [vmem:[%s15428_s28 + $0x54] sm:$0xf] }
  0x20   : > { %268 = vst.msk [vmem:[#allocation2 + $0x120] sm:$0xff] %vm231_vm0, %v15224_v1  ;;  %269 = vst.msk [vmem:[#allocation2 + $0x128] sm:$0xff] %vm231_vm0, %v15224_v1  ;;  %12458 = vmatprep.mubr.msk.bf16.mxu0 %vm1074_vm5, %v15461_v31  ;;  %3323 = vrot.lane.b32.xlu0 %v15461_v31, %s15225_s29  ;;  %v11151_v59 = vcombine.low %v219_v55, %v219_v55  ;;  %v221_v60 = vld [vmem:[%s15428_s28 + $0x58] sm:$0xf]  ;;  %v222_v61 = vld [vmem:[%s15428_s28 + $0x5c] sm:$0xf] }
  0x21   : > { %270 = vst.msk [vmem:[#allocation2 + $0x130] sm:$0xff] %vm231_vm0, %v15224_v1  ;;  %271 = vst.msk [vmem:[#allocation2 + $0x138] sm:$0xff] %vm231_vm0, %v15224_v1  ;;  %v11153_v2 = vcombine.low %v221_v60, %v221_v60  ;;  %v11154_v4 = vcombine.low %v222_v61, %v222_v61  ;;  %v223_v8 = vld [vmem:[%s15428_s28 + $0x60] sm:$0xf]  ;;  %v226_v23 = vld [vmem:[%s15428_s28 + $0x6c] sm:$0xf] }
  0x22   : > { %272 = vst.msk [vmem:[#allocation2 + $0x140] sm:$0xff] %vm231_vm0, %v15224_v1  ;;  %273 = vst.msk [vmem:[#allocation2 + $0x148] sm:$0xff] %vm231_vm0, %v15224_v1  ;;  %v11158_v30 = vcombine.low %v226_v23, %v226_v23  ;;  %v227_v61 = vld [vmem:[%s15428_s28 + $0x70] sm:$0xf]  ;;  %vm3809_vm8 = vcmask 1042432   ;;  %s15226_s14 = smov 120  }
  0x23   : > { %274 = vst.msk [vmem:[#allocation2 + $0x150] sm:$0xff] %vm231_vm0, %v15224_v1  ;;  %275 = vst.msk [vmem:[#allocation2 + $0x158] sm:$0xff] %vm231_vm0, %v15224_v1  ;;  %vm1500_vm9 = vsmask.f32 3328  ;;  %s15227_s17 = smov 116   ;;  %vm5551_vm10 = vcmask 1045504  }
  0x24   : > { %276 = vst.msk [vmem:[#allocation2 + $0x160] sm:$0xff] %vm231_vm0, %v15224_v1  ;;  %277 = vst.msk [vmem:[#allocation2 + $0x168] sm:$0xff] %vm231_vm0, %v15224_v1  ;;  %s15228_s23 = smov 4   ;;  %s15229_s18 = smov 8   ;;  %vm10841_vm11 = vcmask 64512   ;;  %vm10874_vm12 = vcmask 97280  }
  0x25   : > { %278 = vst.msk [vmem:[#allocation2 + $0x170] sm:$0xff] %vm231_vm0, %v15224_v1  ;;  %279 = vst.msk [vmem:[#allocation2 + $0x178] sm:$0xff] %vm231_vm0, %v15224_v1  ;;  %s15230_s19 = smov 12  }
  0x26   : > { %280 = vst.msk [vmem:[#allocation2 + $0x180] sm:$0xff] %vm231_vm0, %v15224_v1  ;;  %281 = vst.msk [vmem:[#allocation2 + $0x188] sm:$0xff] %vm231_vm0, %v15224_v1 }
  0x27   : > { %282 = vst.msk [vmem:[#allocation2 + $0x190] sm:$0xff] %vm231_vm0, %v15224_v1  ;;  %283 = vst.msk [vmem:[#allocation2 + $0x198] sm:$0xff] %vm231_vm0, %v15224_v1 }
  0x28   : > { %284 = vst.msk [vmem:[#allocation2 + $0x1a0] sm:$0xff] %vm231_vm0, %v15224_v1  ;;  %285 = vst.msk [vmem:[#allocation2 + $0x1a8] sm:$0xff] %vm231_vm0, %v15224_v1 }
  0x29   : > { %286 = vst.msk [vmem:[#allocation2 + $0x1b0] sm:$0xff] %vm231_vm0, %v15224_v1  ;;  %287 = vst.msk [vmem:[#allocation2 + $0x1b8] sm:$0xff] %vm231_vm0, %v15224_v1 }
  0x2a   : > { %288 = vst.msk [vmem:[#allocation2 + $0x1c0] sm:$0xff] %vm231_vm0, %v15224_v1  ;;  %289 = vst.msk [vmem:[#allocation2 + $0x1c8] sm:$0xff] %vm231_vm0, %v15224_v1 }
  0x2b   : > { %290 = vst.msk [vmem:[#allocation2 + $0x1d0] sm:$0xff] %vm231_vm0, %v15224_v1  ;;  %291 = vst.msk [vmem:[#allocation2 + $0x1d8] sm:$0xff] %vm231_vm0, %v15224_v1 }
  0x2c   : > { %292 = vst.msk [vmem:[#allocation2 + $0x1e0] sm:$0xff] %vm231_vm0, %v15224_v1  ;;  %293 = vst.msk [vmem:[#allocation2 + $0x1e8] sm:$0xff] %vm231_vm0, %v15224_v1 }
  0x2d   : > { %294 = vst.msk [vmem:[#allocation2 + $0x1f0] sm:$0xff] %vm231_vm0, %v15224_v1  ;;  %295 = vst.msk [vmem:[#allocation2 + $0x1f8] sm:$0xff] %vm231_vm0, %v15224_v1  ;;  %v11152_v1 = vcombine.low %v220_v58, %v220_v58 }
  0x2e   : > { %426 = vst.msk [vmem:[#allocation2 + $0x80] sm:$0xf0] %vm425_vm2, %v11131_v13  ;;  %429 = vst.msk [vmem:[#allocation2 + $0x90] sm:$0xf0] %vm425_vm2, %v11133_v15  ;;  %v224_v13 = vld [vmem:[%s15428_s28 + $0x64] sm:$0xf] }
  0x2f   : > { %428 = vst.msk [vmem:[#allocation2 + $0x88] sm:$0xf] %vm427_vm3, %v11132_v14  ;;  %20693 = vst [vmem:[#allocation3_spill] sm:$0xff] %v15453_v25  ;;  %v11155_v14 = vcombine.low %v223_v8, %v223_v8  ;;  %v225_v15 = vld [vmem:[%s15428_s28 + $0x68] sm:$0xf]  ;;  %v11159_v8 = vcombine.low %v227_v61, %v227_v61 }
  0x30   : > { %20694 = vst [vmem:[#allocation4_spill] sm:$0xff] %v15461_v31  ;;  %430 = vst.msk [vmem:[#allocation2 + $0x98] sm:$0xf] %vm427_vm3, %v11134_v22  ;;  %v11156_v22 = vcombine.low %v224_v13, %v224_v13  ;;  %v11157_v24 = vcombine.low %v225_v15, %v225_v15 }
  0x31   : > { %431 = vst.msk [vmem:[#allocation2 + $0xa0] sm:$0xf0] %vm425_vm2, %v11135_v26  ;;  %433 = vst.msk [vmem:[#allocation2 + $0xb0] sm:$0xf0] %vm425_vm2, %v11137_v32 }
  0x32   : > { %432 = vst.msk [vmem:[#allocation2 + $0xa8] sm:$0xf] %vm427_vm3, %v11136_v27  ;;  %434 = vst.msk [vmem:[#allocation2 + $0xb8] sm:$0xf] %vm427_vm3, %v11138_v33 }
  0x33   : > { %435 = vst.msk [vmem:[#allocation2 + $0xc0] sm:$0xf0] %vm425_vm2, %v11139_v35  ;;  %437 = vst.msk [vmem:[#allocation2 + $0xd0] sm:$0xf0] %vm425_vm2, %v11141_v39 }
  0x34   : > { %436 = vst.msk [vmem:[#allocation2 + $0xc8] sm:$0xf] %vm427_vm3, %v11140_v38  ;;  %438 = vst.msk [vmem:[#allocation2 + $0xd8] sm:$0xf] %vm427_vm3, %v11142_v40 }
  0x35   : > { %439 = vst.msk [vmem:[#allocation2 + $0xe0] sm:$0xf0] %vm425_vm2, %v11143_v44  ;;  %441 = vst.msk [vmem:[#allocation2 + $0xf0] sm:$0xf0] %vm425_vm2, %v11145_v47  ;;  %v15494_v62 = vld [vmem:[#allocation2 + $0x80] sm:$0xff]  ;;  %v15498_v0 = vld [vmem:[#allocation2 + $0x90] sm:$0xff] }
  0x36   : > { %440 = vst.msk [vmem:[#allocation2 + $0xe8] sm:$0xf] %vm427_vm3, %v11144_v45  ;;  %20695 = vst [vmem:[#allocation5_spill] sm:$0xff] %v15494_v62  ;;  %v15496_v63 = vld [vmem:[#allocation2 + $0x88] sm:$0xff]  ;;  %v1027_v5 = vrot.slane %v15494_v62, 4  ;;  %v1030_v7 = vrot.slane %v15498_v0, 4 }
  0x37   : > { %20696 = vst [vmem:[#allocation6_spill] sm:$0xff] %v15496_v63  ;;  %442 = vst.msk [vmem:[#allocation2 + $0xf8] sm:$0xf] %vm427_vm3, %v11146_v50  ;;  %v1028_v6 = vrot.slane %v15496_v63, 4  ;;  %v15510_v9 = vld [vmem:[#allocation2 + $0x98] sm:$0xff]  ;;  %v3266_v47 = vrot.slane %v15434_v10, 3 }
  0x38   : > { %443 = vst.msk [vmem:[#allocation2 + $0x100] sm:$0xf0] %vm425_vm2, %v11147_v51  ;;  %445 = vst.msk [vmem:[#allocation2 + $0x110] sm:$0xf0] %vm425_vm2, %v11149_v56  ;;  %v1031_v19 = vrot.slane %v15510_v9, 4  ;;  %v15523_v20 = vld [vmem:[#allocation2 + $0xa0] sm:$0xff] }
  0x39   : > { %444 = vst.msk [vmem:[#allocation2 + $0x108] sm:$0xf] %vm427_vm3, %v11148_v52  ;;  %446 = vst.msk [vmem:[#allocation2 + $0x118] sm:$0xf] %vm427_vm3, %v11150_v57  ;;  %v15520_v17 = vsel %vm1023_vm4, %v1027_v5, %v1028_v6  ;;  %v15525_v21 = vld [vmem:[#allocation2 + $0xa8] sm:$0xff]  ;;  %v1033_v3 = vrot.slane %v15523_v20, 4  ;;  %v15613_v13 = vsel %vm3265_vm6, %v3266_v47, %v3267_v48 }
  0x3a   : > { %447 = vst.msk [vmem:[#allocation2 + $0x120] sm:$0xf0] %vm425_vm2, %v11151_v59  ;;  %20697 = vst [vmem:[#allocation7_spill] sm:$0xff] %v15510_v9  ;;  %3325 = vrot.lane.b32.xlu1 %v15520_v17, %s15225_s29  ;;  %12459 = vmatmul.mubr.msk.bf16.vlgmr.msra.gmra.mrb[0].mxu0 %vm1074_vm5, %v15520_v17  ;;  %v1034_v26 = vrot.slane %v15525_v21, 4  ;;  %v15534_v27 = vld [vmem:[#allocation2 + $0xb0] sm:$0xff]  ;;  %v15536_v28 = vld [vmem:[#allocation2 + $0xb8] sm:$0xff]  ;;  %v15542_v32 = vsel %vm1023_vm4, %v1030_v7, %v1031_v19 }
  0x3b   : > { %448 = vst.msk [vmem:[#allocation2 + $0x128] sm:$0xf] %vm427_vm3, %v11152_v1  ;;  %450 = vst.msk [vmem:[#allocation2 + $0x138] sm:$0xf] %vm427_vm3, %v11154_v4  ;;  %v15538_v29 = vld [vmem:[#allocation2 + $0xc0] sm:$0xff]  ;;  %v1036_v33 = vrot.slane %v15534_v27, 4  ;;  %12491 = vmatpush3.bf16.msra.mxu0 %v1337_v16  ;;  %12462 = vmatprep.mubr.msk.bf16.mxu0 %vm1074_vm5, %v15542_v32 }
  0x3c   : > { %449 = vst.msk [vmem:[#allocation2 + $0x130] sm:$0xf0] %vm425_vm2, %v11153_v2  ;;  %20698 = vst [vmem:[#allocation8_spill] sm:$0xff] %v15520_v17  ;;  %v1037_v34 = vrot.slane %v15536_v28, 4  ;;  %v15546_v35 = vld [vmem:[#allocation2 + $0xc8] sm:$0xff]  ;;  %v15548_v36 = vld [vmem:[#allocation2 + $0xd0] sm:$0xff]  ;;  %v15557_v38 = vsel %vm1023_vm4, %v1033_v3, %v1034_v26 }
  0x3d   : > { %20699 = vst [vmem:[#allocation9_spill] sm:$0xff] %v15523_v20  ;;  %20700 = vst [vmem:[#allocation10_spill] sm:$0xff] %v15525_v21  ;;  %v15550_v37 = vld [vmem:[#allocation2 + $0xd8] sm:$0xff]  ;;  %v1039_v39 = vrot.slane %v15538_v29, 4  ;;  %v1040_v40 = vrot.slane %v15546_v35, 4  ;;  %v15561_v41 = vld [vmem:[#allocation2 + $0xe0] sm:$0xff]  ;;  %3329 = vrot.lane.b32.xlu0 %v15557_v38, %s15225_s29 }
  0x3e   : > { %20701 = vst [vmem:[#allocation11_spill] sm:$0xff] %v15534_v27  ;;  %20702 = vst [vmem:[#allocation12_spill] sm:$0xff] %v15536_v28  ;;  %v15563_v42 = vld [vmem:[#allocation2 + $0xe8] sm:$0xff]  ;;  %v15565_v43 = vld [vmem:[#allocation2 + $0xf0] sm:$0xff]  ;;  %v1042_v44 = vrot.slane %v15548_v36, 4  ;;  %v1043_v45 = vrot.slane %v15550_v37, 4  ;;  %3327 = vrot.lane.b32.xlu1 %v15542_v32, %s15225_s29  ;;  %v15583_v52 = vsel %vm1023_vm4, %v1036_v33, %v1037_v34 }
  0x3f   : > { %20703 = vst [vmem:[#allocation13_spill] sm:$0xff] %v15538_v29  ;;  %451 = vst.msk [vmem:[#allocation2 + $0x140] sm:$0xf0] %vm425_vm2, %v11155_v14  ;;  %v15572_v46 = vld [vmem:[#allocation2 + $0xf8] sm:$0xff]  ;;  %v1045_v49 = vrot.slane %v15561_v41, 4  ;;  %v1046_v50 = vrot.slane %v15563_v42, 4  ;;  %v15594_v58 = vsel %vm1023_vm4, %v1039_v39, %v1040_v40 }
  0x40   : > { %20704 = vst [vmem:[#allocation14_spill] sm:$0xff] %v15542_v32  ;;  %20705 = vst [vmem:[#allocation15_spill] sm:$0xff] %v15546_v35  ;;  %v15580_v51 = vld [vmem:[#allocation2 + $0x100] sm:$0xff]  ;;  %v1048_v53 = vrot.slane %v15565_v43, 4  ;;  %v1049_v54 = vrot.slane %v15572_v46, 4  ;;  %v15587_v55 = vld [vmem:[#allocation2 + $0x108] sm:$0xff]  ;;  %v15606_v4 = vsel %vm1023_vm4, %v1042_v44, %v1043_v45 }
  0x41   : > { %20706 = vst [vmem:[#allocation16_spill] sm:$0xff] %v15548_v36  ;;  %20707 = vst [vmem:[#allocation17_spill] sm:$0xff] %v15550_v37  ;;  %v15589_v56 = vld [vmem:[#allocation2 + $0x110] sm:$0xff]  ;;  %v15591_v57 = vld [vmem:[#allocation2 + $0x118] sm:$0xff]  ;;  %v3269_v1 = vrot.slane %v15438_v12, 3  ;;  %v3270_v2 = vrot.slane %v15442_v18, 3  ;;  %3333 = vrot.lane.b32.xlu0 %v15594_v58, %s15225_s29  ;;  %v15625_v15 = vsel %vm1023_vm4, %v1045_v49, %v1046_v50 }
  0x42   : > { %452 = vst.msk [vmem:[#allocation2 + $0x148] sm:$0xf] %vm427_vm3, %v11156_v22  ;;  %20708 = vst [vmem:[#allocation18_spill] sm:$0xff] %v15557_v38  ;;  %v15596_v59 = vld [vmem:[#allocation2 + $0x120] sm:$0xff]  ;;  %v15598_v60 = vld [vmem:[#allocation2 + $0x128] sm:$0xff]  ;;  %v1051_v5 = vrot.slane %v15580_v51, 4  ;;  %12463 = vmatmul.mubr.msk.bf16.gmra.mrb[4].mxu0 %vm1074_vm5, %v15557_v38  ;;  %3331 = vrot.lane.b32.xlu1 %v15583_v52, %s15225_s29  ;;  %v15638_v26 = vsel %vm1023_vm4, %v1048_v53, %v1049_v54 }
  0x43   : > { %453 = vst.msk [vmem:[#allocation2 + $0x150] sm:$0xf0] %vm425_vm2, %v11157_v24  ;;  %20709 = vst [vmem:[#allocation19_spill] sm:$0xff] %v15561_v41  ;;  %v15609_v6 = vld [vmem:[#allocation2 + $0x130] sm:$0xff]  ;;  %v228_v7 = vld [vmem:[%s15428_s28 + $0x74] sm:$0xf]  ;;  %12466 = vmatprep.mubr.msk.bf16.mxu0 %vm1074_vm5, %v15583_v52  ;;  %v15679_v31 = vsel %vm3265_vm6, %v3269_v1, %v3270_v2 }
  0x44   : > { %20710 = vst [vmem:[#allocation20_spill] sm:$0xff] %v15563_v42  ;;  %20711 = vst [vmem:[#allocation21_spill] sm:$0xff] %v15565_v43  ;;  %v15618_v14 = vld [vmem:[%s20261_s1 + $0x4] sm:$0x3]  ;;  %v1052_v16 = vrot.slane %v15587_v55, 4  ;;  %v11160_v24 = vcombine.low %v228_v7, %v228_v7  ;;  %v20277_v3 = vshrl.u32 %v15438_v12, 16 }
  0x45   : > { %454 = vst.msk [vmem:[#allocation2 + $0x158] sm:$0xf] %vm427_vm3, %v11158_v30  ;;  %20712 = vst [vmem:[#allocation22_spill] sm:$0xff] %v15572_v46  ;;  %v15628_v19 = vld [vmem:[#allocation2 + $0x138] sm:$0xff]  ;;  %v1054_v30 = vrot.slane %v15589_v56, 4  ;;  %v1055_v33 = vrot.slane %v15591_v57, 4  ;;  %14706 = vmatprep.subr.msk.bf16.mxu0 %vm1123_vm1, %v15618_v14  ;;  %3337 = vrot.lane.b32.xlu0 %v15625_v15, %s15225_s29 }
  0x46   : > { %20713 = vst [vmem:[#allocation23_spill] sm:$0xff] %v15580_v51  ;;  %20714 = vst [vmem:[#allocation24_spill] sm:$0xff] %v15583_v52  ;;  %v15630_v22 = vld [vmem:[#allocation2 + $0x140] sm:$0xff]  ;;  %v20278_v40 = vshll.u32 %v15438_v12, 16  ;;  %v1057_v44 = vrot.slane %v15596_v59, 4  ;;  %v1058_v45 = vrot.slane %v15598_v60, 4  ;;  %3335 = vrot.lane.b32.xlu1 %v15606_v4, %s15225_s29  ;;  %v15676_v25 = vsel %vm1023_vm4, %v1051_v5, %v1052_v16 }
  0x47   : > { %20715 = vst [vmem:[#allocation25_spill] sm:$0xff] %v15587_v55  ;;  %20716 = vst [vmem:[#allocation26_spill] sm:$0xff] %v15589_v56  ;;  %v20279_v47 = vshrl.u32 %v15442_v18, 16  ;;  %v1060_v49 = vrot.slane %v15609_v6, 4  ;;  %v1061_v50 = vrot.slane %v15628_v19, 4  ;;  %v1063_v53 = vrot.slane %v15630_v22, 4 }
  0x48   : > { %20717 = vst [vmem:[#allocation27_spill] sm:$0xff] %v15591_v57  ;;  %20718 = vst [vmem:[#allocation28_spill] sm:$0xff] %v15594_v58  ;;  %v20725_v38 = vshll.u32 %v15442_v18, 16  ;;  %v20282_v17 = vshrl.u32 %v15494_v62, 16  ;;  %v20285_v16 = vshrl.u32 %v15498_v0, 16 }
  0x49   : > { %20719 = vst [vmem:[#allocation29_spill] sm:$0xff] %v15596_v59  ;;  %20720 = vst [vmem:[#allocation30_spill] sm:$0xff] %v15606_v4  ;;  %v15632_v23 = vld [vmem:[#allocation2 + $0x148] sm:$0xff]  ;;  %v729_v48 = vrot.slane %v20279_v47, 3  ;;  %3341 = vrot.lane.b32.xlu0 %v15676_v25, %s15225_s29  ;;  %v15686_v47 = vsel %vm1023_vm4, %v1054_v30, %v1055_v33  ;;  %v15692_v32 = vsel %vm1023_vm4, %v1060_v49, %v1061_v50  ;;  %v20288_v30 = vshll.u32 %v15498_v0, 16 }
  0x4a   : > { %20721 = vst [vmem:[#allocation31_spill] sm:$0xff] %v15618_v14  ;;  %20722 = vst [vmem:[#allocation32_spill] sm:$0xff] %v15625_v15  ;;  %v15642_v34 = vld [vmem:[#allocation2 + $0x150] sm:$0xff]  ;;  %v1064_v54 = vrot.slane %v15632_v23, 4  ;;  %v732_v52 = vrot.slane %v20725_v38, 4  ;;  %v15689_v38 = vsel %vm1023_vm4, %v1057_v44, %v1058_v45  ;;  %12467 = vmatmul.mubr.msk.bf16.gmra.mrb[8].mxu0 %vm1074_vm5, %v15594_v58  ;;  %3339 = vrot.lane.b32.xlu1 %v15638_v26, %s15225_s29  ;;  %v738_v44 = vrot.slane %v20282_v17, 3 }
  0x4b   : > { %20723 = vst [vmem:[#allocation33_spill] sm:$0xff] %v15628_v19  ;;  %20724 = vst [vmem:[#allocation34_spill] sm:$0xff] %v15638_v26  ;;  %v1066_v61 = vrot.slane %v15642_v34, 4  ;;  %12470 = vmatprep.mubr.msk.bf16.mxu0 %vm1074_vm5, %v15606_v4  ;;  %v20732_v45 = vshll.u32 %v15494_v62, 16  ;;  %v20294_v50 = vshrl.u32 %v15510_v9, 16 }
  0x4c   : > { %v15644_v39 = vld [vmem:[#allocation2 + $0x158] sm:$0xff]  ;;  %455 = vst.msk [vmem:[#allocation2 + $0x160] sm:$0xf0] %vm425_vm2, %v11159_v8  ;;  %v721_v8 = vrot.slane %v20277_v3, 3  ;;  %20726 = vst [vmem:[#allocation35_spill] sm:$0xff] %v15676_v25  ;;  %v20281_v3 = vshrl.u32 %v15496_v63, 16  ;;  %v15695_v5 = vsel %vm1023_vm4, %v1063_v53, %v1064_v54  ;;  %v733_v33 = vor.u32 %v732_v52, %v729_v48 }
  0x4d   : > { %456 = vst.msk [vmem:[#allocation2 + $0x168] sm:$0xf] %vm427_vm3, %v11160_v24  ;;  %v1067_v7 = vrot.slane %v15644_v39, 4  ;;  %v724_v24 = vrot.slane %v20278_v40, 4  ;;  %v20280_v40 = vshll.u32 %v15496_v63, 16  ;;  %20727 = vst [vmem:[#allocation36_spill] sm:$0xff] %v15686_v47  ;;  %3345 = vrot.lane.b32.xlu0 %v15689_v38, %s15225_s29 }
  0x4e   : > { %20728 = vst [vmem:[#allocation37_spill] sm:$0xff] %v15689_v38  ;;  %20729 = vst [vmem:[#allocation38_spill] sm:$0xff] %v15692_v32  ;;  %v741_v49 = vrot.slane %v20732_v45, 4  ;;  %v746_v53 = vrot.slane %v20281_v3, 3  ;;  %3343 = vrot.lane.b32.xlu1 %v15686_v47, %s15225_s29  ;;  %v3273_v3 = vrot.slane %v15496_v63, 3  ;;  %v763_v17 = vrot.slane %v20294_v50, 3 }
  0x4f   : > { %20730 = vst [vmem:[#allocation39_spill] sm:$0xff] %v15695_v5  ;;  %v15702_v1 = vsel %vm1023_vm4, %v1066_v61, %v1067_v7  ;;  %v725_v2 = vor.u32 %v724_v24, %v721_v8  ;;  %v749_v54 = vrot.slane %v20280_v40, 4  ;;  %v3272_v61 = vrot.slane %v15494_v62, 3 }
  0x50   : > { %20731 = vst [vmem:[#allocation40_spill] sm:$0xff] %v15702_v1  ;;  %v20295_v7 = vshll.u32 %v15510_v9, 16  ;;  %v755_v8 = vrot.slane %v20285_v16, 3  ;;  %v758_v24 = vrot.slane %v20288_v30, 4  ;;  %v742_v4 = vor.u32 %v741_v49, %v738_v44 }
  0x51   : > { %v3275_v30 = vrot.slane %v15498_v0, 3  ;;  %v3276_v45 = vrot.slane %v15510_v9, 3  ;;  %v15745_v63 = vsel %vm717_vm7, %v725_v2, %v733_v33  ;;  %v750_v50 = vor.u32 %v749_v54, %v746_v53  ;;  %3349 = vrot.lane.b32.xlu0 %v15695_v5, %s15225_s29 }
  0x52   : > { %v766_v58 = vrot.slane %v20295_v7, 4  ;;  %v759_v7 = vor.u32 %v758_v24, %v755_v8  ;;  %v20733_v44 = vshrl.u32 %v15523_v20, 16  ;;  %v20734_v16 = vshll.u32 %v15523_v20, 16  ;;  %12471 = vmatmul.mubr.msk.bf16.gmra.mrb[12].mxu0 %vm1074_vm5, %v15625_v15  ;;  %3347 = vrot.lane.b32.xlu1 %v15692_v32, %s15225_s29 }
  0x53   : > { %v15721_v52 = vld [vmem:[#allocation2 + $0x160] sm:$0xff]  ;;  %v3278_v40 = vrot.slane %v15523_v20, 3  ;;  %v20735_v33 = vshrl.u32 %v15525_v21, 16  ;;  %v20736_v54 = vshll.u32 %v15525_v21, 16  ;;  %v3279_v24 = vrot.slane %v15525_v21, 3  ;;  %12474 = vmatprep.mubr.msk.bf16.mxu0 %vm1074_vm5, %v15638_v26 }
  0x54   : > { %v15723_v48 = vld [vmem:[#allocation2 + $0x168] sm:$0xff]  ;;  %v1069_v62 = vrot.slane %v15721_v52, 4  ;;  %v772_v49 = vrot.slane %v20733_v44, 3  ;;  %v775_v9 = vrot.slane %v20734_v16, 4  ;;  %v767_v2 = vor.u32 %v766_v58, %v763_v17 }
  0x55   : > { %v1070_v14 = vrot.slane %v15723_v48, 4  ;;  %v780_v53 = vrot.slane %v20735_v33, 3  ;;  %v783_v8 = vrot.slane %v20736_v54, 4  ;;  %v20306_v16 = vshrl.u32 %v15534_v27, 16  ;;  %3565 = vrot.lane.b32.xlu0 %v15613_v13, %s15225_s29 }
  0x56   : > { %v3274_v17 = vsel %vm3265_vm6, %v3272_v61, %v3273_v3  ;;  %v3277_v58 = vsel %vm3265_vm6, %v3275_v30, %v3276_v45  ;;  %v20305_v33 = vshrl.u32 %v15538_v29, 16  ;;  %v20304_v54 = vshll.u32 %v15538_v29, 16  ;;  %3351 = vrot.lane.b32.xlu1 %v15702_v1, %s15225_s29 }
  0x57   : > { %v15774_v21 = vsel %vm1023_vm4, %v1069_v62, %v1070_v14  ;;  %v15779_v44 = vsel %vm717_vm7, %v742_v4, %v750_v50  ;;  %v776_v15 = vor.u32 %v775_v9, %v772_v49  ;;  %v3281_v20 = vrot.slane %v15534_v27, 3 }
  0x58   : > { %20737 = vst [vmem:[#allocation41_spill] sm:$0xff] %v15774_v21  ;;  %v15785_v3 = vsel %vm717_vm7, %v759_v7, %v767_v2  ;;  %v784_v30 = vor.u32 %v783_v8, %v780_v53  ;;  %v3280_v61 = vsel %vm3265_vm6, %v3278_v40, %v3279_v24  ;;  %v3282_v62 = vrot.slane %v15536_v28, 3 }
  0x59   : > { %20738 = vst [vmem:[#allocation42_spill] sm:$0xff] %v15785_v3  ;;  %v15791_v13 = vrot.slane %v20306_v16, 3  ;;  %v20739_v4 = vshll.u32 %v15534_v27, 16  ;;  %v20740_v14 = vshrl.u32 %v15536_v28, 16  ;;  %v20741_v7 = vshll.u32 %v15536_v28, 16  ;;  %3569 = vrot.lane.b32.xlu0 %v3274_v17, %s15225_s29 }
  0x5a   : > { %v15807_v40 = vrot.slane %v20305_v33, 3  ;;  %v15811_v49 = vrot.slane %v20304_v54, 4  ;;  %v20307_v2 = vshrl.u32 %v15546_v35, 16  ;;  %v20308_v53 = vshll.u32 %v15546_v35, 16  ;;  %12475 = vmatmul.mubr.msk.bf16.gmra.mrb[16].mxu0 %vm1074_vm5, %v15676_v25  ;;  %3567 = vrot.lane.b32.xlu1 %v15679_v31, %s15225_s29 }
  0x5b   : > { %v15795_v9 = vrot.slane %v20739_v4, 4  ;;  %v15799_v50 = vrot.slane %v20740_v14, 3  ;;  %v15803_v45 = vrot.slane %v20741_v7, 4  ;;  %v3284_v8 = vrot.slane %v15538_v29, 3  ;;  %12478 = vmatprep.mubr.msk.bf16.mxu0 %vm1074_vm5, %v15686_v47 }
  0x5c   : > { %v3285_v24 = vrot.slane %v15546_v35, 3  ;;  %v20309_v4 = vshrl.u32 %v15548_v36, 16  ;;  %v15825_v7 = vsel %vm717_vm7, %v776_v15, %v784_v30  ;;  %v3283_v54 = vsel %vm3265_vm6, %v3281_v20, %v3282_v62 }
  0x5d   : > { %20742 = vst [vmem:[#allocation43_spill] sm:$0xff] %v15825_v7  ;;  %v20314_v17 = vshrl.u32 %v15550_v37, 16  ;;  %v20317_v33 = vshll.u32 %v15550_v37, 16  ;;  %v15842_v30 = vrot.slane %v20307_v2, 3  ;;  %v15846_v62 = vrot.slane %v20308_v53, 4  ;;  %3573 = vrot.lane.b32.xlu0 %v3280_v61, %s15225_s29 }
  0x5e   : > { %v3287_v16 = vrot.slane %v15548_v36, 3  ;;  %v3286_v14 = vsel %vm3265_vm6, %v3284_v8, %v3285_v24  ;;  %v3288_v31 = vrot.slane %v15550_v37, 3  ;;  %v15854_v15 = vrot.slane %v20309_v4, 3  ;;  %3571 = vrot.lane.b32.xlu1 %v3277_v58, %s15225_s29 }
  0x5f   : > { %v20743_v20 = vshll.u32 %v15548_v36, 16  ;;  %v15863_v53 = vrot.slane %v20314_v17, 3  ;;  %v15867_v61 = vrot.slane %v20317_v33, 4  ;;  %v3290_v8 = vrot.slane %v15561_v41, 3 }
  0x60   : > { %v3291_v24 = vrot.slane %v15563_v42, 3  ;;  %v20744_v4 = vshrl.u32 %v15561_v41, 16  ;;  %v20324_v17 = vshll.u32 %v15563_v42, 16  ;;  %v3293_v26 = vrot.slane %v15565_v43, 3 }
  0x61   : > { %v15858_v2 = vrot.slane %v20743_v20, 4  ;;  %v20745_v20 = vshll.u32 %v15561_v41, 16  ;;  %v3294_v33 = vrot.slane %v15572_v46, 3  ;;  %3577 = vrot.lane.b32.xlu0 %v3286_v14, %s15225_s29  ;;  %v20329_v41 = vshrl.u32 %v15572_v46, 16 }
  0x62   : > { %v15873_v25 = vrot.slane %v20744_v4, 3  ;;  %12479 = vmatmul.mubr.msk.bf16.gmra.mrb[20].mxu0 %vm1074_vm5, %v15689_v38  ;;  %3575 = vrot.lane.b32.xlu1 %v3283_v54, %s15225_s29  ;;  %v3292_v36 = vsel %vm3265_vm6, %v3290_v8, %v3291_v24  ;;  %v20746_v54 = vshrl.u32 %v15563_v42, 16  ;;  %v15911_v8 = vrot.slane %v20324_v17, 4 }
  0x63   : > { %v15877_v47 = vrot.slane %v20745_v20, 4  ;;  %v3289_v20 = vsel %vm3265_vm6, %v3287_v16, %v3288_v31  ;;  %12482 = vmatprep.mubr.msk.bf16.mxu0 %vm1074_vm5, %v15692_v32  ;;  %v3295_v24 = vsel %vm3265_vm6, %v3293_v26, %v3294_v33  ;;  %v20747_v37 = vshrl.u32 %v15565_v43, 16 }
  0x64   : > { %v15907_v58 = vrot.slane %v20746_v54, 3  ;;  %v20748_v4 = vshll.u32 %v15565_v43, 16  ;;  %v3296_v31 = vrot.slane %v15580_v51, 3  ;;  %v15926_v54 = vrot.slane %v20329_v41, 3 }
  0x65   : > { %v15916_v14 = vrot.slane %v20747_v37, 3  ;;  %3581 = vrot.lane.b32.xlu0 %v3292_v36, %s15225_s29  ;;  %v20749_v17 = vshll.u32 %v15572_v46, 16  ;;  %v3297_v37 = vrot.slane %v15587_v55, 3  ;;  %v20750_v33 = vshrl.u32 %v15580_v51, 16 }
  0x66   : > { %v15920_v16 = vrot.slane %v20748_v4, 4  ;;  %3579 = vrot.lane.b32.xlu1 %v3289_v20, %s15225_s29  ;;  %v20751_v36 = vshll.u32 %v15580_v51, 16  ;;  %v3299_v46 = vrot.slane %v15589_v56, 3  ;;  %v3300_v26 = vrot.slane %v15591_v57, 3 }
  0x67   : > { %v15930_v38 = vrot.slane %v20749_v17, 4  ;;  %v15937_v4 = vrot.slane %v20750_v33, 3  ;;  %v3298_v17 = vsel %vm3265_vm6, %v3296_v31, %v3297_v37  ;;  %v20346_v43 = vshrl.u32 %v15589_v56, 16 }
  0x68   : > { %v15941_v32 = vrot.slane %v20751_v36, 4  ;;  %v20752_v31 = vshrl.u32 %v15587_v55, 16  ;;  %v20753_v42 = vshll.u32 %v15587_v55, 16  ;;  %v3301_v33 = vsel %vm3265_vm6, %v3299_v46, %v3300_v26 }
  0x69   : > { %3585 = vrot.lane.b32.xlu0 %v3298_v17, %s15225_s29  ;;  %v891_v20 = vrot.slane %v20346_v43, 3  ;;  %v3302_v51 = vrot.slane %v15596_v59, 3  ;;  %v20757_v17 = vshrl.u32 %v15596_v59, 16  ;;  %v20758_v46 = vshll.u32 %v15596_v59, 16 }
  0x6a   : > { %v15959_v37 = vrot.slane %v20752_v31, 3  ;;  %12483 = vmatmul.mubr.msk.bf16.gmra.mrb[24].mxu0 %vm1074_vm5, %v15695_v5  ;;  %3583 = vrot.lane.b32.xlu1 %v3295_v24, %s15225_s29  ;;  %v15971_v41 = vrot.slane %v20753_v42, 4  ;;  %v20754_v24 = vshll.u32 %v15589_v56, 16  ;;  %v20755_v42 = vshrl.u32 %v15591_v57, 16 }
  0x6b   : > { %12486 = vmatprep.mubr.msk.bf16.mxu0 %vm1074_vm5, %v15702_v1  ;;  %v20756_v31 = vshll.u32 %v15591_v57, 16  ;;  %v908_v35 = vrot.slane %v20757_v17, 3  ;;  %v3303_v1 = vrot.slane %v15598_v60, 3  ;;  %v911_v26 = vrot.slane %v20758_v46, 4 }
  0x6c   : > { %v894_v36 = vrot.slane %v20754_v24, 4  ;;  %v899_v5 = vrot.slane %v20755_v42, 3  ;;  %v3305_v43 = vrot.slane %v15609_v6, 3  ;;  %v3306_v24 = vrot.slane %v15628_v19, 3 }
  0x6d   : > { %v902_v55 = vrot.slane %v20756_v31, 4  ;;  %v20359_v56 = vshrl.u32 %v15609_v6, 16  ;;  %v20759_v42 = vshrl.u32 %v15598_v60, 16  ;;  %v20760_v31 = vshll.u32 %v15598_v60, 16 }
  0x6e   : > { %3587 = vrot.lane.b32.xlu1 %v3301_v33, %s15225_s29  ;;  %v3304_v17 = vsel %vm3265_vm6, %v3302_v51, %v3303_v1  ;;  %v20360_v28 = vshll.u32 %v15609_v6, 16  ;;  %v3307_v46 = vsel %vm3265_vm6, %v3305_v43, %v3306_v24  ;;  %v20361_v27 = vshrl.u32 %v15628_v19, 16 }
  0x6f   : > { %v916_v57 = vrot.slane %v20759_v42, 3  ;;  %v919_v29 = vrot.slane %v20760_v31, 4  ;;  %3589 = vrot.lane.b32.xlu0 %v3304_v17, %s15225_s29  ;;  %v925_v59 = vrot.slane %v20359_v56, 3  ;;  %v20362_v33 = vshll.u32 %v15628_v19, 16 }
  0x70   : > { %v886_v42 = vor.u32 %v15971_v41, %v15959_v37  ;;  %v928_v31 = vrot.slane %v20360_v28, 4  ;;  %v933_v43 = vrot.slane %v20361_v27, 3  ;;  %v895_v41 = vor.u32 %v894_v36, %v891_v20 }
  0x71   : > { %v936_v24 = vrot.slane %v20362_v33, 4  ;;  %v903_v37 = vor.u32 %v902_v55, %v899_v5  ;;  %v912_v28 = vor.u32 %v911_v26, %v908_v35  ;;  %v3308_v1 = vrot.slane %v15630_v22, 3 }
  0x72   : > { %12487 = vmatmul.mubr.msk.bf16.gmra.mrb[28].mxu0 %vm1074_vm5, %v15774_v21  ;;  %3591 = vrot.lane.b32.xlu1 %v3307_v46, %s15225_s29  ;;  %v920_v27 = vor.u32 %v919_v29, %v916_v57  ;;  %v929_v51 = vor.u32 %v928_v31, %v925_v59  ;;  %v20761_v33 = vshrl.u32 %v15630_v22, 16  ;;  %v3309_v56 = vrot.slane %v15632_v23, 3 }
  0x73   : > { %12492 = vmatprep.mubr.msk.bf16.mxu0 %vm1074_vm5, %v15745_v63  ;;  %v937_v19 = vor.u32 %v936_v24, %v933_v43  ;;  %v20762_v20 = vshll.u32 %v15630_v22, 16  ;;  %v3311_v35 = vrot.slane %v15642_v34, 3  ;;  %v3312_v5 = vrot.slane %v15644_v39, 3 }
  0x74   : > { %v16028_v17 = vrot.slane %v20761_v33, 3  ;;  %v20763_v36 = vshrl.u32 %v15632_v23, 16  ;;  %v20764_v29 = vshll.u32 %v15632_v23, 16  ;;  %v3310_v59 = vsel %vm3265_vm6, %v3308_v1, %v3309_v56 }
  0x75   : > { %v16033_v55 = vrot.slane %v20762_v20, 4  ;;  %v957_v26 = vshrl.u32 %v15642_v34, 16  ;;  %v20765_v46 = vor.u32 %v15803_v45, %v15799_v50  ;;  %v20766_v33 = vor.u32 %v15795_v9, %v15791_v13  ;;  %3593 = vrot.lane.b32.xlu0 %v3310_v59, %s15225_s29 }
  0x76   : > { %v16039_v63 = vrot.slane %v20763_v36, 3  ;;  %v16043_v57 = vrot.slane %v20764_v29, 4  ;;  %v20768_v43 = vor.u32 %v15846_v62, %v15842_v30  ;;  %v20769_v24 = vor.u32 %v15811_v49, %v15807_v40 }
  0x77   : > { %v16054_v31 = vsel %vm717_vm7, %v20766_v33, %v20765_v46  ;;  %v3313_v56 = vsel %vm3265_vm6, %v3311_v35, %v3312_v5  ;;  %v960_v50 = vshll.u32 %v15642_v34, 16  ;;  %v20771_v13 = vor.u32 %v15867_v61, %v15863_v53 }
  0x78   : > { %20767 = vst [vmem:[#allocation44_spill] sm:$0xff] %v16054_v31  ;;  %v16063_v20 = vsel %vm717_vm7, %v20769_v24, %v20768_v43  ;;  %v20772_v9 = vor.u32 %v15858_v2, %v15854_v15  ;;  %v20774_v40 = vor.u32 %v15911_v8, %v15907_v58  ;;  %v20775_v49 = vor.u32 %v15877_v47, %v15873_v25 }
  0x79   : > { %20770 = vst [vmem:[#allocation45_spill] sm:$0xff] %v16063_v20  ;;  %v20777_v62 = vor.u32 %v15930_v38, %v15926_v54  ;;  %v20778_v53 = vor.u32 %v15920_v16, %v15916_v14  ;;  %v20780_v15 = vor.u32 %v15941_v32, %v15937_v4  ;;  %3595 = vrot.lane.b32.xlu1 %v3313_v56, %s15225_s29  ;;  %v965_v38 = vshrl.u32 %v15644_v39, 16 }
  0x7a   : > { %v16075_v45 = vsel %vm717_vm7, %v20772_v9, %v20771_v13  ;;  %v16084_v30 = vsel %vm717_vm7, %v20775_v49, %v20774_v40  ;;  %v16103_v25 = vsel %vm717_vm7, %v895_v41, %v903_v37  ;;  %v16106_v47 = vsel %vm717_vm7, %v912_v28, %v920_v27  ;;  %12493 = vmatmul.mubr.msk.bf16.vlgmr.msra.gmra.mrb[0].mxu0 %vm1074_vm5, %v15779_v44  ;;  %v20785_v37 = vld [vmem:[#allocation31_spill] sm:$0xff]  ;;  %v20790_v9 = vld [vmem:[#allocation5_spill] sm:$0xff] }
  0x7b   : > { %20773 = vst [vmem:[#allocation46_spill] sm:$0xff] %v16075_v45  ;;  %20776 = vst [vmem:[#allocation47_spill] sm:$0xff] %v16084_v30  ;;  %v16093_v2 = vsel %vm717_vm7, %v20778_v53, %v20777_v62  ;;  %v16099_v61 = vsel %vm717_vm7, %v20780_v15, %v886_v42  ;;  %v20365_v58 = vshll.u32 %v15644_v39, 16  ;;  %v16111_v14 = vsel %vm717_vm7, %v929_v51, %v937_v19 }
  0x7c   : > { %20779 = vst [vmem:[#allocation48_spill] sm:$0xff] %v16093_v2  ;;  %20781 = vst [vmem:[#allocation49_spill] sm:$0xff] %v16099_v61  ;;  %v16119_v8 = vrot.slane %v957_v26, 3  ;;  %v16125_v27 = vrot.slane %v960_v50, 4  ;;  %v3810_v19 = vrot.slane %v15434_v10, 5  ;;  %12496 = vmatprep.mubr.msk.bf16.mxu0 %vm1074_vm5, %v15785_v3  ;;  %v3811_v4 = vrot.slane %v15436_v11, 5 }
  0x7d   : > { %20782 = vst [vmem:[#allocation50_spill] sm:$0xff] %v16103_v25  ;;  %20783 = vst [vmem:[#allocation51_spill] sm:$0xff] %v16106_v47  ;;  %v3813_v42 = vrot.slane %v15438_v12, 5  ;;  %v3814_v51 = vrot.slane %v15442_v18, 5  ;;  %v16137_v1 = vrot.slane %v965_v38, 3  ;;  %v16141_v41 = vrot.slane %v20365_v58, 4 }
  0x7e   : > { %20784 = vst [vmem:[#allocation52_spill] sm:$0xff] %v16111_v14  ;;  %v1664_v35 = vsel %vm1123_vm1, %v20785_v37, 0  ;;  %v16149_v11 = vld [vmem:[%s20261_s1 + $0x6] sm:$0x3]  ;;  %v3812_v5 = vsel %vm3809_vm8, %v3810_v19, %v3811_v4  ;;  %v20786_v29 = vshrl.u32 %v15438_v12, 16  ;;  %v20787_v46 = vshll.u32 %v15438_v12, 16 }
  0x7f   : > { %v3815_v36 = vsel %vm3809_vm8, %v3813_v42, %v3814_v51  ;;  %12525 = vmatpush3.bf16.msra.mxu0 %v1664_v35  ;;  %3860 = vrot.lane.b32.xlu0 %v3812_v5, %s15225_s29  ;;  %v20788_v43 = vshrl.u32 %v15442_v18, 16  ;;  %v20789_v56 = vshll.u32 %v15442_v18, 16  ;;  %v20791_v40 = vshrl.u32 %v20790_v9, 16  ;;  %v20793_v12 = vld [vmem:[#allocation6_spill] sm:$0xff] }
  0x80   : > { %v1501_v59 = vrot.slane %v20786_v29, 4  ;;  %v1502_v33 = vrot.slane %v20787_v46, 5  ;;  %3862 = vrot.lane.b32.xlu1 %v3815_v36, %s15225_s29  ;;  %v20792_v53 = vshll.u32 %v20790_v9, 16  ;;  %v20794_v19 = vshrl.u32 %v20793_v12, 16  ;;  %14707 = vmatprep.subr.msk.bf16.mxu0 %vm1123_vm1, %v16149_v11 }
  0x81   : > { %v1504_v24 = vrot.slane %v20788_v43, 4  ;;  %v1505_v13 = vrot.slane %v20789_v56, 5  ;;  %v1508_v49 = vrot.slane %v20791_v40, 4  ;;  %v20795_v42 = vshll.u32 %v20793_v12, 16 }
  0x82   : > { %v1503_v62 = vor.u32 %v1502_v33, %v1501_v59  ;;  %v1509_v15 = vrot.slane %v20792_v53, 5  ;;  %v1511_v4 = vrot.slane %v20794_v19, 4  ;;  %v3816_v18 = vrot.slane %v20790_v9, 5  ;;  %v20796_v59 = vld [vmem:[#allocation7_spill] sm:$0xff]  ;;  %12497 = vmatmul.mubr.msk.bf16.gmra.mrb[4].mxu0 %vm1074_vm5, %v15825_v7  ;;  %v20802_v19 = vld [vmem:[#allocation9_spill] sm:$0xff] }
  0x83   : > { %v1512_v51 = vrot.slane %v20795_v42, 5  ;;  %v1506_v37 = vor.u32 %v1505_v13, %v1504_v24  ;;  %v3817_v35 = vrot.slane %v20793_v12, 5  ;;  %v3819_v5 = vrot.slane %v15498_v0, 5  ;;  %12500 = vmatprep.mubr.msk.bf16.mxu0 %vm1074_vm5, %v16054_v31 }
  0x84   : > { %v1510_v36 = vor.u32 %v1509_v15, %v1508_v49  ;;  %v3820_v46 = vrot.slane %v20796_v59, 5  ;;  %v20797_v33 = vshrl.u32 %v15498_v0, 16  ;;  %v20798_v13 = vshll.u32 %v15498_v0, 16 }
  0x85   : > { %v1513_v29 = vor.u32 %v1512_v51, %v1511_v4  ;;  %v16182_v56 = vsel %vm1500_vm9, %v1503_v62, %v1506_v37  ;;  %v3818_v24 = vsel %vm3809_vm8, %v3816_v18, %v3817_v35  ;;  %v20799_v40 = vshrl.u32 %v20796_v59, 16  ;;  %v20805_v18 = vld [vmem:[#allocation10_spill] sm:$0xff] }
  0x86   : > { %v1515_v43 = vrot.slane %v20797_v33, 4  ;;  %v1516_v9 = vrot.slane %v20798_v13, 5  ;;  %3864 = vrot.lane.b32.xlu0 %v3818_v24, %s15225_s29  ;;  %v3821_v15 = vsel %vm3809_vm8, %v3819_v5, %v3820_v46  ;;  %v20801_v62 = vshll.u32 %v20796_v59, 16  ;;  %v20808_v46 = vld [vmem:[#allocation11_spill] sm:$0xff] }
  0x87   : > { %v1518_v49 = vrot.slane %v20799_v40, 4  ;;  %v16192_v53 = vsel %vm1500_vm9, %v1510_v36, %v1513_v29  ;;  %v20803_v4 = vshrl.u32 %v20802_v19, 16  ;;  %3866 = vrot.lane.b32.xlu1 %v3821_v15, %s15225_s29  ;;  %v20804_v51 = vshll.u32 %v20802_v19, 16  ;;  %v20809_v15 = vld [vmem:[#allocation12_spill] sm:$0xff] }
  0x88   : > { %20800 = vst [vmem:[#allocation31_spill] sm:$0xff] %v16192_v53  ;;  %v1519_v12 = vrot.slane %v20801_v62, 5  ;;  %v1517_v42 = vor.u32 %v1516_v9, %v1515_v43  ;;  %v20806_v35 = vshrl.u32 %v20805_v18, 16  ;;  %v20807_v29 = vshll.u32 %v20805_v18, 16 }
  0x89   : > { %v1522_v0 = vrot.slane %v20803_v4, 4  ;;  %v1523_v37 = vrot.slane %v20804_v51, 5  ;;  %v3822_v5 = vrot.slane %v20802_v19, 5  ;;  %v3823_v59 = vrot.slane %v20805_v18, 5 }
  0x8a   : > { %v1525_v36 = vrot.slane %v20806_v35, 4  ;;  %v1526_v33 = vrot.slane %v20807_v29, 5  ;;  %v1520_v24 = vor.u32 %v1519_v12, %v1518_v49  ;;  %v3825_v13 = vrot.slane %v20808_v46, 5  ;;  %12501 = vmatmul.mubr.msk.bf16.gmra.mrb[8].mxu0 %vm1074_vm5, %v16063_v20 }
  0x8b   : > { %v1524_v40 = vor.u32 %v1523_v37, %v1522_v0  ;;  %v3826_v43 = vrot.slane %v20809_v15, 5  ;;  %v20810_v9 = vshrl.u32 %v20808_v46, 16  ;;  %v3824_v35 = vsel %vm3809_vm8, %v3822_v5, %v3823_v59  ;;  %12504 = vmatprep.mubr.msk.bf16.mxu0 %vm1074_vm5, %v16075_v45 }
  0x8c   : > { %v1527_v62 = vor.u32 %v1526_v33, %v1525_v36  ;;  %v16214_v51 = vsel %vm1500_vm9, %v1517_v42, %v1520_v24  ;;  %v20812_v49 = vshll.u32 %v20808_v46, 16  ;;  %v20813_v19 = vshrl.u32 %v20809_v15, 16  ;;  %3868 = vrot.lane.b32.xlu0 %v3824_v35, %s15225_s29  ;;  %v20816_v42 = vld [vmem:[#allocation13_spill] sm:$0xff] }
  0x8d   : > { %v1529_v4 = vrot.slane %v20810_v9, 4  ;;  %20811 = vst [vmem:[#allocation5_spill] sm:$0xff] %v16214_v51  ;;  %v3827_v0 = vsel %vm3809_vm8, %v3825_v13, %v3826_v43  ;;  %v20815_v37 = vshll.u32 %v20809_v15, 16  ;;  %v20817_v33 = vshrl.u32 %v20816_v42, 16  ;;  %v20819_v9 = vld [vmem:[#allocation15_spill] sm:$0xff] }
  0x8e   : > { %v1530_v12 = vrot.slane %v20812_v49, 5  ;;  %v1532_v18 = vrot.slane %v20813_v19, 4  ;;  %v16222_v29 = vsel %vm1500_vm9, %v1524_v40, %v1527_v62  ;;  %3870 = vrot.lane.b32.xlu1 %v3827_v0, %s15225_s29  ;;  %v20818_v59 = vshll.u32 %v20816_v42, 16  ;;  %v20822_v19 = vld [vmem:[#allocation16_spill] sm:$0xff] }
  0x8f   : > { %20814 = vst [vmem:[#allocation6_spill] sm:$0xff] %v16222_v29  ;;  %v1533_v36 = vrot.slane %v20815_v37, 5  ;;  %v1536_v24 = vrot.slane %v20817_v33, 4  ;;  %v20820_v49 = vshrl.u32 %v20819_v9, 16  ;;  %v20821_v62 = vshll.u32 %v20819_v9, 16  ;;  %v20823_v37 = vld [vmem:[#allocation17_spill] sm:$0xff] }
  0x90   : > { %v1531_v5 = vor.u32 %v1530_v12, %v1529_v4  ;;  %v1537_v46 = vrot.slane %v20818_v59, 5  ;;  %v3828_v15 = vrot.slane %v20816_v42, 5  ;;  %v3829_v43 = vrot.slane %v20819_v9, 5 }
  0x91   : > { %v1539_v40 = vrot.slane %v20820_v49, 4  ;;  %v1540_v35 = vrot.slane %v20821_v62, 5  ;;  %v1534_v13 = vor.u32 %v1533_v36, %v1532_v18  ;;  %v3831_v0 = vrot.slane %v20822_v19, 5 }
  0x92   : > { %v1538_v4 = vor.u32 %v1537_v46, %v1536_v24  ;;  %v3832_v33 = vrot.slane %v20823_v37, 5  ;;  %v20824_v59 = vshrl.u32 %v20822_v19, 16  ;;  %v3830_v18 = vsel %vm3809_vm8, %v3828_v15, %v3829_v43  ;;  %12505 = vmatmul.mubr.msk.bf16.gmra.mrb[12].mxu0 %vm1074_vm5, %v16084_v30 }
  0x93   : > { %v1541_v12 = vor.u32 %v1540_v35, %v1539_v40  ;;  %v16248_v62 = vsel %vm1500_vm9, %v1531_v5, %v1534_v13  ;;  %v20826_v36 = vshll.u32 %v20822_v19, 16  ;;  %v20827_v9 = vshrl.u32 %v20823_v37, 16  ;;  %3872 = vrot.lane.b32.xlu0 %v3830_v18, %s15225_s29  ;;  %v20830_v5 = vld [vmem:[#allocation19_spill] sm:$0xff]  ;;  %12508 = vmatprep.mubr.msk.bf16.mxu0 %vm1074_vm5, %v16093_v2 }
  0x94   : > { %v1543_v49 = vrot.slane %v20824_v59, 4  ;;  %20825 = vst [vmem:[#allocation7_spill] sm:$0xff] %v16248_v62  ;;  %v3833_v24 = vsel %vm3809_vm8, %v3831_v0, %v3832_v33  ;;  %v20829_v46 = vshll.u32 %v20823_v37, 16  ;;  %v20831_v35 = vshrl.u32 %v20830_v5, 16  ;;  %v20833_v59 = vld [vmem:[#allocation20_spill] sm:$0xff]  ;;  %v20836_v33 = vld [vmem:[#allocation21_spill] sm:$0xff] }
  0x95   : > { %v1544_v42 = vrot.slane %v20826_v36, 5  ;;  %v1546_v32 = vrot.slane %v20827_v9, 4  ;;  %v16256_v16 = vsel %vm1500_vm9, %v1538_v4, %v1541_v12  ;;  %3874 = vrot.lane.b32.xlu1 %v3833_v24, %s15225_s29  ;;  %v20832_v43 = vshll.u32 %v20830_v5, 16  ;;  %v20837_v24 = vld [vmem:[#allocation22_spill] sm:$0xff] }
  0x96   : > { %20828 = vst [vmem:[#allocation9_spill] sm:$0xff] %v16256_v16  ;;  %v1547_v40 = vrot.slane %v20829_v46, 5  ;;  %v1550_v13 = vrot.slane %v20831_v35, 4  ;;  %v20834_v36 = vshrl.u32 %v20833_v59, 16  ;;  %v20835_v12 = vshll.u32 %v20833_v59, 16 }
  0x97   : > { %v1545_v15 = vor.u32 %v1544_v42, %v1543_v49  ;;  %v1551_v19 = vrot.slane %v20832_v43, 5  ;;  %v3834_v0 = vrot.slane %v20830_v5, 5  ;;  %v3835_v37 = vrot.slane %v20833_v59, 5 }
  0x98   : > { %v1553_v4 = vrot.slane %v20834_v36, 4  ;;  %v1554_v18 = vrot.slane %v20835_v12, 5  ;;  %v1548_v9 = vor.u32 %v1547_v40, %v1546_v32  ;;  %v3837_v46 = vrot.slane %v20836_v33, 5  ;;  %v20844_v12 = vld [vmem:[#allocation23_spill] sm:$0xff] }
  0x99   : > { %v1552_v35 = vor.u32 %v1551_v19, %v1550_v13  ;;  %v3838_v49 = vrot.slane %v20837_v24, 5  ;;  %v20838_v42 = vshrl.u32 %v20836_v33, 16  ;;  %v3836_v36 = vsel %vm3809_vm8, %v3834_v0, %v3835_v37 }
  0x9a   : > { %v1555_v10 = vor.u32 %v1554_v18, %v1553_v4  ;;  %v16278_v54 = vsel %vm1500_vm9, %v1545_v15, %v1548_v9  ;;  %v20840_v32 = vshll.u32 %v20836_v33, 16  ;;  %v20841_v5 = vshrl.u32 %v20837_v24, 16  ;;  %3876 = vrot.lane.b32.xlu0 %v3836_v36, %s15225_s29  ;;  %v20847_v33 = vld [vmem:[#allocation25_spill] sm:$0xff]  ;;  %12509 = vmatmul.mubr.msk.bf16.gmra.mrb[16].mxu0 %vm1074_vm5, %v16099_v61 }
  0x9b   : > { %v1557_v43 = vrot.slane %v20838_v42, 4  ;;  %20839 = vst [vmem:[#allocation10_spill] sm:$0xff] %v16278_v54  ;;  %v3839_v19 = vsel %vm3809_vm8, %v3837_v46, %v3838_v49  ;;  %v20843_v15 = vshll.u32 %v20837_v24, 16  ;;  %v20845_v18 = vshrl.u32 %v20844_v12, 16  ;;  %12512 = vmatprep.mubr.msk.bf16.mxu0 %vm1074_vm5, %v16103_v25 }
  0x9c   : > { %v1558_v40 = vrot.slane %v20840_v32, 5  ;;  %v1560_v59 = vrot.slane %v20841_v5, 4  ;;  %v16288_v13 = vsel %vm1500_vm9, %v1552_v35, %v1555_v10  ;;  %3878 = vrot.lane.b32.xlu1 %v3839_v19, %s15225_s29  ;;  %v20846_v37 = vshll.u32 %v20844_v12, 16  ;;  %v20850_v5 = vld [vmem:[#allocation26_spill] sm:$0xff]  ;;  %v20851_v19 = vld [vmem:[#allocation27_spill] sm:$0xff] }
  0x9d   : > { %20842 = vst [vmem:[#allocation11_spill] sm:$0xff] %v16288_v13  ;;  %v1561_v4 = vrot.slane %v20843_v15, 5  ;;  %v1564_v9 = vrot.slane %v20845_v18, 4  ;;  %v20848_v35 = vshrl.u32 %v20847_v33, 16  ;;  %v20849_v46 = vshll.u32 %v20847_v33, 16 }
  0x9e   : > { %v1559_v0 = vor.u32 %v1558_v40, %v1557_v43  ;;  %v1565_v10 = vrot.slane %v20846_v37, 5  ;;  %v3840_v36 = vrot.slane %v20844_v12, 5  ;;  %v3841_v32 = vrot.slane %v20847_v33, 5 }
  0x9f   : > { %v1567_v42 = vrot.slane %v20848_v35, 4  ;;  %v1568_v49 = vrot.slane %v20849_v46, 5  ;;  %v1562_v24 = vor.u32 %v1561_v4, %v1560_v59  ;;  %v3843_v15 = vrot.slane %v20850_v5, 5 }
  0xa0   : > { %v1566_v18 = vor.u32 %v1565_v10, %v1564_v9  ;;  %v3844_v43 = vrot.slane %v20851_v19, 5  ;;  %v20852_v40 = vshrl.u32 %v20850_v5, 16  ;;  %v3842_v35 = vsel %vm3809_vm8, %v3840_v36, %v3841_v32 }
  0xa1   : > { %v1569_v28 = vor.u32 %v1568_v49, %v1567_v42  ;;  %v16312_v58 = vsel %vm1500_vm9, %v1559_v0, %v1562_v24  ;;  %v20854_v59 = vshll.u32 %v20850_v5, 16  ;;  %v20855_v12 = vshrl.u32 %v20851_v19, 16  ;;  %3880 = vrot.lane.b32.xlu0 %v3842_v35, %s15225_s29  ;;  %v20858_v0 = vld [vmem:[#allocation29_spill] sm:$0xff] }
  0xa2   : > { %v1571_v37 = vrot.slane %v20852_v40, 4  ;;  %20853 = vst [vmem:[#allocation12_spill] sm:$0xff] %v16312_v58  ;;  %v3845_v9 = vsel %vm3809_vm8, %v3843_v15, %v3844_v43  ;;  %v20857_v10 = vshll.u32 %v20851_v19, 16  ;;  %v20859_v49 = vshrl.u32 %v20858_v0, 16  ;;  %12513 = vmatmul.mubr.msk.bf16.gmra.mrb[20].mxu0 %vm1074_vm5, %v16106_v47 }
  0xa3   : > { %v1572_v4 = vrot.slane %v20854_v59, 5  ;;  %v1574_v33 = vrot.slane %v20855_v12, 4  ;;  %v16320_v46 = vsel %vm1500_vm9, %v1566_v18, %v1569_v28  ;;  %3882 = vrot.lane.b32.xlu1 %v3845_v9, %s15225_s29  ;;  %v20860_v32 = vshll.u32 %v20858_v0, 16  ;;  %v20863_v12 = vld [vmem:[#allocation33_spill] sm:$0xff]  ;;  %12516 = vmatprep.mubr.msk.bf16.mxu0 %vm1074_vm5, %v16111_v14 }
  0xa4   : > { %20856 = vst [vmem:[#allocation13_spill] sm:$0xff] %v16320_v46  ;;  %v1575_v42 = vrot.slane %v20857_v10, 5  ;;  %v1578_v24 = vrot.slane %v20859_v49, 4  ;;  %v20861_v40 = vshrl.u32 %v15598_v60, 16  ;;  %v20862_v18 = vshll.u32 %v15598_v60, 16 }
  0xa5   : > { %v1573_v36 = vor.u32 %v1572_v4, %v1571_v37  ;;  %v1579_v5 = vrot.slane %v20860_v32, 5  ;;  %v3846_v15 = vrot.slane %v20858_v0, 5  ;;  %v3847_v19 = vrot.slane %v15598_v60, 5 }
  0xa6   : > { %v1581_v28 = vrot.slane %v20861_v40, 4  ;;  %v1582_v35 = vrot.slane %v20862_v18, 5  ;;  %v1576_v59 = vor.u32 %v1575_v42, %v1574_v33  ;;  %v3849_v43 = vrot.slane %v15609_v6, 5 }
  0xa7   : > { %v1580_v37 = vor.u32 %v1579_v5, %v1578_v24  ;;  %v3850_v9 = vrot.slane %v20863_v12, 5  ;;  %v20864_v10 = vshrl.u32 %v15609_v6, 16  ;;  %v3848_v60 = vsel %vm3809_vm8, %v3846_v15, %v3847_v19 }
  0xa8   : > { %v1583_v4 = vor.u32 %v1582_v35, %v1581_v28  ;;  %v16346_v33 = vsel %vm1500_vm9, %v1573_v36, %v1576_v59  ;;  %v20866_v42 = vshll.u32 %v15609_v6, 16  ;;  %v20867_v32 = vshrl.u32 %v20863_v12, 16  ;;  %3884 = vrot.lane.b32.xlu0 %v3848_v60, %s15225_s29 }
  0xa9   : > { %v1585_v49 = vrot.slane %v20864_v10, 4  ;;  %20865 = vst [vmem:[#allocation15_spill] sm:$0xff] %v16346_v33  ;;  %v985_v5 = vshll.u32 %v15723_v48, 16  ;;  %v3851_v28 = vsel %vm3809_vm8, %v3849_v43, %v3850_v9  ;;  %v20869_v36 = vshll.u32 %v20863_v12, 16 }
  0xaa   : > { %v1586_v0 = vrot.slane %v20866_v42, 5  ;;  %v1588_v24 = vrot.slane %v20867_v32, 4  ;;  %v16355_v40 = vsel %vm1500_vm9, %v1580_v37, %v1583_v4  ;;  %3886 = vrot.lane.b32.xlu1 %v3851_v28, %s15225_s29  ;;  %v20870_v6 = vshrl.u32 %v15630_v22, 16 }
  0xab   : > { %20868 = vst [vmem:[#allocation16_spill] sm:$0xff] %v16355_v40  ;;  %v1589_v18 = vrot.slane %v20869_v36, 5  ;;  %v20871_v15 = vshll.u32 %v15630_v22, 16  ;;  %v20872_v37 = vshrl.u32 %v15632_v23, 16  ;;  %v20873_v60 = vshll.u32 %v15632_v23, 16 }
  0xac   : > { %v1587_v35 = vor.u32 %v1586_v0, %v1585_v49  ;;  %v1592_v59 = vrot.slane %v20870_v6, 4  ;;  %v3852_v12 = vrot.slane %v15630_v22, 5  ;;  %v3853_v9 = vrot.slane %v15632_v23, 5 }
  0xad   : > { %v1593_v19 = vrot.slane %v20871_v15, 5  ;;  %v1595_v4 = vrot.slane %v20872_v37, 4  ;;  %v1590_v10 = vor.u32 %v1589_v18, %v1588_v24  ;;  %v1596_v43 = vrot.slane %v20873_v60, 5  ;;  %v229_v18 = vld [vmem:[%s15428_s28 + $0x78] sm:$0xf] }
  0xae   : > { %v3855_v42 = vrot.slane %v15642_v34, 5  ;;  %v3856_v0 = vrot.slane %v15644_v39, 5  ;;  %v1599_v32 = vrot.slane %v957_v26, 4  ;;  %v3854_v36 = vsel %vm3809_vm8, %v3852_v12, %v3853_v9 }
  0xaf   : > { %v1594_v49 = vor.u32 %v1593_v19, %v1592_v59  ;;  %v16377_v28 = vsel %vm1500_vm9, %v1587_v35, %v1590_v10  ;;  %v1597_v24 = vor.u32 %v1596_v43, %v1595_v4  ;;  %v1600_v22 = vrot.slane %v960_v50, 5  ;;  %3888 = vrot.lane.b32.xlu0 %v3854_v36, %s15225_s29  ;;  %v230_v19 = vld [vmem:[%s15428_s28 + $0x7c] sm:$0xf]  ;;  %v3322_v10 = vpop.permute.xlu0 %3321  ;;  %v15107_v36 = vld [vmem:[%s20261_s1 + $0x12] sm:$0x3] }
  0xb0   : > { %20874 = vst [vmem:[#allocation17_spill] sm:$0xff] %v16377_v28  ;;  %v3857_v23 = vsel %vm3809_vm8, %v3855_v42, %v3856_v0  ;;  %v1602_v6 = vrot.slane %v965_v38, 4  ;;  %v20875_v59 = vshll.u32 %v15644_v39, 16  ;;  %v20876_v35 = vshrl.u32 %v15721_v52, 16  ;;  %12764 = vmatprep.mubr.msk.bf16.mxu1 %vm1074_vm5, %v3322_v10 }
  0xb1   : > { %v16395_v34 = vsel %vm1500_vm9, %v1594_v49, %v1597_v24  ;;  %3890 = vrot.lane.b32.xlu1 %v3857_v23, %s15225_s29  ;;  %v1601_v50 = vor.u32 %v1600_v22, %v1599_v32  ;;  %v20878_v37 = vshll.u32 %v15721_v52, 16  ;;  %v20879_v38 = vshrl.u32 %v15723_v48, 16 }
  0xb2   : > { %v1603_v26 = vrot.slane %v20875_v59, 5  ;;  %v1606_v15 = vrot.slane %v20876_v35, 4  ;;  %20877 = vst [vmem:[#allocation19_spill] sm:$0xff] %v16395_v34  ;;  %v1610_v43 = vrot.slane %v985_v5, 5  ;;  %v11161_v12 = vcombine.low %v229_v18, %v229_v18 }
  0xb3   : > { %v1607_v4 = vrot.slane %v20878_v37, 5  ;;  %v1609_v39 = vrot.slane %v20879_v38, 4  ;;  %v963_v9 = vor.u32 %v16125_v27, %v16119_v8  ;;  %v971_v49 = vor.u32 %v16141_v41, %v16137_v1  ;;  %v3324_v23 = vpop.permute.xlu0 %3323 }
  0xb4   : > { %v1604_v60 = vor.u32 %v1603_v26, %v1602_v6  ;;  %v11162_v0 = vcombine.low %v230_v19, %v230_v19  ;;  %457 = vst.msk [vmem:[#allocation2 + $0x170] sm:$0xf0] %vm425_vm2, %v11161_v12  ;;  %v3646_v22 = vsel %vm1123_vm1, %v15107_v36, 0  ;;  %v20881_v8 = vor.u32 %v16043_v57, %v16039_v63  ;;  %12765 = vmatmul.mubr.msk.bf16.vlgmr.msra.gmra.mrb[0].mxu1 %vm1074_vm5, %v3324_v23  ;;  %v509_v23 = vld [vmem:[#allocation2 + $0x190] sm:$0xff] }
  0xb5   : > { %v1608_v42 = vor.u32 %v1607_v4, %v1606_v15  ;;  %v1611_v24 = vor.u32 %v1610_v43, %v1609_v39  ;;  %v20882_v27 = vor.u32 %v16033_v55, %v16028_v17  ;;  %v20884_v41 = vmov %v20876_v35  ;;  %v16436_v17 = vld [vmem:[%s20261_s1 + $0x16] sm:$0x3]  ;;  %12797 = vmatpush3.bf16.msra.mxu1 %v3646_v22 }
  0xb6   : > { %v16410_v32 = vsel %vm1500_vm9, %v1601_v50, %v1604_v60  ;;  %v976_v18 = vrot.slane %v20884_v41, 3  ;;  %458 = vst.msk [vmem:[#allocation2 + $0x178] sm:$0xf] %vm427_vm3, %v11162_v0  ;;  %v20885_v6 = vmov %v20878_v37  ;;  %v20886_v26 = vmov %v20879_v38  ;;  %14715 = vmatprep.subr.msk.bf16.mxu1 %vm1123_vm1, %v16436_v17  ;;  %v16453_v37 = vpop.permute.xlu1 %3325 }
  0xb7   : > { %20880 = vst [vmem:[#allocation20_spill] sm:$0xff] %v16410_v32  ;;  %v16424_v1 = vsel %vm717_vm7, %v20882_v27, %v20881_v8  ;;  %v979_v59 = vrot.slane %v20885_v6, 4  ;;  %v984_v35 = vrot.slane %v20886_v26, 3  ;;  %v987_v15 = vrot.slane %v985_v5, 4  ;;  %20889 = vst [vmem:[#allocation25_spill] sm:$0xff] %v16453_v37  ;;  %12768 = vmatprep.mubr.msk.bf16.mxu1 %vm1074_vm5, %v16453_v37  ;;  %v16468_v12 = vpop.permute.xlu0 %3329  ;;  %v510_v6 = vld [vmem:[#allocation2 + $0x198] sm:$0xff] }
  0xb8   : > { %20883 = vst [vmem:[#allocation21_spill] sm:$0xff] %v16424_v1  ;;  %v16439_v55 = vsel %vm1500_vm9, %v1608_v42, %v1611_v24  ;;  %v16443_v63 = vsel %vm717_vm7, %v963_v9, %v971_v49  ;;  %12517 = vmatmul.mubr.msk.bf16.gmra.mrb[24].mxu0 %vm1074_vm5, %v16424_v1  ;;  %v4136_v57 = vrot.slane %v15721_v52, 3  ;;  %v4137_v5 = vrot.slane %v15723_v48, 3  ;;  %20891 = vst [vmem:[#allocation27_spill] sm:$0xff] %v16468_v12  ;;  %v20927_v37 = vld [vmem:[#allocation36_spill] sm:$0xff] }
  0xb9   : > { %20887 = vst [vmem:[#allocation22_spill] sm:$0xff] %v16439_v55  ;;  %20888 = vst [vmem:[#allocation23_spill] sm:$0xff] %v16443_v63  ;;  %12520 = vmatprep.mubr.msk.bf16.mxu0 %vm1074_vm5, %v16443_v63  ;;  %v980_v19 = vor.u32 %v979_v59, %v976_v18  ;;  %v988_v50 = vor.u32 %v987_v15, %v984_v35  ;;  %v1882_v8 = vsel %vm1123_vm1, %v16149_v11, 0  ;;  %v4558_v11 = vrot.slane %v15721_v52, 5 }
  0xba   : > { %v4138_v4 = vsel %vm3265_vm6, %v4136_v57, %v4137_v5  ;;  %v16470_v9 = vpop.permute.xlu1 %3327  ;;  %v4559_v18 = vrot.slane %v15723_v48, 5  ;;  %v4777_v59 = vrot.slane %v509_v23, 3  ;;  %v4778_v26 = vrot.slane %v510_v6, 3  ;;  %v507_v57 = vld [vmem:[#allocation2 + $0x180] sm:$0xff]  ;;  %v508_v5 = vld [vmem:[#allocation2 + $0x188] sm:$0xff] }
  0xbb   : > { %v16456_v38 = vld [vmem:[#allocation2 + $0x170] sm:$0xff]  ;;  %4144 = vrot.lane.b32.xlu0 %v4138_v4, %s15225_s29  ;;  %v16466_v43 = vsel %vm717_vm7, %v980_v19, %v988_v50  ;;  %20892 = vst [vmem:[#allocation29_spill] sm:$0xff] %v16470_v9  ;;  %v16493_v22 = vpop.permute.xlu0 %3333  ;;  %v4774_v50 = vrot.slane %v507_v57, 3  ;;  %v4775_v4 = vrot.slane %v508_v5, 3 }
  0xbc   : > { %v4139_v10 = vrot.slane %v16456_v38, 3  ;;  %20890 = vst [vmem:[#allocation26_spill] sm:$0xff] %v16466_v43  ;;  %12769 = vmatmul.mubr.msk.bf16.gmra.mrb[4].mxu1 %vm1074_vm5, %v16470_v9  ;;  %v2079_v42 = vrot.slane %v16456_v38, 4  ;;  %20895 = vst [vmem:[#allocation54_spill] sm:$0xff] %v16493_v22  ;;  %v4561_v27 = vrot.slane %v16456_v38, 5  ;;  %v4560_v15 = vsel %vm3809_vm8, %v4558_v11, %v4559_v18  ;;  %v20924_v9 = vld [vmem:[#allocation32_spill] sm:$0xff] }
  0xbd   : > { %v16461_v39 = vld [vmem:[#allocation2 + $0x178] sm:$0xff]  ;;  %12772 = vmatprep.mubr.msk.bf16.mxu1 %vm1074_vm5, %v16468_v12  ;;  %v4779_v48 = vsel %vm3265_vm6, %v4777_v59, %v4778_v26 }
  0xbe   : > { %v4140_v60 = vrot.slane %v16461_v39, 3  ;;  %v2080_v0 = vrot.slane %v16461_v39, 4  ;;  %v16491_v36 = vpop.permute.xlu1 %3331  ;;  %v4562_v41 = vrot.slane %v16461_v39, 5 }
  0xbf   : > { %4352 = vrot.lane.b32.xlu0 %v15774_v21, %s15225_s29  ;;  %20894 = vst [vmem:[#allocation53_spill] sm:$0xff] %v16491_v36  ;;  %v16523_v19 = vpop.permute.xlu0 %3337  ;;  %v20945_v21 = vshrl.u32 %v16456_v38, 16 }
  0xc0   : > { %v4141_v49 = vsel %vm3265_vm6, %v4139_v10, %v4140_v60  ;;  %12521 = vmatmul.mubr.msk.bf16.gmra.mrb[28].mxu0 %vm1074_vm5, %v16466_v43  ;;  %v16487_v24 = vsel %vm1023_vm4, %v2079_v42, %v2080_v0  ;;  %v4563_v35 = vsel %vm3809_vm8, %v4561_v27, %v4562_v41  ;;  %20897 = vst [vmem:[#allocation56_spill] sm:$0xff] %v16523_v19  ;;  %v4988_v60 = vrot.slane %v509_v23, 4 }
  0xc1   : > { %4146 = vrot.lane.b32.xlu1 %v4141_v49, %s15225_s29  ;;  %12526 = vmatprep.mubr.msk.bf16.mxu0 %vm1074_vm5, %v16182_v56  ;;  %20893 = vst [vmem:[#allocation33_spill] sm:$0xff] %v16487_v24  ;;  %v16502_v56 = vld [vmem:[%s20261_s1 + $0x8] sm:$0x3]  ;;  %v4776_v10 = vsel %vm3265_vm6, %v4774_v50, %v4775_v4  ;;  %v4989_v49 = vrot.slane %v510_v6, 4  ;;  %v2711_v42 = vrot.slane %v507_v57, 4  ;;  %v2712_v0 = vrot.slane %v508_v5, 4 }
  0xc2   : > { %v16520_v52 = vpop.permute.xlu1 %3335  ;;  %v5203_v27 = vrot.slane %v510_v6, 5  ;;  %v5200_v6 = vrot.slane %v508_v5, 5  ;;  %v16565_v50 = vld [vmem:[#allocation2 + $0x40] sm:$0xff]  ;;  %v16567_v4 = vld [vmem:[#allocation2 + $0x48] sm:$0xff] }
  0xc3   : > { %4566 = vrot.lane.b32.xlu0 %v4560_v15, %s15225_s29  ;;  %20896 = vst [vmem:[#allocation55_spill] sm:$0xff] %v16520_v52  ;;  %v16537_v41 = vsel %vm1023_vm4, %v4988_v60, %v4989_v49  ;;  %v16540_v11 = vsel %vm1023_vm4, %v2711_v42, %v2712_v0  ;;  %v16547_v26 = vpop.permute.xlu0 %3341  ;;  %v16555_v15 = vld [vmem:[#allocation2 + $0x50] sm:$0xff]  ;;  %v5602_v60 = vrot.slane %v16565_v50, 4  ;;  %v5603_v49 = vrot.slane %v16567_v4, 4  ;;  %v16576_v42 = vld [vmem:[#allocation2 + $0x18] sm:$0xff] }
  0xc4   : > { %12773 = vmatmul.mubr.msk.bf16.gmra.mrb[8].mxu1 %vm1074_vm5, %v16491_v36  ;;  %20898 = vst [vmem:[#allocation57_spill] sm:$0xff] %v16537_v41  ;;  %20899 = vst [vmem:[#allocation58_spill] sm:$0xff] %v16540_v11  ;;  %v20921_v36 = vld [vmem:[#allocation34_spill] sm:$0xff] }
  0xc5   : > { %4354 = vrot.lane.b32.xlu1 %v16487_v24, %s15225_s29  ;;  %12776 = vmatprep.mubr.msk.bf16.mxu1 %vm1074_vm5, %v16493_v22  ;;  %20901 = vst [vmem:[#allocation60_spill] sm:$0xff] %v16547_v26 }
  0xc6   : > { %v16544_v18 = vpop.permute.xlu1 %3339 }
  0xc7   : > { %4782 = vrot.lane.b32.xlu0 %v4776_v10, %s15225_s29  ;;  %20900 = vst [vmem:[#allocation59_spill] sm:$0xff] %v16544_v18  ;;  %v16569_v10 = vld [vmem:[#allocation2 + $0x10] sm:$0xff] }
  0xc8   : > { %12527 = vmatmul.mubr.msk.bf16.vlgmr.msra.gmra.mrb[0].mxu0 %vm1074_vm5, %v16192_v53  ;;  %v8066_v0 = vrot.slane %v16569_v10, 4 }
  0xc9   : > { %12530 = vmatprep.mubr.msk.bf16.mxu0 %vm1074_vm5, %v16214_v51  ;;  %12559 = vmatpush3.bf16.msra.mxu0 %v1882_v8  ;;  %v5202_v8 = vrot.slane %v509_v23, 5  ;;  %v5199_v23 = vrot.slane %v507_v57, 5  ;;  %v5605_v57 = vrot.slane %v16555_v15, 4 }
  0xca   : > { %14708 = vmatprep.subr.msk.bf16.mxu0 %vm1123_vm1, %v16502_v56  ;;  %4568 = vrot.lane.b32.xlu1 %v4563_v35, %s15225_s29 }
  0xcb   : > { %v5204_v59 = vsel %vm3809_vm8, %v5202_v8, %v5203_v27  ;;  %4993 = vrot.lane.b32.xlu0 %v16540_v11, %s15225_s29  ;;  %v5201_v35 = vsel %vm3809_vm8, %v5199_v23, %v5200_v6  ;;  %v8067_v27 = vrot.slane %v16576_v42, 4  ;;  %v16583_v23 = vpop.permute.xlu1 %3343  ;;  %v16588_v11 = vld [vmem:[#allocation2 + $0x8] sm:$0xff] }
  0xcc   : > { %12777 = vmatmul.mubr.msk.bf16.gmra.mrb[12].mxu1 %vm1074_vm5, %v16520_v52  ;;  %20902 = vst [vmem:[#allocation61_spill] sm:$0xff] %v16583_v23 }
  0xcd   : > { %12780 = vmatprep.mubr.msk.bf16.mxu1 %vm1074_vm5, %v16523_v19  ;;  %v8068_v6 = vsel %vm1023_vm4, %v8066_v0, %v8067_v27  ;;  %v16605_v0 = vld [vmem:[#allocation2 + $0x38] sm:$0xff]  ;;  %v20907_v19 = vld [vmem:[#allocation3_spill] sm:$0xff] }
  0xce   : > { %4784 = vrot.lane.b32.xlu1 %v4779_v48, %s15225_s29  ;;  %v16557_v48 = vld [vmem:[#allocation2 + $0x58] sm:$0xff] }
  0xcf   : > { %v5606_v5 = vrot.slane %v16557_v48, 4  ;;  %5207 = vrot.lane.b32.xlu0 %v5201_v35, %s15225_s29  ;;  %v16586_v35 = vld [vmem:[#allocation2] sm:$0xff] }
  0xd0   : > { %12531 = vmatmul.mubr.msk.bf16.gmra.mrb[4].mxu0 %vm1074_vm5, %v16222_v29 }
  0xd1   : > { %12534 = vmatprep.mubr.msk.bf16.mxu0 %vm1074_vm5, %v16248_v62  ;;  %v5607_v8 = vsel %vm1023_vm4, %v5605_v57, %v5606_v5  ;;  %v8063_v57 = vrot.slane %v16586_v35, 4  ;;  %v8064_v5 = vrot.slane %v16588_v11, 4 }
  0xd2   : > { %4995 = vrot.lane.b32.xlu1 %v16537_v41, %s15225_s29  ;;  %v16590_v41 = vpop.permute.xlu0 %3345 }
  0xd3   : > { %20903 = vst [vmem:[#allocation62_spill] sm:$0xff] %v16590_v41 }
  0xd4   : > { %12781 = vmatmul.mubr.msk.bf16.gmra.mrb[16].mxu1 %vm1074_vm5, %v16544_v18 }
  0xd5   : > { %12784 = vmatprep.mubr.msk.bf16.mxu1 %vm1074_vm5, %v16547_v26  ;;  %v16619_v26 = vld [vmem:[#allocation2 + $0x28] sm:$0xff] }
  0xd6   : > { %5209 = vrot.lane.b32.xlu1 %v5204_v59, %s15225_s29  ;;  %v5604_v59 = vsel %vm1023_vm4, %v5602_v60, %v5603_v49  ;;  %v8065_v60 = vsel %vm1023_vm4, %v8063_v57, %v8064_v5  ;;  %v16603_v49 = vld [vmem:[#allocation2 + $0x30] sm:$0xff]  ;;  %v20904_v57 = vld [vmem:[#allocation4_spill] sm:$0xff]  ;;  %v16614_v5 = vpop.permute.xlu1 %3347  ;;  %v16621_v18 = vpop.permute.xlu0 %3349  ;;  %v8070_v52 = vrot.slane %v16619_v26, 4 }
  0xd7   : > { %5610 = vrot.lane.b32.xlu0 %v5604_v59, %s15226_s14  ;;  %v8072_v27 = vrot.slane %v16603_v49, 4  ;;  %20905 = vst [vmem:[#allocation4_spill] sm:$0xff] %v16614_v5  ;;  %20906 = vst [vmem:[#allocation63_spill] sm:$0xff] %v16621_v18 }
  0xd8   : > { %12535 = vmatmul.mubr.msk.bf16.gmra.mrb[8].mxu0 %vm1074_vm5, %v16256_v16 }
  0xd9   : > { %12538 = vmatprep.mubr.msk.bf16.mxu0 %vm1074_vm5, %v16278_v54  ;;  %v5552_v54 = vrot.slane %v16565_v50, 2 }
  0xda   : > { %5612 = vrot.lane.b32.xlu1 %v5607_v8, %s15226_s14  ;;  %v16640_v22 = vpop.permute.xlu1 %3351 }
  0xdb   : > { %8077 = vrot.lane.b32.xlu0 %v8065_v60, %s15227_s17  ;;  %20909 = vst [vmem:[#allocation3_spill] sm:$0xff] %v16640_v22 }
  0xdc   : > { %12785 = vmatmul.mubr.msk.bf16.gmra.mrb[20].mxu1 %vm1074_vm5, %v16583_v23  ;;  %v16617_v23 = vld [vmem:[#allocation2 + $0x20] sm:$0xff] }
  0xdd   : > { %12788 = vmatprep.mubr.msk.bf16.mxu1 %vm1074_vm5, %v16590_v41  ;;  %v8069_v60 = vrot.slane %v16617_v23, 4 }
  0xde   : > { %8079 = vrot.lane.b32.xlu1 %v8068_v6, %s15227_s17  ;;  %v8073_v6 = vrot.slane %v16605_v0, 4 }
  0xdf   : > { %5614 = vrot.lane.b32.xlu0 %v20907_v19, %s15226_s14 }
  0xe0   : > { %12539 = vmatmul.mubr.msk.bf16.gmra.mrb[12].mxu0 %vm1074_vm5, %v16288_v13  ;;  %v8074_v41 = vsel %vm1023_vm4, %v8072_v27, %v8073_v6  ;;  %v8071_v27 = vsel %vm1023_vm4, %v8069_v60, %v8070_v52  ;;  %v20908_v6 = vld [vmem:[#allocation14_spill] sm:$0xff]  ;;  %v20911_v52 = vld [vmem:[#allocation24_spill] sm:$0xff]  ;;  %v3568_v60 = vpop.permute.xlu1 %3567  ;;  %v5556_v13 = vrot.slane %v16557_v48, 2 }
  0xe1   : > { %12542 = vmatprep.mubr.msk.bf16.mxu0 %vm1074_vm5, %v16312_v58 }
  0xe2   : > { %5616 = vrot.lane.b32.xlu1 %v20904_v57, %s15226_s14 }
  0xe3   : > { %8081 = vrot.lane.b32.xlu0 %v8071_v27, %s15227_s17  ;;  %v3941_v27 = vsel %vm1123_vm1, %v16436_v17, 0 }
  0xe4   : > { %12789 = vmatmul.mubr.msk.bf16.gmra.mrb[24].mxu1 %vm1074_vm5, %v16614_v5  ;;  %v3566_v5 = vpop.permute.xlu0 %3565  ;;  %v16673_v17 = vpop.permute.xlu1 %3571 }
  0xe5   : > { %12792 = vmatprep.mubr.msk.bf16.mxu1 %vm1074_vm5, %v16621_v18  ;;  %20914 = vst [vmem:[#allocation64_spill] sm:$0xff] %v16673_v17 }
  0xe6   : > { %8083 = vrot.lane.b32.xlu1 %v8074_v41, %s15227_s17  ;;  %v20910_v41 = vld [vmem:[#allocation8_spill] sm:$0xff] }
  0xe7   : > { %5618 = vrot.lane.b32.xlu0 %v20910_v41, %s15226_s14 }
  0xe8   : > { %12543 = vmatmul.mubr.msk.bf16.gmra.mrb[16].mxu0 %vm1074_vm5, %v16320_v46 }
  0xe9   : > { %12546 = vmatprep.mubr.msk.bf16.mxu0 %vm1074_vm5, %v16346_v33  ;;  %v20933_v33 = vld [vmem:[#allocation38_spill] sm:$0xff] }
  0xea   : > { %5620 = vrot.lane.b32.xlu1 %v20908_v6, %s15226_s14 }
  0xeb   : > { %8085 = vrot.lane.b32.xlu0 %v5604_v59, %s15227_s17  ;;  %v20915_v59 = vld [vmem:[#allocation30_spill] sm:$0xff] }
  0xec   : > { %12793 = vmatmul.mubr.msk.bf16.gmra.mrb[28].mxu1 %vm1074_vm5, %v16640_v22  ;;  %v20912_v22 = vld [vmem:[#allocation18_spill] sm:$0xff] }
  0xed   : > { %12798 = vmatprep.mubr.msk.bf16.mxu1 %vm1074_vm5, %v3566_v5  ;;  %v16665_v5 = vld [vmem:[%s20261_s1 + $0x18] sm:$0x3] }
  0xee   : > { %8087 = vrot.lane.b32.xlu1 %v5607_v8, %s15227_s17  ;;  %v16659_v8 = vpop.permute.xlu0 %3569 }
  0xef   : > { %5622 = vrot.lane.b32.xlu0 %v20912_v22, %s15226_s14  ;;  %20913 = vst [vmem:[#allocation8_spill] sm:$0xff] %v16659_v8 }
  0xf0   : > { %12547 = vmatmul.mubr.msk.bf16.gmra.mrb[20].mxu0 %vm1074_vm5, %v16355_v40 }
  0xf1   : > { %12550 = vmatprep.mubr.msk.bf16.mxu0 %vm1074_vm5, %v16377_v28 }
  0xf2   : > { %5624 = vrot.lane.b32.xlu1 %v20911_v52, %s15226_s14 }
  0xf3   : > { %8089 = vrot.lane.b32.xlu0 %v20907_v19, %s15227_s17 }
  0xf4   : > { %12799 = vmatmul.mubr.msk.bf16.vlgmr.msra.gmra.mrb[0].mxu1 %vm1074_vm5, %v3568_v60  ;;  %v16685_v60 = vpop.permute.xlu1 %3575 }
  0xf5   : > { %12831 = vmatpush3.bf16.msra.mxu1 %v3941_v27  ;;  %12802 = vmatprep.mubr.msk.bf16.mxu1 %vm1074_vm5, %v16659_v8  ;;  %20917 = vst [vmem:[#allocation65_spill] sm:$0xff] %v16685_v60  ;;  %v20918_v27 = vld [vmem:[#allocation28_spill] sm:$0xff]  ;;  %v20948_v8 = vshll.u32 %v16461_v39, 16 }
  0xf6   : > { %8091 = vrot.lane.b32.xlu1 %v20904_v57, %s15227_s17  ;;  %14716 = vmatprep.subr.msk.bf16.mxu1 %vm1123_vm1, %v16665_v5  ;;  %v16683_v57 = vpop.permute.xlu0 %3573 }
  0xf7   : > { %20916 = vst [vmem:[#allocation30_spill] sm:$0xff] %v16683_v57  ;;  %5626 = vrot.lane.b32.xlu0 %v20918_v27, %s15226_s14 }
  0xf8   : > { %12551 = vmatmul.mubr.msk.bf16.gmra.mrb[24].mxu0 %vm1074_vm5, %v16395_v34  ;;  %v16701_v18 = vpop.permute.xlu1 %3579 }
  0xf9   : > { %12554 = vmatprep.mubr.msk.bf16.mxu0 %vm1074_vm5, %v16410_v32  ;;  %20920 = vst [vmem:[#allocation66_spill] sm:$0xff] %v16701_v18 }
  0xfa   : > { %5628 = vrot.lane.b32.xlu1 %v20915_v59, %s15226_s14  ;;  %v16699_v19 = vpop.permute.xlu0 %3577 }
  0xfb   : > { %20919 = vst [vmem:[#allocation28_spill] sm:$0xff] %v16699_v19  ;;  %8093 = vrot.lane.b32.xlu0 %v20910_v41, %s15227_s17 }
  0xfc   : > { %12803 = vmatmul.mubr.msk.bf16.gmra.mrb[4].mxu1 %vm1074_vm5, %v16673_v17  ;;  %v16709_v32 = vpop.permute.xlu1 %3583  ;;  %v20946_v17 = vshll.u32 %v16456_v38, 16 }
  0xfd   : > { %12806 = vmatprep.mubr.msk.bf16.mxu1 %vm1074_vm5, %v16683_v57  ;;  %20923 = vst [vmem:[#allocation67_spill] sm:$0xff] %v16709_v32  ;;  %v1862_v57 = vrot.slane %v20945_v21, 3  ;;  %v16925_v21 = vld [vmem:[%s20261_s1 + $0x1a] sm:$0x3] }
  0xfe   : > { %8095 = vrot.lane.b32.xlu1 %v20908_v6, %s15227_s17  ;;  %v16707_v12 = vpop.permute.xlu0 %3581 }
  0xff   : > { %20922 = vst [vmem:[#allocation34_spill] sm:$0xff] %v16707_v12  ;;  %5630 = vrot.lane.b32.xlu0 %v20924_v9, %s15226_s14 }
 0x100   : > { %12555 = vmatmul.mubr.msk.bf16.gmra.mrb[28].mxu0 %vm1074_vm5, %v16439_v55  ;;  %v2088_v55 = vsel %vm1123_vm1, %v16502_v56, 0  ;;  %v16732_v34 = vpop.permute.xlu1 %3587 }
 0x101   : > { %12560 = vmatprep.mubr.msk.bf16.mxu0 %vm1074_vm5, %v15779_v44  ;;  %v16720_v44 = vld [vmem:[%s20261_s1 + $0xa] sm:$0x3]  ;;  %20926 = vst [vmem:[#allocation68_spill] sm:$0xff] %v16732_v34 }
 0x102   : > { %5632 = vrot.lane.b32.xlu1 %v20921_v36, %s15226_s14  ;;  %v16730_v56 = vpop.permute.xlu0 %3585 }
 0x103   : > { %20925 = vst [vmem:[#allocation32_spill] sm:$0xff] %v16730_v56  ;;  %8097 = vrot.lane.b32.xlu0 %v20912_v22, %s15227_s17 }
 0x104   : > { %12807 = vmatmul.mubr.msk.bf16.gmra.mrb[8].mxu1 %vm1074_vm5, %v16685_v60  ;;  %v16742_v28 = vpop.permute.xlu1 %3591 }
 0x105   : > { %12810 = vmatprep.mubr.msk.bf16.mxu1 %vm1074_vm5, %v16699_v19  ;;  %20929 = vst [vmem:[#allocation69_spill] sm:$0xff] %v16742_v28 }
 0x106   : > { %8099 = vrot.lane.b32.xlu1 %v20911_v52, %s15227_s17 }
 0x108   : > { %12561 = vmatmul.mubr.msk.bf16.vlgmr.msra.gmra.mrb[0].mxu0 %vm1074_vm5, %v15785_v3  ;;  %v16740_v3 = vpop.permute.xlu0 %3589  ;;  %v16758_v40 = vpop.permute.xlu1 %3595 }
 0x109   : > { %12564 = vmatprep.mubr.msk.bf16.mxu0 %vm1074_vm5, %v15825_v7  ;;  %12593 = vmatpush3.bf16.msra.mxu0 %v2088_v55  ;;  %20928 = vst [vmem:[#allocation36_spill] sm:$0xff] %v16740_v3  ;;  %v20930_v7 = vld [vmem:[#allocation35_spill] sm:$0xff]  ;;  %20932 = vst [vmem:[#allocation70_spill] sm:$0xff] %v16758_v40 }
 0x10a   : > { %14709 = vmatprep.subr.msk.bf16.mxu0 %vm1123_vm1, %v16720_v44  ;;  %5636 = vrot.lane.b32.xlu1 %v20927_v37, %s15226_s14 }
 0x10b   : > { %5634 = vrot.lane.b32.xlu0 %v20930_v7, %s15226_s14 }
 0x10c   : > { %12811 = vmatmul.mubr.msk.bf16.gmra.mrb[12].mxu1 %vm1074_vm5, %v16701_v18  ;;  %v16756_v55 = vpop.permute.xlu0 %3593  ;;  %v16766_v58 = vpop.permute.xlu1 %3862 }
 0x10d   : > { %12814 = vmatprep.mubr.msk.bf16.mxu1 %vm1074_vm5, %v16707_v12  ;;  %20931 = vst [vmem:[#allocation35_spill] sm:$0xff] %v16756_v55 }
 0x10e   : > { %8103 = vrot.lane.b32.xlu1 %v20915_v59, %s15227_s17 }
 0x10f   : > { %8101 = vrot.lane.b32.xlu0 %v20918_v27, %s15227_s17 }
 0x110   : > { %12565 = vmatmul.mubr.msk.bf16.gmra.mrb[4].mxu0 %vm1074_vm5, %v16054_v31  ;;  %v16764_v46 = vpop.permute.xlu0 %3860  ;;  %v20934_v31 = vld [vmem:[#allocation37_spill] sm:$0xff]  ;;  %v16785_v62 = vpop.permute.xlu1 %3866 }
 0x111   : > { %12568 = vmatprep.mubr.msk.bf16.mxu0 %vm1074_vm5, %v16063_v20  ;;  %v5555_v20 = vrot.slane %v16555_v15, 2  ;;  %20936 = vst [vmem:[#allocation71_spill] sm:$0xff] %v16785_v62 }
 0x112   : > { %5640 = vrot.lane.b32.xlu1 %v20933_v33, %s15226_s14  ;;  %v1873_v33 = vrot.slane %v20948_v8, 4 }
 0x113   : > { %5638 = vrot.lane.b32.xlu0 %v20934_v31, %s15226_s14 }
 0x114   : > { %12815 = vmatmul.mubr.msk.bf16.gmra.mrb[16].mxu1 %vm1074_vm5, %v16709_v32  ;;  %v16783_v16 = vpop.permute.xlu0 %3864  ;;  %v5553_v32 = vrot.slane %v16567_v4, 2  ;;  %v16795_v12 = vpop.permute.xlu1 %3870 }
 0x115   : > { %12818 = vmatprep.mubr.msk.bf16.mxu1 %vm1074_vm5, %v16730_v56  ;;  %20935 = vst [vmem:[#allocation37_spill] sm:$0xff] %v16783_v16  ;;  %20938 = vst [vmem:[#allocation73_spill] sm:$0xff] %v16795_v12 }
 0x116   : > { %8107 = vrot.lane.b32.xlu1 %v20921_v36, %s15227_s17  ;;  %v5554_v56 = vsel %vm5551_vm10, %v5552_v54, %v5553_v32  ;;  %v16809_v54 = vld [vmem:[#allocation2 + $0x78] sm:$0xff]  ;;  %v16812_v32 = vld [vmem:[#allocation2 + $0x60] sm:$0xff] }
 0x117   : > { %8105 = vrot.lane.b32.xlu0 %v20924_v9, %s15227_s17 }
 0x118   : > { %12569 = vmatmul.mubr.msk.bf16.gmra.mrb[8].mxu0 %vm1074_vm5, %v16075_v45  ;;  %v5557_v45 = vsel %vm5551_vm10, %v5555_v20, %v5556_v13  ;;  %v16793_v29 = vpop.permute.xlu0 %3868  ;;  %v16806_v20 = vld [vmem:[#allocation2 + $0x70] sm:$0xff]  ;;  %v5562_v13 = vrot.slane %v16809_v54, 2 }
 0x119   : > { %12572 = vmatprep.mubr.msk.bf16.mxu0 %vm1074_vm5, %v16084_v30  ;;  %20937 = vst [vmem:[#allocation72_spill] sm:$0xff] %v16793_v29  ;;  %v16815_v30 = vld [vmem:[#allocation2 + $0x68] sm:$0xff] }
 0x11a   : > { %5856 = vrot.lane.b32.xlu1 %v5557_v45, %s15226_s14  ;;  %v5561_v45 = vrot.slane %v16806_v20, 2 }
 0x11b   : > { %5854 = vrot.lane.b32.xlu0 %v5554_v56, %s15226_s14  ;;  %v5558_v56 = vrot.slane %v16812_v32, 2 }
 0x11c   : > { %12819 = vmatmul.mubr.msk.bf16.gmra.mrb[20].mxu1 %vm1074_vm5, %v16732_v34  ;;  %v5563_v34 = vsel %vm5551_vm10, %v5561_v45, %v5562_v13  ;;  %v16845_v45 = vld [vmem:[#allocation2 + $0x98] sm:$0xff]  ;;  %v16848_v13 = vld [vmem:[#allocation2 + $0x80] sm:$0xff] }
 0x11d   : > { %12822 = vmatprep.mubr.msk.bf16.mxu1 %vm1074_vm5, %v16740_v3  ;;  %v16822_v3 = vpop.permute.xlu1 %3874 }
 0x11e   : > { %8323 = vrot.lane.b32.xlu1 %v16569_v10, %s15227_s17  ;;  %v5559_v10 = vrot.slane %v16815_v30, 2  ;;  %20940 = vst [vmem:[#allocation75_spill] sm:$0xff] %v16822_v3 }
 0x11f   : > { %8321 = vrot.lane.b32.xlu0 %v16586_v35, %s15227_s17 }
 0x120   : > { %12573 = vmatmul.mubr.msk.bf16.gmra.mrb[12].mxu0 %vm1074_vm5, %v16093_v2  ;;  %v16820_v2 = vpop.permute.xlu0 %3872  ;;  %v5560_v51 = vsel %vm5551_vm10, %v5558_v56, %v5559_v10  ;;  %v5564_v56 = vrot.slane %v16848_v13, 2  ;;  %v16851_v10 = vld [vmem:[#allocation2 + $0x88] sm:$0xff] }
 0x121   : > { %12576 = vmatprep.mubr.msk.bf16.mxu0 %vm1074_vm5, %v16099_v61  ;;  %20939 = vst [vmem:[#allocation74_spill] sm:$0xff] %v16820_v2  ;;  %v16831_v53 = vpop.permute.xlu1 %3878 }
 0x122   : > { %5860 = vrot.lane.b32.xlu1 %v5563_v34, %s15226_s14  ;;  %v16842_v34 = vld [vmem:[#allocation2 + $0x90] sm:$0xff] }
 0x123   : > { %5858 = vrot.lane.b32.xlu0 %v5560_v51, %s15226_s14  ;;  %v5567_v35 = vrot.slane %v16842_v34, 2  ;;  %v5568_v51 = vrot.slane %v16845_v45, 2 }
 0x124   : > { %v16829_v18 = vpop.permute.xlu0 %3876  ;;  %12823 = vmatmul.mubr.msk.bf16.gmra.mrb[24].mxu1 %vm1074_vm5, %v16742_v28 }
 0x125   : > { %20941 = vst [vmem:[#allocation76_spill] sm:$0xff] %v16829_v18  ;;  %12826 = vmatprep.mubr.msk.bf16.mxu1 %vm1074_vm5, %v16756_v55  ;;  %v16858_v61 = vpop.permute.xlu1 %3882  ;;  %v5569_v55 = vsel %vm5551_vm10, %v5567_v35, %v5568_v51  ;;  %v16885_v51 = vld [vmem:[#allocation2 + $0xb8] sm:$0xff] }
 0x126   : > { %8327 = vrot.lane.b32.xlu1 %v16603_v49, %s15227_s17  ;;  %v5565_v49 = vrot.slane %v16851_v10, 2  ;;  %20942 = vst [vmem:[#allocation77_spill] sm:$0xff] %v16885_v51 }
 0x127   : > { %8325 = vrot.lane.b32.xlu0 %v16617_v23, %s15227_s17  ;;  %v16891_v23 = vld [vmem:[#allocation2 + $0xa8] sm:$0xff] }
 0x128   : > { %12577 = vmatmul.mubr.msk.bf16.gmra.mrb[16].mxu0 %vm1074_vm5, %v16103_v25  ;;  %v16856_v25 = vpop.permute.xlu0 %3880  ;;  %v5566_v28 = vsel %vm5551_vm10, %v5564_v56, %v5565_v49  ;;  %v5574_v56 = vrot.slane %v16885_v51, 2  ;;  %v16888_v49 = vld [vmem:[#allocation2 + $0xa0] sm:$0xff]  ;;  %20943 = vst [vmem:[#allocation78_spill] sm:$0xff] %v16891_v23  ;;  %v5571_v60 = vrot.slane %v16891_v23, 2  ;;  %v1865_v23 = vrot.slane %v20946_v17, 4 }
 0x129   : > { %12580 = vmatprep.mubr.msk.bf16.mxu0 %vm1074_vm5, %v16106_v47  ;;  %v16867_v24 = vpop.permute.xlu1 %3886  ;;  %v5570_v35 = vrot.slane %v16888_v49, 2 }
 0x12a   : > { %5864 = vrot.lane.b32.xlu1 %v5569_v55, %s15226_s14 }
 0x12b   : > { %5862 = vrot.lane.b32.xlu0 %v5566_v28, %s15226_s14  ;;  %v16882_v28 = vld [vmem:[#allocation2 + $0xb0] sm:$0xff] }
 0x12c   : > { %v16865_v19 = vpop.permute.xlu0 %3884  ;;  %12827 = vmatmul.mubr.msk.bf16.gmra.mrb[28].mxu1 %vm1074_vm5, %v16758_v40  ;;  %v5573_v55 = vrot.slane %v16882_v28, 2  ;;  %v5572_v40 = vsel %vm5551_vm10, %v5570_v35, %v5571_v60 }
 0x12d   : > { %12832 = vmatprep.mubr.msk.bf16.mxu1 %vm1074_vm5, %v16764_v46  ;;  %v16898_v47 = vpop.permute.xlu1 %3890 }
 0x12e   : > { %8331 = vrot.lane.b32.xlu1 %v16555_v15, %s15227_s17  ;;  %20944 = vst [vmem:[#allocation79_spill] sm:$0xff] %v16898_v47  ;;  %v4155_v47 = vsel %vm1123_vm1, %v16665_v5, 0  ;;  %v16939_v5 = vld [vmem:[#allocation2 + $0xd0] sm:$0xff] }
 0x12f   : > { %8329 = vrot.lane.b32.xlu0 %v16565_v50, %s15227_s17  ;;  %v5579_v17 = vrot.slane %v16939_v5, 2 }
 0x130   : > { %12581 = vmatmul.mubr.msk.bf16.gmra.mrb[20].mxu0 %vm1074_vm5, %v16111_v14  ;;  %v16896_v46 = vpop.permute.xlu0 %3888  ;;  %v5575_v14 = vsel %vm5551_vm10, %v5573_v55, %v5574_v56 }
 0x131   : > { %12584 = vmatprep.mubr.msk.bf16.mxu0 %vm1074_vm5, %v16424_v1  ;;  %v20947_v1 = vshrl.u32 %v16461_v39, 16 }
 0x132   : > { %5868 = vrot.lane.b32.xlu1 %v5575_v14, %s15226_s14 }
 0x133   : > { %v1870_v51 = vrot.slane %v20947_v1, 3  ;;  %v16917_v14 = vpop.permute.xlu1 %4146  ;;  %5866 = vrot.lane.b32.xlu0 %v5572_v40, %s15226_s14  ;;  %v1866_v1 = vor.u32 %v1865_v23, %v1862_v57  ;;  %v16945_v57 = vld [vmem:[#allocation2 + $0xc0] sm:$0xff]  ;;  %v16948_v23 = vld [vmem:[#allocation2 + $0xc8] sm:$0xff] }
 0x134   : > { %v16915_v55 = vpop.permute.xlu0 %4144  ;;  %20950 = vst [vmem:[#allocation81_spill] sm:$0xff] %v16917_v14  ;;  %12833 = vmatmul.mubr.msk.bf16.vlgmr.msra.gmra.mrb[0].mxu1 %vm1074_vm5, %v16766_v58  ;;  %v5577_v35 = vrot.slane %v16948_v23, 2 }
 0x135   : > { %20949 = vst [vmem:[#allocation80_spill] sm:$0xff] %v16915_v55  ;;  %12865 = vmatpush3.bf16.msra.mxu1 %v4155_v47  ;;  %v1874_v8 = vor.u32 %v1873_v33, %v1870_v51  ;;  %12836 = vmatprep.mubr.msk.bf16.mxu1 %vm1074_vm5, %v16783_v16  ;;  %v16942_v47 = vld [vmem:[#allocation2 + $0xd8] sm:$0xff]  ;;  %v5576_v33 = vrot.slane %v16945_v57, 2 }
 0x136   : > { %8335 = vrot.lane.b32.xlu1 %v16806_v20, %s15227_s17  ;;  %v5580_v60 = vrot.slane %v16942_v47, 2  ;;  %14717 = vmatprep.subr.msk.bf16.mxu1 %vm1123_vm1, %v16925_v21 }
 0x137   : > { %v16935_v58 = vpop.permute.xlu1 %4354  ;;  %8333 = vrot.lane.b32.xlu0 %v16812_v32, %s15227_s17  ;;  %v5578_v56 = vsel %vm5551_vm10, %v5576_v33, %v5577_v35  ;;  %v16978_v33 = vld [vmem:[#allocation2 + $0xe0] sm:$0xff] }
 0x138   : > { %12585 = vmatmul.mubr.msk.bf16.gmra.mrb[24].mxu0 %vm1074_vm5, %v16443_v63  ;;  %20951 = vst [vmem:[#allocation82_spill] sm:$0xff] %v16935_v58  ;;  %v16937_v40 = vpop.permute.xlu0 %4352  ;;  %v5581_v51 = vsel %vm5551_vm10, %v5579_v17, %v5580_v60  ;;  %v16972_v17 = vld [vmem:[#allocation2 + $0xf0] sm:$0xff]  ;;  %v5582_v35 = vrot.slane %v16978_v33, 2 }
 0x139   : > { %12588 = vmatprep.mubr.msk.bf16.mxu0 %vm1074_vm5, %v16466_v43  ;;  %20952 = vst [vmem:[#allocation83_spill] sm:$0xff] %v16937_v40  ;;  %v16959_v43 = vsel %vm717_vm7, %v1866_v1, %v1874_v8  ;;  %v5585_v1 = vrot.slane %v16972_v17, 2  ;;  %v16975_v8 = vld [vmem:[#allocation2 + $0xf8] sm:$0xff] }
 0x13a   : > { %5872 = vrot.lane.b32.xlu1 %v5581_v51, %s15226_s14  ;;  %20953 = vst [vmem:[#allocation84_spill] sm:$0xff] %v16959_v43  ;;  %v5586_v60 = vrot.slane %v16975_v8, 2 }
 0x13b   : > { %5870 = vrot.lane.b32.xlu0 %v5578_v56, %s15226_s14  ;;  %v16987_v56 = vld [vmem:[#allocation2 + $0xe8] sm:$0xff] }
 0x13c   : > { %v16961_v63 = vpop.permute.xlu1 %4568  ;;  %v16963_v16 = vpop.permute.xlu0 %4566  ;;  %12837 = vmatmul.mubr.msk.bf16.gmra.mrb[4].mxu1 %vm1074_vm5, %v16785_v62 }
 0x13d   : > { %20954 = vst [vmem:[#allocation85_spill] sm:$0xff] %v16961_v63  ;;  %20955 = vst [vmem:[#allocation86_spill] sm:$0xff] %v16963_v16  ;;  %12840 = vmatprep.mubr.msk.bf16.mxu1 %vm1074_vm5, %v16793_v29  ;;  %v5583_v63 = vrot.slane %v16987_v56, 2  ;;  %v5587_v16 = vsel %vm5551_vm10, %v5585_v1, %v5586_v60  ;;  %v17007_v1 = vld [vmem:[%s20261_s1 + $0xc] sm:$0x3] }
 0x13e   : > { %8339 = vrot.lane.b32.xlu1 %v16842_v34, %s15227_s17 }
 0x13f   : > { %8337 = vrot.lane.b32.xlu0 %v16848_v13, %s15227_s17  ;;  %v5584_v29 = vsel %vm5551_vm10, %v5582_v35, %v5583_v63  ;;  %v17018_v63 = vld [vmem:[#allocation2 + $0x118] sm:$0xff]  ;;  %v17021_v35 = vld [vmem:[#allocation2 + $0x100] sm:$0xff] }
 0x140   : > { %12589 = vmatmul.mubr.msk.bf16.gmra.mrb[28].mxu0 %vm1074_vm5, %v16959_v43  ;;  %v16985_v51 = vpop.permute.xlu1 %4784  ;;  %v16993_v43 = vpop.permute.xlu0 %4782 }
 0x141   : > { %12594 = vmatprep.mubr.msk.bf16.mxu0 %vm1074_vm5, %v20910_v41  ;;  %20956 = vst [vmem:[#allocation87_spill] sm:$0xff] %v16985_v51  ;;  %20957 = vst [vmem:[#allocation88_spill] sm:$0xff] %v16993_v43  ;;  %v2296_v51 = vsel %vm1123_vm1, %v16720_v44, 0  ;;  %v5592_v44 = vrot.slane %v17018_v63, 2  ;;  %v17024_v43 = vld [vmem:[#allocation2 + $0x108] sm:$0xff] }
 0x142   : > { %5876 = vrot.lane.b32.xlu1 %v5587_v16, %s15226_s14  ;;  %v17015_v16 = vld [vmem:[#allocation2 + $0x110] sm:$0xff] }
 0x143   : > { %5874 = vrot.lane.b32.xlu0 %v5584_v29, %s15226_s14  ;;  %v5591_v29 = vrot.slane %v17015_v16, 2 }
 0x144   : > { %v16997_v41 = vpop.permute.xlu1 %4995  ;;  %12841 = vmatmul.mubr.msk.bf16.gmra.mrb[8].mxu1 %vm1074_vm5, %v16795_v12  ;;  %v17009_v60 = vpop.permute.xlu0 %4993 }
 0x145   : > { %20958 = vst [vmem:[#allocation89_spill] sm:$0xff] %v16997_v41  ;;  %20959 = vst [vmem:[#allocation90_spill] sm:$0xff] %v17009_v60  ;;  %12844 = vmatprep.mubr.msk.bf16.mxu1 %vm1074_vm5, %v16820_v2  ;;  %v5588_v41 = vrot.slane %v17021_v35, 2  ;;  %v5589_v60 = vrot.slane %v17024_v43, 2  ;;  %v5593_v12 = vsel %vm5551_vm10, %v5591_v29, %v5592_v44  ;;  %v17053_v29 = vld [vmem:[#allocation2 + $0x130] sm:$0xff]  ;;  %v17059_v44 = vld [vmem:[#allocation2 + $0x120] sm:$0xff] }
 0x146   : > { %8343 = vrot.lane.b32.xlu1 %v16882_v28, %s15227_s17 }
 0x147   : > { %8341 = vrot.lane.b32.xlu0 %v16888_v49, %s15227_s17  ;;  %v5590_v62 = vsel %vm5551_vm10, %v5588_v41, %v5589_v60  ;;  %v5597_v41 = vrot.slane %v17053_v29, 2  ;;  %v17056_v60 = vld [vmem:[#allocation2 + $0x138] sm:$0xff] }
 0x148   : > { %12595 = vmatmul.mubr.msk.bf16.vlgmr.msra.gmra.mrb[0].mxu0 %vm1074_vm5, %v20908_v6  ;;  %v17029_v6 = vpop.permute.xlu1 %5209  ;;  %v17037_v2 = vpop.permute.xlu0 %5207 }
 0x149   : > { %12598 = vmatprep.mubr.msk.bf16.mxu0 %vm1074_vm5, %v20912_v22  ;;  %12627 = vmatpush3.bf16.msra.mxu0 %v2296_v51  ;;  %20960 = vst [vmem:[#allocation91_spill] sm:$0xff] %v17029_v6  ;;  %20961 = vst [vmem:[#allocation92_spill] sm:$0xff] %v17037_v2  ;;  %v17062_v6 = vld [vmem:[#allocation2 + $0x128] sm:$0xff] }
 0x14a   : > { %14710 = vmatprep.subr.msk.bf16.mxu0 %vm1123_vm1, %v17007_v1  ;;  %5880 = vrot.lane.b32.xlu1 %v5593_v12, %s15226_s14  ;;  %v5598_v12 = vrot.slane %v17056_v60, 2  ;;  %v5595_v2 = vrot.slane %v17062_v6, 2 }
 0x14b   : > { %5878 = vrot.lane.b32.xlu0 %v5590_v62, %s15226_s14  ;;  %v5594_v62 = vrot.slane %v17059_v44, 2 }
 0x14c   : > { %v17041_v58 = vpop.permute.xlu1 %5612  ;;  %12845 = vmatmul.mubr.msk.bf16.gmra.mrb[12].mxu1 %vm1074_vm5, %v16822_v3  ;;  %v17047_v51 = vpop.permute.xlu0 %5610 }
 0x14d   : > { %20962 = vst [vmem:[#allocation93_spill] sm:$0xff] %v17041_v58  ;;  %20963 = vst [vmem:[#allocation94_spill] sm:$0xff] %v17047_v51  ;;  %12848 = vmatprep.mubr.msk.bf16.mxu1 %vm1074_vm5, %v16829_v18  ;;  %v5596_v18 = vsel %vm5551_vm10, %v5594_v62, %v5595_v2  ;;  %v6103_v2 = vrot.slane %v16557_v48, 6 }
 0x14e   : > { %8347 = vrot.lane.b32.xlu1 %v16939_v5, %s15227_s17 }
 0x14f   : > { %8345 = vrot.lane.b32.xlu0 %v16945_v57, %s15227_s17 }
 0x150   : > { %12599 = vmatmul.mubr.msk.bf16.gmra.mrb[4].mxu0 %vm1074_vm5, %v20911_v52  ;;  %v17067_v58 = vpop.permute.xlu1 %8079  ;;  %v17073_v51 = vpop.permute.xlu0 %8077  ;;  %v5599_v52 = vsel %vm5551_vm10, %v5597_v41, %v5598_v12  ;;  %v6102_v41 = vrot.slane %v16555_v15, 6  ;;  %v6099_v12 = vrot.slane %v16565_v50, 6 }
 0x151   : > { %12602 = vmatprep.mubr.msk.bf16.mxu0 %vm1074_vm5, %v20918_v27  ;;  %20964 = vst [vmem:[#allocation95_spill] sm:$0xff] %v17067_v58  ;;  %20965 = vst [vmem:[#allocation96_spill] sm:$0xff] %v17073_v51 }
 0x152   : > { %5884 = vrot.lane.b32.xlu1 %v5599_v52, %s15226_s14  ;;  %v6100_v52 = vrot.slane %v16567_v4, 6  ;;  %v6104_v15 = vsel %vm1123_vm1, %v6102_v41, %v6103_v2  ;;  %v6108_v41 = vrot.slane %v16806_v20, 6  ;;  %v6109_v2 = vrot.slane %v16809_v54, 6 }
 0x153   : > { %5882 = vrot.lane.b32.xlu0 %v5596_v18, %s15226_s14 }
 0x154   : > { %v17077_v22 = vpop.permute.xlu1 %5616  ;;  %12849 = vmatmul.mubr.msk.bf16.gmra.mrb[16].mxu1 %vm1074_vm5, %v16831_v53  ;;  %v17083_v58 = vpop.permute.xlu0 %5614  ;;  %v6101_v51 = vsel %vm1123_vm1, %v6099_v12, %v6100_v52  ;;  %v6105_v12 = vrot.slane %v16812_v32, 6  ;;  %v6106_v52 = vrot.slane %v16815_v30, 6  ;;  %v6110_v20 = vsel %vm1123_vm1, %v6108_v41, %v6109_v2 }
 0x155   : > { %20966 = vst [vmem:[#allocation97_spill] sm:$0xff] %v17077_v22  ;;  %20967 = vst [vmem:[#allocation98_spill] sm:$0xff] %v17083_v58  ;;  %12852 = vmatprep.mubr.msk.bf16.mxu1 %vm1074_vm5, %v16856_v25  ;;  %v6111_v41 = vrot.slane %v16848_v13, 6  ;;  %v6112_v2 = vrot.slane %v16851_v10, 6 }
 0x156   : > { %8351 = vrot.lane.b32.xlu1 %v16972_v17, %s15227_s17 }
 0x157   : > { %8349 = vrot.lane.b32.xlu0 %v16978_v33, %s15227_s17 }
 0x158   : > { %12603 = vmatmul.mubr.msk.bf16.gmra.mrb[8].mxu0 %vm1074_vm5, %v20915_v59  ;;  %v17095_v18 = vpop.permute.xlu1 %8083  ;;  %v17101_v62 = vpop.permute.xlu0 %8081 }
 0x159   : > { %12606 = vmatprep.mubr.msk.bf16.mxu0 %vm1074_vm5, %v20924_v9  ;;  %20968 = vst [vmem:[#allocation99_spill] sm:$0xff] %v17095_v18  ;;  %20969 = vst [vmem:[#allocation100_spill] sm:$0xff] %v17101_v62  ;;  %v6107_v62 = vsel %vm1123_vm1, %v6105_v12, %v6106_v52  ;;  %v6113_v52 = vsel %vm1123_vm1, %v6111_v41, %v6112_v2  ;;  %v6117_v2 = vrot.slane %v16888_v49, 6  ;;  %v4363_v49 = vsel %vm1123_vm1, %v16925_v21, 0  ;;  %v20992_v21 = vld [vmem:[#allocation30_spill] sm:$0xff] }
 0x15a   : > { %6151 = vrot.lane.b32.xlu1 %v6104_v15, %s15226_s14 }
 0x15b   : > { %6149 = vrot.lane.b32.xlu0 %v6101_v51, %s15226_s14 }
 0x15c   : > { %v17105_v50 = vpop.permute.xlu1 %5620  ;;  %12853 = vmatmul.mubr.msk.bf16.gmra.mrb[20].mxu1 %vm1074_vm5, %v16858_v61  ;;  %v17111_v18 = vpop.permute.xlu0 %5618 }
 0x15d   : > { %20970 = vst [vmem:[#allocation101_spill] sm:$0xff] %v17105_v50  ;;  %20971 = vst [vmem:[#allocation102_spill] sm:$0xff] %v17111_v18  ;;  %12856 = vmatprep.mubr.msk.bf16.mxu1 %vm1074_vm5, %v16865_v19  ;;  %v21033_v50 = vld [vmem:[#allocation13_spill] sm:$0xff] }
 0x15e   : > { %8569 = vrot.lane.b32.xlu1 %v16576_v42, %s15227_s17  ;;  %v6115_v42 = vrot.slane %v16845_v45, 6 }
 0x15f   : > { %8567 = vrot.lane.b32.xlu0 %v16588_v11, %s15227_s17  ;;  %v6114_v11 = vrot.slane %v16842_v34, 6 }
 0x160   : > { %12607 = vmatmul.mubr.msk.bf16.gmra.mrb[12].mxu0 %vm1074_vm5, %v20921_v36  ;;  %v17123_v51 = vpop.permute.xlu1 %8087  ;;  %v17129_v15 = vpop.permute.xlu0 %8085 }
 0x161   : > { %12610 = vmatprep.mubr.msk.bf16.mxu0 %vm1074_vm5, %v20930_v7  ;;  %20972 = vst [vmem:[#allocation103_spill] sm:$0xff] %v17123_v51  ;;  %20973 = vst [vmem:[#allocation104_spill] sm:$0xff] %v17129_v15  ;;  %v6116_v12 = vsel %vm1123_vm1, %v6114_v11, %v6115_v42  ;;  %v6120_v11 = vrot.slane %v16882_v28, 6  ;;  %v20983_v42 = vld [vmem:[#allocation77_spill] sm:$0xff]  ;;  %v20985_v15 = vld [vmem:[#allocation39_spill] sm:$0xff] }
 0x162   : > { %6155 = vrot.lane.b32.xlu1 %v6110_v20, %s15226_s14  ;;  %v20979_v20 = vld [vmem:[#allocation79_spill] sm:$0xff]  ;;  %v6121_v41 = vrot.slane %v20983_v42, 6 }
 0x163   : > { %6153 = vrot.lane.b32.xlu0 %v6107_v62, %s15226_s14 }
 0x164   : > { %v17133_v32 = vpop.permute.xlu1 %5624  ;;  %12857 = vmatmul.mubr.msk.bf16.gmra.mrb[24].mxu1 %vm1074_vm5, %v16867_v24  ;;  %v17139_v51 = vpop.permute.xlu0 %5622 }
 0x165   : > { %20974 = vst [vmem:[#allocation105_spill] sm:$0xff] %v17133_v32  ;;  %20975 = vst [vmem:[#allocation106_spill] sm:$0xff] %v17139_v51  ;;  %12860 = vmatprep.mubr.msk.bf16.mxu1 %vm1074_vm5, %v16896_v46  ;;  %v21021_v51 = vld [vmem:[#allocation68_spill] sm:$0xff] }
 0x166   : > { %8573 = vrot.lane.b32.xlu1 %v16605_v0, %s15227_s17  ;;  %v20981_v0 = vld [vmem:[#allocation8_spill] sm:$0xff] }
 0x167   : > { %8571 = vrot.lane.b32.xlu0 %v16619_v26, %s15227_s17 }
 0x168   : > { %12611 = vmatmul.mubr.msk.bf16.gmra.mrb[16].mxu0 %vm1074_vm5, %v20927_v37  ;;  %v17151_v62 = vpop.permute.xlu1 %8091  ;;  %v17158_v34 = vpop.permute.xlu0 %8089 }
 0x169   : > { %12614 = vmatprep.mubr.msk.bf16.mxu0 %vm1074_vm5, %v20934_v31  ;;  %20976 = vst [vmem:[#allocation107_spill] sm:$0xff] %v17151_v62  ;;  %20977 = vst [vmem:[#allocation108_spill] sm:$0xff] %v17158_v34  ;;  %v20980_v62 = vld [vmem:[#allocation38_spill] sm:$0xff] }
 0x16a   : > { %6159 = vrot.lane.b32.xlu1 %v6116_v12, %s15226_s14  ;;  %v20984_v12 = vld [vmem:[#allocation78_spill] sm:$0xff] }
 0x16b   : > { %6157 = vrot.lane.b32.xlu0 %v6113_v52, %s15226_s14  ;;  %v6118_v34 = vrot.slane %v20984_v12, 6 }
 0x16c   : > { %v17161_v13 = vpop.permute.xlu1 %5628  ;;  %12861 = vmatmul.mubr.msk.bf16.gmra.mrb[28].mxu1 %vm1074_vm5, %v20979_v20  ;;  %v17171_v26 = vpop.permute.xlu0 %5626 }
 0x16d   : > { %20978 = vst [vmem:[#allocation109_spill] sm:$0xff] %v17161_v13  ;;  %12866 = vmatprep.mubr.msk.bf16.mxu1 %vm1074_vm5, %v20981_v0  ;;  %20982 = vst [vmem:[#allocation79_spill] sm:$0xff] %v17171_v26  ;;  %v6122_v0 = vsel %vm1123_vm1, %v6120_v11, %v6121_v41  ;;  %v6119_v13 = vsel %vm1123_vm1, %v6117_v2, %v6118_v34  ;;  %v20993_v11 = vld [vmem:[#allocation41_spill] sm:$0xff]  ;;  %v6126_v2 = vrot.slane %v16939_v5, 6 }
 0x16e   : > { %8577 = vrot.lane.b32.xlu1 %v16557_v48, %s15227_s17  ;;  %v17199_v48 = vld [vmem:[%s20261_s1 + $0x1c] sm:$0x3] }
 0x16f   : > { %8575 = vrot.lane.b32.xlu0 %v16567_v4, %s15227_s17  ;;  %v20990_v4 = vld [vmem:[#allocation40_spill] sm:$0xff] }
 0x170   : > { %12615 = vmatmul.mubr.msk.bf16.gmra.mrb[20].mxu0 %vm1074_vm5, %v20980_v62  ;;  %v17179_v52 = vpop.permute.xlu1 %8095  ;;  %v17186_v28 = vpop.permute.xlu0 %8093 }
 0x171   : > { %12618 = vmatprep.mubr.msk.bf16.mxu0 %vm1074_vm5, %v20985_v15  ;;  %20986 = vst [vmem:[#allocation38_spill] sm:$0xff] %v17179_v52  ;;  %20987 = vst [vmem:[#allocation8_spill] sm:$0xff] %v17186_v28  ;;  %v20989_v52 = vld [vmem:[#allocation64_spill] sm:$0xff] }
 0x172   : > { %6163 = vrot.lane.b32.xlu1 %v6122_v0, %s15226_s14  ;;  %v6124_v0 = vrot.slane %v16948_v23, 6 }
 0x173   : > { %6161 = vrot.lane.b32.xlu0 %v6119_v13, %s15226_s14  ;;  %v6123_v13 = vrot.slane %v16945_v57, 6  ;;  %v20997_v57 = vld [vmem:[#allocation65_spill] sm:$0xff] }
 0x174   : > { %v17191_v26 = vpop.permute.xlu1 %5632  ;;  %12867 = vmatmul.mubr.msk.bf16.vlgmr.msra.gmra.mrb[0].mxu1 %vm1074_vm5, %v20989_v52  ;;  %v17204_v34 = vpop.permute.xlu0 %5630  ;;  %v6127_v52 = vrot.slane %v16942_v47, 6 }
 0x175   : > { %20988 = vst [vmem:[#allocation77_spill] sm:$0xff] %v17191_v26  ;;  %12899 = vmatpush3.bf16.msra.mxu1 %v4363_v49  ;;  %20991 = vst [vmem:[#allocation78_spill] sm:$0xff] %v17204_v34  ;;  %12870 = vmatprep.mubr.msk.bf16.mxu1 %vm1074_vm5, %v20992_v21  ;;  %v6125_v5 = vsel %vm1123_vm1, %v6123_v13, %v6124_v0  ;;  %v20998_v26 = vld [vmem:[#allocation33_spill] sm:$0xff]  ;;  %v6129_v13 = vrot.slane %v16978_v33, 6  ;;  %v21001_v0 = vld [vmem:[#allocation31_spill] sm:$0xff] }
 0x176   : > { %14718 = vmatprep.subr.msk.bf16.mxu1 %vm1123_vm1, %v17199_v48  ;;  %8581 = vrot.lane.b32.xlu1 %v16809_v54, %s15227_s17  ;;  %v6128_v49 = vsel %vm1123_vm1, %v6126_v2, %v6127_v52  ;;  %v20999_v54 = vld [vmem:[#allocation28_spill] sm:$0xff]  ;;  %v6132_v2 = vrot.slane %v16972_v17, 6  ;;  %v6133_v52 = vrot.slane %v16975_v8, 6 }
 0x177   : > { %8579 = vrot.lane.b32.xlu0 %v16815_v30, %s15227_s17 }
 0x178   : > { %12619 = vmatmul.mubr.msk.bf16.gmra.mrb[24].mxu0 %vm1074_vm5, %v20990_v4  ;;  %v17210_v41 = vpop.permute.xlu1 %8099 }
 0x179   : > { %12622 = vmatprep.mubr.msk.bf16.mxu0 %vm1074_vm5, %v20993_v11  ;;  %20994 = vst [vmem:[#allocation39_spill] sm:$0xff] %v17210_v41  ;;  %v17223_v41 = vpop.permute.xlu0 %8097 }
 0x17a   : > { %20995 = vst [vmem:[#allocation64_spill] sm:$0xff] %v17223_v41  ;;  %6167 = vrot.lane.b32.xlu1 %v6128_v49, %s15226_s14  ;;  %v6134_v41 = vsel %vm1123_vm1, %v6132_v2, %v6133_v52  ;;  %v21007_v2 = vld [vmem:[#allocation34_spill] sm:$0xff] }
 0x17b   : > { %6165 = vrot.lane.b32.xlu0 %v6125_v5, %s15226_s14  ;;  %v6130_v5 = vrot.slane %v16987_v56, 6 }
 0x17c   : > { %v17226_v28 = vpop.permute.xlu1 %5636  ;;  %12871 = vmatmul.mubr.msk.bf16.gmra.mrb[4].mxu1 %vm1074_vm5, %v20997_v57 }
 0x17d   : > { %20996 = vst [vmem:[#allocation40_spill] sm:$0xff] %v17226_v28  ;;  %12874 = vmatprep.mubr.msk.bf16.mxu1 %vm1074_vm5, %v20999_v54  ;;  %v17236_v30 = vpop.permute.xlu0 %5634  ;;  %v6131_v28 = vsel %vm1123_vm1, %v6129_v13, %v6130_v5  ;;  %v6135_v13 = vrot.slane %v17021_v35, 6  ;;  %v21009_v5 = vld [vmem:[#allocation6_spill] sm:$0xff] }
 0x17e   : > { %21000 = vst [vmem:[#allocation30_spill] sm:$0xff] %v17236_v30  ;;  %8585 = vrot.lane.b32.xlu1 %v16845_v45, %s15227_s17  ;;  %v17265_v45 = vld [vmem:[%s20261_s1 + $0xe] sm:$0x3] }
 0x17f   : > { %8583 = vrot.lane.b32.xlu0 %v16851_v10, %s15227_s17  ;;  %v21006_v10 = vld [vmem:[#allocation5_spill] sm:$0xff] }
 0x180   : > { %12623 = vmatmul.mubr.msk.bf16.gmra.mrb[28].mxu0 %vm1074_vm5, %v20998_v26  ;;  %v17243_v49 = vpop.permute.xlu1 %8103 }
 0x181   : > { %12628 = vmatprep.mubr.msk.bf16.mxu0 %vm1074_vm5, %v21001_v0  ;;  %21002 = vst [vmem:[#allocation41_spill] sm:$0xff] %v17243_v49  ;;  %v17251_v17 = vpop.permute.xlu0 %8101  ;;  %v2514_v0 = vsel %vm1123_vm1, %v17007_v1, 0  ;;  %v21005_v49 = vld [vmem:[#allocation66_spill] sm:$0xff]  ;;  %v6138_v1 = vrot.slane %v17015_v16, 6 }
 0x182   : > { %21003 = vst [vmem:[#allocation65_spill] sm:$0xff] %v17251_v17  ;;  %6171 = vrot.lane.b32.xlu1 %v6134_v41, %s15226_s14  ;;  %v6139_v41 = vrot.slane %v17018_v63, 6 }
 0x183   : > { %6169 = vrot.lane.b32.xlu0 %v6131_v28, %s15226_s14  ;;  %v6136_v28 = vrot.slane %v17024_v43, 6 }
 0x184   : > { %v17254_v33 = vpop.permute.xlu1 %5640  ;;  %12875 = vmatmul.mubr.msk.bf16.gmra.mrb[8].mxu1 %vm1074_vm5, %v21005_v49 }
 0x185   : > { %21004 = vst [vmem:[#allocation33_spill] sm:$0xff] %v17254_v33  ;;  %12878 = vmatprep.mubr.msk.bf16.mxu1 %vm1074_vm5, %v21007_v2  ;;  %v17271_v52 = vpop.permute.xlu0 %5638  ;;  %v6140_v33 = vsel %vm1123_vm1, %v6138_v1, %v6139_v41  ;;  %v6137_v30 = vsel %vm1123_vm1, %v6135_v13, %v6136_v28  ;;  %v6144_v1 = vrot.slane %v17053_v29, 6  ;;  %v6145_v41 = vrot.slane %v17056_v60, 6  ;;  %v21017_v28 = vld [vmem:[#allocation9_spill] sm:$0xff] }
 0x186   : > { %21008 = vst [vmem:[#allocation28_spill] sm:$0xff] %v17271_v52  ;;  %8589 = vrot.lane.b32.xlu1 %v20983_v42, %s15227_s17  ;;  %v21015_v42 = vld [vmem:[#allocation32_spill] sm:$0xff]  ;;  %v6141_v13 = vrot.slane %v17059_v44, 6 }
 0x187   : > { %8587 = vrot.lane.b32.xlu0 %v20984_v12, %s15227_s17 }
 0x188   : > { %12629 = vmatmul.mubr.msk.bf16.vlgmr.msra.gmra.mrb[0].mxu0 %vm1074_vm5, %v21006_v10  ;;  %v17279_v17 = vpop.permute.xlu1 %8107 }
 0x189   : > { %12632 = vmatprep.mubr.msk.bf16.mxu0 %vm1074_vm5, %v21009_v5  ;;  %12661 = vmatpush3.bf16.msra.mxu0 %v2514_v0  ;;  %21010 = vst [vmem:[#allocation31_spill] sm:$0xff] %v17279_v17  ;;  %v17288_v52 = vpop.permute.xlu0 %8105  ;;  %v21013_v0 = vld [vmem:[#allocation67_spill] sm:$0xff] }
 0x18a   : > { %14711 = vmatprep.subr.msk.bf16.mxu0 %vm1123_vm1, %v17265_v45  ;;  %21011 = vst [vmem:[#allocation66_spill] sm:$0xff] %v17288_v52  ;;  %6175 = vrot.lane.b32.xlu1 %v6140_v33, %s15226_s14  ;;  %v21014_v17 = vld [vmem:[#allocation7_spill] sm:$0xff]  ;;  %v6142_v33 = vrot.slane %v17062_v6, 6  ;;  %v6146_v52 = vsel %vm1123_vm1, %v6144_v1, %v6145_v41 }
 0x18b   : > { %6173 = vrot.lane.b32.xlu0 %v6137_v30, %s15226_s14  ;;  %v21025_v1 = vld [vmem:[#allocation11_spill] sm:$0xff] }
 0x18c   : > { %v17291_v34 = vpop.permute.xlu1 %5856  ;;  %12879 = vmatmul.mubr.msk.bf16.gmra.mrb[12].mxu1 %vm1074_vm5, %v21013_v0 }
 0x18d   : > { %21012 = vst [vmem:[#allocation5_spill] sm:$0xff] %v17291_v34  ;;  %12882 = vmatprep.mubr.msk.bf16.mxu1 %vm1074_vm5, %v21015_v42  ;;  %v17301_v12 = vpop.permute.xlu0 %5854 }
 0x18e   : > { %21016 = vst [vmem:[#allocation34_spill] sm:$0xff] %v17301_v12  ;;  %8593 = vrot.lane.b32.xlu1 %v16942_v47, %s15227_s17  ;;  %v6143_v12 = vsel %vm1123_vm1, %v6141_v13, %v6142_v33  ;;  %v21023_v47 = vld [vmem:[#allocation36_spill] sm:$0xff]  ;;  %v21029_v13 = vld [vmem:[#allocation69_spill] sm:$0xff] }
 0x18f   : > { %8591 = vrot.lane.b32.xlu0 %v16948_v23, %s15227_s17  ;;  %v21030_v33 = vld [vmem:[#allocation12_spill] sm:$0xff] }
 0x190   : > { %12633 = vmatmul.mubr.msk.bf16.gmra.mrb[4].mxu0 %vm1074_vm5, %v21014_v17  ;;  %v17309_v30 = vpop.permute.xlu1 %8323 }
 0x191   : > { %12636 = vmatprep.mubr.msk.bf16.mxu0 %vm1074_vm5, %v21017_v28  ;;  %21018 = vst [vmem:[#allocation6_spill] sm:$0xff] %v17309_v30  ;;  %v17316_v34 = vpop.permute.xlu0 %8321  ;;  %v21022_v30 = vld [vmem:[#allocation10_spill] sm:$0xff] }
 0x192   : > { %21019 = vst [vmem:[#allocation67_spill] sm:$0xff] %v17316_v34  ;;  %6179 = vrot.lane.b32.xlu1 %v6146_v52, %s15226_s14  ;;  %v17358_v34 = vld [vmem:[#allocation2 + $0x158] sm:$0xff] }
 0x193   : > { %6177 = vrot.lane.b32.xlu0 %v6143_v12, %s15226_s14 }
 0x194   : > { %v17319_v32 = vpop.permute.xlu1 %5860  ;;  %12883 = vmatmul.mubr.msk.bf16.gmra.mrb[16].mxu1 %vm1074_vm5, %v21021_v51 }
 0x195   : > { %21020 = vst [vmem:[#allocation7_spill] sm:$0xff] %v17319_v32  ;;  %12886 = vmatprep.mubr.msk.bf16.mxu1 %vm1074_vm5, %v21023_v47  ;;  %v17329_v23 = vpop.permute.xlu0 %5858  ;;  %v17364_v32 = vld [vmem:[#allocation2 + $0x148] sm:$0xff] }
 0x196   : > { %21024 = vst [vmem:[#allocation32_spill] sm:$0xff] %v17329_v23  ;;  %8597 = vrot.lane.b32.xlu1 %v16975_v8, %s15227_s17  ;;  %v21031_v8 = vld [vmem:[#allocation35_spill] sm:$0xff]  ;;  %v6426_v23 = vrot.slane %v17364_v32, 2 }
 0x197   : > { %8595 = vrot.lane.b32.xlu0 %v16987_v56, %s15227_s17 }
 0x198   : > { %12637 = vmatmul.mubr.msk.bf16.gmra.mrb[8].mxu0 %vm1074_vm5, %v21022_v30  ;;  %v17333_v41 = vpop.permute.xlu1 %8327 }
 0x199   : > { %12640 = vmatprep.mubr.msk.bf16.mxu0 %vm1074_vm5, %v21025_v1  ;;  %21026 = vst [vmem:[#allocation9_spill] sm:$0xff] %v17333_v41  ;;  %v17339_v52 = vpop.permute.xlu0 %8325  ;;  %v17355_v41 = vld [vmem:[#allocation2 + $0x150] sm:$0xff] }
 0x19a   : > { %21027 = vst [vmem:[#allocation68_spill] sm:$0xff] %v17339_v52  ;;  %8847 = vrot.lane.b32.xlu1 %v17015_v16, %s15227_s17  ;;  %v6428_v52 = vrot.slane %v17355_v41, 2  ;;  %v6429_v16 = vrot.slane %v17358_v34, 2 }
 0x19b   : > { %8845 = vrot.lane.b32.xlu0 %v17021_v35, %s15227_s17 }
 0x19c   : > { %v17341_v12 = vpop.permute.xlu1 %5864  ;;  %12887 = vmatmul.mubr.msk.bf16.gmra.mrb[20].mxu1 %vm1074_vm5, %v21029_v13  ;;  %v6430_v18 = vsel %vm5551_vm10, %v6428_v52, %v6429_v16  ;;  %v17394_v52 = vld [vmem:[#allocation2 + $0x178] sm:$0xff]  ;;  %v17397_v16 = vld [vmem:[#allocation2 + $0x160] sm:$0xff] }
 0x19d   : > { %21028 = vst [vmem:[#allocation10_spill] sm:$0xff] %v17341_v12  ;;  %12890 = vmatprep.mubr.msk.bf16.mxu1 %vm1074_vm5, %v21031_v8  ;;  %v17353_v56 = vpop.permute.xlu0 %5862  ;;  %v17361_v12 = vld [vmem:[#allocation2 + $0x140] sm:$0xff]  ;;  %v21037_v8 = vld [vmem:[#allocation70_spill] sm:$0xff] }
 0x19e   : > { %21032 = vst [vmem:[#allocation36_spill] sm:$0xff] %v17353_v56  ;;  %v6425_v35 = vrot.slane %v17361_v12, 2  ;;  %8851 = vrot.lane.b32.xlu1 %v17053_v29, %s15227_s17 }
 0x19f   : > { %8849 = vrot.lane.b32.xlu0 %v17059_v44, %s15227_s17  ;;  %v17391_v44 = vld [vmem:[#allocation2 + $0x170] sm:$0xff] }
 0x1a0   : > { %12641 = vmatmul.mubr.msk.bf16.gmra.mrb[12].mxu0 %vm1074_vm5, %v21030_v33  ;;  %v17369_v56 = vpop.permute.xlu1 %8331  ;;  %v6427_v58 = vsel %vm5551_vm10, %v6425_v35, %v6426_v23  ;;  %v6434_v23 = vrot.slane %v17391_v44, 2  ;;  %v17400_v35 = vld [vmem:[#allocation2 + $0x168] sm:$0xff] }
 0x1a1   : > { %12644 = vmatprep.mubr.msk.bf16.mxu0 %vm1074_vm5, %v21033_v50  ;;  %21034 = vst [vmem:[#allocation11_spill] sm:$0xff] %v17369_v56  ;;  %v17376_v22 = vpop.permute.xlu0 %8329  ;;  %v21038_v56 = vld [vmem:[#allocation15_spill] sm:$0xff] }
 0x1a2   : > { %21035 = vst [vmem:[#allocation69_spill] sm:$0xff] %v17376_v22  ;;  %6441 = vrot.lane.b32.xlu1 %v6430_v18, %s15226_s14  ;;  %v6435_v18 = vrot.slane %v17394_v52, 2  ;;  %v6432_v22 = vrot.slane %v17400_v35, 2 }
 0x1a3   : > { %6439 = vrot.lane.b32.xlu0 %v6427_v58, %s15226_s14  ;;  %v6431_v58 = vrot.slane %v17397_v16, 2 }
 0x1a4   : > { %v17379_v33 = vpop.permute.xlu1 %5868  ;;  %12891 = vmatmul.mubr.msk.bf16.gmra.mrb[24].mxu1 %vm1074_vm5, %v21037_v8 }
 0x1a5   : > { %21036 = vst [vmem:[#allocation110_spill] sm:$0xff] %v17379_v33  ;;  %12894 = vmatprep.mubr.msk.bf16.mxu1 %vm1074_vm5, %v16915_v55  ;;  %v17389_v29 = vpop.permute.xlu0 %5866  ;;  %v21040_v33 = vld [vmem:[#allocation16_spill] sm:$0xff]  ;;  %v6433_v50 = vsel %vm5551_vm10, %v6431_v58, %v6432_v22 }
 0x1a6   : > { %21039 = vst [vmem:[#allocation111_spill] sm:$0xff] %v17389_v29  ;;  %8855 = vrot.lane.b32.xlu1 %v17355_v41, %s15227_s17 }
 0x1a7   : > { %8853 = vrot.lane.b32.xlu0 %v17361_v12, %s15227_s17 }
 0x1a8   : > { %12645 = vmatmul.mubr.msk.bf16.gmra.mrb[16].mxu0 %vm1074_vm5, %v21038_v56  ;;  %v17405_v29 = vpop.permute.xlu1 %8335  ;;  %v6436_v56 = vsel %vm5551_vm10, %v6434_v23, %v6435_v18  ;;  %v21047_v18 = vld [vmem:[#allocation19_spill] sm:$0xff] }
 0x1a9   : > { %12648 = vmatprep.mubr.msk.bf16.mxu0 %vm1074_vm5, %v21040_v33  ;;  %21041 = vst [vmem:[#allocation112_spill] sm:$0xff] %v17405_v29  ;;  %v17412_v55 = vpop.permute.xlu0 %8333  ;;  %v21044_v29 = vld [vmem:[#allocation17_spill] sm:$0xff] }
 0x1aa   : > { %21042 = vst [vmem:[#allocation113_spill] sm:$0xff] %v17412_v55  ;;  %6445 = vrot.lane.b32.xlu1 %v6436_v56, %s15226_s14  ;;  %v21045_v33 = vld [vmem:[#allocation25_spill] sm:$0xff]  ;;  %v21051_v55 = vshll.u32 %v16456_v38, 16 }
 0x1ab   : > { %6443 = vrot.lane.b32.xlu0 %v6433_v50, %s15226_s14  ;;  %v4577_v50 = vsel %vm1123_vm1, %v17199_v48, 0  ;;  %v17454_v48 = vld [vmem:[%s20261_s1 + $0x1e] sm:$0x3] }
 0x1ac   : > { %v17416_v8 = vpop.permute.xlu1 %5872  ;;  %12895 = vmatmul.mubr.msk.bf16.gmra.mrb[28].mxu1 %vm1074_vm5, %v16917_v14 }
 0x1ad   : > { %21043 = vst [vmem:[#allocation114_spill] sm:$0xff] %v17416_v8  ;;  %12900 = vmatprep.mubr.msk.bf16.mxu1 %vm1074_vm5, %v21045_v33  ;;  %v17425_v23 = vpop.permute.xlu0 %5870  ;;  %v21050_v33 = vshrl.u32 %v16456_v38, 16  ;;  %v2284_v8 = vrot.slane %v21051_v55, 5  ;;  %v21056_v55 = vld [vmem:[#allocation20_spill] sm:$0xff] }
 0x1ae   : > { %21046 = vst [vmem:[#allocation25_spill] sm:$0xff] %v17425_v23  ;;  %8859 = vrot.lane.b32.xlu1 %v17391_v44, %s15227_s17  ;;  %v21052_v23 = vshrl.u32 %v16461_v39, 16 }
 0x1af   : > { %8857 = vrot.lane.b32.xlu0 %v17397_v16, %s15227_s17  ;;  %v2283_v58 = vrot.slane %v21050_v33, 4 }
 0x1b0   : > { %12649 = vmatmul.mubr.msk.bf16.gmra.mrb[20].mxu0 %vm1074_vm5, %v21044_v29  ;;  %v17433_v22 = vpop.permute.xlu1 %8339  ;;  %v21053_v29 = vshll.u32 %v16461_v39, 16 }
 0x1b1   : > { %12652 = vmatprep.mubr.msk.bf16.mxu0 %vm1074_vm5, %v21047_v18  ;;  %21048 = vst [vmem:[#allocation115_spill] sm:$0xff] %v17433_v22  ;;  %v17437_v56 = vpop.permute.xlu0 %8337  ;;  %v2286_v18 = vrot.slane %v21052_v23, 4  ;;  %v21054_v22 = vld [vmem:[#allocation29_spill] sm:$0xff]  ;;  %v21059_v23 = vld [vmem:[#allocation22_spill] sm:$0xff] }
 0x1b2   : > { %21049 = vst [vmem:[#allocation116_spill] sm:$0xff] %v17437_v56  ;;  %v2287_v14 = vrot.slane %v21053_v29, 5  ;;  %9085 = vrot.lane.b32.xlu1 %v20927_v37, %s15227_s17  ;;  %v21058_v29 = vld [vmem:[#allocation27_spill] sm:$0xff] }
 0x1b3   : > { %9083 = vrot.lane.b32.xlu0 %v20930_v7, %s15227_s17 }
 0x1b4   : > { %12901 = vmatmul.mubr.msk.bf16.vlgmr.msra.gmra.mrb[0].mxu1 %vm1074_vm5, %v21054_v22  ;;  %v17458_v38 = vpop.permute.xlu1 %5876  ;;  %v2285_v22 = vor.u32 %v2284_v8, %v2283_v58  ;;  %v2288_v33 = vor.u32 %v2287_v14, %v2286_v18  ;;  %v21063_v14 = vld [vmem:[#allocation53_spill] sm:$0xff]  ;;  %v21064_v8 = vld [vmem:[#allocation54_spill] sm:$0xff] }
 0x1b5   : > { %21055 = vst [vmem:[#allocation29_spill] sm:$0xff] %v17458_v38  ;;  %12933 = vmatpush3.bf16.msra.mxu1 %v4577_v50  ;;  %v17462_v39 = vpop.permute.xlu0 %5874  ;;  %12904 = vmatprep.mubr.msk.bf16.mxu1 %vm1074_vm5, %v21058_v29  ;;  %v21066_v58 = vld [vmem:[#allocation42_spill] sm:$0xff] }
 0x1b6   : > { %21057 = vst [vmem:[#allocation117_spill] sm:$0xff] %v17462_v39  ;;  %14719 = vmatprep.subr.msk.bf16.mxu1 %vm1123_vm1, %v17454_v48  ;;  %9089 = vrot.lane.b32.xlu1 %v20980_v62, %s15227_s17  ;;  %v17477_v56 = vsel %vm1500_vm9, %v2285_v22, %v2288_v33 }
 0x1b7   : > { %9087 = vrot.lane.b32.xlu0 %v20934_v31, %s15227_s17  ;;  %21061 = vst [vmem:[#allocation119_spill] sm:$0xff] %v17477_v56 }
 0x1b8   : > { %12653 = vmatmul.mubr.msk.bf16.gmra.mrb[24].mxu0 %vm1074_vm5, %v21056_v55  ;;  %v17474_v50 = vpop.permute.xlu1 %8343 }
 0x1b9   : > { %12656 = vmatprep.mubr.msk.bf16.mxu0 %vm1074_vm5, %v21059_v23  ;;  %21060 = vst [vmem:[#allocation118_spill] sm:$0xff] %v17474_v50  ;;  %v17479_v38 = vpop.permute.xlu0 %8341 }
 0x1ba   : > { %21062 = vst [vmem:[#allocation120_spill] sm:$0xff] %v17479_v38  ;;  %6659 = vrot.lane.b32.xlu1 %v20990_v4, %s15226_s14  ;;  %v2720_v38 = vsel %vm1123_vm1, %v17265_v45, 0 }
 0x1bb   : > { %6657 = vrot.lane.b32.xlu0 %v20985_v15, %s15226_s14 }
 0x1bc   : > { %12905 = vmatmul.mubr.msk.bf16.gmra.mrb[4].mxu1 %vm1074_vm5, %v21063_v14  ;;  %v17491_v18 = vpop.permute.xlu1 %5880 }
 0x1bd   : > { %12908 = vmatprep.mubr.msk.bf16.mxu1 %vm1074_vm5, %v21064_v8  ;;  %21065 = vst [vmem:[#allocation121_spill] sm:$0xff] %v17491_v18  ;;  %v17495_v22 = vpop.permute.xlu0 %5878  ;;  %v21070_v18 = vld [vmem:[#allocation55_spill] sm:$0xff] }
 0x1be   : > { %21067 = vst [vmem:[#allocation42_spill] sm:$0xff] %v17495_v22  ;;  %9093 = vrot.lane.b32.xlu1 %v20990_v4, %s15227_s17  ;;  %v21074_v22 = vld [vmem:[#allocation44_spill] sm:$0xff] }
 0x1bf   : > { %9091 = vrot.lane.b32.xlu0 %v20985_v15, %s15227_s17 }
 0x1c0   : > { %12657 = vmatmul.mubr.msk.bf16.gmra.mrb[28].mxu0 %vm1074_vm5, %v17477_v56  ;;  %v17501_v33 = vpop.permute.xlu1 %8347 }
 0x1c1   : > { %12662 = vmatprep.mubr.msk.bf16.mxu0 %vm1074_vm5, %v21066_v58  ;;  %21068 = vst [vmem:[#allocation122_spill] sm:$0xff] %v17501_v33  ;;  %v17503_v50 = vpop.permute.xlu0 %8345  ;;  %v17516_v58 = vld [vmem:[%s20261_s1 + $0x10] sm:$0x3]  ;;  %v21071_v33 = vld [vmem:[#allocation43_spill] sm:$0xff] }
 0x1c2   : > { %21069 = vst [vmem:[#allocation123_spill] sm:$0xff] %v17503_v50  ;;  %6663 = vrot.lane.b32.xlu1 %v20998_v26, %s15226_s14  ;;  %v21072_v50 = vld [vmem:[#allocation56_spill] sm:$0xff] }
 0x1c3   : > { %6661 = vrot.lane.b32.xlu0 %v20993_v11, %s15226_s14 }
 0x1c4   : > { %12909 = vmatmul.mubr.msk.bf16.gmra.mrb[8].mxu1 %vm1074_vm5, %v21070_v18  ;;  %v17522_v45 = vpop.permute.xlu1 %5884  ;;  %v6874_v18 = vrot.slane %v17364_v32, 6 }
 0x1c5   : > { %12912 = vmatprep.mubr.msk.bf16.mxu1 %vm1074_vm5, %v21072_v50  ;;  %21073 = vst [vmem:[#allocation43_spill] sm:$0xff] %v17522_v45  ;;  %v17526_v39 = vpop.permute.xlu0 %5882  ;;  %v21080_v45 = vld [vmem:[#allocation60_spill] sm:$0xff] }
 0x1c6   : > { %21075 = vst [vmem:[#allocation44_spill] sm:$0xff] %v17526_v39  ;;  %9097 = vrot.lane.b32.xlu1 %v20998_v26, %s15227_s17 }
 0x1c7   : > { %9095 = vrot.lane.b32.xlu0 %v20993_v11, %s15227_s17 }
 0x1c8   : > { %12663 = vmatmul.mubr.msk.bf16.vlgmr.msra.gmra.mrb[0].mxu0 %vm1074_vm5, %v21071_v33  ;;  %v17534_v33 = vpop.permute.xlu1 %8351 }
 0x1c9   : > { %12666 = vmatprep.mubr.msk.bf16.mxu0 %vm1074_vm5, %v21074_v22  ;;  %12695 = vmatpush3.bf16.msra.mxu0 %v2720_v38  ;;  %21076 = vst [vmem:[#allocation124_spill] sm:$0xff] %v17534_v33  ;;  %v17536_v50 = vpop.permute.xlu0 %8349  ;;  %v21078_v22 = vld [vmem:[#allocation59_spill] sm:$0xff]  ;;  %v21079_v38 = vld [vmem:[#allocation45_spill] sm:$0xff]  ;;  %v6876_v33 = vrot.slane %v17355_v41, 6 }
 0x1ca   : > { %14712 = vmatprep.subr.msk.bf16.mxu0 %vm1123_vm1, %v17516_v58  ;;  %21077 = vst [vmem:[#allocation125_spill] sm:$0xff] %v17536_v50  ;;  %9323 = vrot.lane.b32.xlu1 %v17018_v63, %s15227_s17  ;;  %v6877_v50 = vrot.slane %v17358_v34, 6  ;;  %v6873_v63 = vrot.slane %v17361_v12, 6 }
 0x1cb   : > { %9321 = vrot.lane.b32.xlu0 %v17024_v43, %s15227_s17 }
 0x1cc   : > { %12913 = vmatmul.mubr.msk.bf16.gmra.mrb[12].mxu1 %vm1074_vm5, %v21078_v22  ;;  %v17548_v39 = vpop.permute.xlu1 %6151  ;;  %v21082_v22 = vld [vmem:[#allocation46_spill] sm:$0xff] }
 0x1cd   : > { %12916 = vmatprep.mubr.msk.bf16.mxu1 %vm1074_vm5, %v21080_v45  ;;  %21081 = vst [vmem:[#allocation45_spill] sm:$0xff] %v17548_v39  ;;  %v17556_v43 = vpop.permute.xlu0 %6149  ;;  %v6875_v39 = vsel %vm1123_vm1, %v6873_v63, %v6874_v18  ;;  %v21086_v45 = vld [vmem:[#allocation61_spill] sm:$0xff]  ;;  %v6883_v18 = vrot.slane %v17394_v52, 6  ;;  %v6880_v63 = vrot.slane %v17400_v35, 6 }
 0x1ce   : > { %21083 = vst [vmem:[#allocation46_spill] sm:$0xff] %v17556_v43  ;;  %9327 = vrot.lane.b32.xlu1 %v17056_v60, %s15227_s17  ;;  %v21088_v60 = vld [vmem:[#allocation62_spill] sm:$0xff] }
 0x1cf   : > { %9325 = vrot.lane.b32.xlu0 %v17062_v6, %s15227_s17 }
 0x1d0   : > { %12667 = vmatmul.mubr.msk.bf16.gmra.mrb[4].mxu0 %vm1074_vm5, %v21079_v38  ;;  %v6878_v38 = vsel %vm1123_vm1, %v6876_v33, %v6877_v50  ;;  %v17563_v41 = vpop.permute.xlu1 %8569  ;;  %v6882_v50 = vrot.slane %v17391_v44, 6  ;;  %v6879_v33 = vrot.slane %v17397_v16, 6 }
 0x1d1   : > { %12670 = vmatprep.mubr.msk.bf16.mxu0 %vm1074_vm5, %v21082_v22  ;;  %21084 = vst [vmem:[#allocation126_spill] sm:$0xff] %v17563_v41  ;;  %v17566_v12 = vpop.permute.xlu0 %8567  ;;  %v21087_v22 = vld [vmem:[#allocation47_spill] sm:$0xff] }
 0x1d2   : > { %21085 = vst [vmem:[#allocation127_spill] sm:$0xff] %v17566_v12  ;;  %6889 = vrot.lane.b32.xlu1 %v6878_v38, %s15226_s14  ;;  %v21090_v38 = vld [vmem:[#allocation48_spill] sm:$0xff]  ;;  %v6881_v41 = vsel %vm1123_vm1, %v6879_v33, %v6880_v63  ;;  %v17618_v63 = vld [vmem:[#allocation2 + $0x190] sm:$0xff] }
 0x1d3   : > { %6887 = vrot.lane.b32.xlu0 %v6875_v39, %s15226_s14  ;;  %v21094_v12 = vld [vmem:[#allocation4_spill] sm:$0xff] }
 0x1d4   : > { %12917 = vmatmul.mubr.msk.bf16.gmra.mrb[16].mxu1 %vm1074_vm5, %v21086_v45  ;;  %v17576_v6 = vpop.permute.xlu1 %6155 }
 0x1d5   : > { %12920 = vmatprep.mubr.msk.bf16.mxu1 %vm1074_vm5, %v21088_v60  ;;  %21089 = vst [vmem:[#allocation47_spill] sm:$0xff] %v17576_v6  ;;  %v17584_v39 = vpop.permute.xlu0 %6153  ;;  %v17649_v6 = vld [vmem:[#allocation2 + $0x188] sm:$0xff] }
 0x1d6   : > { %21091 = vst [vmem:[#allocation48_spill] sm:$0xff] %v17584_v39  ;;  %9331 = vrot.lane.b32.xlu1 %v17358_v34, %s15227_s17  ;;  %v21096_v34 = vld [vmem:[#allocation63_spill] sm:$0xff]  ;;  %v21118_v23 = vshrl.u32 %v17649_v6, 16  ;;  %v21119_v55 = vshll.u32 %v17649_v6, 16 }
 0x1d7   : > { %9329 = vrot.lane.b32.xlu0 %v17364_v32, %s15227_s17 }
 0x1d8   : > { %12671 = vmatmul.mubr.msk.bf16.gmra.mrb[8].mxu0 %vm1074_vm5, %v21087_v22  ;;  %v6884_v22 = vsel %vm1123_vm1, %v6882_v50, %v6883_v18  ;;  %v17591_v44 = vpop.permute.xlu1 %8573  ;;  %v21098_v50 = vld [vmem:[#allocation50_spill] sm:$0xff]  ;;  %v2502_v14 = vrot.slane %v21118_v23, 3  ;;  %v2505_v29 = vrot.slane %v21119_v55, 4 }
 0x1d9   : > { %12674 = vmatprep.mubr.msk.bf16.mxu0 %vm1074_vm5, %v21090_v38  ;;  %21092 = vst [vmem:[#allocation128_spill] sm:$0xff] %v17591_v44  ;;  %v17594_v16 = vpop.permute.xlu0 %8571  ;;  %v21095_v38 = vld [vmem:[#allocation49_spill] sm:$0xff]  ;;  %v21122_v23 = vld [vmem:[#allocation26_spill] sm:$0xff] }
 0x1da   : > { %21093 = vst [vmem:[#allocation129_spill] sm:$0xff] %v17594_v16  ;;  %6893 = vrot.lane.b32.xlu1 %v6884_v22, %s15226_s14  ;;  %v21102_v22 = vld [vmem:[#allocation3_spill] sm:$0xff]  ;;  %v7110_v16 = vrot.slane %v17618_v63, 2 }
 0x1db   : > { %6891 = vrot.lane.b32.xlu0 %v6881_v41, %s15226_s14 }
 0x1dc   : > { %12921 = vmatmul.mubr.msk.bf16.gmra.mrb[20].mxu1 %vm1074_vm5, %v21094_v12  ;;  %v17604_v32 = vpop.permute.xlu1 %6159  ;;  %v21110_v12 = vld [vmem:[#allocation21_spill] sm:$0xff] }
 0x1dd   : > { %12924 = vmatprep.mubr.msk.bf16.mxu1 %vm1074_vm5, %v21096_v34  ;;  %21097 = vst [vmem:[#allocation49_spill] sm:$0xff] %v17604_v32  ;;  %v17608_v18 = vpop.permute.xlu0 %6157  ;;  %v17643_v32 = vld [vmem:[#allocation2 + $0x198] sm:$0xff]  ;;  %v17665_v34 = vld [vmem:[#allocation2 + $0x1d0] sm:$0xff] }
 0x1de   : > { %21099 = vst [vmem:[#allocation50_spill] sm:$0xff] %v17608_v18  ;;  %9335 = vrot.lane.b32.xlu1 %v17394_v52, %s15227_s17  ;;  %v17628_v52 = vld [vmem:[#allocation2 + $0x1b0] sm:$0xff]  ;;  %v7111_v18 = vrot.slane %v17643_v32, 2 }
 0x1df   : > { %9333 = vrot.lane.b32.xlu0 %v17400_v35, %s15227_s17  ;;  %v21103_v35 = vld [vmem:[#allocation51_spill] sm:$0xff] }
 0x1e0   : > { %12675 = vmatmul.mubr.msk.bf16.gmra.mrb[12].mxu0 %vm1074_vm5, %v21095_v38  ;;  %v17614_v41 = vpop.permute.xlu1 %8577  ;;  %v17624_v38 = vld [vmem:[#allocation2 + $0x180] sm:$0xff] }
 0x1e1   : > { %12678 = vmatprep.mubr.msk.bf16.mxu0 %vm1074_vm5, %v21098_v50  ;;  %21100 = vst [vmem:[#allocation130_spill] sm:$0xff] %v17614_v41  ;;  %v17616_v33 = vpop.permute.xlu0 %8575  ;;  %v17636_v41 = vld [vmem:[#allocation2 + $0x1a0] sm:$0xff]  ;;  %v21117_v56 = vshll.u32 %v17624_v38, 16 }
 0x1e2   : > { %21101 = vst [vmem:[#allocation131_spill] sm:$0xff] %v17616_v33  ;;  %9565 = vrot.lane.b32.xlu1 %v17618_v63, %s15227_s17  ;;  %v21105_v33 = vld [vmem:[#allocation52_spill] sm:$0xff] }
 0x1e3   : > { %9563 = vrot.lane.b32.xlu0 %v17624_v38, %s15227_s17  ;;  %v2497_v8 = vrot.slane %v21117_v56, 4  ;;  %v17719_v56 = vld [vmem:[#allocation2 + $0x1f0] sm:$0xff] }
 0x1e4   : > { %12925 = vmatmul.mubr.msk.bf16.gmra.mrb[24].mxu1 %vm1074_vm5, %v21102_v22  ;;  %v17634_v50 = vpop.permute.xlu1 %6163  ;;  %v7116_v22 = vrot.slane %v17628_v52, 2 }
 0x1e5   : > { %12928 = vmatprep.mubr.msk.bf16.mxu1 %vm1074_vm5, %v16937_v40  ;;  %21104 = vst [vmem:[#allocation51_spill] sm:$0xff] %v17634_v50  ;;  %v17640_v44 = vpop.permute.xlu0 %6161  ;;  %v7108_v50 = vrot.slane %v17649_v6, 2  ;;  %v21109_v40 = vld [vmem:[#allocation82_spill] sm:$0xff] }
 0x1e6   : > { %21106 = vst [vmem:[#allocation52_spill] sm:$0xff] %v17640_v44  ;;  %9569 = vrot.lane.b32.xlu1 %v17628_v52, %s15227_s17 }
 0x1e7   : > { %9567 = vrot.lane.b32.xlu0 %v17636_v41, %s15227_s17 }
 0x1e8   : > { %12679 = vmatmul.mubr.msk.bf16.gmra.mrb[16].mxu0 %vm1074_vm5, %v21103_v35  ;;  %v7107_v35 = vrot.slane %v17624_v38, 2  ;;  %v17655_v44 = vpop.permute.xlu1 %8581 }
 0x1e9   : > { %12682 = vmatprep.mubr.msk.bf16.mxu0 %vm1074_vm5, %v21105_v33  ;;  %v7112_v33 = vsel %vm5551_vm10, %v7110_v16, %v7111_v18  ;;  %21107 = vst [vmem:[#allocation132_spill] sm:$0xff] %v17655_v44  ;;  %v17658_v43 = vpop.permute.xlu0 %8579  ;;  %v21111_v16 = vld [vmem:[#allocation37_spill] sm:$0xff]  ;;  %v17676_v44 = vld [vmem:[#allocation2 + $0x1c0] sm:$0xff] }
 0x1ea   : > { %v7109_v39 = vsel %vm5551_vm10, %v7107_v35, %v7108_v50  ;;  %21108 = vst [vmem:[#allocation133_spill] sm:$0xff] %v17658_v43  ;;  %7123 = vrot.lane.b32.xlu1 %v7112_v33, %s15226_s14  ;;  %v7113_v35 = vrot.slane %v17636_v41, 2  ;;  %v17678_v43 = vld [vmem:[#allocation2 + $0x1b8] sm:$0xff] }
 0x1eb   : > { %7121 = vrot.lane.b32.xlu0 %v7109_v39, %s15226_s14  ;;  %v17680_v39 = vld [vmem:[#allocation2 + $0x1a8] sm:$0xff]  ;;  %v7117_v50 = vrot.slane %v17678_v43, 2 }
 0x1ec   : > { %12929 = vmatmul.mubr.msk.bf16.gmra.mrb[28].mxu1 %vm1074_vm5, %v21109_v40  ;;  %v17674_v33 = vpop.permute.xlu1 %6167  ;;  %v21113_v40 = vld [vmem:[#allocation23_spill] sm:$0xff]  ;;  %v7114_v60 = vrot.slane %v17680_v39, 2 }
 0x1ed   : > { %12934 = vmatprep.mubr.msk.bf16.mxu1 %vm1074_vm5, %v21111_v16  ;;  %21112 = vst [vmem:[#allocation21_spill] sm:$0xff] %v17674_v33  ;;  %v17686_v18 = vpop.permute.xlu0 %6165  ;;  %v7118_v33 = vsel %vm5551_vm10, %v7116_v22, %v7117_v50  ;;  %v21124_v50 = vld [vmem:[#allocation72_spill] sm:$0xff] }
 0x1ee   : > { %21114 = vst [vmem:[#allocation37_spill] sm:$0xff] %v17686_v18  ;;  %9573 = vrot.lane.b32.xlu1 %v17665_v34, %s15227_s17  ;;  %v7115_v16 = vsel %vm5551_vm10, %v7113_v35, %v7114_v60  ;;  %v21116_v18 = vshrl.u32 %v17624_v38, 16  ;;  %v17716_v60 = vld [vmem:[%s20261_s1 + $0x20] sm:$0x3]  ;;  %v21125_v35 = vld [vmem:[#allocation84_spill] sm:$0xff] }
 0x1ef   : > { %9571 = vrot.lane.b32.xlu0 %v17676_v44, %s15227_s17 }
 0x1f0   : > { %12683 = vmatmul.mubr.msk.bf16.gmra.mrb[20].mxu0 %vm1074_vm5, %v21110_v12  ;;  %v17697_v12 = vpop.permute.xlu1 %8585  ;;  %v2494_v45 = vrot.slane %v21116_v18, 3  ;;  %v17725_v18 = vld [vmem:[#allocation2 + $0x1e0] sm:$0xff] }
 0x1f1   : > { %12686 = vmatprep.mubr.msk.bf16.mxu0 %vm1074_vm5, %v21113_v40  ;;  %v4793_v40 = vsel %vm1123_vm1, %v17454_v48, 0  ;;  %21115 = vst [vmem:[#allocation23_spill] sm:$0xff] %v17697_v12  ;;  %v17708_v22 = vpop.permute.xlu0 %8583  ;;  %v21121_v48 = vld [vmem:[#allocation71_spill] sm:$0xff] }
 0x1f2   : > { %21120 = vst [vmem:[#allocation134_spill] sm:$0xff] %v17708_v22  ;;  %7127 = vrot.lane.b32.xlu1 %v7118_v33, %s15226_s14  ;;  %v2498_v33 = vor.u32 %v2497_v8, %v2494_v45  ;;  %v21129_v45 = vld [vmem:[#allocation57_spill] sm:$0xff] }
 0x1f3   : > { %7125 = vrot.lane.b32.xlu0 %v7115_v16, %s15226_s14  ;;  %v7340_v16 = vrot.slane %v17628_v52, 4  ;;  %v21130_v22 = vld [vmem:[#allocation73_spill] sm:$0xff] }
 0x1f4   : > { %12935 = vmatmul.mubr.msk.bf16.vlgmr.msra.gmra.mrb[0].mxu1 %vm1074_vm5, %v21121_v48  ;;  %v17723_v55 = vpop.permute.xlu1 %6171  ;;  %v2506_v48 = vor.u32 %v2505_v29, %v2502_v14  ;;  %v7341_v14 = vrot.slane %v17678_v43, 4 }
 0x1f5   : > { %12967 = vmatpush3.bf16.msra.mxu1 %v4793_v40  ;;  %21123 = vst [vmem:[#allocation71_spill] sm:$0xff] %v17723_v55  ;;  %12938 = vmatprep.mubr.msk.bf16.mxu1 %vm1074_vm5, %v21124_v50  ;;  %v17731_v12 = vpop.permute.xlu0 %6169  ;;  %v7337_v40 = vrot.slane %v17636_v41, 4  ;;  %v21131_v55 = vld [vmem:[#allocation58_spill] sm:$0xff] }
 0x1f6   : > { %21126 = vst [vmem:[#allocation26_spill] sm:$0xff] %v17731_v12  ;;  %14720 = vmatprep.subr.msk.bf16.mxu1 %vm1123_vm1, %v17716_v60  ;;  %9577 = vrot.lane.b32.xlu1 %v17719_v56, %s15227_s17  ;;  %v2507_v8 = vsel %vm717_vm7, %v2498_v33, %v2506_v48  ;;  %v7342_v12 = vsel %vm1023_vm4, %v7340_v16, %v7341_v14  ;;  %v21132_v33 = vld [vmem:[#allocation74_spill] sm:$0xff]  ;;  %v9803_v16 = vrot.slane %v17676_v44, 4 }
 0x1f7   : > { %9575 = vrot.lane.b32.xlu0 %v17725_v18, %s15227_s17  ;;  %v17771_v14 = vld [vmem:[#allocation2 + $0x1d8] sm:$0xff] }
 0x1f8   : > { %12687 = vmatmul.mubr.msk.bf16.gmra.mrb[24].mxu0 %vm1074_vm5, %v21122_v23  ;;  %v17741_v23 = vpop.permute.xlu1 %8589  ;;  %v17790_v44 = vld [vmem:[%s20261_s1 + $0x26] sm:$0x3] }
 0x1f9   : > { %12690 = vmatprep.mubr.msk.bf16.mxu0 %vm1074_vm5, %v21125_v35  ;;  %21127 = vst [vmem:[#allocation84_spill] sm:$0xff] %v17741_v23  ;;  %v17744_v29 = vpop.permute.xlu0 %8587  ;;  %v7338_v35 = vrot.slane %v17680_v39, 4 }
 0x1fa   : > { %21128 = vst [vmem:[#allocation135_spill] sm:$0xff] %v17744_v29  ;;  %9819 = vrot.lane.b32.xlu1 %v21129_v45, %s15227_s17  ;;  %v21134_v29 = vld [vmem:[#allocation14_spill] sm:$0xff] }
 0x1fb   : > { %9817 = vrot.lane.b32.xlu0 %v21131_v55, %s15227_s17  ;;  %v7339_v23 = vsel %vm1023_vm4, %v7337_v40, %v7338_v35  ;;  %v9807_v40 = vrot.slane %v17771_v14, 4  ;;  %v17776_v35 = vld [vmem:[#allocation2 + $0x1c8] sm:$0xff] }
 0x1fc   : > { %12939 = vmatmul.mubr.msk.bf16.gmra.mrb[4].mxu1 %vm1074_vm5, %v21130_v22  ;;  %v17758_v48 = vpop.permute.xlu1 %6175  ;;  %v9806_v22 = vrot.slane %v17665_v34, 4  ;;  %v9804_v34 = vrot.slane %v17776_v35, 4 }
 0x1fd   : > { %12942 = vmatprep.mubr.msk.bf16.mxu1 %vm1074_vm5, %v21132_v33  ;;  %21133 = vst [vmem:[#allocation57_spill] sm:$0xff] %v17758_v48  ;;  %v17763_v50 = vpop.permute.xlu0 %6173 }
 0x1fe   : > { %21135 = vst [vmem:[#allocation58_spill] sm:$0xff] %v17763_v50  ;;  %9823 = vrot.lane.b32.xlu1 %v7342_v12, %s15227_s17  ;;  %v9805_v50 = vsel %vm1023_vm4, %v9803_v16, %v9804_v34  ;;  %v17812_v16 = vld [vmem:[#allocation2 + $0x1f8] sm:$0xff] }
 0x1ff   : > { %9821 = vrot.lane.b32.xlu0 %v7339_v23, %s15227_s17 }
 0x200   : > { %12691 = vmatmul.mubr.msk.bf16.gmra.mrb[28].mxu0 %vm1074_vm5, %v2507_v8  ;;  %v17769_v8 = vpop.permute.xlu1 %8593 }
 0x201   : > { %12696 = vmatprep.mubr.msk.bf16.mxu0 %vm1074_vm5, %v21134_v29  ;;  %21136 = vst [vmem:[#allocation14_spill] sm:$0xff] %v17769_v8  ;;  %v17773_v48 = vpop.permute.xlu0 %8591  ;;  %v2928_v29 = vsel %vm1123_vm1, %v17516_v58, 0  ;;  %v9808_v8 = vsel %vm1023_vm4, %v9806_v22, %v9807_v40  ;;  %v21139_v58 = vld [vmem:[#allocation76_spill] sm:$0xff]  ;;  %v9812_v22 = vrot.slane %v17719_v56, 4 }
 0x202   : > { %21137 = vst [vmem:[#allocation136_spill] sm:$0xff] %v17773_v48  ;;  %7347 = vrot.lane.b32.xlu1 %v21129_v45, %s15226_s14  ;;  %v21138_v48 = vld [vmem:[#allocation18_spill] sm:$0xff] }
 0x203   : > { %7345 = vrot.lane.b32.xlu0 %v21131_v55, %s15226_s14 }
 0x204   : > { %12943 = vmatmul.mubr.msk.bf16.gmra.mrb[8].mxu1 %vm1074_vm5, %v16822_v3  ;;  %v17797_v45 = vpop.permute.xlu1 %6179  ;;  %v21141_v3 = vld [vmem:[#allocation24_spill] sm:$0xff] }
 0x205   : > { %12946 = vmatprep.mubr.msk.bf16.mxu1 %vm1074_vm5, %v21139_v58  ;;  %21140 = vst [vmem:[#allocation18_spill] sm:$0xff] %v17797_v45  ;;  %v17802_v33 = vpop.permute.xlu0 %6177 }
 0x206   : > { %21142 = vst [vmem:[#allocation76_spill] sm:$0xff] %v17802_v33  ;;  %9827 = vrot.lane.b32.xlu1 %v9808_v8, %s15227_s17 }
 0x207   : > { %9825 = vrot.lane.b32.xlu0 %v9805_v50, %s15227_s17 }
 0x208   : > { %12697 = vmatmul.mubr.msk.bf16.vlgmr.msra.gmra.mrb[0].mxu0 %vm1074_vm5, %v21138_v48  ;;  %v9809_v48 = vrot.slane %v17725_v18, 4  ;;  %v17810_v40 = vpop.permute.xlu1 %8597 }
 0x209   : > { %12700 = vmatprep.mubr.msk.bf16.mxu0 %vm1074_vm5, %v21141_v3  ;;  %12729 = vmatpush3.bf16.msra.mxu0 %v2928_v29  ;;  %21143 = vst [vmem:[#allocation24_spill] sm:$0xff] %v17810_v40  ;;  %v17814_v34 = vpop.permute.xlu0 %8595  ;;  %v9813_v3 = vrot.slane %v17812_v16, 4  ;;  %v17817_v29 = vld [vmem:[#allocation2 + $0x1e8] sm:$0xff] }
 0x20a   : > { %14722 = vmatprep.subr.msk.bf16.mxu0 %vm1123_vm1, %v17790_v44  ;;  %21144 = vst [vmem:[#allocation137_spill] sm:$0xff] %v17814_v34  ;;  %7351 = vrot.lane.b32.xlu1 %v7342_v12, %s15226_s14  ;;  %v9810_v8 = vrot.slane %v17817_v29, 4 }
 0x20b   : > { %7349 = vrot.lane.b32.xlu0 %v7339_v23, %s15226_s14  ;;  %v9814_v56 = vsel %vm1023_vm4, %v9812_v22, %v9813_v3  ;;  %v7561_v3 = vrot.slane %v17624_v38, 6 }
 0x20c   : > { %12947 = vmatmul.mubr.msk.bf16.gmra.mrb[12].mxu1 %vm1074_vm5, %v16831_v53  ;;  %v17829_v18 = vpop.permute.xlu1 %8847  ;;  %v9811_v50 = vsel %vm1023_vm4, %v9809_v48, %v9810_v8  ;;  %v7565_v48 = vrot.slane %v17643_v32, 6  ;;  %v7562_v8 = vrot.slane %v17649_v6, 6 }
 0x20d   : > { %12950 = vmatprep.mubr.msk.bf16.mxu1 %vm1074_vm5, %v16856_v25  ;;  %21145 = vst [vmem:[#allocation138_spill] sm:$0xff] %v17829_v18  ;;  %v17834_v12 = vpop.permute.xlu0 %8845  ;;  %v21192_v18 = vld [vmem:[#allocation70_spill] sm:$0xff] }
 0x20e   : > { %21146 = vst [vmem:[#allocation139_spill] sm:$0xff] %v17834_v12  ;;  %9831 = vrot.lane.b32.xlu1 %v9814_v56, %s15227_s17  ;;  %v21193_v12 = vld [vmem:[#allocation13_spill] sm:$0xff] }
 0x20f   : > { %9829 = vrot.lane.b32.xlu0 %v9811_v50, %s15227_s17 }
 0x210   : > { %12701 = vmatmul.mubr.msk.bf16.gmra.mrb[4].mxu0 %vm1074_vm5, %v20918_v27  ;;  %v17838_v23 = vpop.permute.xlu1 %8851  ;;  %v7564_v27 = vrot.slane %v17618_v63, 6 }
 0x211   : > { %12704 = vmatprep.mubr.msk.bf16.mxu0 %vm1074_vm5, %v20915_v59  ;;  %21147 = vst [vmem:[#allocation140_spill] sm:$0xff] %v17838_v23  ;;  %v17840_v22 = vpop.permute.xlu0 %8849  ;;  %v5691_v23 = vsel %vm1123_vm1, %v17790_v44, 0 }
 0x212   : > { %21148 = vst [vmem:[#allocation141_spill] sm:$0xff] %v17840_v22  ;;  %10057 = vrot.lane.b32.xlu1 %v17643_v32, %s15227_s17  ;;  %v7563_v32 = vsel %vm1123_vm1, %v7561_v3, %v7562_v8  ;;  %v7571_v3 = vrot.slane %v17678_v43, 6  ;;  %v7568_v8 = vrot.slane %v17680_v39, 6 }
 0x213   : > { %10055 = vrot.lane.b32.xlu0 %v17649_v6, %s15227_s17 }
 0x214   : > { %12951 = vmatmul.mubr.msk.bf16.gmra.mrb[16].mxu1 %vm1074_vm5, %v16858_v61  ;;  %v17852_v59 = vpop.permute.xlu1 %6441 }
 0x215   : > { %12954 = vmatprep.mubr.msk.bf16.mxu1 %vm1074_vm5, %v16865_v19  ;;  %21149 = vst [vmem:[#allocation142_spill] sm:$0xff] %v17852_v59  ;;  %v17860_v56 = vpop.permute.xlu0 %6439 }
 0x216   : > { %21150 = vst [vmem:[#allocation143_spill] sm:$0xff] %v17860_v56  ;;  %10061 = vrot.lane.b32.xlu1 %v17678_v43, %s15227_s17 }
 0x217   : > { %10059 = vrot.lane.b32.xlu0 %v17680_v39, %s15227_s17 }
 0x218   : > { %12705 = vmatmul.mubr.msk.bf16.gmra.mrb[8].mxu0 %vm1074_vm5, %v20924_v9  ;;  %v7566_v9 = vsel %vm1123_vm1, %v7564_v27, %v7565_v48  ;;  %v17867_v63 = vpop.permute.xlu1 %8855  ;;  %v7567_v27 = vrot.slane %v17636_v41, 6 }
 0x219   : > { %12708 = vmatprep.mubr.msk.bf16.mxu0 %vm1074_vm5, %v20921_v36  ;;  %21151 = vst [vmem:[#allocation144_spill] sm:$0xff] %v17867_v63  ;;  %v17870_v50 = vpop.permute.xlu0 %8853  ;;  %v7570_v36 = vrot.slane %v17628_v52, 6 }
 0x21a   : > { %21152 = vst [vmem:[#allocation145_spill] sm:$0xff] %v17870_v50  ;;  %7577 = vrot.lane.b32.xlu1 %v7566_v9, %s15226_s14  ;;  %v7569_v41 = vsel %vm1123_vm1, %v7567_v27, %v7568_v8  ;;  %v17919_v27 = vld [vmem:[%s15428_s28] sm:$0xf]  ;;  %v17923_v8 = vld [vmem:[%s15428_s28 + $0x4] sm:$0xf] }
 0x21b   : > { %7575 = vrot.lane.b32.xlu0 %v7563_v32, %s15226_s14  ;;  %v17915_v32 = vld [vmem:[%s15428_s28 + $0xc] sm:$0xf] }
 0x21c   : > { %12955 = vmatmul.mubr.msk.bf16.gmra.mrb[20].mxu1 %vm1074_vm5, %v16867_v24  ;;  %v17882_v48 = vpop.permute.xlu1 %6445 }
 0x21d   : > { %12958 = vmatprep.mubr.msk.bf16.mxu1 %vm1074_vm5, %v16896_v46  ;;  %21153 = vst [vmem:[#allocation146_spill] sm:$0xff] %v17882_v48  ;;  %v17888_v52 = vpop.permute.xlu0 %6443 }
 0x21e   : > { %21154 = vst [vmem:[#allocation147_spill] sm:$0xff] %v17888_v52  ;;  %10065 = vrot.lane.b32.xlu1 %v17771_v14, %s15227_s17 }
 0x21f   : > { %10063 = vrot.lane.b32.xlu0 %v17776_v35, %s15227_s17  ;;  %v17911_v35 = vld [vmem:[%s15428_s28 + $0x8] sm:$0xf] }
 0x220   : > { %12709 = vmatmul.mubr.msk.bf16.gmra.mrb[12].mxu0 %vm1074_vm5, %v20930_v7  ;;  %v7572_v7 = vsel %vm1123_vm1, %v7570_v36, %v7571_v3  ;;  %v17895_v43 = vpop.permute.xlu1 %8859  ;;  %v20554_v9 = vunpack.c.l.bf16 %v17911_v35  ;;  %v20555_v36 = vunpack.c.l.bf16 %v17915_v32  ;;  %v20556_v3 = vunpack.c.l.bf16 %v17919_v27 }
 0x221   : > { %12712 = vmatprep.mubr.msk.bf16.mxu0 %vm1074_vm5, %v20927_v37  ;;  %21155 = vst [vmem:[#allocation148_spill] sm:$0xff] %v17895_v43  ;;  %v17898_v39 = vpop.permute.xlu0 %8857  ;;  %v21157_v37 = vld [vmem:[#allocation86_spill] sm:$0xff] }
 0x222   : > { %21156 = vst [vmem:[#allocation149_spill] sm:$0xff] %v17898_v39  ;;  %7581 = vrot.lane.b32.xlu1 %v7572_v7, %s15226_s14 }
 0x223   : > { %7579 = vrot.lane.b32.xlu0 %v7569_v41, %s15226_s14  ;;  %v14760_v41 = vpack.i.bf16 %v20555_v36, %v20554_v9  ;;  %v17957_v9 = vld [vmem:[%s15428_s28 + $0x18] sm:$0xf] }
 0x224   : > { %12959 = vmatmul.mubr.msk.bf16.gmra.mrb[24].mxu1 %vm1074_vm5, %v20979_v20  ;;  %v17908_v14 = vpop.permute.xlu1 %9085  ;;  %v20563_v36 = vunpack.c.l.bf16 %v17957_v9 }
 0x225   : > { %12962 = vmatprep.mubr.msk.bf16.mxu1 %vm1074_vm5, %v21157_v37  ;;  %21158 = vst [vmem:[#allocation86_spill] sm:$0xff] %v17908_v14  ;;  %v17928_v7 = vpop.permute.xlu0 %9083 }
 0x226   : > { %21159 = vst [vmem:[#allocation150_spill] sm:$0xff] %v17928_v7  ;;  %10069 = vrot.lane.b32.xlu1 %v17812_v16, %s15227_s17  ;;  %v21162_v16 = vld [vmem:[#allocation85_spill] sm:$0xff] }
 0x227   : > { %10067 = vrot.lane.b32.xlu0 %v17817_v29, %s15227_s17 }
 0x228   : > { %12713 = vmatmul.mubr.msk.bf16.gmra.mrb[16].mxu0 %vm1074_vm5, %v20934_v31  ;;  %v20557_v31 = vunpack.c.l.bf16 %v17923_v8  ;;  %v17942_v14 = vpop.permute.xlu1 %9089 }
 0x229   : > { %12716 = vmatprep.mubr.msk.bf16.mxu0 %vm1074_vm5, %v20980_v62  ;;  %21160 = vst [vmem:[#allocation151_spill] sm:$0xff] %v17942_v14  ;;  %v17944_v7 = vpop.permute.xlu0 %9087  ;;  %v17969_v14 = vld [vmem:[%s15428_s28 + $0x14] sm:$0xf] }
 0x22a   : > { %v14755_v62 = vpack.i.bf16 %v20557_v31, %v20556_v3  ;;  %21161 = vst [vmem:[#allocation152_spill] sm:$0xff] %v17944_v7  ;;  %14761 = vrot.lane.b32.xlu1 %v14760_v41, %s15225_s29  ;;  %v17961_v3 = vld [vmem:[%s15428_s28 + $0x1c] sm:$0xf]  ;;  %v17965_v31 = vld [vmem:[%s15428_s28 + $0x10] sm:$0xf] }
 0x22b   : > { %v20564_v41 = vunpack.c.l.bf16 %v17961_v3 }
 0x22c   : > { %12963 = vmatmul.mubr.msk.bf16.gmra.mrb[28].mxu1 %vm1074_vm5, %v21162_v16  ;;  %14756 = vrot.lane.b32.xlu0 %v14755_v62, %s15225_s29  ;;  %v17954_v29 = vpop.permute.xlu1 %6659  ;;  %v20565_v62 = vunpack.c.l.bf16 %v17965_v31 }
 0x22d   : > { %12968 = vmatprep.mubr.msk.bf16.mxu1 %vm1074_vm5, %v20992_v21  ;;  %21163 = vst [vmem:[#allocation85_spill] sm:$0xff] %v17954_v29  ;;  %v17974_v21 = vpop.permute.xlu0 %6657  ;;  %v14770_v7 = vpack.i.bf16 %v20564_v41, %v20563_v36  ;;  %v17997_v36 = vld [vmem:[%s20261_s1 + $0x22] sm:$0x3]  ;;  %v18008_v41 = vld [vmem:[%s15428_s28 + $0x2c] sm:$0xf]  ;;  %v21200_v29 = vld [vmem:[#allocation81_spill] sm:$0xff] }
 0x22e   : > { %21164 = vst [vmem:[#allocation153_spill] sm:$0xff] %v17974_v21  ;;  %v21201_v21 = vld [vmem:[#allocation16_spill] sm:$0xff] }
 0x22f   : > { %14771 = vrot.lane.b32.xlu1 %v14770_v7, %s15225_s29 }
 0x230   : > { %12717 = vmatmul.mubr.msk.bf16.gmra.mrb[20].mxu0 %vm1074_vm5, %v20985_v15  ;;  %v20566_v15 = vunpack.c.l.bf16 %v17969_v14  ;;  %v17984_v39 = vpop.permute.xlu1 %9093 }
 0x231   : > { %12720 = vmatprep.mubr.msk.bf16.mxu0 %vm1074_vm5, %v20990_v4  ;;  %21165 = vst [vmem:[#allocation154_spill] sm:$0xff] %v17984_v39  ;;  %v5004_v4 = vsel %vm1123_vm1, %v17716_v60, 0  ;;  %v17990_v63 = vpop.permute.xlu0 %9091 }
 0x232   : > { %v14765_v43 = vpack.i.bf16 %v20566_v15, %v20565_v62  ;;  %21166 = vst [vmem:[#allocation155_spill] sm:$0xff] %v17990_v63  ;;  %v20570_v62 = vunpack.c.l.bf16 %v18008_v41  ;;  %v18022_v15 = vld [vmem:[%s15428_s28 + $0x24] sm:$0xf] }
 0x233   : > { %v20572_v60 = vunpack.c.l.bf16 %v18022_v15 }
 0x234   : > { %14766 = vrot.lane.b32.xlu0 %v14765_v43, %s15225_s29  ;;  %12969 = vmatmul.mubr.msk.bf16.vlgmr.msra.gmra.mrb[0].mxu1 %vm1074_vm5, %v20997_v57  ;;  %v18001_v7 = vpop.permute.xlu1 %6663  ;;  %v18004_v43 = vld [vmem:[%s15428_s28 + $0x28] sm:$0xf] }
 0x235   : > { %13001 = vmatpush3.bf16.msra.mxu1 %v5004_v4  ;;  %21167 = vst [vmem:[#allocation156_spill] sm:$0xff] %v18001_v7  ;;  %12972 = vmatprep.mubr.msk.bf16.mxu1 %vm1074_vm5, %v20999_v54  ;;  %v18015_v57 = vpop.permute.xlu0 %6661  ;;  %v21169_v54 = vunpack.c.l.bf16 %v18004_v43 }
 0x236   : > { %21168 = vst [vmem:[#allocation157_spill] sm:$0xff] %v18015_v57  ;;  %14721 = vmatprep.subr.msk.bf16.mxu1 %vm1123_vm1, %v17997_v36 }
 0x238   : > { %12721 = vmatmul.mubr.msk.bf16.gmra.mrb[24].mxu0 %vm1074_vm5, %v20993_v11  ;;  %v18018_v11 = vld [vmem:[%s15428_s28 + $0x20] sm:$0xf]  ;;  %v18035_v63 = vpop.permute.xlu1 %9097 }
 0x239   : > { %12724 = vmatprep.mubr.msk.bf16.mxu0 %vm1074_vm5, %v20998_v26  ;;  %v20571_v4 = vunpack.c.l.bf16 %v18018_v11  ;;  %v14780_v26 = vpack.i.bf16 %v20570_v62, %v21169_v54  ;;  %21170 = vst [vmem:[#allocation158_spill] sm:$0xff] %v18035_v63  ;;  %v18038_v50 = vpop.permute.xlu0 %9095  ;;  %v18050_v62 = vld [vmem:[%s15428_s28 + $0x38] sm:$0xf] }
 0x23a   : > { %21171 = vst [vmem:[#allocation159_spill] sm:$0xff] %v18038_v50 }
 0x23b   : > { %v14775_v39 = vpack.i.bf16 %v20572_v60, %v20571_v4  ;;  %14781 = vrot.lane.b32.xlu1 %v14780_v26, %s15225_s29  ;;  %v20578_v4 = vunpack.c.l.bf16 %v18050_v62  ;;  %v18054_v26 = vld [vmem:[%s15428_s28 + $0x3c] sm:$0xf] }
 0x23c   : > { %12973 = vmatmul.mubr.msk.bf16.gmra.mrb[4].mxu1 %vm1074_vm5, %v21005_v49  ;;  %v18047_v54 = vpop.permute.xlu1 %9323  ;;  %v20579_v60 = vunpack.c.l.bf16 %v18054_v26 }
 0x23d   : > { %14776 = vrot.lane.b32.xlu0 %v14775_v39, %s15225_s29  ;;  %12976 = vmatprep.mubr.msk.bf16.mxu1 %vm1074_vm5, %v21007_v2  ;;  %21172 = vst [vmem:[#allocation160_spill] sm:$0xff] %v18047_v54  ;;  %v18059_v49 = vpop.permute.xlu0 %9321  ;;  %v18062_v39 = vld [vmem:[%s15428_s28 + $0x30] sm:$0xf] }
 0x23e   : > { %21173 = vst [vmem:[#allocation161_spill] sm:$0xff] %v18059_v49  ;;  %v20580_v2 = vunpack.c.l.bf16 %v18062_v39  ;;  %v14790_v63 = vpack.i.bf16 %v20579_v60, %v20578_v4  ;;  %v18090_v4 = vld [vmem:[%s20261_s1 + $0x24] sm:$0x3]  ;;  %v18103_v60 = vld [vmem:[%s15428_s28 + $0x4c] sm:$0xf] }
 0x240   : > { %12725 = vmatmul.mubr.msk.bf16.gmra.mrb[28].mxu0 %vm1074_vm5, %v21131_v55  ;;  %v18066_v55 = vld [vmem:[%s15428_s28 + $0x34] sm:$0xf]  ;;  %v18077_v49 = vpop.permute.xlu1 %9327  ;;  %14791 = vrot.lane.b32.xlu1 %v14790_v63, %s15225_s29 }
 0x241   : > { %12730 = vmatprep.mubr.msk.bf16.mxu0 %vm1074_vm5, %v21006_v10  ;;  %v20581_v54 = vunpack.c.l.bf16 %v18066_v55  ;;  %21174 = vst [vmem:[#allocation162_spill] sm:$0xff] %v18077_v49  ;;  %v18080_v50 = vpop.permute.xlu0 %9325 }
 0x242   : > { %21175 = vst [vmem:[#allocation163_spill] sm:$0xff] %v18080_v50 }
 0x243   : > { %v14785_v10 = vpack.i.bf16 %v20581_v54, %v20580_v2  ;;  %v18115_v54 = vld [vmem:[%s15428_s28 + $0x44] sm:$0xf] }
 0x244   : > { %12977 = vmatmul.mubr.msk.bf16.gmra.mrb[8].mxu1 %vm1074_vm5, %v21013_v0  ;;  %v18096_v63 = vpop.permute.xlu1 %6889  ;;  %v20586_v44 = vunpack.c.l.bf16 %v18115_v54 }
 0x245   : > { %14786 = vrot.lane.b32.xlu0 %v14785_v10, %s15225_s29  ;;  %12980 = vmatprep.mubr.msk.bf16.mxu1 %vm1074_vm5, %v21015_v42  ;;  %21176 = vst [vmem:[#allocation164_spill] sm:$0xff] %v18096_v63  ;;  %v18099_v10 = vld [vmem:[%s15428_s28 + $0x48] sm:$0xf]  ;;  %v18108_v2 = vpop.permute.xlu0 %6887 }
 0x246   : > { %21177 = vst [vmem:[#allocation165_spill] sm:$0xff] %v18108_v2  ;;  %v21178_v0 = vunpack.c.l.bf16 %v18099_v10 }
 0x248   : > { %12731 = vmatmul.mubr.msk.bf16.vlgmr.msra.gmra.mrb[0].mxu0 %vm1074_vm5, %v21009_v5  ;;  %v18111_v5 = vld [vmem:[%s15428_s28 + $0x40] sm:$0xf]  ;;  %v18128_v50 = vpop.permute.xlu1 %9331 }
 0x249   : > { %12734 = vmatprep.mubr.msk.bf16.mxu0 %vm1074_vm5, %v21014_v17  ;;  %13069 = vmatpush3.bf16.msra.mxu0 %v5691_v23  ;;  %v20585_v42 = vunpack.c.l.bf16 %v18111_v5  ;;  %v21179_v17 = vunpack.c.l.bf16 %v18103_v60  ;;  %21180 = vst [vmem:[#allocation166_spill] sm:$0xff] %v18128_v50  ;;  %v18131_v63 = vpop.permute.xlu0 %9329 }
 0x24a   : > { %14723 = vmatprep.subr.msk.bf16.mxu0 %vm1123_vm1, %v18090_v4  ;;  %21181 = vst [vmem:[#allocation167_spill] sm:$0xff] %v18131_v63 }
 0x24b   : > { %v14800_v23 = vpack.i.bf16 %v21179_v17, %v21178_v0  ;;  %v14795_v49 = vpack.i.bf16 %v20586_v44, %v20585_v42  ;;  %v18143_v17 = vld [vmem:[%s15428_s28 + $0x58] sm:$0xf] }
 0x24c   : > { %12981 = vmatmul.mubr.msk.bf16.gmra.mrb[12].mxu1 %vm1074_vm5, %v21021_v51  ;;  %v18140_v0 = vpop.permute.xlu1 %6893  ;;  %v20591_v42 = vunpack.c.l.bf16 %v18143_v17 }
 0x24d   : > { %14801 = vrot.lane.b32.xlu1 %v14800_v23, %s15225_s29  ;;  %14796 = vrot.lane.b32.xlu0 %v14795_v49, %s15225_s29  ;;  %21182 = vst [vmem:[#allocation168_spill] sm:$0xff] %v18140_v0  ;;  %v18147_v23 = vld [vmem:[%s15428_s28 + $0x5c] sm:$0xf]  ;;  %v18152_v51 = vpop.permute.xlu0 %6891  ;;  %v18159_v49 = vld [vmem:[%s15428_s28 + $0x54] sm:$0xf] }
 0x24e   : > { %12984 = vmatprep.mubr.msk.bf16.mxu1 %vm1074_vm5, %v21023_v47  ;;  %v20592_v44 = vunpack.c.l.bf16 %v18147_v23  ;;  %21183 = vst [vmem:[#allocation169_spill] sm:$0xff] %v18152_v51  ;;  %v20594_v50 = vunpack.c.l.bf16 %v18159_v49 }
 0x250   : > { %12735 = vmatmul.mubr.msk.bf16.gmra.mrb[4].mxu0 %vm1074_vm5, %v21017_v28  ;;  %v18155_v28 = vld [vmem:[%s15428_s28 + $0x50] sm:$0xf]  ;;  %v14810_v63 = vpack.i.bf16 %v20592_v44, %v20591_v42  ;;  %v18170_v0 = vpop.permute.xlu1 %9335  ;;  %v21186_v42 = vld [vmem:[#allocation35_spill] sm:$0xff] }
 0x251   : > { %12738 = vmatprep.mubr.msk.bf16.mxu0 %vm1074_vm5, %v21022_v30  ;;  %v20593_v47 = vunpack.c.l.bf16 %v18155_v28  ;;  %21184 = vst [vmem:[#allocation170_spill] sm:$0xff] %v18170_v0  ;;  %v18173_v51 = vpop.permute.xlu0 %9333 }
 0x252   : > { %14811 = vrot.lane.b32.xlu1 %v14810_v63, %s15225_s29  ;;  %21185 = vst [vmem:[#allocation171_spill] sm:$0xff] %v18173_v51  ;;  %v18189_v63 = vld [vmem:[%s15428_s28 + $0x6c] sm:$0xf] }
 0x253   : > { %v14805_v30 = vpack.i.bf16 %v20594_v50, %v20593_v47  ;;  %v18185_v47 = vld [vmem:[%s15428_s28 + $0x68] sm:$0xf]  ;;  %v20602_v0 = vunpack.c.l.bf16 %v18189_v63 }
 0x254   : > { %12985 = vmatmul.mubr.msk.bf16.gmra.mrb[16].mxu1 %vm1074_vm5, %v21029_v13  ;;  %v18182_v44 = vpop.permute.xlu1 %9565  ;;  %v20601_v50 = vunpack.c.l.bf16 %v18185_v47 }
 0x255   : > { %14806 = vrot.lane.b32.xlu0 %v14805_v30, %s15225_s29  ;;  %12988 = vmatprep.mubr.msk.bf16.mxu1 %vm1074_vm5, %v21186_v42  ;;  %21187 = vst [vmem:[#allocation35_spill] sm:$0xff] %v18182_v44  ;;  %v21188_v30 = vld [vmem:[#allocation12_spill] sm:$0xff]  ;;  %v18194_v13 = vpop.permute.xlu0 %9563  ;;  %v18201_v44 = vld [vmem:[%s15428_s28 + $0x64] sm:$0xf] }
 0x256   : > { %21189 = vst [vmem:[#allocation12_spill] sm:$0xff] %v18194_v13  ;;  %v20604_v51 = vunpack.c.l.bf16 %v18201_v44  ;;  %v14820_v2 = vpack.i.bf16 %v20602_v0, %v20601_v50  ;;  %v21194_v50 = vld [vmem:[#allocation80_spill] sm:$0xff] }
 0x258   : > { %12739 = vmatmul.mubr.msk.bf16.gmra.mrb[8].mxu0 %vm1074_vm5, %v21025_v1  ;;  %v18197_v1 = vld [vmem:[%s15428_s28 + $0x60] sm:$0xf]  ;;  %v18212_v13 = vpop.permute.xlu1 %9569  ;;  %14821 = vrot.lane.b32.xlu1 %v14820_v2, %s15225_s29  ;;  %v18231_v2 = vld [vmem:[%s15428_s28 + $0x7c] sm:$0xf] }
 0x259   : > { %12742 = vmatprep.mubr.msk.bf16.mxu0 %vm1074_vm5, %v21188_v30  ;;  %v20603_v42 = vunpack.c.l.bf16 %v18197_v1  ;;  %21190 = vst [vmem:[#allocation172_spill] sm:$0xff] %v18212_v13  ;;  %v18215_v22 = vpop.permute.xlu0 %9567  ;;  %v20610_v13 = vunpack.c.l.bf16 %v18231_v2 }
 0x25a   : > { %21191 = vst [vmem:[#allocation173_spill] sm:$0xff] %v18215_v22  ;;  %v18239_v22 = vld [vmem:[%s15428_s28 + $0x70] sm:$0xf] }
 0x25b   : > { %v14815_v30 = vpack.i.bf16 %v20604_v51, %v20603_v42  ;;  %v18227_v42 = vld [vmem:[%s15428_s28 + $0x78] sm:$0xf] }
 0x25c   : > { %12989 = vmatmul.mubr.msk.bf16.gmra.mrb[20].mxu1 %vm1074_vm5, %v21192_v18  ;;  %v18224_v0 = vpop.permute.xlu1 %7123  ;;  %v20609_v51 = vunpack.c.l.bf16 %v18227_v42 }
 0x25d   : > { %14816 = vrot.lane.b32.xlu0 %v14815_v30, %s15225_s29  ;;  %12992 = vmatprep.mubr.msk.bf16.mxu1 %vm1074_vm5, %v21194_v50  ;;  %21195 = vst [vmem:[#allocation70_spill] sm:$0xff] %v18224_v0  ;;  %v21196_v30 = vld [vmem:[#allocation15_spill] sm:$0xff]  ;;  %v18236_v18 = vpop.permute.xlu0 %7121  ;;  %v18243_v50 = vld [vmem:[%s15428_s28 + $0x74] sm:$0xf] }
 0x25e   : > { %21197 = vst [vmem:[#allocation13_spill] sm:$0xff] %v18236_v18  ;;  %v20612_v0 = vunpack.c.l.bf16 %v18243_v50  ;;  %v14830_v7 = vpack.i.bf16 %v20610_v13, %v20609_v51  ;;  %v21202_v51 = vld [vmem:[#allocation88_spill] sm:$0xff] }
 0x260   : > { %12743 = vmatmul.mubr.msk.bf16.gmra.mrb[12].mxu0 %vm1074_vm5, %v21193_v12  ;;  %v20611_v12 = vunpack.c.l.bf16 %v18239_v22  ;;  %v18254_v57 = vpop.permute.xlu1 %9573  ;;  %14831 = vrot.lane.b32.xlu1 %v14830_v7, %s15225_s29 }
 0x261   : > { %12746 = vmatprep.mubr.msk.bf16.mxu0 %vm1074_vm5, %v21196_v30  ;;  %21198 = vst [vmem:[#allocation80_spill] sm:$0xff] %v18254_v57  ;;  %v18257_v18 = vpop.permute.xlu0 %9571 }
 0x262   : > { %v14825_v30 = vpack.i.bf16 %v20612_v0, %v20611_v12  ;;  %21199 = vst [vmem:[#allocation15_spill] sm:$0xff] %v18257_v18  ;;  %v21204_v12 = vld [vmem:[#allocation17_spill] sm:$0xff]  ;;  %v21212_v18 = vld [vmem:[#allocation20_spill] sm:$0xff] }
 0x264   : > { %14826 = vrot.lane.b32.xlu0 %v14825_v30, %s15225_s29  ;;  %12993 = vmatmul.mubr.msk.bf16.gmra.mrb[24].mxu1 %vm1074_vm5, %v21200_v29  ;;  %v18266_v13 = vpop.permute.xlu1 %7127  ;;  %v21208_v30 = vld [vmem:[#allocation87_spill] sm:$0xff] }
 0x265   : > { %12996 = vmatprep.mubr.msk.bf16.mxu1 %vm1074_vm5, %v21202_v51  ;;  %21203 = vst [vmem:[#allocation81_spill] sm:$0xff] %v18266_v13  ;;  %v18270_v0 = vpop.permute.xlu0 %7125  ;;  %v21209_v29 = vld [vmem:[#allocation19_spill] sm:$0xff] }
 0x266   : > { %21205 = vst [vmem:[#allocation16_spill] sm:$0xff] %v18270_v0 }
 0x268   : > { %12747 = vmatmul.mubr.msk.bf16.gmra.mrb[16].mxu0 %vm1074_vm5, %v21201_v21  ;;  %v18272_v7 = vpop.permute.xlu1 %9577  ;;  %v21210_v21 = vld [vmem:[#allocation27_spill] sm:$0xff] }
 0x269   : > { %12750 = vmatprep.mubr.msk.bf16.mxu0 %vm1074_vm5, %v21204_v12  ;;  %21206 = vst [vmem:[#allocation88_spill] sm:$0xff] %v18272_v7  ;;  %v18274_v57 = vpop.permute.xlu0 %9575  ;;  %v5218_v7 = vsel %vm1123_vm1, %v17997_v36, 0  ;;  %v18307_v36 = vld [vmem:[%s20261_s1 + $0x38] sm:$0x3] }
 0x26a   : > { %21207 = vst [vmem:[#allocation17_spill] sm:$0xff] %v18274_v57 }
 0x26c   : > { %12997 = vmatmul.mubr.msk.bf16.gmra.mrb[28].mxu1 %vm1074_vm5, %v21208_v30  ;;  %v18282_v51 = vpop.permute.xlu1 %9819  ;;  %v21215_v30 = vshrl.u32 %v17624_v38, 16 }
 0x26d   : > { %13002 = vmatprep.mubr.msk.bf16.mxu1 %vm1074_vm5, %v21210_v21  ;;  %21211 = vst [vmem:[#allocation87_spill] sm:$0xff] %v18282_v51  ;;  %v18286_v12 = vpop.permute.xlu0 %9817  ;;  %v21217_v21 = vshrl.u32 %v17649_v6, 16  ;;  %v21218_v51 = vshll.u32 %v17649_v6, 16  ;;  %v21224_v6 = vld [vmem:[#allocation119_spill] sm:$0xff] }
 0x26e   : > { %21213 = vst [vmem:[#allocation19_spill] sm:$0xff] %v18286_v12  ;;  %v2915_v13 = vrot.slane %v21215_v30, 4  ;;  %v21220_v12 = vld [vmem:[#allocation53_spill] sm:$0xff]  ;;  %v21221_v30 = vld [vmem:[#allocation22_spill] sm:$0xff] }
 0x26f   : > { %v2918_v40 = vrot.slane %v21217_v21, 4  ;;  %v2919_v34 = vrot.slane %v21218_v51, 5 }
 0x270   : > { %12751 = vmatmul.mubr.msk.bf16.gmra.mrb[20].mxu0 %vm1074_vm5, %v21209_v29  ;;  %v18290_v57 = vpop.permute.xlu1 %9823  ;;  %v21216_v29 = vshll.u32 %v17624_v38, 16 }
 0x271   : > { %12754 = vmatprep.mubr.msk.bf16.mxu0 %vm1074_vm5, %v21212_v18  ;;  %21214 = vst [vmem:[#allocation27_spill] sm:$0xff] %v18290_v57  ;;  %v18300_v18 = vpop.permute.xlu0 %9821  ;;  %v2920_v21 = vor.u32 %v2919_v34, %v2918_v40  ;;  %v21231_v34 = vld [vmem:[#allocation94_spill] sm:$0xff] }
 0x272   : > { %v2916_v0 = vrot.slane %v21216_v29, 5  ;;  %21219 = vst [vmem:[#allocation20_spill] sm:$0xff] %v18300_v18  ;;  %v21223_v29 = vld [vmem:[#allocation54_spill] sm:$0xff]  ;;  %v21228_v18 = vld [vmem:[#allocation55_spill] sm:$0xff] }
 0x274   : > { %13003 = vmatmul.mubr.msk.bf16.vlgmr.msra.gmra.mrb[0].mxu1 %vm1074_vm5, %v21220_v12  ;;  %v18311_v38 = vpop.permute.xlu1 %7347  ;;  %v2917_v51 = vor.u32 %v2916_v0, %v2915_v13 }
 0x275   : > { %13035 = vmatpush3.bf16.msra.mxu1 %v5218_v7  ;;  %21222 = vst [vmem:[#allocation53_spill] sm:$0xff] %v18311_v38  ;;  %13006 = vmatprep.mubr.msk.bf16.mxu1 %vm1074_vm5, %v21223_v29  ;;  %v18317_v12 = vpop.permute.xlu0 %7345  ;;  %v21229_v29 = vld [vmem:[#allocation56_spill] sm:$0xff] }
 0x276   : > { %21225 = vst [vmem:[#allocation22_spill] sm:$0xff] %v18317_v12  ;;  %14731 = vmatprep.subr.msk.bf16.mxu1 %vm1123_vm1, %v18307_v36  ;;  %v2921_v7 = vsel %vm1500_vm9, %v2917_v51, %v2920_v21  ;;  %v5935_v51 = vsel %vm1123_vm1, %v18090_v4, 0  ;;  %v18348_v21 = vld [vmem:[%s20261_s1 + $0x28] sm:$0x3]  ;;  %v21265_v12 = vunpack.c.l.bf16 %v17919_v27  ;;  %v21270_v27 = vunpack.c.l.bf16 %v17915_v32 }
 0x277   : > { %v21277_v32 = vunpack.c.l.bf16 %v17965_v31  ;;  %v21282_v31 = vunpack.c.l.bf16 %v17961_v3  ;;  %v21287_v3 = vunpack.c.l.bf16 %v18018_v11 }
 0x278   : > { %12755 = vmatmul.mubr.msk.bf16.gmra.mrb[24].mxu0 %vm1074_vm5, %v21221_v30  ;;  %v18321_v57 = vpop.permute.xlu1 %9827 }
 0x279   : > { %12758 = vmatprep.mubr.msk.bf16.mxu0 %vm1074_vm5, %v21224_v6  ;;  %21226 = vst [vmem:[#allocation54_spill] sm:$0xff] %v18321_v57  ;;  %v18324_v30 = vpop.permute.xlu0 %9825  ;;  %v21243_v57 = vld [vmem:[#allocation61_spill] sm:$0xff] }
 0x27a   : > { %21227 = vst [vmem:[#allocation119_spill] sm:$0xff] %v18324_v30 }
 0x27c   : > { %13007 = vmatmul.mubr.msk.bf16.gmra.mrb[4].mxu1 %vm1074_vm5, %v21228_v18  ;;  %v18331_v40 = vpop.permute.xlu1 %7351  ;;  %v21235_v18 = vld [vmem:[#allocation59_spill] sm:$0xff] }
 0x27d   : > { %13010 = vmatprep.mubr.msk.bf16.mxu1 %vm1074_vm5, %v21229_v29  ;;  %21230 = vst [vmem:[#allocation55_spill] sm:$0xff] %v18331_v40  ;;  %v18335_v0 = vpop.permute.xlu0 %7349  ;;  %v21237_v29 = vld [vmem:[#allocation93_spill] sm:$0xff]  ;;  %v21262_v40 = vld [vmem:[#allocation79_spill] sm:$0xff] }
 0x27e   : > { %21232 = vst [vmem:[#allocation56_spill] sm:$0xff] %v18335_v0  ;;  %v21263_v0 = vunpack.c.l.bf16 %v17923_v8  ;;  %v21269_v8 = vld [vmem:[#allocation90_spill] sm:$0xff] }
 0x280   : > { %12759 = vmatmul.mubr.msk.bf16.gmra.mrb[28].mxu0 %vm1074_vm5, %v2921_v7  ;;  %v18337_v13 = vpop.permute.xlu1 %9831  ;;  %v21236_v7 = vld [vmem:[#allocation60_spill] sm:$0xff] }
 0x281   : > { %13070 = vmatprep.mubr.msk.bf16.mxu0 %vm1074_vm5, %v21231_v34  ;;  %21233 = vst [vmem:[#allocation94_spill] sm:$0xff] %v18337_v13  ;;  %v18339_v6 = vpop.permute.xlu0 %9829  ;;  %v21239_v13 = vld [vmem:[#allocation98_spill] sm:$0xff] }
 0x282   : > { %21234 = vst [vmem:[#allocation174_spill] sm:$0xff] %v18339_v6 }
 0x284   : > { %13011 = vmatmul.mubr.msk.bf16.gmra.mrb[8].mxu1 %vm1074_vm5, %v21235_v18  ;;  %v18354_v34 = vpop.permute.xlu1 %10057 }
 0x285   : > { %13014 = vmatprep.mubr.msk.bf16.mxu1 %vm1074_vm5, %v21236_v7  ;;  %21238 = vst [vmem:[#allocation59_spill] sm:$0xff] %v18354_v34  ;;  %v18358_v4 = vpop.permute.xlu0 %10055  ;;  %v21244_v7 = vld [vmem:[#allocation62_spill] sm:$0xff] }
 0x286   : > { %21240 = vst [vmem:[#allocation60_spill] sm:$0xff] %v18358_v4 }
 0x288   : > { %13071 = vmatmul.mubr.msk.bf16.vlgmr.msra.gmra.mrb[32].mxu0 %vm1074_vm5, %v21237_v29  ;;  %v18362_v18 = vpop.permute.xlu1 %10061  ;;  %v21245_v29 = vld [vmem:[#allocation97_spill] sm:$0xff] }
 0x289   : > { %13074 = vmatprep.mubr.msk.bf16.mxu0 %vm1074_vm5, %v21239_v13  ;;  %13103 = vmatpush3.bf16.msra.mxu0 %v5935_v51  ;;  %21241 = vst [vmem:[#allocation93_spill] sm:$0xff] %v18362_v18  ;;  %v18364_v6 = vpop.permute.xlu0 %10059  ;;  %v21247_v51 = vld [vmem:[#allocation102_spill] sm:$0xff] }
 0x28a   : > { %14724 = vmatprep.subr.msk.bf16.mxu0 %vm1123_vm1, %v18348_v21  ;;  %21242 = vst [vmem:[#allocation98_spill] sm:$0xff] %v18364_v6  ;;  %v21251_v6 = vld [vmem:[#allocation4_spill] sm:$0xff] }
 0x28c   : > { %13015 = vmatmul.mubr.msk.bf16.gmra.mrb[12].mxu1 %vm1074_vm5, %v21243_v57  ;;  %v18372_v13 = vpop.permute.xlu1 %7577  ;;  %v18387_v57 = vld [vmem:[%s20262_s2] ss:$0 sm:$0xff] }
 0x28d   : > { %13018 = vmatprep.mubr.msk.bf16.mxu1 %vm1074_vm5, %v21244_v7  ;;  %21246 = vst [vmem:[#allocation61_spill] sm:$0xff] %v18372_v13  ;;  %v18376_v34 = vpop.permute.xlu0 %7575  ;;  %v21252_v7 = vld [vmem:[#allocation63_spill] sm:$0xff]  ;;  %v21255_v13 = vld [vmem:[#allocation106_spill] sm:$0xff]  ;;  %5413 = vrot.lane.b32.xlu0 %v18387_v57, %s15225_s29 }
 0x28e   : > { %21248 = vst [vmem:[#allocation62_spill] sm:$0xff] %v18376_v34  ;;  %v21261_v34 = vld [vmem:[#allocation105_spill] sm:$0xff] }
 0x290   : > { %13075 = vmatmul.mubr.msk.bf16.gmra.mrb[36].mxu0 %vm1074_vm5, %v21245_v29  ;;  %v18378_v4 = vpop.permute.xlu1 %10065  ;;  %v21253_v29 = vld [vmem:[#allocation101_spill] sm:$0xff] }
 0x291   : > { %13078 = vmatprep.mubr.msk.bf16.mxu0 %vm1074_vm5, %v21247_v51  ;;  %21249 = vst [vmem:[#allocation97_spill] sm:$0xff] %v18378_v4  ;;  %v18380_v18 = vpop.permute.xlu0 %10063  ;;  %7791 = vrot.lane.b32.xlu0 %v18387_v57, %s15226_s14 }
 0x292   : > { %21250 = vst [vmem:[#allocation102_spill] sm:$0xff] %v18380_v18 }
 0x294   : > { %13019 = vmatmul.mubr.msk.bf16.gmra.mrb[16].mxu1 %vm1074_vm5, %v21251_v6  ;;  %v18393_v30 = vpop.permute.xlu1 %7581  ;;  %v18404_v6 = vld [vmem:[%s20263_s3] ss:$0 sm:$0xff] }
 0x295   : > { %13022 = vmatprep.mubr.msk.bf16.mxu1 %vm1074_vm5, %v21252_v7  ;;  %21254 = vst [vmem:[#allocation4_spill] sm:$0xff] %v18393_v30  ;;  %v18397_v4 = vpop.permute.xlu0 %7579  ;;  %5448 = vrot.lane.b32.xlu1 %v18404_v6, %s15225_s29  ;;  %v21259_v30 = vld [vmem:[#allocation3_spill] sm:$0xff] }
 0x296   : > { %21256 = vst [vmem:[#allocation63_spill] sm:$0xff] %v18397_v4  ;;  %v21260_v4 = vld [vmem:[#allocation83_spill] sm:$0xff] }
 0x298   : > { %13079 = vmatmul.mubr.msk.bf16.gmra.mrb[40].mxu0 %vm1074_vm5, %v21253_v29  ;;  %v18408_v7 = vpop.permute.xlu1 %10069 }
 0x299   : > { %13082 = vmatprep.mubr.msk.bf16.mxu0 %vm1074_vm5, %v21255_v13  ;;  %21257 = vst [vmem:[#allocation101_spill] sm:$0xff] %v18408_v7  ;;  %v18410_v18 = vpop.permute.xlu0 %10067  ;;  %7826 = vrot.lane.b32.xlu1 %v18404_v6, %s15226_s14 }
 0x29a   : > { %21258 = vst [vmem:[#allocation175_spill] sm:$0xff] %v18410_v18 }
 0x29c   : > { %13023 = vmatmul.mubr.msk.bf16.gmra.mrb[20].mxu1 %vm1074_vm5, %v21259_v30  ;;  %v14762_v7 = vpop.permute.xlu1 %14761  ;;  %v21267_v30 = vld [vmem:[#allocation82_spill] sm:$0xff] }
 0x29d   : > { %13026 = vmatprep.mubr.msk.bf16.mxu1 %vm1074_vm5, %v21260_v4 }
 0x29e   : > { %v14757_v18 = vpop.permute.xlu0 %14756 }
 0x29f   : > { %v18426_v38 = vadd.high.f32.bf16 %v21263_v0, %v14757_v18  ;;  %v18430_v13 = vadd.low.f32.bf16 %v21265_v12, %v14757_v18  ;;  %v18444_v12 = vadd.high.f32.bf16 %v21270_v27, %v14762_v7  ;;  %v21272_v0 = vunpack.c.l.bf16 %v17911_v35  ;;  %v21279_v35 = vld [vmem:[#allocation89_spill] sm:$0xff] }
 0x2a0   : > { %13083 = vmatmul.mubr.msk.bf16.gmra.mrb[44].mxu0 %vm1074_vm5, %v21261_v34 }
 0x2a1   : > { %13086 = vmatprep.mubr.msk.bf16.mxu0 %vm1074_vm5, %v21262_v40  ;;  %21264 = vst [vmem:[#allocation3_spill] sm:$0xff] %v18426_v38  ;;  %21266 = vst [vmem:[#allocation83_spill] sm:$0xff] %v18430_v13  ;;  %7927 = vrot.lane.b32.xlu1 %v18426_v38, %s15226_s14  ;;  %v21268_v40 = vld [vmem:[#allocation109_spill] sm:$0xff]  ;;  %v18448_v18 = vadd.low.f32.bf16 %v21272_v0, %v14762_v7  ;;  %v21274_v38 = vld [vmem:[#allocation78_spill] sm:$0xff] }
 0x2a2   : > { %7925 = vrot.lane.b32.xlu0 %v18430_v13, %s15226_s14  ;;  %21271 = vst [vmem:[#allocation105_spill] sm:$0xff] %v18444_v12  ;;  %v14772_v13 = vpop.permute.xlu1 %14771  ;;  %v21280_v0 = vld [vmem:[#allocation72_spill] sm:$0xff] }
 0x2a3   : > { %21273 = vst [vmem:[#allocation82_spill] sm:$0xff] %v18448_v18 }
 0x2a4   : > { %13027 = vmatmul.mubr.msk.bf16.gmra.mrb[24].mxu1 %vm1074_vm5, %v21267_v30  ;;  %v21275_v30 = vunpack.c.l.bf16 %v17969_v14  ;;  %v21281_v14 = vld [vmem:[#allocation77_spill] sm:$0xff] }
 0x2a5   : > { %13030 = vmatprep.mubr.msk.bf16.mxu1 %vm1074_vm5, %v21269_v8  ;;  %7931 = vrot.lane.b32.xlu1 %v18444_v12, %s15226_s14 }
 0x2a6   : > { %v14767_v4 = vpop.permute.xlu0 %14766  ;;  %7929 = vrot.lane.b32.xlu0 %v18448_v18, %s15226_s14 }
 0x2a7   : > { %v18458_v8 = vadd.high.f32.bf16 %v21275_v30, %v14767_v4  ;;  %v18462_v27 = vadd.low.f32.bf16 %v21277_v32, %v14767_v4  ;;  %v18476_v4 = vadd.high.f32.bf16 %v21282_v31, %v14772_v13  ;;  %v21283_v30 = vunpack.c.l.bf16 %v17957_v9 }
 0x2a8   : > { %13087 = vmatmul.mubr.msk.bf16.gmra.mrb[48].mxu0 %vm1074_vm5, %v21268_v40  ;;  %v8158_v9 = vsel %vm1123_vm1, %v18307_v36, 0  ;;  %v21290_v36 = vunpack.c.l.bf16 %v18008_v41  ;;  %v21294_v41 = vunpack.c.l.bf16 %v18066_v55  ;;  %v21297_v55 = vunpack.c.l.bf16 %v18054_v26 }
 0x2a9   : > { %13090 = vmatprep.mubr.msk.bf16.mxu0 %vm1074_vm5, %v21274_v38  ;;  %21276 = vst [vmem:[#allocation90_spill] sm:$0xff] %v18458_v8  ;;  %21278 = vst [vmem:[#allocation176_spill] sm:$0xff] %v18462_v27  ;;  %7935 = vrot.lane.b32.xlu1 %v18458_v8, %s15226_s14  ;;  %v18480_v32 = vadd.low.f32.bf16 %v21283_v30, %v14772_v13  ;;  %v21284_v8 = vld [vmem:[#allocation30_spill] sm:$0xff]  ;;  %v18501_v13 = vld [vmem:[%s20261_s1 + $0x36] sm:$0x3] }
 0x2aa   : > { %7933 = vrot.lane.b32.xlu0 %v18462_v27, %s15226_s14 }
 0x2ac   : > { %13031 = vmatmul.mubr.msk.bf16.gmra.mrb[28].mxu1 %vm1074_vm5, %v21279_v35  ;;  %v21285_v35 = vunpack.c.l.bf16 %v18022_v15  ;;  %v21288_v15 = vld [vmem:[#allocation73_spill] sm:$0xff] }
 0x2ad   : > { %13036 = vmatprep.mubr.msk.bf16.mxu1 %vm1074_vm5, %v21280_v0  ;;  %v14782_v27 = vpop.permute.xlu1 %14781  ;;  %7939 = vrot.lane.b32.xlu1 %v18476_v4, %s15226_s14 }
 0x2ae   : > { %7937 = vrot.lane.b32.xlu0 %v18480_v32, %s15226_s14  ;;  %v18513_v30 = vadd.high.f32.bf16 %v21290_v36, %v14782_v27  ;;  %v21295_v36 = vunpack.c.l.bf16 %v18062_v39  ;;  %v21298_v39 = vld [vmem:[#allocation33_spill] sm:$0xff] }
 0x2af   : > { %v14777_v7 = vpop.permute.xlu0 %14776 }
 0x2b0   : > { %13091 = vmatmul.mubr.msk.bf16.gmra.mrb[52].mxu0 %vm1074_vm5, %v21281_v14  ;;  %v18490_v0 = vadd.high.f32.bf16 %v21285_v35, %v14777_v7  ;;  %v18494_v31 = vadd.low.f32.bf16 %v21287_v3, %v14777_v7  ;;  %v21289_v7 = vld [vmem:[#allocation74_spill] sm:$0xff]  ;;  %v21291_v35 = vld [vmem:[#allocation40_spill] sm:$0xff]  ;;  %v21292_v3 = vunpack.c.l.bf16 %v18004_v43  ;;  %v21296_v43 = vld [vmem:[#allocation75_spill] sm:$0xff] }
 0x2b1   : > { %13094 = vmatprep.mubr.msk.bf16.mxu0 %vm1074_vm5, %v21284_v8 }
 0x2b2   : > { %21286 = vst [vmem:[#allocation89_spill] sm:$0xff] %v18490_v0  ;;  %7943 = vrot.lane.b32.xlu1 %v18490_v0, %s15226_s14  ;;  %7941 = vrot.lane.b32.xlu0 %v18494_v31, %s15226_s14  ;;  %v18521_v0 = vadd.low.f32.bf16 %v21292_v3, %v14782_v27 }
 0x2b4   : > { %13037 = vmatmul.mubr.msk.bf16.vlgmr.msra.gmra.mrb[0].mxu1 %vm1074_vm5, %v21288_v15  ;;  %v21293_v15 = vld [vmem:[#allocation28_spill] sm:$0xff] }
 0x2b5   : > { %13375 = vmatpush3.bf16.msra.mxu1 %v8158_v9  ;;  %13040 = vmatprep.mubr.msk.bf16.mxu1 %vm1074_vm5, %v21289_v7  ;;  %v14792_v9 = vpop.permute.xlu1 %14791 }
 0x2b6   : > { %14732 = vmatprep.subr.msk.bf16.mxu1 %vm1123_vm1, %v18501_v13  ;;  %7947 = vrot.lane.b32.xlu1 %v18513_v30, %s15226_s14  ;;  %v18547_v3 = vadd.high.f32.bf16 %v21297_v55, %v14792_v9  ;;  %v21302_v55 = vunpack.c.l.bf16 %v18111_v5  ;;  %v21303_v5 = vld [vmem:[#allocation5_spill] sm:$0xff] }
 0x2b7   : > { %v14787_v11 = vpop.permute.xlu0 %14786  ;;  %7945 = vrot.lane.b32.xlu0 %v18521_v0, %s15226_s14 }
 0x2b8   : > { %13095 = vmatmul.mubr.msk.bf16.gmra.mrb[56].mxu0 %vm1074_vm5, %v21291_v35  ;;  %v18531_v7 = vadd.high.f32.bf16 %v21294_v41, %v14787_v11  ;;  %v18535_v35 = vadd.low.f32.bf16 %v21295_v36, %v14787_v11  ;;  %v21299_v11 = vunpack.c.l.bf16 %v18050_v62  ;;  %v21300_v36 = vld [vmem:[#allocation34_spill] sm:$0xff]  ;;  %v6230_v62 = vsel %vm1123_vm1, %v18348_v21, 0  ;;  %v21305_v21 = vld [vmem:[#allocation32_spill] sm:$0xff] }
 0x2b9   : > { %13098 = vmatprep.mubr.msk.bf16.mxu0 %vm1074_vm5, %v21293_v15 }
 0x2ba   : > { %7951 = vrot.lane.b32.xlu1 %v18531_v7, %s15226_s14  ;;  %v18553_v41 = vadd.low.f32.bf16 %v21299_v11, %v14792_v9  ;;  %v21306_v11 = vunpack.c.l.bf16 %v18099_v10 }
 0x2bb   : > { %7949 = vrot.lane.b32.xlu0 %v18535_v35, %s15226_s14 }
 0x2bc   : > { %13041 = vmatmul.mubr.msk.bf16.gmra.mrb[4].mxu1 %vm1074_vm5, %v21296_v43 }
 0x2bd   : > { %13044 = vmatprep.mubr.msk.bf16.mxu1 %vm1074_vm5, %v21139_v58  ;;  %v21301_v58 = vunpack.c.l.bf16 %v18115_v54  ;;  %v18582_v54 = vld [vmem:[%s20261_s1 + $0x2a] sm:$0x3] }
 0x2be   : > { %7955 = vrot.lane.b32.xlu1 %v18547_v3, %s15226_s14 }
 0x2bf   : > { %v14797_v27 = vpop.permute.xlu0 %14796  ;;  %v14802_v43 = vpop.permute.xlu1 %14801  ;;  %7953 = vrot.lane.b32.xlu0 %v18553_v41, %s15226_s14 }
 0x2c0   : > { %13099 = vmatmul.mubr.msk.bf16.gmra.mrb[60].mxu0 %vm1074_vm5, %v21298_v39  ;;  %v18563_v26 = vadd.high.f32.bf16 %v21301_v58, %v14797_v27  ;;  %v18567_v39 = vadd.low.f32.bf16 %v21302_v55, %v14797_v27  ;;  %v21308_v55 = vunpack.c.l.bf16 %v18155_v28  ;;  %v21310_v28 = vunpack.c.l.bf16 %v18147_v23 }
 0x2c1   : > { %13104 = vmatprep.mubr.msk.bf16.mxu0 %vm1074_vm5, %v21300_v36  ;;  %v18594_v36 = vadd.low.f32.bf16 %v21306_v11, %v14802_v43  ;;  %v21314_v23 = vunpack.c.l.bf16 %v18197_v1  ;;  %v21316_v1 = vunpack.c.l.bf16 %v18189_v63  ;;  %v21321_v63 = vunpack.c.l.bf16 %v18239_v22 }
 0x2c2   : > { %7959 = vrot.lane.b32.xlu1 %v18563_v26, %s15226_s14 }
 0x2c3   : > { %7957 = vrot.lane.b32.xlu0 %v18567_v39, %s15226_s14 }
 0x2c4   : > { %13045 = vmatmul.mubr.msk.bf16.gmra.mrb[8].mxu1 %vm1074_vm5, %v16831_v53  ;;  %v21304_v53 = vunpack.c.l.bf16 %v18103_v60  ;;  %v21307_v60 = vunpack.c.l.bf16 %v18159_v49  ;;  %v21309_v49 = vld [vmem:[#allocation7_spill] sm:$0xff] }
 0x2c5   : > { %13048 = vmatprep.mubr.msk.bf16.mxu1 %vm1074_vm5, %v16856_v25  ;;  %v14812_v25 = vpop.permute.xlu1 %14811 }
 0x2c6   : > { %v18588_v27 = vadd.high.f32.bf16 %v21304_v53, %v14802_v43  ;;  %v18622_v43 = vadd.high.f32.bf16 %v21310_v28, %v14812_v25 }
 0x2c7   : > { %v14807_v9 = vpop.permute.xlu0 %14806  ;;  %7961 = vrot.lane.b32.xlu0 %v18594_v36, %s15226_s14 }
 0x2c8   : > { %13105 = vmatmul.mubr.msk.bf16.vlgmr.msra.gmra.mrb[32].mxu0 %vm1074_vm5, %v21303_v5  ;;  %7963 = vrot.lane.b32.xlu1 %v18588_v27, %s15226_s14  ;;  %v18604_v58 = vadd.high.f32.bf16 %v21307_v60, %v14807_v9  ;;  %v21317_v60 = vld [vmem:[#allocation111_spill] sm:$0xff] }
 0x2c9   : > { %13108 = vmatprep.mubr.msk.bf16.mxu0 %vm1074_vm5, %v21305_v21  ;;  %13137 = vmatpush3.bf16.msra.mxu0 %v6230_v62  ;;  %v18608_v62 = vadd.low.f32.bf16 %v21308_v55, %v14807_v9  ;;  %v21311_v9 = vld [vmem:[#allocation36_spill] sm:$0xff] }
 0x2ca   : > { %14725 = vmatprep.subr.msk.bf16.mxu0 %vm1123_vm1, %v18582_v54  ;;  %v14822_v53 = vpop.permute.xlu1 %14821 }
 0x2cb   : > { %7965 = vrot.lane.b32.xlu0 %v18608_v62, %s15226_s14 }
 0x2cc   : > { %13049 = vmatmul.mubr.msk.bf16.gmra.mrb[12].mxu1 %vm1074_vm5, %v16858_v61  ;;  %7967 = vrot.lane.b32.xlu1 %v18604_v58, %s15226_s14  ;;  %v21312_v61 = vunpack.c.l.bf16 %v18143_v17 }
 0x2cd   : > { %13052 = vmatprep.mubr.msk.bf16.mxu1 %vm1074_vm5, %v16865_v19  ;;  %v21313_v19 = vunpack.c.l.bf16 %v18201_v44  ;;  %v21315_v44 = vld [vmem:[#allocation10_spill] sm:$0xff] }
 0x2ce   : > { %v18628_v5 = vadd.low.f32.bf16 %v21312_v61, %v14812_v25  ;;  %v18654_v25 = vadd.high.f32.bf16 %v21316_v1, %v14822_v53  ;;  %v21326_v61 = vld [vmem:[#allocation25_spill] sm:$0xff]  ;;  %v21336_v1 = vld [vmem:[#allocation95_spill] sm:$0xff] }
 0x2cf   : > { %v14817_v10 = vpop.permute.xlu0 %14816 }
 0x2d0   : > { %13109 = vmatmul.mubr.msk.bf16.gmra.mrb[36].mxu0 %vm1074_vm5, %v21309_v49  ;;  %7971 = vrot.lane.b32.xlu1 %v18622_v43, %s15226_s14  ;;  %v18636_v21 = vadd.high.f32.bf16 %v21313_v19, %v14817_v10  ;;  %v18640_v11 = vadd.low.f32.bf16 %v21314_v23, %v14817_v10  ;;  %v21332_v19 = vld [vmem:[#allocation91_spill] sm:$0xff]  ;;  %v21333_v23 = vld [vmem:[#allocation96_spill] sm:$0xff] }
 0x2d1   : > { %13112 = vmatprep.mubr.msk.bf16.mxu0 %vm1074_vm5, %v21311_v9  ;;  %7969 = vrot.lane.b32.xlu0 %v18628_v5, %s15226_s14 }
 0x2d2   : > { %v14832_v10 = vpop.permute.xlu1 %14831 }
 0x2d4   : > { %13053 = vmatmul.mubr.msk.bf16.gmra.mrb[16].mxu1 %vm1074_vm5, %v16867_v24  ;;  %7975 = vrot.lane.b32.xlu1 %v18636_v21, %s15226_s14  ;;  %v21318_v24 = vunpack.c.l.bf16 %v18185_v47  ;;  %v21323_v47 = vld [vmem:[#allocation110_spill] sm:$0xff] }
 0x2d5   : > { %13056 = vmatprep.mubr.msk.bf16.mxu1 %vm1074_vm5, %v16896_v46  ;;  %7973 = vrot.lane.b32.xlu0 %v18640_v11, %s15226_s14  ;;  %v21319_v46 = vunpack.c.l.bf16 %v18243_v50  ;;  %v21324_v50 = vunpack.c.l.bf16 %v18231_v2  ;;  %v21331_v2 = vld [vmem:[#allocation117_spill] sm:$0xff] }
 0x2d6   : > { %v14827_v17 = vpop.permute.xlu0 %14826  ;;  %v18660_v55 = vadd.low.f32.bf16 %v21318_v24, %v14822_v53  ;;  %v21337_v24 = vld [vmem:[#allocation100_spill] sm:$0xff] }
 0x2d7   : > { %v18668_v49 = vadd.high.f32.bf16 %v21319_v46, %v14827_v17  ;;  %v18672_v28 = vadd.low.f32.bf16 %v21321_v63, %v14827_v17  ;;  %v18686_v22 = vadd.high.f32.bf16 %v21324_v50, %v14832_v10  ;;  %v11657_v17 = vld [vmem:[%s20261_s1 + $0x3a] sm:$0x3]  ;;  %v21339_v46 = vld [vmem:[#allocation44_spill] sm:$0xff]  ;;  %v21342_v50 = vld [vmem:[#allocation43_spill] sm:$0xff] }
 0x2d8   : > { %13113 = vmatmul.mubr.msk.bf16.gmra.mrb[40].mxu0 %vm1074_vm5, %v21315_v44  ;;  %7979 = vrot.lane.b32.xlu1 %v18654_v25, %s15226_s14  ;;  %v21341_v63 = vld [vmem:[#allocation104_spill] sm:$0xff] }
 0x2d9   : > { %13116 = vmatprep.mubr.msk.bf16.mxu0 %vm1074_vm5, %v21317_v60  ;;  %7977 = vrot.lane.b32.xlu0 %v18660_v55, %s15226_s14  ;;  %21320 = vst [vmem:[#allocation72_spill] sm:$0xff] %v18668_v49  ;;  %21322 = vst [vmem:[#allocation73_spill] sm:$0xff] %v18672_v28 }
 0x2da   : > { %21325 = vst [vmem:[#allocation74_spill] sm:$0xff] %v18686_v22 }
 0x2dc   : > { %13057 = vmatmul.mubr.msk.bf16.gmra.mrb[20].mxu1 %vm1074_vm5, %v20979_v20  ;;  %7983 = vrot.lane.b32.xlu1 %v18668_v49, %s15226_s14  ;;  %v21327_v20 = vunpack.c.l.bf16 %v18227_v42  ;;  %v21330_v42 = vld [vmem:[#allocation114_spill] sm:$0xff]  ;;  %v21360_v49 = vld [vmem:[#allocation39_spill] sm:$0xff] }
 0x2dd   : > { %13060 = vmatprep.mubr.msk.bf16.mxu1 %vm1074_vm5, %v21157_v37  ;;  %7981 = vrot.lane.b32.xlu0 %v18672_v28, %s15226_s14  ;;  %v21329_v37 = vld [vmem:[#allocation92_spill] sm:$0xff]  ;;  %v21363_v28 = vld [vmem:[#allocation37_spill] sm:$0xff] }
 0x2de   : > { %v18692_v53 = vadd.low.f32.bf16 %v21327_v20, %v14832_v10  ;;  %v21338_v10 = vld [vmem:[#allocation121_spill] sm:$0xff]  ;;  %v21343_v20 = vld [vmem:[#allocation46_spill] sm:$0xff] }
 0x2e0   : > { %13117 = vmatmul.mubr.msk.bf16.gmra.mrb[44].mxu0 %vm1074_vm5, %v21323_v47  ;;  %21328 = vst [vmem:[#allocation75_spill] sm:$0xff] %v18692_v53  ;;  %7987 = vrot.lane.b32.xlu1 %v18686_v22, %s15226_s14 }
 0x2e1   : > { %13120 = vmatprep.mubr.msk.bf16.mxu0 %vm1074_vm5, %v21326_v61  ;;  %7985 = vrot.lane.b32.xlu0 %v18692_v53, %s15226_s14 }
 0x2e4   : > { %13061 = vmatmul.mubr.msk.bf16.gmra.mrb[24].mxu1 %vm1074_vm5, %v21162_v16  ;;  %10326 = vrot.lane.b32.xlu1 %v18404_v6, %s15227_s17  ;;  %v21334_v16 = vld [vmem:[#allocation29_spill] sm:$0xff]  ;;  %v21335_v6 = vld [vmem:[#allocation42_spill] sm:$0xff] }
 0x2e5   : > { %13064 = vmatprep.mubr.msk.bf16.mxu1 %vm1074_vm5, %v21329_v37  ;;  %10291 = vrot.lane.b32.xlu0 %v18387_v57, %s15227_s17  ;;  %v8402_v57 = vsel %vm1123_vm1, %v18501_v13, 0  ;;  %v21340_v13 = vld [vmem:[#allocation99_spill] sm:$0xff] }
 0x2e6   : > { %v21344_v37 = vld [vmem:[#allocation103_spill] sm:$0xff] }
 0x2e8   : > { %13121 = vmatmul.mubr.msk.bf16.gmra.mrb[48].mxu0 %vm1074_vm5, %v21330_v42 }
 0x2e9   : > { %13124 = vmatprep.mubr.msk.bf16.mxu0 %vm1074_vm5, %v21331_v2 }
 0x2ec   : > { %13065 = vmatmul.mubr.msk.bf16.gmra.mrb[28].mxu1 %vm1074_vm5, %v21332_v19  ;;  %v6460_v19 = vsel %vm1123_vm1, %v18582_v54, 0  ;;  %v21349_v54 = vld [vmem:[#allocation8_spill] sm:$0xff] }
 0x2ed   : > { %13376 = vmatprep.mubr.msk.bf16.mxu1 %vm1074_vm5, %v21333_v23  ;;  %v21345_v23 = vld [vmem:[#allocation108_spill] sm:$0xff] }
 0x2f0   : > { %13125 = vmatmul.mubr.msk.bf16.gmra.mrb[52].mxu0 %vm1074_vm5, %v21334_v16 }
 0x2f1   : > { %13128 = vmatprep.mubr.msk.bf16.mxu0 %vm1074_vm5, %v21335_v6 }
 0x2f4   : > { %13377 = vmatmul.mubr.msk.bf16.vlgmr.msra.gmra.mrb[32].mxu1 %vm1074_vm5, %v21336_v1  ;;  %v21346_v1 = vld [vmem:[#allocation45_spill] sm:$0xff] }
 0x2f5   : > { %13409 = vmatpush3.bf16.msra.mxu1 %v8402_v57  ;;  %13380 = vmatprep.mubr.msk.bf16.mxu1 %vm1074_vm5, %v21337_v24  ;;  %v11538_v57 = vld [vmem:[%s20261_s1 + $0x2c] sm:$0x3]  ;;  %v21347_v24 = vld [vmem:[#allocation48_spill] sm:$0xff] }
 0x2f6   : > { %14733 = vmatprep.subr.msk.bf16.mxu1 %vm1123_vm1, %v11657_v17 }
 0x2f8   : > { %13129 = vmatmul.mubr.msk.bf16.gmra.mrb[56].mxu0 %vm1074_vm5, %v21338_v10 }
 0x2f9   : > { %13132 = vmatprep.mubr.msk.bf16.mxu0 %vm1074_vm5, %v21339_v46 }
 0x2fc   : > { %13381 = vmatmul.mubr.msk.bf16.gmra.mrb[36].mxu1 %vm1074_vm5, %v21340_v13  ;;  %v21348_v13 = vld [vmem:[#allocation107_spill] sm:$0xff] }
 0x2fd   : > { %13384 = vmatprep.mubr.msk.bf16.mxu1 %vm1074_vm5, %v21341_v63  ;;  %v21350_v63 = vld [vmem:[#allocation47_spill] sm:$0xff] }
 0x300   : > { %13133 = vmatmul.mubr.msk.bf16.gmra.mrb[60].mxu0 %vm1074_vm5, %v21342_v50 }
 0x301   : > { %13138 = vmatprep.mubr.msk.bf16.mxu0 %vm1074_vm5, %v21343_v20  ;;  %v21351_v20 = vld [vmem:[#allocation50_spill] sm:$0xff] }
 0x304   : > { %13385 = vmatmul.mubr.msk.bf16.gmra.mrb[40].mxu1 %vm1074_vm5, %v21344_v37  ;;  %v21352_v37 = vld [vmem:[#allocation38_spill] sm:$0xff] }
 0x305   : > { %13388 = vmatprep.mubr.msk.bf16.mxu1 %vm1074_vm5, %v21345_v23  ;;  %v21353_v23 = vld [vmem:[#allocation64_spill] sm:$0xff] }
 0x308   : > { %13139 = vmatmul.mubr.msk.bf16.vlgmr.msra.gmra.mrb[32].mxu0 %vm1074_vm5, %v21346_v1  ;;  %v21355_v1 = vld [vmem:[#allocation52_spill] sm:$0xff] }
 0x309   : > { %13142 = vmatprep.mubr.msk.bf16.mxu0 %vm1074_vm5, %v21347_v24  ;;  %13171 = vmatpush3.bf16.msra.mxu0 %v6460_v19  ;;  %v21354_v19 = vld [vmem:[#allocation49_spill] sm:$0xff] }
 0x30a   : > { %14726 = vmatprep.subr.msk.bf16.mxu0 %vm1123_vm1, %v11538_v57 }
 0x30c   : > { %13389 = vmatmul.mubr.msk.bf16.gmra.mrb[44].mxu1 %vm1074_vm5, %v21348_v13 }
 0x30d   : > { %13392 = vmatprep.mubr.msk.bf16.mxu1 %vm1074_vm5, %v21349_v54 }
 0x310   : > { %13143 = vmatmul.mubr.msk.bf16.gmra.mrb[36].mxu0 %vm1074_vm5, %v21350_v63 }
 0x311   : > { %13146 = vmatprep.mubr.msk.bf16.mxu0 %vm1074_vm5, %v21351_v20 }
 0x314   : > { %13393 = vmatmul.mubr.msk.bf16.gmra.mrb[48].mxu1 %vm1074_vm5, %v21352_v37  ;;  %v21361_v37 = vld [vmem:[#allocation65_spill] sm:$0xff] }
 0x315   : > { %13396 = vmatprep.mubr.msk.bf16.mxu1 %vm1074_vm5, %v21353_v23  ;;  %v21362_v23 = vld [vmem:[#allocation51_spill] sm:$0xff] }
 0x318   : > { %13147 = vmatmul.mubr.msk.bf16.gmra.mrb[40].mxu0 %vm1074_vm5, %v21354_v19 }
 0x319   : > { %13150 = vmatprep.mubr.msk.bf16.mxu0 %vm1074_vm5, %v21355_v1 }
 0x31b   : > { %v18770_v24 = vpop.f32.mrb[0].mxu0 }
 0x31c   : > { %21356 = vst [vmem:[#allocation34_spill] sm:$0xff] %v18770_v24  ;;  %v18772_v13 = vpop.f32.mrb[1].mxu0  ;;  %13397 = vmatmul.mubr.msk.bf16.gmra.mrb[52].mxu1 %vm1074_vm5, %v21360_v49  ;;  %v21369_v49 = vld [vmem:[#allocation66_spill] sm:$0xff] }
 0x31d   : > { %21357 = vst [vmem:[#allocation5_spill] sm:$0xff] %v18772_v13  ;;  %v18774_v63 = vpop.f32.mrb[2].mxu0  ;;  %13400 = vmatprep.mubr.msk.bf16.mxu1 %vm1074_vm5, %v21361_v37  ;;  %v21370_v37 = vld [vmem:[#allocation21_spill] sm:$0xff] }
 0x31e   : > { %21358 = vst [vmem:[#allocation32_spill] sm:$0xff] %v18774_v63  ;;  %v18776_v54 = vpop.f32.mrb[3].mxu0 }
 0x31f   : > { %21359 = vst [vmem:[#allocation7_spill] sm:$0xff] %v18776_v54  ;;  %v21368_v54 = vld [vmem:[#allocation41_spill] sm:$0xff] }
 0x320   : > { %13151 = vmatmul.mubr.msk.bf16.gmra.mrb[44].mxu0 %vm1074_vm5, %v21362_v23  ;;  %v21371_v23 = vld [vmem:[#allocation26_spill] sm:$0xff] }
 0x321   : > { %13154 = vmatprep.mubr.msk.bf16.mxu0 %vm1074_vm5, %v21363_v28 }
 0x323   : > { %v18786_v22 = vpop.f32.mrb[4].mxu0 }
 0x324   : > { %21364 = vst [vmem:[#allocation36_spill] sm:$0xff] %v18786_v22  ;;  %v18788_v24 = vpop.f32.mrb[5].mxu0  ;;  %13401 = vmatmul.mubr.msk.bf16.gmra.mrb[56].mxu1 %vm1074_vm5, %v21368_v54  ;;  %v21377_v54 = vld [vmem:[#allocation67_spill] sm:$0xff] }
 0x325   : > { %21365 = vst [vmem:[#allocation10_spill] sm:$0xff] %v18788_v24  ;;  %v18790_v13 = vpop.f32.mrb[6].mxu0  ;;  %13404 = vmatprep.mubr.msk.bf16.mxu1 %vm1074_vm5, %v21369_v49  ;;  %v21378_v49 = vld [vmem:[#allocation71_spill] sm:$0xff] }
 0x326   : > { %21366 = vst [vmem:[#allocation111_spill] sm:$0xff] %v18790_v13  ;;  %v18792_v63 = vpop.f32.mrb[7].mxu0 }
 0x327   : > { %21367 = vst [vmem:[#allocation110_spill] sm:$0xff] %v18792_v63  ;;  %v21376_v63 = vld [vmem:[#allocation31_spill] sm:$0xff] }
 0x328   : > { %13155 = vmatmul.mubr.msk.bf16.gmra.mrb[48].mxu0 %vm1074_vm5, %v21370_v37  ;;  %v21379_v37 = vld [vmem:[#allocation58_spill] sm:$0xff] }
 0x329   : > { %13158 = vmatprep.mubr.msk.bf16.mxu0 %vm1074_vm5, %v21371_v23 }
 0x32b   : > { %v18802_v28 = vpop.f32.mrb[8].mxu0 }
 0x32c   : > { %21372 = vst [vmem:[#allocation92_spill] sm:$0xff] %v18802_v28  ;;  %v18804_v22 = vpop.f32.mrb[9].mxu0  ;;  %13405 = vmatmul.mubr.msk.bf16.gmra.mrb[60].mxu1 %vm1074_vm5, %v21376_v63  ;;  %v21384_v63 = vld [vmem:[#allocation6_spill] sm:$0xff] }
 0x32d   : > { %21373 = vst [vmem:[#allocation91_spill] sm:$0xff] %v18804_v22  ;;  %v18806_v24 = vpop.f32.mrb[10].mxu0  ;;  %13410 = vmatprep.mubr.msk.bf16.mxu1 %vm1074_vm5, %v21377_v54  ;;  %v11674_v54 = vld [vmem:[%s20261_s1 + $0x3c] sm:$0x3] }
 0x32e   : > { %21374 = vst [vmem:[#allocation96_spill] sm:$0xff] %v18806_v24  ;;  %v18808_v13 = vpop.f32.mrb[11].mxu0 }
 0x32f   : > { %21375 = vst [vmem:[#allocation95_spill] sm:$0xff] %v18808_v13  ;;  %v8648_v13 = vsel %vm1123_vm1, %v11657_v17, 0 }
 0x330   : > { %13159 = vmatmul.mubr.msk.bf16.gmra.mrb[52].mxu0 %vm1074_vm5, %v21378_v49  ;;  %v21385_v49 = vld [vmem:[#allocation68_spill] sm:$0xff] }
 0x331   : > { %13162 = vmatprep.mubr.msk.bf16.mxu0 %vm1074_vm5, %v21379_v37 }
 0x333   : > { %v18818_v23 = vpop.f32.mrb[12].mxu0 }
 0x334   : > { %21380 = vst [vmem:[#allocation100_spill] sm:$0xff] %v18818_v23  ;;  %v18820_v28 = vpop.f32.mrb[13].mxu0  ;;  %13411 = vmatmul.mubr.msk.bf16.vlgmr.msra.gmra.mrb[32].mxu1 %vm1074_vm5, %v21384_v63  ;;  %v21386_v23 = vld [vmem:[#allocation57_spill] sm:$0xff] }
 0x335   : > { %21381 = vst [vmem:[#allocation99_spill] sm:$0xff] %v18820_v28  ;;  %v18822_v22 = vpop.f32.mrb[14].mxu0  ;;  %13443 = vmatpush3.bf16.msra.mxu1 %v8648_v13  ;;  %13414 = vmatprep.mubr.msk.bf16.mxu1 %vm1074_vm5, %v21385_v49  ;;  %v21391_v13 = vld [vmem:[#allocation9_spill] sm:$0xff] }
 0x336   : > { %21382 = vst [vmem:[#allocation104_spill] sm:$0xff] %v18822_v22  ;;  %v18825_v24 = vpop.f32.mrb[15].mxu0  ;;  %14734 = vmatprep.subr.msk.bf16.mxu1 %vm1123_vm1, %v11674_v54  ;;  %v21392_v49 = vld [vmem:[#allocation69_spill] sm:$0xff] }
 0x337   : > { %21383 = vst [vmem:[#allocation46_spill] sm:$0xff] %v18825_v24 }
 0x338   : > { %13163 = vmatmul.mubr.msk.bf16.gmra.mrb[56].mxu0 %vm1074_vm5, %v21386_v23 }
 0x339   : > { %13166 = vmatprep.mubr.msk.bf16.mxu0 %vm1074_vm5, %v17802_v33 }
 0x33b   : > { %v18839_v17 = vpop.f32.mrb[16].mxu0 }
 0x33c   : > { %21387 = vst [vmem:[#allocation103_spill] sm:$0xff] %v18839_v17  ;;  %v18841_v24 = vpop.f32.mrb[17].mxu0  ;;  %13415 = vmatmul.mubr.msk.bf16.gmra.mrb[36].mxu1 %vm1074_vm5, %v21391_v13  ;;  %v6678_v13 = vsel %vm1123_vm1, %v11538_v57, 0 }
 0x33d   : > { %21388 = vst [vmem:[#allocation108_spill] sm:$0xff] %v18841_v24  ;;  %v18843_v22 = vpop.f32.mrb[18].mxu0  ;;  %13418 = vmatprep.mubr.msk.bf16.mxu1 %vm1074_vm5, %v21392_v49  ;;  %v21398_v49 = vld [vmem:[#allocation113_spill] sm:$0xff] }
 0x33e   : > { %21389 = vst [vmem:[#allocation45_spill] sm:$0xff] %v18843_v22  ;;  %v18845_v28 = vpop.f32.mrb[19].mxu0 }
 0x33f   : > { %21390 = vst [vmem:[#allocation48_spill] sm:$0xff] %v18845_v28  ;;  %v21397_v28 = vld [vmem:[#allocation11_spill] sm:$0xff] }
 0x340   : > { %13167 = vmatmul.mubr.msk.bf16.gmra.mrb[60].mxu0 %vm1074_vm5, %v17797_v45  ;;  %v21428_v45 = vld [vmem:[#allocation3_spill] sm:$0xff] }
 0x341   : > { %13172 = vmatprep.mubr.msk.bf16.mxu0 %vm1074_vm5, %v21311_v9  ;;  %v11555_v9 = vld [vmem:[%s20261_s1 + $0x2e] sm:$0x3] }
 0x343   : > { %v18855_v63 = vpop.f32.mrb[20].mxu0 }
 0x344   : > { %21393 = vst [vmem:[#allocation107_spill] sm:$0xff] %v18855_v63  ;;  %v18857_v17 = vpop.f32.mrb[21].mxu0  ;;  %13419 = vmatmul.mubr.msk.bf16.gmra.mrb[40].mxu1 %vm1074_vm5, %v21397_v28  ;;  %v18936_v63 = vld [vmem:[%s20261_s1 + $0x3e] sm:$0x3] }
 0x345   : > { %21394 = vst [vmem:[#allocation47_spill] sm:$0xff] %v18857_v17  ;;  %v18859_v24 = vpop.f32.mrb[22].mxu0  ;;  %13422 = vmatprep.mubr.msk.bf16.mxu1 %vm1074_vm5, %v21398_v49  ;;  %v21404_v17 = vld [vmem:[#allocation116_spill] sm:$0xff] }
 0x346   : > { %21395 = vst [vmem:[#allocation50_spill] sm:$0xff] %v18859_v24  ;;  %v18861_v22 = vpop.f32.mrb[23].mxu0  ;;  %v21403_v24 = vld [vmem:[#allocation112_spill] sm:$0xff] }
 0x347   : > { %21396 = vst [vmem:[#allocation49_spill] sm:$0xff] %v18861_v22 }
 0x348   : > { %13173 = vmatmul.mubr.msk.bf16.vlgmr.msra.gmra.mrb[32].mxu0 %vm1074_vm5, %v21315_v44 }
 0x349   : > { %13176 = vmatprep.mubr.msk.bf16.mxu0 %vm1074_vm5, %v21317_v60  ;;  %13205 = vmatpush3.bf16.msra.mxu0 %v6678_v13 }
 0x34a   : > { %14727 = vmatprep.subr.msk.bf16.mxu0 %vm1123_vm1, %v11555_v9 }
 0x34b   : > { %v18875_v22 = vpop.f32.mrb[24].mxu0 }
 0x34c   : > { %21399 = vst [vmem:[#allocation52_spill] sm:$0xff] %v18875_v22  ;;  %v18878_v28 = vpop.f32.mrb[25].mxu0  ;;  %13423 = vmatmul.mubr.msk.bf16.gmra.mrb[44].mxu1 %vm1074_vm5, %v21403_v24  ;;  %v21410_v24 = vld [vmem:[#allocation120_spill] sm:$0xff]  ;;  %v8886_v22 = vsel %vm1123_vm1, %v11674_v54, 0 }
 0x34d   : > { %21400 = vst [vmem:[#allocation67_spill] sm:$0xff] %v18878_v28  ;;  %v18880_v57 = vpop.f32.mrb[26].mxu0  ;;  %13426 = vmatprep.mubr.msk.bf16.mxu1 %vm1074_vm5, %v21404_v17  ;;  %v21419_v54 = vld [vmem:[#allocation128_spill] sm:$0xff] }
 0x34e   : > { %21401 = vst [vmem:[#allocation6_spill] sm:$0xff] %v18880_v57  ;;  %v18882_v49 = vpop.f32.mrb[27].mxu0  ;;  %v21416_v57 = vld [vmem:[#allocation127_spill] sm:$0xff] }
 0x34f   : > { %21402 = vst [vmem:[#allocation68_spill] sm:$0xff] %v18882_v49  ;;  %v21409_v49 = vld [vmem:[#allocation115_spill] sm:$0xff] }
 0x350   : > { %13177 = vmatmul.mubr.msk.bf16.gmra.mrb[36].mxu0 %vm1074_vm5, %v21323_v47  ;;  %v21411_v47 = vld [vmem:[#allocation118_spill] sm:$0xff] }
 0x351   : > { %13180 = vmatprep.mubr.msk.bf16.mxu0 %vm1074_vm5, %v21326_v61 }
 0x353   : > { %v18892_v44 = vpop.f32.mrb[28].mxu0 }
 0x354   : > { %21405 = vst [vmem:[#allocation9_spill] sm:$0xff] %v18892_v44  ;;  %v18894_v60 = vpop.f32.mrb[29].mxu0  ;;  %13427 = vmatmul.mubr.msk.bf16.gmra.mrb[48].mxu1 %vm1074_vm5, %v21409_v49  ;;  %v21415_v44 = vld [vmem:[#allocation124_spill] sm:$0xff] }
 0x355   : > { %21406 = vst [vmem:[#allocation69_spill] sm:$0xff] %v18894_v60  ;;  %v18896_v13 = vpop.f32.mrb[30].mxu0  ;;  %13430 = vmatprep.mubr.msk.bf16.mxu1 %vm1074_vm5, %v21410_v24  ;;  %v21412_v60 = vld [vmem:[#allocation123_spill] sm:$0xff] }
 0x356   : > { %21407 = vst [vmem:[#allocation11_spill] sm:$0xff] %v18896_v13  ;;  %v18898_v28 = vpop.f32.mrb[31].mxu0  ;;  %v21414_v13 = vld [vmem:[#allocation125_spill] sm:$0xff] }
 0x357   : > { %21408 = vst [vmem:[#allocation113_spill] sm:$0xff] %v18898_v28  ;;  %v21413_v28 = vld [vmem:[#allocation122_spill] sm:$0xff] }
 0x358   : > { %13181 = vmatmul.mubr.msk.bf16.gmra.mrb[40].mxu0 %vm1074_vm5, %v21330_v42 }
 0x359   : > { %13184 = vmatprep.mubr.msk.bf16.mxu0 %vm1074_vm5, %v21331_v2 }
 0x35c   : > { %13431 = vmatmul.mubr.msk.bf16.gmra.mrb[52].mxu1 %vm1074_vm5, %v21411_v47 }
 0x35d   : > { %13434 = vmatprep.mubr.msk.bf16.mxu1 %vm1074_vm5, %v21412_v60 }
 0x360   : > { %13185 = vmatmul.mubr.msk.bf16.gmra.mrb[44].mxu0 %vm1074_vm5, %v21334_v16  ;;  %v21424_v16 = vld [vmem:[#allocation132_spill] sm:$0xff] }
 0x361   : > { %13188 = vmatprep.mubr.msk.bf16.mxu0 %vm1074_vm5, %v21335_v6 }
 0x364   : > { %13435 = vmatmul.mubr.msk.bf16.gmra.mrb[56].mxu1 %vm1074_vm5, %v21413_v28 }
 0x365   : > { %13438 = vmatprep.mubr.msk.bf16.mxu1 %vm1074_vm5, %v21414_v13 }
 0x368   : > { %13189 = vmatmul.mubr.msk.bf16.gmra.mrb[48].mxu0 %vm1074_vm5, %v21338_v10  ;;  %v21418_v10 = vld [vmem:[#allocation129_spill] sm:$0xff] }
 0x369   : > { %13192 = vmatprep.mubr.msk.bf16.mxu0 %vm1074_vm5, %v21339_v46  ;;  %v21417_v46 = vld [vmem:[#allocation126_spill] sm:$0xff] }
 0x36c   : > { %13439 = vmatmul.mubr.msk.bf16.gmra.mrb[60].mxu1 %vm1074_vm5, %v21415_v44 }
 0x36d   : > { %13444 = vmatprep.mubr.msk.bf16.mxu1 %vm1074_vm5, %v21416_v57  ;;  %v21420_v57 = vld [vmem:[#allocation131_spill] sm:$0xff] }
 0x370   : > { %13193 = vmatmul.mubr.msk.bf16.gmra.mrb[52].mxu0 %vm1074_vm5, %v21342_v50 }
 0x371   : > { %13196 = vmatprep.mubr.msk.bf16.mxu0 %vm1074_vm5, %v17860_v56 }
 0x374   : > { %13445 = vmatmul.mubr.msk.bf16.vlgmr.msra.gmra.mrb[32].mxu1 %vm1074_vm5, %v21417_v46  ;;  %v21422_v46 = vld [vmem:[#allocation133_spill] sm:$0xff] }
 0x375   : > { %13477 = vmatpush3.bf16.msra.mxu1 %v8886_v22  ;;  %13448 = vmatprep.mubr.msk.bf16.mxu1 %vm1074_vm5, %v21418_v10  ;;  %v21421_v22 = vld [vmem:[#allocation130_spill] sm:$0xff]  ;;  %v6908_v10 = vsel %vm1123_vm1, %v11555_v9, 0 }
 0x376   : > { %14735 = vmatprep.subr.msk.bf16.mxu1 %vm1123_vm1, %v18936_v63 }
 0x378   : > { %13197 = vmatmul.mubr.msk.bf16.gmra.mrb[56].mxu0 %vm1074_vm5, %v17852_v59 }
 0x379   : > { %13200 = vmatprep.mubr.msk.bf16.mxu0 %vm1074_vm5, %v17888_v52  ;;  %v18961_v52 = vpop.permute.xlu0 %5413 }
 0x37c   : > { %13449 = vmatmul.mubr.msk.bf16.gmra.mrb[36].mxu1 %vm1074_vm5, %v21419_v54  ;;  %v18966_v54 = vld [vmem:[%s20261_s1 + $0x30] sm:$0x3] }
 0x37d   : > { %13452 = vmatprep.mubr.msk.bf16.mxu1 %vm1074_vm5, %v21420_v57  ;;  %v21423_v57 = vld [vmem:[#allocation106_spill] sm:$0xff] }
 0x380   : > { %13201 = vmatmul.mubr.msk.bf16.gmra.mrb[60].mxu0 %vm1074_vm5, %v17882_v48 }
 0x381   : > { %13206 = vmatprep.mubr.msk.bf16.mxu0 %vm1074_vm5, %v21247_v51 }
 0x384   : > { %13453 = vmatmul.mubr.msk.bf16.gmra.mrb[40].mxu1 %vm1074_vm5, %v21421_v22  ;;  %v18972_v22 = vpop.permute.xlu1 %5448 }
 0x385   : > { %13456 = vmatprep.mubr.msk.bf16.mxu1 %vm1074_vm5, %v21422_v46 }
 0x387   : > { %v13038_v51 = vpop.f32.mrb[0].mxu1 }
 0x388   : > { %13207 = vmatmul.mubr.msk.bf16.vlgmr.msra.gmra.mrb[32].mxu0 %vm1074_vm5, %v21253_v29  ;;  %v5418_v9 = vmul.f32 %v13038_v51, %v18961_v52  ;;  %v5254_v46 = vpop.f32.mrb[1].mxu1 }
 0x389   : > { %13210 = vmatprep.mubr.msk.bf16.mxu0 %vm1074_vm5, %v21423_v57  ;;  %13239 = vmatpush3.bf16.msra.mxu0 %v6908_v10  ;;  %v5416_v48 = vmul.f32 %v18961_v52, %v5254_v46  ;;  %v13039_v59 = vpop.f32.mrb[2].mxu1  ;;  %v21425_v46 = vld [vmem:[#allocation134_spill] sm:$0xff] }
 0x38a   : > { %14728 = vmatprep.subr.msk.bf16.mxu0 %vm1123_vm1, %v18966_v54  ;;  %v5419_v56 = vmul.f32 %v13039_v59, %v18961_v52  ;;  %v5257_v50 = vpop.f32.mrb[3].mxu1  ;;  %v5453_v29 = vadd.f32 %v18972_v22, %v5418_v9 }
 0x38b   : > { %v5417_v57 = vmul.f32 %v18961_v52, %v5257_v50  ;;  %v5451_v6 = vadd.f32 %v18972_v22, %v5416_v48  ;;  %v21426_v50 = vld [vmem:[#allocation79_spill] sm:$0xff] }
 0x38c   : > { %13457 = vmatmul.mubr.msk.bf16.gmra.mrb[44].mxu1 %vm1074_vm5, %v21424_v16  ;;  %v5454_v10 = vadd.f32 %v18972_v22, %v5419_v56  ;;  %v5485_v51 = vmax.f32 %v5453_v29, 0.0 }
 0x38d   : > { %v5452_v2 = vadd.f32 %v18972_v22, %v5417_v57  ;;  %v5483_v42 = vmax.f32 %v5451_v6, 0.0  ;;  %13460 = vmatprep.mubr.msk.bf16.mxu1 %vm1074_vm5, %v21425_v46  ;;  %v21427_v6 = vld [vmem:[#allocation83_spill] sm:$0xff] }
 0x38e   : > { %v5486_v59 = vmax.f32 %v5454_v10, 0.0  ;;  %v5517_v56 = vadd.f32 %v18448_v18, %v5485_v51 }
 0x38f   : > { %v5484_v9 = vmax.f32 %v5452_v2, 0.0  ;;  %v13042_v48 = vpop.f32.mrb[4].mxu1  ;;  %v5515_v57 = vadd.f32 %v21427_v6, %v5483_v42  ;;  %v21429_v42 = vld [vmem:[#allocation23_spill] sm:$0xff] }
 0x390   : > { %13211 = vmatmul.mubr.msk.bf16.gmra.mrb[36].mxu0 %vm1074_vm5, %v21261_v34  ;;  %v5422_v16 = vmul.f32 %v13042_v48, %v18961_v52  ;;  %v5270_v61 = vpop.f32.mrb[5].mxu1  ;;  %v5518_v29 = vadd.f32 %v18444_v12, %v5486_v59 }
 0x391   : > { %13214 = vmatprep.mubr.msk.bf16.mxu0 %vm1074_vm5, %v21426_v50  ;;  %v5516_v46 = vadd.f32 %v21428_v45, %v5484_v9  ;;  %v5420_v33 = vmul.f32 %v18961_v52, %v5270_v61  ;;  %v13043_v34 = vpop.f32.mrb[6].mxu1 }
 0x392   : > { %v5457_v2 = vadd.f32 %v18972_v22, %v5422_v16  ;;  %v5423_v10 = vmul.f32 %v13043_v34, %v18961_v52  ;;  %v5273_v50 = vpop.f32.mrb[7].mxu1  ;;  %v14835_v23 = vpack.i.bf16 %v5518_v29, %v5517_v56  ;;  %v21430_v16 = vld [vmem:[#allocation135_spill] sm:$0xff]  ;;  %v21431_v34 = vld [vmem:[#allocation176_spill] sm:$0xff] }
 0x393   : > { %v14840_v37 = vpack.i.bf16 %v5516_v46, %v5515_v57  ;;  %v5455_v48 = vadd.f32 %v18972_v22, %v5420_v33  ;;  %v5421_v51 = vmul.f32 %v18961_v52, %v5273_v50 }
 0x394   : > { %v5489_v18 = vmax.f32 %v5457_v2, 0.0  ;;  %v5458_v59 = vadd.f32 %v18972_v22, %v5423_v10  ;;  %13461 = vmatmul.mubr.msk.bf16.gmra.mrb[48].mxu1 %vm1074_vm5, %v21429_v42  ;;  %14836 = vrot.lane.b32.xlu1 %v14835_v23, %s15228_s23  ;;  %v21432_v10 = vld [vmem:[#allocation90_spill] sm:$0xff] }
 0x395   : > { %v5487_v61 = vmax.f32 %v5455_v48, 0.0  ;;  %v5456_v9 = vadd.f32 %v18972_v22, %v5421_v51  ;;  %13464 = vmatprep.mubr.msk.bf16.mxu1 %vm1074_vm5, %v21430_v16  ;;  %14841 = vrot.lane.b32.xlu0 %v14840_v37, %s15228_s23 }
 0x396   : > { %v5490_v33 = vmax.f32 %v5458_v59, 0.0  ;;  %v5521_v56 = vadd.f32 %v18480_v32, %v5489_v18 }
 0x397   : > { %v5488_v46 = vmax.f32 %v5456_v9, 0.0  ;;  %v13046_v50 = vpop.f32.mrb[8].mxu1  ;;  %v5519_v2 = vadd.f32 %v21431_v34, %v5487_v61  ;;  %v21433_v61 = vld [vmem:[#allocation84_spill] sm:$0xff] }
 0x398   : > { %13215 = vmatmul.mubr.msk.bf16.gmra.mrb[40].mxu0 %vm1074_vm5, %v21268_v40  ;;  %v5522_v23 = vadd.f32 %v18476_v4, %v5490_v33  ;;  %v5426_v29 = vmul.f32 %v13046_v50, %v18961_v52  ;;  %v5286_v57 = vpop.f32.mrb[9].mxu1 }
 0x399   : > { %13218 = vmatprep.mubr.msk.bf16.mxu0 %vm1074_vm5, %v21274_v38  ;;  %v5520_v37 = vadd.f32 %v21432_v10, %v5488_v46  ;;  %v5424_v48 = vmul.f32 %v18961_v52, %v5286_v57  ;;  %v13047_v51 = vpop.f32.mrb[10].mxu1 }
 0x39a   : > { %v14845_v59 = vpack.i.bf16 %v5522_v23, %v5521_v56  ;;  %v5461_v9 = vadd.f32 %v18972_v22, %v5426_v29  ;;  %v5427_v45 = vmul.f32 %v13047_v51, %v18961_v52  ;;  %v5289_v6 = vpop.f32.mrb[11].mxu1  ;;  %v21434_v23 = vld [vmem:[#allocation136_spill] sm:$0xff] }
 0x39b   : > { %v14850_v12 = vpack.i.bf16 %v5520_v37, %v5519_v2  ;;  %v5459_v18 = vadd.f32 %v18972_v22, %v5424_v48  ;;  %v5425_v33 = vmul.f32 %v18961_v52, %v5289_v6  ;;  %v19034_v6 = vpop.permute.xlu1 %7826  ;;  %v19038_v2 = vpop.permute.xlu0 %7791 }
 0x39c   : > { %v5493_v50 = vmax.f32 %v5461_v9, 0.0  ;;  %v5462_v38 = vadd.f32 %v18972_v22, %v5427_v45  ;;  %13465 = vmatmul.mubr.msk.bf16.gmra.mrb[52].mxu1 %vm1074_vm5, %v21433_v61  ;;  %14846 = vrot.lane.b32.xlu1 %v14845_v59, %s15228_s23  ;;  %21435 = vst [vmem:[#allocation112_spill] sm:$0xff] %v19034_v6  ;;  %21436 = vst [vmem:[#allocation116_spill] sm:$0xff] %v19038_v2  ;;  %v21437_v59 = vld [vmem:[#allocation89_spill] sm:$0xff] }
 0x39d   : > { %v5491_v46 = vmax.f32 %v5459_v18, 0.0  ;;  %v5460_v56 = vadd.f32 %v18972_v22, %v5425_v33  ;;  %13468 = vmatprep.mubr.msk.bf16.mxu1 %vm1074_vm5, %v21434_v23  ;;  %14851 = vrot.lane.b32.xlu0 %v14850_v12, %s15228_s23 }
 0x39e   : > { %v5494_v29 = vmax.f32 %v5462_v38, 0.0  ;;  %v5525_v37 = vadd.f32 %v18521_v0, %v5493_v50 }
 0x39f   : > { %v5492_v45 = vmax.f32 %v5460_v56, 0.0  ;;  %v13050_v57 = vpop.f32.mrb[12].mxu1  ;;  %v5523_v38 = vadd.f32 %v18494_v31, %v5491_v46  ;;  %v21438_v46 = vld [vmem:[#allocation14_spill] sm:$0xff] }
 0x3a0   : > { %13219 = vmatmul.mubr.msk.bf16.gmra.mrb[44].mxu0 %vm1074_vm5, %v21281_v14  ;;  %v5526_v48 = vadd.f32 %v18513_v30, %v5494_v29  ;;  %v5430_v51 = vmul.f32 %v13050_v57, %v18961_v52  ;;  %v5302_v12 = vpop.f32.mrb[13].mxu1 }
 0x3a1   : > { %13222 = vmatprep.mubr.msk.bf16.mxu0 %vm1074_vm5, %v21284_v8  ;;  %v5524_v9 = vadd.f32 %v21437_v59, %v5492_v45  ;;  %v5428_v18 = vmul.f32 %v18961_v52, %v5302_v12  ;;  %v13051_v33 = vpop.f32.mrb[14].mxu1  ;;  %v19054_v45 = vpop.permute.xlu1 %7927 }
 0x3a2   : > { %v14855_v56 = vpack.i.bf16 %v5526_v48, %v5525_v37  ;;  %v5465_v6 = vadd.f32 %v18972_v22, %v5430_v51  ;;  %v5431_v8 = vmul.f32 %v13051_v33, %v18961_v52  ;;  %v5305_v2 = vpop.f32.mrb[15].mxu1  ;;  %21439 = vst [vmem:[#allocation115_spill] sm:$0xff] %v19054_v45  ;;  %v21440_v51 = vld [vmem:[#allocation137_spill] sm:$0xff]  ;;  %v19060_v12 = vpop.permute.xlu0 %7925 }
 0x3a3   : > { %v14860_v14 = vpack.i.bf16 %v5524_v9, %v5523_v38  ;;  %v5463_v50 = vadd.f32 %v18972_v22, %v5428_v18  ;;  %v5429_v29 = vmul.f32 %v18961_v52, %v5305_v2  ;;  %21441 = vst [vmem:[#allocation120_spill] sm:$0xff] %v19060_v12  ;;  %v21442_v2 = vld [vmem:[#allocation40_spill] sm:$0xff] }
 0x3a4   : > { %v5497_v57 = vmax.f32 %v5465_v6, 0.0  ;;  %v5466_v40 = vadd.f32 %v18972_v22, %v5431_v8  ;;  %13469 = vmatmul.mubr.msk.bf16.gmra.mrb[56].mxu1 %vm1074_vm5, %v21438_v46  ;;  %14856 = vrot.lane.b32.xlu1 %v14855_v56, %s15228_s23 }
 0x3a5   : > { %v5495_v37 = vmax.f32 %v5463_v50, 0.0  ;;  %v5464_v48 = vadd.f32 %v18972_v22, %v5429_v29  ;;  %14861 = vrot.lane.b32.xlu0 %v14860_v14, %s15228_s23  ;;  %13472 = vmatprep.mubr.msk.bf16.mxu1 %vm1074_vm5, %v21440_v51 }
 0x3a6   : > { %v5498_v6 = vmax.f32 %v5466_v40, 0.0  ;;  %v5529_v9 = vadd.f32 %v18553_v41, %v5497_v57  ;;  %v19078_v51 = vpop.permute.xlu0 %7929 }
 0x3a7   : > { %v5496_v8 = vmax.f32 %v5464_v48, 0.0  ;;  %v13054_v38 = vpop.f32.mrb[16].mxu1  ;;  %v5527_v56 = vadd.f32 %v18535_v35, %v5495_v37  ;;  %21444 = vst [vmem:[#allocation123_spill] sm:$0xff] %v19078_v51 }
 0x3a8   : > { %13223 = vmatmul.mubr.msk.bf16.gmra.mrb[48].mxu0 %vm1074_vm5, %v21442_v2  ;;  %v5530_v18 = vadd.f32 %v18547_v3, %v5498_v6  ;;  %v5434_v14 = vmul.f32 %v13054_v38, %v18961_v52  ;;  %v5318_v33 = vpop.f32.mrb[17].mxu1  ;;  %v19074_v2 = vpop.permute.xlu1 %7931 }
 0x3a9   : > { %13226 = vmatprep.mubr.msk.bf16.mxu0 %vm1074_vm5, %v21293_v15  ;;  %v5528_v50 = vadd.f32 %v18531_v7, %v5496_v8  ;;  %v5432_v40 = vmul.f32 %v18961_v52, %v5318_v33  ;;  %v13055_v29 = vpop.f32.mrb[18].mxu1  ;;  %21443 = vst [vmem:[#allocation118_spill] sm:$0xff] %v19074_v2  ;;  %v21445_v33 = vld [vmem:[#allocation24_spill] sm:$0xff] }
 0x3aa   : > { %v14865_v45 = vpack.i.bf16 %v5530_v18, %v5529_v9  ;;  %v5469_v48 = vadd.f32 %v18972_v22, %v5434_v14  ;;  %v5435_v12 = vmul.f32 %v13055_v29, %v18961_v52  ;;  %v5321_v15 = vpop.f32.mrb[19].mxu1 }
 0x3ab   : > { %v14870_v57 = vpack.i.bf16 %v5528_v50, %v5527_v56  ;;  %v5467_v6 = vadd.f32 %v18972_v22, %v5432_v40  ;;  %v5433_v38 = vmul.f32 %v18961_v52, %v5321_v15  ;;  %v21446_v15 = vld [vmem:[#allocation33_spill] sm:$0xff] }
 0x3ac   : > { %v5501_v37 = vmax.f32 %v5469_v48, 0.0  ;;  %v5470_v8 = vadd.f32 %v18972_v22, %v5435_v12  ;;  %13473 = vmatmul.mubr.msk.bf16.gmra.mrb[60].mxu1 %vm1074_vm5, %v21445_v33  ;;  %14866 = vrot.lane.b32.xlu1 %v14865_v45, %s15228_s23  ;;  %v21447_v12 = vld [vmem:[#allocation153_spill] sm:$0xff] }
 0x3ad   : > { %v5499_v9 = vmax.f32 %v5467_v6, 0.0  ;;  %v5468_v18 = vadd.f32 %v18972_v22, %v5433_v38  ;;  %13478 = vmatprep.mubr.msk.bf16.mxu1 %vm1074_vm5, %v21404_v17  ;;  %14871 = vrot.lane.b32.xlu0 %v14870_v57, %s15228_s23  ;;  %v19095_v6 = vpop.permute.xlu1 %7935 }
 0x3ae   : > { %v5502_v14 = vmax.f32 %v5470_v8, 0.0  ;;  %v5533_v40 = vadd.f32 %v18594_v36, %v5501_v37  ;;  %21448 = vst [vmem:[#allocation122_spill] sm:$0xff] %v19095_v6 }
 0x3af   : > { %v5500_v56 = vmax.f32 %v5468_v18, 0.0  ;;  %v13058_v50 = vpop.f32.mrb[20].mxu1  ;;  %v5531_v17 = vadd.f32 %v18567_v39, %v5499_v9  ;;  %v19100_v18 = vpop.permute.xlu0 %7933 }
 0x3b0   : > { %13227 = vmatmul.mubr.msk.bf16.gmra.mrb[52].mxu0 %vm1074_vm5, %v21446_v15  ;;  %v5534_v45 = vadd.f32 %v18588_v27, %v5502_v14  ;;  %v5438_v29 = vmul.f32 %v13058_v50, %v18961_v52  ;;  %v5334_v48 = vpop.f32.mrb[21].mxu1  ;;  %21449 = vst [vmem:[#allocation125_spill] sm:$0xff] %v19100_v18  ;;  %v9124_v50 = vsel %vm1123_vm1, %v18936_v63, 0 }
 0x3b1   : > { %13230 = vmatprep.mubr.msk.bf16.mxu0 %vm1074_vm5, %v21447_v12  ;;  %v5532_v57 = vadd.f32 %v18563_v26, %v5500_v56  ;;  %v5436_v38 = vmul.f32 %v18961_v52, %v5334_v48  ;;  %v13059_v8 = vpop.f32.mrb[22].mxu1 }
 0x3b2   : > { %v14875_v2 = vpack.i.bf16 %v5534_v45, %v5533_v40  ;;  %v5473_v51 = vadd.f32 %v18972_v22, %v5438_v29  ;;  %v5439_v37 = vmul.f32 %v13059_v8, %v18961_v52  ;;  %v5337_v14 = vpop.f32.mrb[23].mxu1  ;;  %v19115_v40 = vld [vmem:[%s20261_s1 + $0x40] sm:$0x3]  ;;  %v21450_v29 = vld [vmem:[#allocation85_spill] sm:$0xff] }
 0x3b3   : > { %v14880_v12 = vpack.i.bf16 %v5532_v57, %v5531_v17  ;;  %v5471_v6 = vadd.f32 %v18972_v22, %v5436_v38  ;;  %v5437_v9 = vmul.f32 %v18961_v52, %v5337_v14  ;;  %v21452_v57 = vld [vmem:[#allocation157_spill] sm:$0xff] }
 0x3b4   : > { %v5505_v56 = vmax.f32 %v5473_v51, 0.0  ;;  %v5474_v48 = vadd.f32 %v18972_v22, %v5439_v37  ;;  %13479 = vmatmul.mubr.msk.bf16.vlgmr.msra.gmra.mrb[32].mxu1 %vm1074_vm5, %v21409_v49  ;;  %14876 = vrot.lane.b32.xlu1 %v14875_v2, %s15228_s23  ;;  %v19123_v49 = vpop.permute.xlu1 %7939 }
 0x3b5   : > { %v5503_v45 = vmax.f32 %v5471_v6, 0.0  ;;  %v5472_v63 = vadd.f32 %v18972_v22, %v5437_v9  ;;  %13511 = vmatpush3.bf16.msra.mxu1 %v9124_v50  ;;  %13482 = vmatprep.mubr.msk.bf16.mxu1 %vm1074_vm5, %v21410_v24  ;;  %21451 = vst [vmem:[#allocation124_spill] sm:$0xff] %v19123_v49  ;;  %v19127_v6 = vpop.permute.xlu0 %7937 }
 0x3b6   : > { %v5506_v51 = vmax.f32 %v5474_v48, 0.0  ;;  %14881 = vrot.lane.b32.xlu0 %v14880_v12, %s15228_s23  ;;  %21453 = vst [vmem:[#allocation127_spill] sm:$0xff] %v19127_v6  ;;  %14736 = vmatprep.subr.msk.bf16.mxu1 %vm1123_vm1, %v19115_v40  ;;  %v5537_v24 = vadd.f32 %v18628_v5, %v5505_v56 }
 0x3b7   : > { %v5504_v2 = vmax.f32 %v5472_v63, 0.0  ;;  %v13062_v17 = vpop.f32.mrb[24].mxu1  ;;  %v5535_v37 = vadd.f32 %v18608_v62, %v5503_v45 }
 0x3b8   : > { %13231 = vmatmul.mubr.msk.bf16.gmra.mrb[56].mxu0 %vm1074_vm5, %v21450_v29  ;;  %v5538_v38 = vadd.f32 %v18622_v43, %v5506_v51  ;;  %v5442_v12 = vmul.f32 %v13062_v17, %v18961_v52  ;;  %v5350_v8 = vpop.f32.mrb[25].mxu1  ;;  %v19145_v45 = vpop.permute.xlu1 %7943 }
 0x3b9   : > { %13234 = vmatprep.mubr.msk.bf16.mxu0 %vm1074_vm5, %v21452_v57  ;;  %v5536_v14 = vadd.f32 %v18604_v58, %v5504_v2  ;;  %v5440_v50 = vmul.f32 %v18961_v52, %v5350_v8  ;;  %v13063_v9 = vpop.f32.mrb[26].mxu1  ;;  %21454 = vst [vmem:[#allocation126_spill] sm:$0xff] %v19145_v45  ;;  %v21507_v45 = vld [vmem:[#allocation25_spill] sm:$0xff] }
 0x3ba   : > { %v14885_v48 = vpack.i.bf16 %v5538_v38, %v5537_v24  ;;  %v5477_v63 = vadd.f32 %v18972_v22, %v5442_v12  ;;  %v5443_v18 = vmul.f32 %v13063_v9, %v18961_v52  ;;  %v5353_v49 = vpop.f32.mrb[27].mxu1  ;;  %v19151_v38 = vpop.permute.xlu0 %7941  ;;  %v21456_v12 = vld [vmem:[#allocation156_spill] sm:$0xff] }
 0x3bb   : > { %v14890_v6 = vpack.i.bf16 %v5536_v14, %v5535_v37  ;;  %v5475_v56 = vadd.f32 %v18972_v22, %v5440_v50  ;;  %v5441_v51 = vmul.f32 %v18961_v52, %v5353_v49  ;;  %21455 = vst [vmem:[#allocation129_spill] sm:$0xff] %v19151_v38 }
 0x3bc   : > { %v5509_v17 = vmax.f32 %v5477_v63, 0.0  ;;  %v5478_v57 = vadd.f32 %v18972_v22, %v5443_v18  ;;  %13483 = vmatmul.mubr.msk.bf16.gmra.mrb[36].mxu1 %vm1074_vm5, %v21411_v47  ;;  %14886 = vrot.lane.b32.xlu1 %v14885_v48, %s15228_s23 }
 0x3bd   : > { %v5507_v2 = vmax.f32 %v5475_v56, 0.0  ;;  %v5476_v24 = vadd.f32 %v18972_v22, %v5441_v51  ;;  %13486 = vmatprep.mubr.msk.bf16.mxu1 %vm1074_vm5, %v21412_v60  ;;  %14891 = vrot.lane.b32.xlu0 %v14890_v6, %s15228_s23  ;;  %v19165_v51 = vpop.permute.xlu1 %7947 }
 0x3be   : > { %v5510_v49 = vmax.f32 %v5478_v57, 0.0  ;;  %v5541_v8 = vadd.f32 %v18660_v55, %v5509_v17  ;;  %21457 = vst [vmem:[#allocation128_spill] sm:$0xff] %v19165_v51  ;;  %v21510_v51 = vld [vmem:[#allocation10_spill] sm:$0xff] }
 0x3bf   : > { %v5508_v18 = vmax.f32 %v5476_v24, 0.0  ;;  %v13066_v47 = vpop.f32.mrb[28].mxu1  ;;  %v5539_v6 = vadd.f32 %v18640_v11, %v5507_v2 }
 0x3c0   : > { %13235 = vmatmul.mubr.msk.bf16.gmra.mrb[60].mxu0 %vm1074_vm5, %v21456_v12  ;;  %v5542_v37 = vadd.f32 %v18654_v25, %v5510_v49  ;;  %v5446_v14 = vmul.f32 %v13066_v47, %v18961_v52  ;;  %v5366_v60 = vpop.f32.mrb[29].mxu1  ;;  %v19169_v47 = vpop.permute.xlu0 %7945 }
 0x3c1   : > { %13240 = vmatprep.mubr.msk.bf16.mxu0 %vm1074_vm5, %v21351_v20  ;;  %v5540_v50 = vadd.f32 %v18636_v21, %v5508_v18  ;;  %v5444_v57 = vmul.f32 %v18961_v52, %v5366_v60  ;;  %v13067_v9 = vpop.f32.mrb[30].mxu1  ;;  %21458 = vst [vmem:[#allocation131_spill] sm:$0xff] %v19169_v47  ;;  %v21511_v47 = vld [vmem:[#allocation111_spill] sm:$0xff] }
 0x3c2   : > { %v14895_v48 = vpack.i.bf16 %v5542_v37, %v5541_v8  ;;  %v5481_v63 = vadd.f32 %v18972_v22, %v5446_v14  ;;  %v5447_v20 = vmul.f32 %v13067_v9, %v18961_v52  ;;  %v5369_v56 = vpop.f32.mrb[31].mxu1  ;;  %v7142_v8 = vsel %vm1123_vm1, %v18966_v54, 0  ;;  %v21462_v9 = vld [vmem:[#allocation72_spill] sm:$0xff] }
 0x3c3   : > { %v14900_v17 = vpack.i.bf16 %v5540_v50, %v5539_v6  ;;  %v5479_v24 = vadd.f32 %v18972_v22, %v5444_v57  ;;  %v5445_v49 = vmul.f32 %v18961_v52, %v5369_v56  ;;  %v19184_v52 = vld [vmem:[%s20261_s1 + $0x32] sm:$0x3]  ;;  %v19192_v6 = vpop.permute.xlu1 %7951  ;;  %v21461_v50 = vld [vmem:[#allocation73_spill] sm:$0xff]  ;;  %v21465_v56 = vld [vmem:[#allocation51_spill] sm:$0xff] }
 0x3c4   : > { %v5513_v2 = vmax.f32 %v5481_v63, 0.0  ;;  %v5482_v18 = vadd.f32 %v18972_v22, %v5447_v20  ;;  %13487 = vmatmul.mubr.msk.bf16.gmra.mrb[40].mxu1 %vm1074_vm5, %v21413_v28  ;;  %14896 = vrot.lane.b32.xlu1 %v14895_v48, %s15228_s23  ;;  %21460 = vst [vmem:[#allocation130_spill] sm:$0xff] %v19192_v6  ;;  %v19198_v63 = vpop.permute.xlu0 %7949  ;;  %v21494_v6 = vld [vmem:[#allocation165_spill] sm:$0xff] }
 0x3c5   : > { %v5511_v37 = vmax.f32 %v5479_v24, 0.0  ;;  %v5480_v14 = vadd.f32 %v18972_v22, %v5445_v49  ;;  %13490 = vmatprep.mubr.msk.bf16.mxu1 %vm1074_vm5, %v21414_v13  ;;  %14901 = vrot.lane.b32.xlu0 %v14900_v17, %s15228_s23  ;;  %v21459_v22 = vld [vmem:[#allocation74_spill] sm:$0xff]  ;;  %21463 = vst [vmem:[#allocation133_spill] sm:$0xff] %v19198_v63  ;;  %v21467_v24 = vld [vmem:[#allocation37_spill] sm:$0xff] }
 0x3c6   : > { %v5514_v60 = vmax.f32 %v5482_v18, 0.0  ;;  %v5545_v54 = vadd.f32 %v18692_v53, %v5513_v2  ;;  %v21469_v2 = vld [vmem:[#allocation138_spill] sm:$0xff]  ;;  %v21471_v18 = vld [vmem:[#allocation141_spill] sm:$0xff]  ;;  %v21487_v53 = vld [vmem:[#allocation76_spill] sm:$0xff] }
 0x3c7   : > { %v5512_v28 = vmax.f32 %v5480_v14, 0.0  ;;  %v5543_v57 = vadd.f32 %v21461_v50, %v5511_v37  ;;  %v19208_v17 = vpop.permute.xlu1 %7955  ;;  %v21473_v37 = vld [vmem:[#allocation21_spill] sm:$0xff]  ;;  %v21474_v14 = vld [vmem:[#allocation26_spill] sm:$0xff] }
 0x3c8   : > { %13241 = vmatmul.mubr.msk.bf16.vlgmr.msra.gmra.mrb[32].mxu0 %vm1074_vm5, %v21354_v19  ;;  %v5546_v13 = vadd.f32 %v21459_v22, %v5514_v60  ;;  %21466 = vst [vmem:[#allocation106_spill] sm:$0xff] %v19208_v17  ;;  %v19212_v49 = vpop.permute.xlu0 %7953  ;;  %v21485_v50 = vld [vmem:[#allocation57_spill] sm:$0xff]  ;;  %v21499_v17 = vld [vmem:[#allocation164_spill] sm:$0xff] }
 0x3c9   : > { %13244 = vmatprep.mubr.msk.bf16.mxu0 %vm1074_vm5, %v21355_v1  ;;  %13273 = vmatpush3.bf16.msra.mxu0 %v7142_v8  ;;  %v5544_v48 = vadd.f32 %v21462_v9, %v5512_v28  ;;  %v21464_v1 = vld [vmem:[#allocation139_spill] sm:$0xff]  ;;  %21468 = vst [vmem:[#allocation132_spill] sm:$0xff] %v19212_v49  ;;  %v21484_v9 = vld [vmem:[#allocation149_spill] sm:$0xff] }
 0x3ca   : > { %14729 = vmatprep.subr.msk.bf16.mxu0 %vm1123_vm1, %v19184_v52  ;;  %v14905_v19 = vpack.i.bf16 %v5546_v13, %v5545_v54  ;;  %v21477_v54 = vld [vmem:[#allocation140_spill] sm:$0xff]  ;;  %v21478_v13 = vld [vmem:[#allocation145_spill] sm:$0xff]  ;;  %v21503_v49 = vld [vmem:[#allocation39_spill] sm:$0xff] }
 0x3cb   : > { %v14910_v20 = vpack.i.bf16 %v5544_v48, %v5543_v57  ;;  %v21479_v57 = vld [vmem:[#allocation71_spill] sm:$0xff]  ;;  %v21480_v48 = vld [vmem:[#allocation58_spill] sm:$0xff] }
 0x3cc   : > { %13491 = vmatmul.mubr.msk.bf16.gmra.mrb[44].mxu1 %vm1074_vm5, %v21415_v44  ;;  %14906 = vrot.lane.b32.xlu1 %v14905_v19, %s15228_s23  ;;  %v19216_v44 = vpop.permute.xlu1 %7959  ;;  %v19220_v8 = vpop.permute.xlu0 %7957 }
 0x3cd   : > { %13494 = vmatprep.mubr.msk.bf16.mxu1 %vm1074_vm5, %v21464_v1  ;;  %14911 = vrot.lane.b32.xlu0 %v14910_v20, %s15228_s23  ;;  %21470 = vst [vmem:[#allocation23_spill] sm:$0xff] %v19216_v44  ;;  %21472 = vst [vmem:[#allocation135_spill] sm:$0xff] %v19220_v8  ;;  %v21489_v8 = vld [vmem:[#allocation148_spill] sm:$0xff] }
 0x3d0   : > { %13245 = vmatmul.mubr.msk.bf16.gmra.mrb[36].mxu0 %vm1074_vm5, %v21465_v56  ;;  %v19226_v60 = vpop.permute.xlu1 %7963  ;;  %v19228_v28 = vpop.permute.xlu0 %7961  ;;  %v21483_v56 = vld [vmem:[#allocation144_spill] sm:$0xff] }
 0x3d1   : > { %13248 = vmatprep.mubr.msk.bf16.mxu0 %vm1074_vm5, %v21467_v24  ;;  %21475 = vst [vmem:[#allocation176_spill] sm:$0xff] %v19226_v60  ;;  %21476 = vst [vmem:[#allocation90_spill] sm:$0xff] %v19228_v28  ;;  %v21493_v28 = vld [vmem:[#allocation18_spill] sm:$0xff] }
 0x3d4   : > { %13495 = vmatmul.mubr.msk.bf16.gmra.mrb[48].mxu1 %vm1074_vm5, %v21469_v2  ;;  %v19238_v19 = vpop.permute.xlu1 %7967  ;;  %v19240_v20 = vpop.permute.xlu0 %7965 }
 0x3d5   : > { %13498 = vmatprep.mubr.msk.bf16.mxu1 %vm1074_vm5, %v21471_v18  ;;  %21481 = vst [vmem:[#allocation84_spill] sm:$0xff] %v19238_v19  ;;  %21482 = vst [vmem:[#allocation136_spill] sm:$0xff] %v19240_v20  ;;  %v21491_v20 = vld [vmem:[#allocation8_spill] sm:$0xff] }
 0x3d8   : > { %13249 = vmatmul.mubr.msk.bf16.gmra.mrb[40].mxu0 %vm1074_vm5, %v21473_v37  ;;  %v19248_v22 = vpop.permute.xlu1 %7971  ;;  %v19252_v44 = vpop.permute.xlu0 %7969 }
 0x3d9   : > { %13252 = vmatprep.mubr.msk.bf16.mxu0 %vm1074_vm5, %v21474_v14  ;;  %21486 = vst [vmem:[#allocation89_spill] sm:$0xff] %v19248_v22  ;;  %21488 = vst [vmem:[#allocation14_spill] sm:$0xff] %v19252_v44  ;;  %v9362_v22 = vsel %vm1123_vm1, %v19115_v40, 0  ;;  %v21500_v40 = vld [vmem:[#allocation169_spill] sm:$0xff] }
 0x3dc   : > { %13499 = vmatmul.mubr.msk.bf16.gmra.mrb[52].mxu1 %vm1074_vm5, %v21477_v54  ;;  %v19256_v19 = vpop.permute.xlu1 %7975  ;;  %v19260_v60 = vpop.permute.xlu0 %7973 }
 0x3dd   : > { %13502 = vmatprep.mubr.msk.bf16.mxu1 %vm1074_vm5, %v21478_v13  ;;  %21490 = vst [vmem:[#allocation24_spill] sm:$0xff] %v19256_v19  ;;  %21492 = vst [vmem:[#allocation33_spill] sm:$0xff] %v19260_v60  ;;  %v19275_v19 = vld [vmem:[%s20261_s1 + $0x42] sm:$0x3]  ;;  %v21498_v60 = vld [vmem:[#allocation64_spill] sm:$0xff] }
 0x3e0   : > { %13253 = vmatmul.mubr.msk.bf16.gmra.mrb[44].mxu0 %vm1074_vm5, %v21479_v57  ;;  %v19268_v44 = vpop.permute.xlu1 %7979  ;;  %v19270_v63 = vpop.permute.xlu0 %7977 }
 0x3e1   : > { %13256 = vmatprep.mubr.msk.bf16.mxu0 %vm1074_vm5, %v21480_v48  ;;  %21495 = vst [vmem:[#allocation85_spill] sm:$0xff] %v19268_v44  ;;  %21496 = vst [vmem:[#allocation156_spill] sm:$0xff] %v19270_v63 }
 0x3e4   : > { %13503 = vmatmul.mubr.msk.bf16.gmra.mrb[56].mxu1 %vm1074_vm5, %v21483_v56  ;;  %v19287_v44 = vpop.permute.xlu1 %7983  ;;  %v19289_v63 = vpop.permute.xlu0 %7981 }
 0x3e5   : > { %13506 = vmatprep.mubr.msk.bf16.mxu1 %vm1074_vm5, %v21484_v9  ;;  %21501 = vst [vmem:[#allocation139_spill] sm:$0xff] %v19287_v44  ;;  %21502 = vst [vmem:[#allocation51_spill] sm:$0xff] %v19289_v63  ;;  %v19306_v44 = vld [vmem:[%s20262_s2] ss:$0 sm:$0xff]  ;;  %v21509_v63 = vld [vmem:[#allocation36_spill] sm:$0xff] }
 0x3e6   : > { %v21528_v9 = vld [vmem:[#allocation42_spill] sm:$0xff] }
 0x3e8   : > { %13257 = vmatmul.mubr.msk.bf16.gmra.mrb[48].mxu0 %vm1074_vm5, %v21485_v50  ;;  %v19301_v38 = vpop.permute.xlu0 %7985 }
 0x3e9   : > { %13260 = vmatprep.mubr.msk.bf16.mxu0 %vm1074_vm5, %v21487_v53  ;;  %21508 = vst [vmem:[#allocation138_spill] sm:$0xff] %v19301_v38  ;;  %v21514_v38 = vld [vmem:[#allocation41_spill] sm:$0xff] }
 0x3ec   : > { %13507 = vmatmul.mubr.msk.bf16.gmra.mrb[60].mxu1 %vm1074_vm5, %v21489_v8  ;;  %v21523_v8 = vld [vmem:[#allocation91_spill] sm:$0xff] }
 0x3ed   : > { %13512 = vmatprep.mubr.msk.bf16.mxu1 %vm1074_vm5, %v21491_v20  ;;  %v21497_v20 = vld [vmem:[#allocation38_spill] sm:$0xff] }
 0x3f0   : > { %13261 = vmatmul.mubr.msk.bf16.gmra.mrb[52].mxu0 %vm1074_vm5, %v21493_v28 }
 0x3f1   : > { %13264 = vmatprep.mubr.msk.bf16.mxu0 %vm1074_vm5, %v21494_v6  ;;  %v19322_v6 = vpop.permute.xlu0 %10291 }
 0x3f2   : > { %21515 = vst [vmem:[#allocation140_spill] sm:$0xff] %v19322_v6  ;;  %v21517_v6 = vld [vmem:[#allocation114_spill] sm:$0xff] }
 0x3f4   : > { %13513 = vmatmul.mubr.msk.bf16.vlgmr.msra.gmra.mrb[32].mxu1 %vm1074_vm5, %v21497_v20  ;;  %v19297_v20 = vpop.permute.xlu1 %7987 }
 0x3f5   : > { %13545 = vmatpush3.bf16.msra.mxu1 %v9362_v22  ;;  %13516 = vmatprep.mubr.msk.bf16.mxu1 %vm1074_vm5, %v21498_v60  ;;  %v21504_v22 = vld [vmem:[#allocation65_spill] sm:$0xff]  ;;  %v21505_v60 = vld [vmem:[#allocation168_spill] sm:$0xff]  ;;  %21506 = vst [vmem:[#allocation37_spill] sm:$0xff] %v19297_v20  ;;  %v21512_v20 = vld [vmem:[#allocation110_spill] sm:$0xff] }
 0x3f6   : > { %14737 = vmatprep.subr.msk.bf16.mxu1 %vm1123_vm1, %v19275_v19 }
 0x3f8   : > { %13265 = vmatmul.mubr.msk.bf16.gmra.mrb[56].mxu0 %vm1074_vm5, %v21499_v17  ;;  %v7366_v17 = vsel %vm1123_vm1, %v19184_v52, 0 }
 0x3f9   : > { %13268 = vmatprep.mubr.msk.bf16.mxu0 %vm1074_vm5, %v21500_v40  ;;  %v3134_v40 = vmul.f32 %v19306_v44, %v21512_v20 }
 0x3fc   : > { %13517 = vmatmul.mubr.msk.bf16.gmra.mrb[36].mxu1 %vm1074_vm5, %v21503_v49  ;;  %v3135_v49 = vmul.f32 %v19306_v44, %v21509_v63  ;;  %v21516_v63 = vld [vmem:[#allocation66_spill] sm:$0xff] }
 0x3fd   : > { %13520 = vmatprep.mubr.msk.bf16.mxu1 %vm1074_vm5, %v21504_v22  ;;  %v3133_v22 = vmul.f32 %v19306_v44, %v21510_v51  ;;  %v19329_v51 = vld [vmem:[%s20261_s1 + $0x34] sm:$0x3] }
 0x400   : > { %13269 = vmatmul.mubr.msk.bf16.gmra.mrb[60].mxu0 %vm1074_vm5, %v21505_v60  ;;  %v3136_v60 = vmul.f32 %v19306_v44, %v21511_v47  ;;  %v19334_v47 = vld [vmem:[%s20263_s3] ss:$0 sm:$0xff] }
 0x401   : > { %13274 = vmatprep.mubr.msk.bf16.mxu0 %vm1074_vm5, %v21507_v45  ;;  %v19316_v45 = vpop.permute.xlu1 %10326  ;;  %v3171_v20 = vadd.f32 %v19334_v47, %v3133_v22  ;;  %v21520_v22 = vld [vmem:[#allocation92_spill] sm:$0xff] }
 0x402   : > { %21513 = vst [vmem:[#allocation141_spill] sm:$0xff] %v19316_v45  ;;  %v3174_v52 = vadd.f32 %v19334_v47, %v3136_v60  ;;  %v3172_v45 = vadd.f32 %v19334_v47, %v3134_v40  ;;  %v3139_v60 = vmul.f32 %v19306_v44, %v21520_v22  ;;  %v21521_v40 = vld [vmem:[#allocation96_spill] sm:$0xff] }
 0x403   : > { %v3203_v53 = vmax.f32 %v3171_v20, 0.0  ;;  %v3140_v57 = vmul.f32 %v19306_v44, %v21521_v40 }
 0x404   : > { %13521 = vmatmul.mubr.msk.bf16.gmra.mrb[40].mxu1 %vm1074_vm5, %v21514_v38  ;;  %v3173_v38 = vadd.f32 %v19334_v47, %v3135_v49  ;;  %v3206_v50 = vmax.f32 %v3174_v52, 0.0  ;;  %v3204_v49 = vmax.f32 %v3172_v45, 0.0  ;;  %v21526_v45 = vld [vmem:[#allocation150_spill] sm:$0xff] }
 0x405   : > { %13524 = vmatprep.mubr.msk.bf16.mxu1 %vm1074_vm5, %v21516_v63  ;;  %v21518_v63 = vld [vmem:[#allocation117_spill] sm:$0xff]  ;;  %v3235_v22 = vadd.f32 %v21431_v34, %v3203_v53 }
 0x406   : > { %v3205_v28 = vmax.f32 %v3173_v38, 0.0  ;;  %v19346_v48 = vpop.permute.xlu1 %14836  ;;  %v21525_v38 = vld [vmem:[#allocation31_spill] sm:$0xff]  ;;  %v3238_v52 = vadd.f32 %v18476_v4, %v3206_v50  ;;  %v3236_v40 = vadd.f32 %v21432_v10, %v3204_v49  ;;  %v21529_v50 = vld [vmem:[#allocation100_spill] sm:$0xff] }
 0x407   : > { %21519 = vst [vmem:[#allocation145_spill] sm:$0xff] %v19346_v48  ;;  %v3178_v48 = vadd.f32 %v19334_v47, %v3140_v57  ;;  %v21530_v49 = vld [vmem:[#allocation99_spill] sm:$0xff] }
 0x408   : > { %13275 = vmatmul.mubr.msk.bf16.vlgmr.msra.gmra.mrb[32].mxu0 %vm1074_vm5, %v21517_v6  ;;  %v19352_v6 = vpop.permute.xlu0 %14841  ;;  %v3237_v20 = vadd.f32 %v18480_v32, %v3205_v28  ;;  %v3143_v28 = vmul.f32 %v19306_v44, %v21529_v50 }
 0x409   : > { %13278 = vmatprep.mubr.msk.bf16.mxu0 %vm1074_vm5, %v21518_v63  ;;  %13307 = vmatpush3.bf16.msra.mxu0 %v7366_v17  ;;  %21522 = vst [vmem:[#allocation8_spill] sm:$0xff] %v19352_v6  ;;  %v3137_v17 = vmul.f32 %v19306_v44, %v21523_v8  ;;  %v21524_v63 = vld [vmem:[#allocation95_spill] sm:$0xff]  ;;  %v21527_v6 = vld [vmem:[#allocation29_spill] sm:$0xff] }
 0x40a   : > { %14730 = vmatprep.subr.msk.bf16.mxu0 %vm1123_vm1, %v19329_v51  ;;  %v3138_v14 = vmul.f32 %v19306_v44, %v21524_v63  ;;  %v3177_v63 = vadd.f32 %v19334_v47, %v3139_v60  ;;  %v3141_v60 = vmul.f32 %v19306_v44, %v21530_v49  ;;  %v3210_v49 = vmax.f32 %v3178_v48, 0.0 }
 0x40b   : > { %v3175_v4 = vadd.f32 %v19334_v47, %v3137_v17  ;;  %v21533_v17 = vld [vmem:[#allocation46_spill] sm:$0xff] }
 0x40c   : > { %13525 = vmatmul.mubr.msk.bf16.gmra.mrb[44].mxu1 %vm1074_vm5, %v21525_v38  ;;  %v3176_v53 = vadd.f32 %v19334_v47, %v3138_v14  ;;  %v3142_v14 = vmul.f32 %v19306_v44, %v21533_v17 }
 0x40d   : > { %13528 = vmatprep.mubr.msk.bf16.mxu1 %vm1074_vm5, %v21526_v45  ;;  %v3209_v45 = vmax.f32 %v3177_v63, 0.0  ;;  %v3207_v56 = vmax.f32 %v3175_v4, 0.0  ;;  %v3242_v4 = vadd.f32 %v18513_v30, %v3210_v49 }
 0x40e   : > { %v14847_v8 = vpop.permute.xlu1 %14846 }
 0x40f   : > { %v14849_v38 = vunpack.i.h.bf16 %v14847_v8  ;;  %v14848_v37 = vunpack.i.l.bf16 %v14847_v8  ;;  %v14852_v32 = vpop.permute.xlu0 %14851  ;;  %v3241_v63 = vadd.f32 %v18521_v0, %v3209_v45  ;;  %v3239_v17 = vadd.f32 %v18494_v31, %v3207_v56  ;;  %v21541_v31 = vld [vmem:[#allocation103_spill] sm:$0xff]  ;;  %v21542_v56 = vld [vmem:[#allocation45_spill] sm:$0xff] }
 0x410   : > { %13279 = vmatmul.mubr.msk.bf16.gmra.mrb[36].mxu0 %vm1074_vm5, %v21527_v6  ;;  %v14854_v34 = vunpack.i.h.bf16 %v14852_v32  ;;  %v14853_v10 = vunpack.i.l.bf16 %v14852_v32 }
 0x411   : > { %13282 = vmatprep.mubr.msk.bf16.mxu0 %vm1074_vm5, %v21528_v9  ;;  %v19379_v57 = vsel %vm1074_vm5, %v3237_v20, %v14848_v37  ;;  %v19382_v6 = vsel %vm1074_vm5, %v3238_v52, %v14849_v38  ;;  %v21532_v9 = vld [vmem:[#allocation104_spill] sm:$0xff]  ;;  %v3208_v37 = vmax.f32 %v3176_v53, 0.0  ;;  %v21536_v20 = vld [vmem:[#allocation86_spill] sm:$0xff]  ;;  %v3181_v52 = vadd.f32 %v19334_v47, %v3143_v28 }
 0x412   : > { %21531 = vst [vmem:[#allocation38_spill] sm:$0xff] %v19379_v57  ;;  %v3144_v8 = vmul.f32 %v19306_v44, %v21532_v9  ;;  %v19389_v32 = vsel %vm1074_vm5, %v3235_v22, %v14853_v10  ;;  %v19392_v50 = vsel %vm1074_vm5, %v3236_v40, %v14854_v34  ;;  %v3179_v38 = vadd.f32 %v19334_v47, %v3141_v60  ;;  %v21537_v9 = vld [vmem:[#allocation152_spill] sm:$0xff]  ;;  %v21538_v40 = vld [vmem:[#allocation121_spill] sm:$0xff] }
 0x413   : > { %21534 = vst [vmem:[#allocation64_spill] sm:$0xff] %v19389_v32  ;;  %21535 = vst [vmem:[#allocation39_spill] sm:$0xff] %v19392_v50  ;;  %v3180_v10 = vadd.f32 %v19334_v47, %v3142_v14  ;;  %v21539_v28 = vld [vmem:[#allocation44_spill] sm:$0xff]  ;;  %v3213_v50 = vmax.f32 %v3181_v52, 0.0 }
 0x414   : > { %13529 = vmatmul.mubr.msk.bf16.gmra.mrb[48].mxu1 %vm1074_vm5, %v21536_v20  ;;  %v3182_v22 = vadd.f32 %v19334_v47, %v3144_v8  ;;  %v3240_v8 = vadd.f32 %v21437_v59, %v3208_v37  ;;  %v3211_v57 = vmax.f32 %v3179_v38, 0.0  ;;  %v3147_v59 = vmul.f32 %v19306_v44, %v21541_v31  ;;  %v21543_v52 = vld [vmem:[#allocation108_spill] sm:$0xff] }
 0x415   : > { %13532 = vmatprep.mubr.msk.bf16.mxu1 %vm1074_vm5, %v21537_v9  ;;  %v3212_v45 = vmax.f32 %v3180_v10, 0.0  ;;  %v3148_v37 = vmul.f32 %v19306_v44, %v21542_v56  ;;  %v3145_v38 = vmul.f32 %v19306_v44, %v21543_v52  ;;  %v21546_v10 = vld [vmem:[#allocation155_spill] sm:$0xff] }
 0x416   : > { %v14857_v48 = vpop.permute.xlu1 %14856  ;;  %v3214_v30 = vmax.f32 %v3182_v22, 0.0  ;;  %v21545_v22 = vld [vmem:[#allocation151_spill] sm:$0xff] }
 0x417   : > { %v14859_v53 = vunpack.i.h.bf16 %v14857_v48  ;;  %v14858_v34 = vunpack.i.l.bf16 %v14857_v48  ;;  %v14862_v60 = vpop.permute.xlu0 %14861  ;;  %v21548_v52 = vld [vmem:[#allocation143_spill] sm:$0xff] }
 0x418   : > { %13283 = vmatmul.mubr.msk.bf16.gmra.mrb[40].mxu0 %vm1074_vm5, %v21538_v40  ;;  %v14864_v32 = vunpack.i.h.bf16 %v14862_v60  ;;  %v14863_v14 = vunpack.i.l.bf16 %v14862_v60  ;;  %v21547_v60 = vld [vmem:[#allocation43_spill] sm:$0xff] }
 0x419   : > { %13286 = vmatprep.mubr.msk.bf16.mxu0 %vm1074_vm5, %v21539_v28  ;;  %v19411_v40 = vsel %vm1074_vm5, %v3241_v63, %v14858_v34  ;;  %v19414_v0 = vsel %vm1074_vm5, %v3242_v4, %v14859_v53  ;;  %v21544_v63 = vld [vmem:[#allocation48_spill] sm:$0xff]  ;;  %v3246_v53 = vadd.f32 %v18547_v3, %v3214_v30  ;;  %v3243_v34 = vadd.f32 %v18535_v35, %v3211_v57 }
 0x41a   : > { %v19417_v49 = vsel %vm1074_vm5, %v3239_v17, %v14863_v14  ;;  %v19420_v48 = vsel %vm1074_vm5, %v3240_v8, %v14864_v32  ;;  %v3146_v4 = vmul.f32 %v19306_v44, %v21544_v63  ;;  %v3245_v32 = vadd.f32 %v18553_v41, %v3213_v50  ;;  %v21549_v50 = vld [vmem:[#allocation107_spill] sm:$0xff] }
 0x41b   : > { %21540 = vst [vmem:[#allocation65_spill] sm:$0xff] %v19417_v49  ;;  %v3244_v28 = vadd.f32 %v18531_v7, %v3212_v45  ;;  %v3185_v8 = vadd.f32 %v19334_v47, %v3147_v59  ;;  %v3186_v14 = vadd.f32 %v19334_v47, %v3148_v37  ;;  %v3183_v3 = vadd.f32 %v19334_v47, %v3145_v38  ;;  %v21550_v45 = vld [vmem:[#allocation47_spill] sm:$0xff]  ;;  %v21553_v38 = vld [vmem:[#allocation49_spill] sm:$0xff] }
 0x41c   : > { %13533 = vmatmul.mubr.msk.bf16.gmra.mrb[52].mxu1 %vm1074_vm5, %v21545_v22  ;;  %v3184_v35 = vadd.f32 %v19334_v47, %v3146_v4  ;;  %v3151_v30 = vmul.f32 %v19306_v44, %v21549_v50  ;;  %v3149_v59 = vmul.f32 %v19306_v44, %v21550_v45  ;;  %v3150_v4 = vmul.f32 %v19306_v44, %v21553_v38  ;;  %v21559_v38 = vld [vmem:[#allocation147_spill] sm:$0xff] }
 0x41d   : > { %13536 = vmatprep.mubr.msk.bf16.mxu1 %vm1074_vm5, %v21546_v10  ;;  %v3217_v50 = vmax.f32 %v3185_v8, 0.0  ;;  %v3218_v45 = vmax.f32 %v3186_v14, 0.0  ;;  %v3215_v49 = vmax.f32 %v3183_v3, 0.0 }
 0x41e   : > { %v14867_v17 = vpop.permute.xlu1 %14866 }
 0x41f   : > { %v14869_v31 = vunpack.i.h.bf16 %v14867_v17  ;;  %v14868_v56 = vunpack.i.l.bf16 %v14867_v17  ;;  %v14872_v41 = vpop.permute.xlu0 %14871  ;;  %v3249_v14 = vadd.f32 %v18594_v36, %v3217_v50  ;;  %v3250_v3 = vadd.f32 %v18588_v27, %v3218_v45 }
 0x420   : > { %13287 = vmatmul.mubr.msk.bf16.gmra.mrb[44].mxu0 %vm1074_vm5, %v21547_v60  ;;  %v14874_v57 = vunpack.i.h.bf16 %v14872_v41  ;;  %v14873_v7 = vunpack.i.l.bf16 %v14872_v41  ;;  %v21552_v60 = vld [vmem:[#allocation50_spill] sm:$0xff] }
 0x421   : > { %13290 = vmatprep.mubr.msk.bf16.mxu0 %vm1074_vm5, %v21548_v52  ;;  %v19451_v37 = vsel %vm1074_vm5, %v3245_v32, %v14868_v56  ;;  %v19454_v63 = vsel %vm1074_vm5, %v3246_v53, %v14869_v31  ;;  %v3152_v17 = vmul.f32 %v19306_v44, %v21552_v60  ;;  %v3216_v32 = vmax.f32 %v3184_v35, 0.0  ;;  %v21556_v56 = vld [vmem:[#allocation154_spill] sm:$0xff]  ;;  %v21557_v53 = vld [vmem:[#allocation159_spill] sm:$0xff] }
 0x422   : > { %21551 = vst [vmem:[#allocation25_spill] sm:$0xff] %v19451_v37  ;;  %v19461_v52 = vsel %vm1074_vm5, %v3243_v34, %v14873_v7  ;;  %v19464_v41 = vsel %vm1074_vm5, %v3244_v28, %v14874_v57  ;;  %v3189_v31 = vadd.f32 %v19334_v47, %v3151_v30  ;;  %v3187_v60 = vadd.f32 %v19334_v47, %v3149_v59  ;;  %v21558_v28 = vld [vmem:[#allocation142_spill] sm:$0xff] }
 0x423   : > { %21554 = vst [vmem:[#allocation36_spill] sm:$0xff] %v19461_v52  ;;  %21555 = vst [vmem:[#allocation10_spill] sm:$0xff] %v19464_v41  ;;  %v3190_v34 = vadd.f32 %v19334_v47, %v3152_v17  ;;  %v3188_v7 = vadd.f32 %v19334_v47, %v3150_v4  ;;  %v3247_v30 = vadd.f32 %v18567_v39, %v3215_v49  ;;  %v21560_v41 = vld [vmem:[#allocation52_spill] sm:$0xff]  ;;  %v21561_v37 = vld [vmem:[#allocation6_spill] sm:$0xff] }
 0x424   : > { %13537 = vmatmul.mubr.msk.bf16.gmra.mrb[56].mxu1 %vm1074_vm5, %v21556_v56  ;;  %v3248_v59 = vadd.f32 %v18563_v26, %v3216_v32  ;;  %v3221_v50 = vmax.f32 %v3189_v31, 0.0  ;;  %v3219_v27 = vmax.f32 %v3187_v60, 0.0  ;;  %v3156_v39 = vmul.f32 %v19306_v44, %v21561_v37  ;;  %v21562_v32 = vld [vmem:[#allocation67_spill] sm:$0xff]  ;;  %v21564_v60 = vld [vmem:[#allocation158_spill] sm:$0xff] }
 0x425   : > { %13540 = vmatprep.mubr.msk.bf16.mxu1 %vm1074_vm5, %v21557_v53  ;;  %v3222_v45 = vmax.f32 %v3190_v34, 0.0  ;;  %v21565_v34 = vld [vmem:[#allocation134_spill] sm:$0xff] }
 0x426   : > { %v14877_v8 = vpop.permute.xlu1 %14876  ;;  %v3253_v37 = vadd.f32 %v18628_v5, %v3221_v50 }
 0x427   : > { %v14879_v35 = vunpack.i.h.bf16 %v14877_v8  ;;  %v14878_v57 = vunpack.i.l.bf16 %v14877_v8  ;;  %v3220_v8 = vmax.f32 %v3188_v7, 0.0  ;;  %v3251_v7 = vadd.f32 %v18608_v62, %v3219_v27 }
 0x428   : > { %13291 = vmatmul.mubr.msk.bf16.gmra.mrb[48].mxu0 %vm1074_vm5, %v21558_v28  ;;  %v14882_v17 = vpop.permute.xlu0 %14881 }
 0x429   : > { %13294 = vmatprep.mubr.msk.bf16.mxu0 %vm1074_vm5, %v21559_v38  ;;  %v19483_v4 = vsel %vm1074_vm5, %v3249_v14, %v14878_v57  ;;  %v19486_v28 = vsel %vm1074_vm5, %v3250_v3, %v14879_v35  ;;  %v14884_v52 = vunpack.i.h.bf16 %v14882_v17  ;;  %v14883_v36 = vunpack.i.l.bf16 %v14882_v17  ;;  %v21563_v3 = vld [vmem:[#allocation68_spill] sm:$0xff]  ;;  %v21566_v35 = vld [vmem:[#allocation146_spill] sm:$0xff] }
 0x42a   : > { %v3155_v38 = vmul.f32 %v19306_v44, %v21560_v41  ;;  %v3153_v14 = vmul.f32 %v19306_v44, %v21562_v32  ;;  %v3154_v31 = vmul.f32 %v19306_v44, %v21563_v3  ;;  %v3254_v41 = vadd.f32 %v18622_v43, %v3222_v45  ;;  %v21567_v32 = vld [vmem:[#allocation13_spill] sm:$0xff] }
 0x42b   : > { %v19493_v26 = vsel %vm1074_vm5, %v3247_v30, %v14883_v36  ;;  %v19496_v49 = vsel %vm1074_vm5, %v3248_v59, %v14884_v52  ;;  %v3252_v52 = vadd.f32 %v18604_v58, %v3220_v8  ;;  %v3194_v30 = vadd.f32 %v19334_v47, %v3156_v39 }
 0x42c   : > { %13541 = vmatmul.mubr.msk.bf16.gmra.mrb[60].mxu1 %vm1074_vm5, %v21564_v60  ;;  %v3193_v44 = vadd.f32 %v19334_v47, %v3155_v38  ;;  %v3191_v43 = vadd.f32 %v19334_v47, %v3153_v14  ;;  %v3192_v62 = vadd.f32 %v19334_v47, %v3154_v31  ;;  %v9604_v38 = vsel %vm1123_vm1, %v19275_v19, 0  ;;  %v11742_v47 = vld [vmem:[%s20261_s1 + $0x44] sm:$0x3] }
 0x42d   : > { %13546 = vmatprep.mubr.msk.bf16.mxu1 %vm1074_vm5, %v21565_v34  ;;  %v3226_v14 = vmax.f32 %v3194_v30, 0.0  ;;  %v21569_v34 = vld [vmem:[#allocation70_spill] sm:$0xff] }
 0x42e   : > { %v14887_v57 = vpop.permute.xlu1 %14886  ;;  %v3225_v39 = vmax.f32 %v3193_v44, 0.0  ;;  %v3223_v3 = vmax.f32 %v3191_v43, 0.0  ;;  %v3224_v31 = vmax.f32 %v3192_v62, 0.0  ;;  %v21578_v43 = vld [vmem:[#allocation109_spill] sm:$0xff]  ;;  %v21583_v62 = vld [vmem:[#allocation160_spill] sm:$0xff] }
 0x42f   : > { %v14889_v59 = vunpack.i.h.bf16 %v14887_v57  ;;  %v14888_v17 = vunpack.i.l.bf16 %v14887_v57  ;;  %v14892_v36 = vpop.permute.xlu0 %14891  ;;  %v21570_v57 = vld [vmem:[#allocation16_spill] sm:$0xff] }
 0x430   : > { %13295 = vmatmul.mubr.msk.bf16.gmra.mrb[52].mxu0 %vm1074_vm5, %v21566_v35  ;;  %v14894_v5 = vunpack.i.h.bf16 %v14892_v36  ;;  %v14893_v58 = vunpack.i.l.bf16 %v14892_v36  ;;  %v3257_v19 = vadd.f32 %v18660_v55, %v3225_v39  ;;  %v7596_v36 = vsel %vm1123_vm1, %v19329_v51, 0  ;;  %v21582_v51 = vld [vmem:[#allocation30_spill] sm:$0xff]  ;;  %v21588_v39 = vld [vmem:[#allocation167_spill] sm:$0xff] }
 0x431   : > { %13298 = vmatprep.mubr.msk.bf16.mxu0 %vm1074_vm5, %v21567_v32  ;;  %v19519_v50 = vsel %vm1074_vm5, %v3253_v37, %v14888_v17  ;;  %v19522_v27 = vsel %vm1074_vm5, %v3254_v41, %v14889_v59  ;;  %v3258_v41 = vadd.f32 %v18654_v25, %v3226_v14  ;;  %v21577_v32 = vld [vmem:[#allocation137_spill] sm:$0xff] }
 0x432   : > { %v19525_v45 = vsel %vm1074_vm5, %v3251_v7, %v14893_v58  ;;  %v19528_v8 = vsel %vm1074_vm5, %v3252_v52, %v14894_v5  ;;  %v21584_v5 = vld [vmem:[#allocation163_spill] sm:$0xff]  ;;  %v21585_v58 = vld [vmem:[#allocation40_spill] sm:$0xff]  ;;  %v21589_v14 = vld [vmem:[#allocation153_spill] sm:$0xff] }
 0x433   : > { %21568 = vst [vmem:[#allocation111_spill] sm:$0xff] %v19525_v45 }
 0x434   : > { %13547 = vmatmul.mubr.msk.bf16.vlgmr.msra.gmra.mrb[32].mxu1 %vm1074_vm5, %v21429_v42  ;;  %v3255_v42 = vadd.f32 %v18640_v11, %v3223_v3  ;;  %v21576_v11 = vld [vmem:[#allocation79_spill] sm:$0xff]  ;;  %v21590_v3 = vld [vmem:[#allocation166_spill] sm:$0xff] }
 0x435   : > { %13579 = vmatpush3.bf16.msra.mxu1 %v9604_v38  ;;  %13550 = vmatprep.mubr.msk.bf16.mxu1 %vm1074_vm5, %v21430_v16  ;;  %v3256_v16 = vadd.f32 %v18636_v21, %v3224_v31  ;;  %v21575_v21 = vld [vmem:[#allocation81_spill] sm:$0xff]  ;;  %v21586_v38 = vld [vmem:[#allocation28_spill] sm:$0xff]  ;;  %v21591_v31 = vld [vmem:[#allocation171_spill] sm:$0xff] }
 0x436   : > { %v14897_v37 = vpop.permute.xlu1 %14896  ;;  %14738 = vmatprep.subr.msk.bf16.mxu1 %vm1123_vm1, %v11742_v47 }
 0x437   : > { %v14899_v7 = vunpack.i.h.bf16 %v14897_v37  ;;  %v14898_v52 = vunpack.i.l.bf16 %v14897_v37  ;;  %v14902_v35 = vpop.permute.xlu0 %14901  ;;  %v21593_v37 = vld [vmem:[#allocation170_spill] sm:$0xff] }
 0x438   : > { %13299 = vmatmul.mubr.msk.bf16.gmra.mrb[56].mxu0 %vm1074_vm5, %v21569_v34  ;;  %v14904_v44 = vunpack.i.h.bf16 %v14902_v35  ;;  %v14903_v30 = vunpack.i.l.bf16 %v14902_v35  ;;  %v21592_v34 = vld [vmem:[#allocation157_spill] sm:$0xff]  ;;  %v21606_v35 = vld [vmem:[#allocation35_spill] sm:$0xff] }
 0x439   : > { %13302 = vmatprep.mubr.msk.bf16.mxu0 %vm1074_vm5, %v21570_v57  ;;  %v19549_v59 = vsel %vm1074_vm5, %v3257_v19, %v14898_v52  ;;  %v19552_v17 = vsel %vm1074_vm5, %v3258_v41, %v14899_v7  ;;  %v9858_v19 = vsel %vm1123_vm1, %v11742_v47, 0  ;;  %v21597_v47 = vld [vmem:[#allocation55_spill] sm:$0xff]  ;;  %v21600_v41 = vld [vmem:[#allocation21_spill] sm:$0xff]  ;;  %v21601_v7 = vld [vmem:[#allocation26_spill] sm:$0xff] }
 0x43a   : > { %21571 = vst [vmem:[#allocation110_spill] sm:$0xff] %v19549_v59  ;;  %21572 = vst [vmem:[#allocation41_spill] sm:$0xff] %v19552_v17  ;;  %v19555_v25 = vsel %vm1074_vm5, %v3255_v42, %v14903_v30  ;;  %v19558_v55 = vsel %vm1074_vm5, %v3256_v16, %v14904_v44  ;;  %v21604_v52 = vld [vmem:[#allocation71_spill] sm:$0xff]  ;;  %v21607_v57 = vld [vmem:[#allocation173_spill] sm:$0xff] }
 0x43b   : > { %21573 = vst [vmem:[#allocation66_spill] sm:$0xff] %v19555_v25  ;;  %21574 = vst [vmem:[#allocation114_spill] sm:$0xff] %v19558_v55  ;;  %v21608_v42 = vld [vmem:[#allocation57_spill] sm:$0xff]  ;;  %v21609_v16 = vld [vmem:[#allocation76_spill] sm:$0xff] }
 0x43c   : > { %13551 = vmatmul.mubr.msk.bf16.gmra.mrb[36].mxu1 %vm1074_vm5, %v21433_v61  ;;  %v21579_v61 = vld [vmem:[#allocation78_spill] sm:$0xff]  ;;  %v21610_v44 = vld [vmem:[#allocation172_spill] sm:$0xff]  ;;  %v21611_v30 = vld [vmem:[#allocation15_spill] sm:$0xff] }
 0x43d   : > { %13554 = vmatprep.mubr.msk.bf16.mxu1 %vm1074_vm5, %v21434_v23  ;;  %v21580_v23 = vld [vmem:[#allocation161_spill] sm:$0xff]  ;;  %v21674_v59 = vld [vmem:[#allocation139_spill] sm:$0xff] }
 0x440   : > { %13303 = vmatmul.mubr.msk.bf16.gmra.mrb[60].mxu0 %vm1074_vm5, %v21575_v21  ;;  %v21612_v21 = vld [vmem:[#allocation18_spill] sm:$0xff] }
 0x441   : > { %13308 = vmatprep.mubr.msk.bf16.mxu0 %vm1074_vm5, %v21576_v11  ;;  %v21613_v11 = vld [vmem:[#allocation165_spill] sm:$0xff] }
 0x444   : > { %13555 = vmatmul.mubr.msk.bf16.gmra.mrb[40].mxu1 %vm1074_vm5, %v21438_v46  ;;  %v21581_v46 = vld [vmem:[#allocation77_spill] sm:$0xff] }
 0x445   : > { %13558 = vmatprep.mubr.msk.bf16.mxu1 %vm1074_vm5, %v21577_v32  ;;  %v21615_v32 = vld [vmem:[#allocation17_spill] sm:$0xff] }
 0x448   : > { %13309 = vmatmul.mubr.msk.bf16.vlgmr.msra.gmra.mrb[32].mxu0 %vm1074_vm5, %v21578_v43  ;;  %v21616_v43 = vld [vmem:[#allocation164_spill] sm:$0xff] }
 0x449   : > { %13312 = vmatprep.mubr.msk.bf16.mxu0 %vm1074_vm5, %v21579_v61  ;;  %13341 = vmatpush3.bf16.msra.mxu0 %v7596_v36  ;;  %v21614_v36 = vld [vmem:[#allocation80_spill] sm:$0xff]  ;;  %v21617_v61 = vld [vmem:[#allocation169_spill] sm:$0xff] }
 0x44c   : > { %13559 = vmatmul.mubr.msk.bf16.gmra.mrb[44].mxu1 %vm1074_vm5, %v21445_v33  ;;  %v21587_v33 = vld [vmem:[#allocation162_spill] sm:$0xff] }
 0x44d   : > { %13562 = vmatprep.mubr.msk.bf16.mxu1 %vm1074_vm5, %v21580_v23 }
 0x450   : > { %13313 = vmatmul.mubr.msk.bf16.gmra.mrb[36].mxu0 %vm1074_vm5, %v21581_v46  ;;  %v21618_v46 = vld [vmem:[#allocation88_spill] sm:$0xff] }
 0x451   : > { %13316 = vmatprep.mubr.msk.bf16.mxu0 %vm1074_vm5, %v21582_v51  ;;  %v21619_v51 = vld [vmem:[#allocation150_spill] sm:$0xff] }
 0x454   : > { %13563 = vmatmul.mubr.msk.bf16.gmra.mrb[48].mxu1 %vm1074_vm5, %v21583_v62 }
 0x455   : > { %13566 = vmatprep.mubr.msk.bf16.mxu1 %vm1074_vm5, %v21584_v5 }
 0x458   : > { %13317 = vmatmul.mubr.msk.bf16.gmra.mrb[40].mxu0 %vm1074_vm5, %v21585_v58  ;;  %v21620_v58 = vld [vmem:[#allocation168_spill] sm:$0xff] }
 0x459   : > { %13320 = vmatprep.mubr.msk.bf16.mxu0 %vm1074_vm5, %v21586_v38  ;;  %v21621_v38 = vld [vmem:[#allocation62_spill] sm:$0xff] }
 0x45c   : > { %13567 = vmatmul.mubr.msk.bf16.gmra.mrb[52].mxu1 %vm1074_vm5, %v21587_v33 }
 0x45d   : > { %13570 = vmatprep.mubr.msk.bf16.mxu1 %vm1074_vm5, %v21588_v39 }
 0x460   : > { %13321 = vmatmul.mubr.msk.bf16.gmra.mrb[44].mxu0 %vm1074_vm5, %v21446_v15  ;;  %v21594_v15 = vld [vmem:[#allocation22_spill] sm:$0xff] }
 0x461   : > { %13324 = vmatprep.mubr.msk.bf16.mxu0 %vm1074_vm5, %v21589_v14 }
 0x464   : > { %13571 = vmatmul.mubr.msk.bf16.gmra.mrb[56].mxu1 %vm1074_vm5, %v21590_v3 }
 0x465   : > { %13574 = vmatprep.mubr.msk.bf16.mxu1 %vm1074_vm5, %v21591_v31 }
 0x468   : > { %13325 = vmatmul.mubr.msk.bf16.gmra.mrb[48].mxu0 %vm1074_vm5, %v21450_v29  ;;  %v11759_v29 = vld [vmem:[%s20261_s1 + $0x46] sm:$0x3] }
 0x469   : > { %13328 = vmatprep.mubr.msk.bf16.mxu0 %vm1074_vm5, %v21592_v34  ;;  %v10096_v14 = vsel %vm1123_vm1, %v11759_v29, 0  ;;  %v21622_v34 = vld [vmem:[#allocation61_spill] sm:$0xff] }
 0x46c   : > { %13575 = vmatmul.mubr.msk.bf16.gmra.mrb[60].mxu1 %vm1074_vm5, %v21593_v37 }
 0x46d   : > { %13580 = vmatprep.mubr.msk.bf16.mxu1 %vm1074_vm5, %v21464_v1  ;;  %v21595_v1 = vld [vmem:[#allocation53_spill] sm:$0xff] }
 0x470   : > { %13329 = vmatmul.mubr.msk.bf16.gmra.mrb[52].mxu0 %vm1074_vm5, %v21456_v12  ;;  %v21596_v12 = vld [vmem:[#allocation56_spill] sm:$0xff] }
 0x471   : > { %13332 = vmatprep.mubr.msk.bf16.mxu0 %vm1074_vm5, %v21594_v15  ;;  %v21623_v15 = vld [vmem:[#allocation63_spill] sm:$0xff] }
 0x474   : > { %13581 = vmatmul.mubr.msk.bf16.vlgmr.msra.gmra.mrb[32].mxu1 %vm1074_vm5, %v21469_v2  ;;  %v21598_v2 = vld [vmem:[#allocation144_spill] sm:$0xff] }
 0x475   : > { %13613 = vmatpush3.bf16.msra.mxu1 %v9858_v19  ;;  %13584 = vmatprep.mubr.msk.bf16.mxu1 %vm1074_vm5, %v21471_v18  ;;  %v21599_v18 = vld [vmem:[#allocation149_spill] sm:$0xff]  ;;  %v21624_v19 = vld [vmem:[#allocation4_spill] sm:$0xff] }
 0x476   : > { %14739 = vmatprep.subr.msk.bf16.mxu1 %vm1123_vm1, %v11759_v29  ;;  %v21629_v29 = vld [vmem:[#allocation119_spill] sm:$0xff] }
 0x478   : > { %13333 = vmatmul.mubr.msk.bf16.gmra.mrb[56].mxu0 %vm1074_vm5, %v21595_v1 }
 0x479   : > { %13336 = vmatprep.mubr.msk.bf16.mxu0 %vm1074_vm5, %v21596_v12  ;;  %v21641_v12 = vld [vmem:[#allocation116_spill] sm:$0xff] }
 0x47c   : > { %13585 = vmatmul.mubr.msk.bf16.gmra.mrb[36].mxu1 %vm1074_vm5, %v21477_v54  ;;  %v21602_v54 = vld [vmem:[#allocation148_spill] sm:$0xff] }
 0x47d   : > { %13588 = vmatprep.mubr.msk.bf16.mxu1 %vm1074_vm5, %v21478_v13  ;;  %v21603_v13 = vld [vmem:[#allocation12_spill] sm:$0xff] }
 0x480   : > { %13337 = vmatmul.mubr.msk.bf16.gmra.mrb[60].mxu0 %vm1074_vm5, %v21597_v47 }
 0x481   : > { %13342 = vmatprep.mubr.msk.bf16.mxu0 %vm1074_vm5, %v21467_v24  ;;  %v21605_v24 = vld [vmem:[#allocation58_spill] sm:$0xff] }
 0x484   : > { %13589 = vmatmul.mubr.msk.bf16.gmra.mrb[40].mxu1 %vm1074_vm5, %v21598_v2 }
 0x485   : > { %13592 = vmatprep.mubr.msk.bf16.mxu1 %vm1074_vm5, %v21599_v18 }
 0x488   : > { %13343 = vmatmul.mubr.msk.bf16.vlgmr.msra.gmra.mrb[32].mxu0 %vm1074_vm5, %v21600_v41 }
 0x489   : > { %13346 = vmatprep.mubr.msk.bf16.mxu0 %vm1074_vm5, %v21601_v7  ;;  %v21642_v7 = vld [vmem:[#allocation112_spill] sm:$0xff] }
 0x48c   : > { %13593 = vmatmul.mubr.msk.bf16.gmra.mrb[44].mxu1 %vm1074_vm5, %v21602_v54 }
 0x48d   : > { %13596 = vmatprep.mubr.msk.bf16.mxu1 %vm1074_vm5, %v21603_v13 }
 0x490   : > { %13347 = vmatmul.mubr.msk.bf16.gmra.mrb[36].mxu0 %vm1074_vm5, %v21604_v52 }
 0x491   : > { %13350 = vmatprep.mubr.msk.bf16.mxu0 %vm1074_vm5, %v21605_v24 }
 0x494   : > { %13597 = vmatmul.mubr.msk.bf16.gmra.mrb[48].mxu1 %vm1074_vm5, %v21606_v35 }
 0x495   : > { %13600 = vmatprep.mubr.msk.bf16.mxu1 %vm1074_vm5, %v21607_v57 }
 0x498   : > { %13351 = vmatmul.mubr.msk.bf16.gmra.mrb[40].mxu0 %vm1074_vm5, %v21608_v42 }
 0x499   : > { %13354 = vmatprep.mubr.msk.bf16.mxu0 %vm1074_vm5, %v21609_v16 }
 0x49c   : > { %13601 = vmatmul.mubr.msk.bf16.gmra.mrb[52].mxu1 %vm1074_vm5, %v21610_v44 }
 0x49d   : > { %13604 = vmatprep.mubr.msk.bf16.mxu1 %vm1074_vm5, %v21611_v30 }
 0x4a0   : > { %13355 = vmatmul.mubr.msk.bf16.gmra.mrb[44].mxu0 %vm1074_vm5, %v21612_v21 }
 0x4a1   : > { %13358 = vmatprep.mubr.msk.bf16.mxu0 %vm1074_vm5, %v21613_v11 }
 0x4a4   : > { %13605 = vmatmul.mubr.msk.bf16.gmra.mrb[56].mxu1 %vm1074_vm5, %v21614_v36  ;;  %v21643_v36 = vld [vmem:[#allocation123_spill] sm:$0xff] }
 0x4a5   : > { %13608 = vmatprep.mubr.msk.bf16.mxu1 %vm1074_vm5, %v21615_v32 }
 0x4a8   : > { %13359 = vmatmul.mubr.msk.bf16.gmra.mrb[48].mxu0 %vm1074_vm5, %v21616_v43  ;;  %v21644_v43 = vld [vmem:[#allocation118_spill] sm:$0xff] }
 0x4a9   : > { %13362 = vmatprep.mubr.msk.bf16.mxu0 %vm1074_vm5, %v21617_v61 }
 0x4ac   : > { %13609 = vmatmul.mubr.msk.bf16.gmra.mrb[60].mxu1 %vm1074_vm5, %v21618_v46 }
 0x4ad   : > { %13614 = vmatprep.mubr.msk.bf16.mxu1 %vm1074_vm5, %v21619_v51 }
 0x4b0   : > { %13363 = vmatmul.mubr.msk.bf16.gmra.mrb[52].mxu0 %vm1074_vm5, %v21620_v58  ;;  %v21645_v58 = vld [vmem:[#allocation120_spill] sm:$0xff] }
 0x4b1   : > { %13366 = vmatprep.mubr.msk.bf16.mxu0 %vm1074_vm5, %v21621_v38 }
 0x4b4   : > { %13615 = vmatmul.mubr.msk.bf16.vlgmr.msra.gmra.mrb[32].mxu1 %vm1074_vm5, %v21536_v20  ;;  %v21625_v20 = vld [vmem:[#allocation19_spill] sm:$0xff] }
 0x4b5   : > { %13647 = vmatpush3.bf16.msra.mxu1 %v10096_v14  ;;  %13618 = vmatprep.mubr.msk.bf16.mxu1 %vm1074_vm5, %v21537_v9  ;;  %v21626_v9 = vld [vmem:[#allocation87_spill] sm:$0xff] }
 0x4b6   : > { %v21646_v14 = vld [vmem:[#allocation115_spill] sm:$0xff] }
 0x4b8   : > { %13367 = vmatmul.mubr.msk.bf16.gmra.mrb[56].mxu0 %vm1074_vm5, %v21622_v34 }
 0x4b9   : > { %13370 = vmatprep.mubr.msk.bf16.mxu0 %vm1074_vm5, %v21623_v15 }
 0x4bc   : > { %13619 = vmatmul.mubr.msk.bf16.gmra.mrb[36].mxu1 %vm1074_vm5, %v21545_v22  ;;  %v21627_v22 = vld [vmem:[#allocation20_spill] sm:$0xff] }
 0x4bd   : > { %13622 = vmatprep.mubr.msk.bf16.mxu1 %vm1074_vm5, %v21546_v10  ;;  %v21628_v10 = vld [vmem:[#allocation27_spill] sm:$0xff] }
 0x4c0   : > { %13371 = vmatmul.mubr.msk.bf16.gmra.mrb[60].mxu0 %vm1074_vm5, %v21624_v19 }
 0x4c4   : > { %13623 = vmatmul.mubr.msk.bf16.gmra.mrb[40].mxu1 %vm1074_vm5, %v21556_v56  ;;  %v21630_v56 = vld [vmem:[#allocation54_spill] sm:$0xff] }
 0x4c5   : > { %13626 = vmatprep.mubr.msk.bf16.mxu1 %vm1074_vm5, %v21557_v53  ;;  %v21631_v53 = vld [vmem:[#allocation174_spill] sm:$0xff] }
 0x4cc   : > { %13627 = vmatmul.mubr.msk.bf16.gmra.mrb[44].mxu1 %vm1074_vm5, %v21564_v60  ;;  %v21632_v60 = vld [vmem:[#allocation94_spill] sm:$0xff] }
 0x4cd   : > { %13630 = vmatprep.mubr.msk.bf16.mxu1 %vm1074_vm5, %v21625_v20 }
 0x4d4   : > { %13631 = vmatmul.mubr.msk.bf16.gmra.mrb[48].mxu1 %vm1074_vm5, %v21626_v9 }
 0x4d5   : > { %13634 = vmatprep.mubr.msk.bf16.mxu1 %vm1074_vm5, %v21627_v22 }
 0x4dc   : > { %13635 = vmatmul.mubr.msk.bf16.gmra.mrb[52].mxu1 %vm1074_vm5, %v21628_v10 }
 0x4dd   : > { %13638 = vmatprep.mubr.msk.bf16.mxu1 %vm1074_vm5, %v21629_v29 }
 0x4e4   : > { %13639 = vmatmul.mubr.msk.bf16.gmra.mrb[56].mxu1 %vm1074_vm5, %v21630_v56 }
 0x4e5   : > { %13642 = vmatprep.mubr.msk.bf16.mxu1 %vm1074_vm5, %v21631_v53 }
 0x4ec   : > { %13643 = vmatmul.mubr.msk.bf16.gmra.mrb[60].mxu1 %vm1074_vm5, %v21632_v60 }
 0x4ed   : > { %13648 = vmatprep.mubr.msk.bf16.mxu1 %vm1074_vm5, %v21580_v23  ;;  %v21633_v23 = vld [vmem:[#allocation60_spill] sm:$0xff] }
 0x4f4   : > { %13649 = vmatmul.mubr.msk.bf16.vlgmr.msra.gmra.mrb[32].mxu1 %vm1074_vm5, %v21583_v62  ;;  %v21634_v62 = vld [vmem:[#allocation59_spill] sm:$0xff] }
 0x4f5   : > { %13652 = vmatprep.mubr.msk.bf16.mxu1 %vm1074_vm5, %v21584_v5  ;;  %v21635_v5 = vld [vmem:[#allocation98_spill] sm:$0xff] }
 0x4fc   : > { %13653 = vmatmul.mubr.msk.bf16.gmra.mrb[36].mxu1 %vm1074_vm5, %v21587_v33  ;;  %v21636_v33 = vld [vmem:[#allocation93_spill] sm:$0xff] }
 0x4fd   : > { %13656 = vmatprep.mubr.msk.bf16.mxu1 %vm1074_vm5, %v21588_v39  ;;  %v21637_v39 = vld [vmem:[#allocation102_spill] sm:$0xff] }
 0x504   : > { %13657 = vmatmul.mubr.msk.bf16.gmra.mrb[40].mxu1 %vm1074_vm5, %v21590_v3  ;;  %v21638_v3 = vld [vmem:[#allocation97_spill] sm:$0xff] }
 0x505   : > { %13660 = vmatprep.mubr.msk.bf16.mxu1 %vm1074_vm5, %v21591_v31  ;;  %v21639_v31 = vld [vmem:[#allocation175_spill] sm:$0xff] }
 0x50c   : > { %13661 = vmatmul.mubr.msk.bf16.gmra.mrb[44].mxu1 %vm1074_vm5, %v21593_v37  ;;  %v21640_v37 = vld [vmem:[#allocation101_spill] sm:$0xff] }
 0x50d   : > { %13664 = vmatprep.mubr.msk.bf16.mxu1 %vm1074_vm5, %v21633_v23 }
 0x514   : > { %13665 = vmatmul.mubr.msk.bf16.gmra.mrb[48].mxu1 %vm1074_vm5, %v21634_v62 }
 0x515   : > { %13668 = vmatprep.mubr.msk.bf16.mxu1 %vm1074_vm5, %v21635_v5 }
 0x51c   : > { %13669 = vmatmul.mubr.msk.bf16.gmra.mrb[52].mxu1 %vm1074_vm5, %v21636_v33 }
 0x51d   : > { %13672 = vmatprep.mubr.msk.bf16.mxu1 %vm1074_vm5, %v21637_v39 }
 0x524   : > { %13673 = vmatmul.mubr.msk.bf16.gmra.mrb[56].mxu1 %vm1074_vm5, %v21638_v3 }
 0x525   : > { %13676 = vmatprep.mubr.msk.bf16.mxu1 %vm1074_vm5, %v21639_v31  ;;  %v21647_v31 = vld [vmem:[#allocation127_spill] sm:$0xff] }
 0x52c   : > { %13677 = vmatmul.mubr.msk.bf16.gmra.mrb[60].mxu1 %vm1074_vm5, %v21640_v37 }
 0x55b   : > { %v13344_v1 = vpop.f32.mrb[32].mxu0 }
 0x55c   : > { %v7796_v47 = vmul.f32 %v13344_v1, %v21641_v12  ;;  %v7632_v2 = vpop.f32.mrb[33].mxu0  ;;  %v21648_v1 = vld [vmem:[#allocation124_spill] sm:$0xff] }
 0x55d   : > { %v7794_v18 = vmul.f32 %v21641_v12, %v7632_v2  ;;  %v13345_v41 = vpop.f32.mrb[34].mxu0 }
 0x55e   : > { %v7831_v54 = vadd.f32 %v21642_v7, %v7796_v47  ;;  %v7797_v13 = vmul.f32 %v13345_v41, %v21641_v12  ;;  %v7635_v52 = vpop.f32.mrb[35].mxu0  ;;  %v21649_v41 = vld [vmem:[#allocation125_spill] sm:$0xff] }
 0x55f   : > { %v7829_v24 = vadd.f32 %v21642_v7, %v7794_v18  ;;  %v7795_v35 = vmul.f32 %v21641_v12, %v7635_v52 }
 0x560   : > { %v7863_v57 = vmax.f32 %v7831_v54, 0.0  ;;  %v7832_v42 = vadd.f32 %v21642_v7, %v7797_v13  ;;  %v21650_v13 = vld [vmem:[#allocation122_spill] sm:$0xff] }
 0x561   : > { %v7861_v16 = vmax.f32 %v7829_v24, 0.0  ;;  %v7830_v44 = vadd.f32 %v21642_v7, %v7795_v35 }
 0x562   : > { %v7864_v30 = vmax.f32 %v7832_v42, 0.0  ;;  %v8023_v32 = vadd.f32 %v21643_v36, %v7863_v57 }
 0x563   : > { %v7862_v21 = vmax.f32 %v7830_v44, 0.0  ;;  %v13348_v11 = vpop.f32.mrb[36].mxu0  ;;  %v8021_v38 = vadd.f32 %v21645_v58, %v7861_v16 }
 0x564   : > { %v8024_v61 = vadd.f32 %v21644_v43, %v7864_v30  ;;  %v7800_v46 = vmul.f32 %v13348_v11, %v21641_v12  ;;  %v7648_v51 = vpop.f32.mrb[37].mxu0 }
 0x565   : > { %v8022_v34 = vadd.f32 %v21646_v14, %v7862_v21  ;;  %v7798_v15 = vmul.f32 %v21641_v12, %v7648_v51  ;;  %v13349_v19 = vpop.f32.mrb[38].mxu0 }
 0x566   : > { %v14915_v20 = vpack.i.bf16 %v8024_v61, %v8023_v32  ;;  %v7835_v9 = vadd.f32 %v21642_v7, %v7800_v46  ;;  %v7801_v22 = vmul.f32 %v13349_v19, %v21641_v12  ;;  %v7651_v10 = vpop.f32.mrb[39].mxu0  ;;  %v21651_v19 = vld [vmem:[#allocation131_spill] sm:$0xff] }
 0x567   : > { %v14920_v29 = vpack.i.bf16 %v8022_v34, %v8021_v38  ;;  %v7833_v56 = vadd.f32 %v21642_v7, %v7798_v15  ;;  %v7799_v53 = vmul.f32 %v21641_v12, %v7651_v10 }
 0x568   : > { %v7867_v60 = vmax.f32 %v7835_v9, 0.0  ;;  %v7836_v23 = vadd.f32 %v21642_v7, %v7801_v22  ;;  %14916 = vrot.lane.b32.xlu1 %v14915_v20, %s15229_s18  ;;  %v21652_v9 = vld [vmem:[#allocation128_spill] sm:$0xff] }
 0x569   : > { %v7865_v62 = vmax.f32 %v7833_v56, 0.0  ;;  %v7834_v5 = vadd.f32 %v21642_v7, %v7799_v53  ;;  %14921 = vrot.lane.b32.xlu0 %v14920_v29, %s15229_s18  ;;  %v21653_v56 = vld [vmem:[#allocation129_spill] sm:$0xff] }
 0x56a   : > { %v7868_v33 = vmax.f32 %v7836_v23, 0.0  ;;  %v8027_v37 = vadd.f32 %v21647_v31, %v7867_v60  ;;  %v21654_v60 = vld [vmem:[#allocation126_spill] sm:$0xff] }
 0x56b   : > { %v7866_v39 = vmax.f32 %v7834_v5, 0.0  ;;  %v13352_v3 = vpop.f32.mrb[40].mxu0  ;;  %v8025_v54 = vadd.f32 %v21649_v41, %v7865_v62 }
 0x56c   : > { %v8028_v47 = vadd.f32 %v21648_v1, %v7868_v33  ;;  %v7804_v2 = vmul.f32 %v13352_v3, %v21641_v12  ;;  %v7664_v18 = vpop.f32.mrb[41].mxu0 }
 0x56d   : > { %v8026_v52 = vadd.f32 %v21650_v13, %v7866_v39  ;;  %v7802_v24 = vmul.f32 %v21641_v12, %v7664_v18  ;;  %v13353_v35 = vpop.f32.mrb[42].mxu0 }
 0x56e   : > { %v14925_v57 = vpack.i.bf16 %v8028_v47, %v8027_v37  ;;  %v7839_v42 = vadd.f32 %v21642_v7, %v7804_v2  ;;  %v7805_v16 = vmul.f32 %v13353_v35, %v21641_v12  ;;  %v7667_v44 = vpop.f32.mrb[43].mxu0 }
 0x56f   : > { %v14930_v30 = vpack.i.bf16 %v8026_v52, %v8025_v54  ;;  %v7837_v21 = vadd.f32 %v21642_v7, %v7802_v24  ;;  %v7803_v11 = vmul.f32 %v21641_v12, %v7667_v44  ;;  %v21655_v44 = vld [vmem:[#allocation132_spill] sm:$0xff] }
 0x570   : > { %v7871_v32 = vmax.f32 %v7839_v42, 0.0  ;;  %v7840_v61 = vadd.f32 %v21642_v7, %v7805_v16  ;;  %14926 = vrot.lane.b32.xlu1 %v14925_v57, %s15229_s18 }
 0x571   : > { %v7869_v46 = vmax.f32 %v7837_v21, 0.0  ;;  %v7838_v51 = vadd.f32 %v21642_v7, %v7803_v11  ;;  %14931 = vrot.lane.b32.xlu0 %v14930_v30, %s15229_s18  ;;  %v21656_v21 = vld [vmem:[#allocation106_spill] sm:$0xff] }
 0x572   : > { %v7872_v38 = vmax.f32 %v7840_v61, 0.0  ;;  %v8031_v20 = vadd.f32 %v21651_v19, %v7871_v32 }
 0x573   : > { %v7870_v34 = vmax.f32 %v7838_v51, 0.0  ;;  %v13356_v15 = vpop.f32.mrb[44].mxu0  ;;  %v8029_v53 = vadd.f32 %v21653_v56, %v7869_v46  ;;  %v21657_v46 = vld [vmem:[#allocation133_spill] sm:$0xff] }
 0x574   : > { %v8032_v22 = vadd.f32 %v21652_v9, %v7872_v38  ;;  %v7808_v10 = vmul.f32 %v13356_v15, %v21641_v12  ;;  %v7680_v29 = vpop.f32.mrb[45].mxu0  ;;  %v21658_v38 = vld [vmem:[#allocation130_spill] sm:$0xff] }
 0x575   : > { %v8030_v23 = vadd.f32 %v21654_v60, %v7870_v34  ;;  %v7806_v62 = vmul.f32 %v21641_v12, %v7680_v29  ;;  %v13357_v5 = vpop.f32.mrb[46].mxu0 }
 0x576   : > { %v14935_v33 = vpack.i.bf16 %v8032_v22, %v8031_v20  ;;  %v7843_v39 = vadd.f32 %v21642_v7, %v7808_v10  ;;  %v7809_v3 = vmul.f32 %v13357_v5, %v21641_v12  ;;  %v7683_v37 = vpop.f32.mrb[47].mxu0 }
 0x577   : > { %v14940_v47 = vpack.i.bf16 %v8030_v23, %v8029_v53  ;;  %v7841_v2 = vadd.f32 %v21642_v7, %v7806_v62  ;;  %v7807_v18 = vmul.f32 %v21641_v12, %v7683_v37 }
 0x578   : > { %v7875_v54 = vmax.f32 %v7843_v39, 0.0  ;;  %v7844_v52 = vadd.f32 %v21642_v7, %v7809_v3  ;;  %14936 = vrot.lane.b32.xlu1 %v14935_v33, %s15229_s18 }
 0x579   : > { %v7873_v24 = vmax.f32 %v7841_v2, 0.0  ;;  %v7842_v35 = vadd.f32 %v21642_v7, %v7807_v18  ;;  %14941 = vrot.lane.b32.xlu0 %v14940_v47, %s15229_s18 }
 0x57a   : > { %v7876_v57 = vmax.f32 %v7844_v52, 0.0  ;;  %v8035_v30 = vadd.f32 %v21655_v44, %v7875_v54  ;;  %v21659_v54 = vld [vmem:[#allocation90_spill] sm:$0xff] }
 0x57b   : > { %v7874_v42 = vmax.f32 %v7842_v35, 0.0  ;;  %v13360_v16 = vpop.f32.mrb[48].mxu0  ;;  %v8033_v51 = vadd.f32 %v21657_v46, %v7873_v24  ;;  %v21660_v24 = vld [vmem:[#allocation176_spill] sm:$0xff] }
 0x57c   : > { %v8036_v11 = vadd.f32 %v21656_v21, %v7876_v57  ;;  %v7812_v32 = vmul.f32 %v13360_v16, %v21641_v12  ;;  %v7696_v61 = vpop.f32.mrb[49].mxu0  ;;  %v21661_v16 = vld [vmem:[#allocation135_spill] sm:$0xff] }
 0x57d   : > { %v8034_v34 = vadd.f32 %v21658_v38, %v7874_v42  ;;  %v7810_v15 = vmul.f32 %v21641_v12, %v7696_v61  ;;  %v13361_v20 = vpop.f32.mrb[50].mxu0 }
 0x57e   : > { %v14945_v22 = vpack.i.bf16 %v8036_v11, %v8035_v30  ;;  %v7847_v10 = vadd.f32 %v21642_v7, %v7812_v32  ;;  %v7813_v29 = vmul.f32 %v13361_v20, %v21641_v12  ;;  %v7699_v53 = vpop.f32.mrb[51].mxu0  ;;  %v21662_v11 = vld [vmem:[#allocation23_spill] sm:$0xff] }
 0x57f   : > { %v14950_v23 = vpack.i.bf16 %v8034_v34, %v8033_v51  ;;  %v7845_v62 = vadd.f32 %v21642_v7, %v7810_v15  ;;  %v7811_v5 = vmul.f32 %v21641_v12, %v7699_v53 }
 0x580   : > { %v7879_v33 = vmax.f32 %v7847_v10, 0.0  ;;  %v7848_v39 = vadd.f32 %v21642_v7, %v7813_v29  ;;  %14946 = vrot.lane.b32.xlu1 %v14945_v22, %s15229_s18 }
 0x581   : > { %v7877_v3 = vmax.f32 %v7845_v62, 0.0  ;;  %v7846_v37 = vadd.f32 %v21642_v7, %v7811_v5  ;;  %14951 = vrot.lane.b32.xlu0 %v14950_v23, %s15229_s18 }
 0x582   : > { %v7880_v47 = vmax.f32 %v7848_v39, 0.0  ;;  %v8039_v52 = vadd.f32 %v21659_v54, %v7879_v33 }
 0x583   : > { %v7878_v2 = vmax.f32 %v7846_v37, 0.0  ;;  %v13364_v18 = vpop.f32.mrb[52].mxu0  ;;  %v8037_v30 = vadd.f32 %v21661_v16, %v7877_v3 }
 0x584   : > { %v8040_v35 = vadd.f32 %v21660_v24, %v7880_v47  ;;  %v7816_v57 = vmul.f32 %v13364_v18, %v21641_v12  ;;  %v7712_v42 = vpop.f32.mrb[53].mxu0  ;;  %v21663_v47 = vld [vmem:[#allocation14_spill] sm:$0xff]  ;;  %v21664_v18 = vld [vmem:[#allocation89_spill] sm:$0xff] }
 0x585   : > { %v8038_v32 = vadd.f32 %v21662_v11, %v7878_v2  ;;  %v7814_v61 = vmul.f32 %v21641_v12, %v7712_v42  ;;  %v13365_v51 = vpop.f32.mrb[54].mxu0  ;;  %v21665_v42 = vld [vmem:[#allocation136_spill] sm:$0xff] }
 0x586   : > { %v14955_v34 = vpack.i.bf16 %v8040_v35, %v8039_v52  ;;  %v7851_v15 = vadd.f32 %v21642_v7, %v7816_v57  ;;  %v7817_v20 = vmul.f32 %v13365_v51, %v21641_v12  ;;  %v7715_v22 = vpop.f32.mrb[55].mxu0 }
 0x587   : > { %v14960_v10 = vpack.i.bf16 %v8038_v32, %v8037_v30  ;;  %v7849_v29 = vadd.f32 %v21642_v7, %v7814_v61  ;;  %v7815_v53 = vmul.f32 %v21641_v12, %v7715_v22  ;;  %v21666_v32 = vld [vmem:[#allocation84_spill] sm:$0xff] }
 0x588   : > { %v7883_v23 = vmax.f32 %v7851_v15, 0.0  ;;  %v7852_v62 = vadd.f32 %v21642_v7, %v7817_v20  ;;  %14956 = vrot.lane.b32.xlu1 %v14955_v34, %s15229_s18 }
 0x589   : > { %v7881_v5 = vmax.f32 %v7849_v29, 0.0  ;;  %v7850_v33 = vadd.f32 %v21642_v7, %v7815_v53  ;;  %14961 = vrot.lane.b32.xlu0 %v14960_v10, %s15229_s18 }
 0x58a   : > { %v7884_v39 = vmax.f32 %v7852_v62, 0.0  ;;  %v8043_v2 = vadd.f32 %v21663_v47, %v7883_v23 }
 0x58b   : > { %v7882_v3 = vmax.f32 %v7850_v33, 0.0  ;;  %v13368_v37 = vpop.f32.mrb[56].mxu0  ;;  %v8041_v30 = vadd.f32 %v21665_v42, %v7881_v5 }
 0x58c   : > { %v8044_v52 = vadd.f32 %v21664_v18, %v7884_v39  ;;  %v7820_v35 = vmul.f32 %v13368_v37, %v21641_v12  ;;  %v7728_v57 = vpop.f32.mrb[57].mxu0 }
 0x58d   : > { %v8042_v61 = vadd.f32 %v21666_v32, %v7882_v3  ;;  %v7818_v51 = vmul.f32 %v21641_v12, %v7728_v57  ;;  %v13369_v34 = vpop.f32.mrb[58].mxu0  ;;  %v21668_v57 = vld [vmem:[#allocation85_spill] sm:$0xff] }
 0x58e   : > { %v14965_v15 = vpack.i.bf16 %v8044_v52, %v8043_v2  ;;  %v7855_v20 = vadd.f32 %v21642_v7, %v7820_v35  ;;  %v7821_v22 = vmul.f32 %v13369_v34, %v21641_v12  ;;  %v7731_v10 = vpop.f32.mrb[59].mxu0  ;;  %v21667_v52 = vld [vmem:[#allocation156_spill] sm:$0xff]  ;;  %v21669_v34 = vld [vmem:[#allocation33_spill] sm:$0xff] }
 0x58f   : > { %v14970_v29 = vpack.i.bf16 %v8042_v61, %v8041_v30  ;;  %v7853_v53 = vadd.f32 %v21642_v7, %v7818_v51  ;;  %v7819_v23 = vmul.f32 %v21641_v12, %v7731_v10 }
 0x590   : > { %v7887_v62 = vmax.f32 %v7855_v20, 0.0  ;;  %v7856_v33 = vadd.f32 %v21642_v7, %v7821_v22  ;;  %14966 = vrot.lane.b32.xlu1 %v14965_v15, %s15229_s18  ;;  %v21670_v22 = vld [vmem:[#allocation24_spill] sm:$0xff] }
 0x591   : > { %v7885_v5 = vmax.f32 %v7853_v53, 0.0  ;;  %v7854_v39 = vadd.f32 %v21642_v7, %v7819_v23  ;;  %14971 = vrot.lane.b32.xlu0 %v14970_v29, %s15229_s18 }
 0x592   : > { %v7888_v3 = vmax.f32 %v7856_v33, 0.0  ;;  %v8047_v35 = vadd.f32 %v21667_v52, %v7887_v62 }
 0x593   : > { %v7886_v37 = vmax.f32 %v7854_v39, 0.0  ;;  %v13372_v2 = vpop.f32.mrb[60].mxu0  ;;  %v8045_v20 = vadd.f32 %v21669_v34, %v7885_v5 }
 0x594   : > { %v8048_v30 = vadd.f32 %v21668_v57, %v7888_v3  ;;  %v7824_v61 = vmul.f32 %v13372_v2, %v21641_v12  ;;  %v7744_v51 = vpop.f32.mrb[61].mxu0 }
 0x595   : > { %v8046_v10 = vadd.f32 %v21670_v22, %v7886_v37  ;;  %v7822_v15 = vmul.f32 %v21641_v12, %v7744_v51  ;;  %v13373_v53 = vpop.f32.mrb[62].mxu0 }
 0x596   : > { %v14975_v23 = vpack.i.bf16 %v8048_v30, %v8047_v35  ;;  %v7859_v29 = vadd.f32 %v21642_v7, %v7824_v61  ;;  %v7825_v33 = vmul.f32 %v13373_v53, %v21641_v12  ;;  %v7747_v39 = vpop.f32.mrb[63].mxu0  ;;  %v21671_v61 = vld [vmem:[#allocation138_spill] sm:$0xff]  ;;  %v21672_v53 = vld [vmem:[#allocation37_spill] sm:$0xff] }
 0x597   : > { %v14980_v25 = vpack.i.bf16 %v8046_v10, %v8045_v20  ;;  %v7857_v62 = vadd.f32 %v21642_v7, %v7822_v15  ;;  %v7823_v3 = vmul.f32 %v21641_v12, %v7747_v39  ;;  %v21673_v10 = vld [vmem:[#allocation51_spill] sm:$0xff] }
 0x598   : > { %v7891_v2 = vmax.f32 %v7859_v29, 0.0  ;;  %v7860_v55 = vadd.f32 %v21642_v7, %v7825_v33  ;;  %14976 = vrot.lane.b32.xlu1 %v14975_v23, %s15229_s18 }
 0x599   : > { %v7889_v5 = vmax.f32 %v7857_v62, 0.0  ;;  %v7858_v37 = vadd.f32 %v21642_v7, %v7823_v3  ;;  %14981 = vrot.lane.b32.xlu0 %v14980_v25, %s15229_s18  ;;  %v21675_v7 = vld [vmem:[#allocation140_spill] sm:$0xff]  ;;  %v21676_v3 = vld [vmem:[#allocation141_spill] sm:$0xff] }
 0x59a   : > { %v7892_v35 = vmax.f32 %v7860_v55, 0.0  ;;  %v8051_v51 = vadd.f32 %v21671_v61, %v7891_v2 }
 0x59b   : > { %v7890_v30 = vmax.f32 %v7858_v37, 0.0  ;;  %v8049_v15 = vadd.f32 %v21673_v10, %v7889_v5 }
 0x59c   : > { %v8052_v20 = vadd.f32 %v21672_v53, %v7892_v35 }
 0x59d   : > { %v8050_v12 = vadd.f32 %v21674_v59, %v7890_v30 }
 0x59e   : > { %v14985_v29 = vpack.i.bf16 %v8052_v20, %v8051_v51 }
 0x59f   : > { %v14990_v39 = vpack.i.bf16 %v8050_v12, %v8049_v15 }
 0x5a0   : > { %14986 = vrot.lane.b32.xlu1 %v14985_v29, %s15229_s18 }
 0x5a1   : > { %14991 = vrot.lane.b32.xlu0 %v14990_v39, %s15229_s18 }
 0x5c7   : > { %v13650_v23 = vpop.f32.mrb[32].mxu1 }
 0x5c8   : > { %v10296_v33 = vmul.f32 %v13650_v23, %v21675_v7  ;;  %v10132_v25 = vpop.f32.mrb[33].mxu1 }
 0x5c9   : > { %v10294_v55 = vmul.f32 %v21675_v7, %v10132_v25  ;;  %v13651_v62 = vpop.f32.mrb[34].mxu1 }
 0x5ca   : > { %v10331_v2 = vadd.f32 %v21676_v3, %v10296_v33  ;;  %v10297_v37 = vmul.f32 %v13651_v62, %v21675_v7  ;;  %v10135_v5 = vpop.f32.mrb[35].mxu1 }
 0x5cb   : > { %v10329_v35 = vadd.f32 %v21676_v3, %v10294_v55  ;;  %v10295_v30 = vmul.f32 %v21675_v7, %v10135_v5 }
 0x5cc   : > { %v10363_v51 = vmax.f32 %v10331_v2, 0.0  ;;  %v10332_v20 = vadd.f32 %v21676_v3, %v10297_v37 }
 0x5cd   : > { %v10361_v15 = vmax.f32 %v10329_v35, 0.0  ;;  %v10330_v12 = vadd.f32 %v21676_v3, %v10295_v30 }
 0x5ce   : > { %v10364_v29 = vmax.f32 %v10332_v20, 0.0  ;;  %v10395_v25 = vadd.f32 %v10363_v51, %v21643_v36 }
 0x5cf   : > { %v10362_v39 = vmax.f32 %v10330_v12, 0.0  ;;  %v13654_v23 = vpop.f32.mrb[36].mxu1  ;;  %v10393_v55 = vadd.f32 %v10361_v15, %v21645_v58 }
 0x5d0   : > { %v10396_v33 = vadd.f32 %v10364_v29, %v21644_v43  ;;  %v10300_v62 = vmul.f32 %v13654_v23, %v21675_v7  ;;  %v10148_v17 = vpop.f32.mrb[37].mxu1 }
 0x5d1   : > { %v10394_v5 = vadd.f32 %v10362_v39, %v21646_v14  ;;  %v10298_v2 = vmul.f32 %v21675_v7, %v10148_v17  ;;  %v13655_v37 = vpop.f32.mrb[38].mxu1 }
 0x5d2   : > { %v14995_v35 = vpack.i.bf16 %v10396_v33, %v10395_v25  ;;  %v10335_v30 = vadd.f32 %v21676_v3, %v10300_v62  ;;  %v10301_v20 = vmul.f32 %v13655_v37, %v21675_v7  ;;  %v10151_v12 = vpop.f32.mrb[39].mxu1 }
 0x5d3   : > { %v15000_v45 = vpack.i.bf16 %v10394_v5, %v10393_v55  ;;  %v10333_v36 = vadd.f32 %v21676_v3, %v10298_v2  ;;  %v10299_v43 = vmul.f32 %v21675_v7, %v10151_v12 }
 0x5d4   : > { %v10367_v51 = vmax.f32 %v10335_v30, 0.0  ;;  %v10336_v29 = vadd.f32 %v21676_v3, %v10301_v20  ;;  %14996 = vrot.lane.b32.xlu1 %v14995_v35, %s15230_s19 }
 0x5d5   : > { %v10365_v58 = vmax.f32 %v10333_v36, 0.0  ;;  %v10334_v17 = vadd.f32 %v21676_v3, %v10299_v43  ;;  %15001 = vrot.lane.b32.xlu0 %v15000_v45, %s15230_s19 }
 0x5d6   : > { %v10368_v14 = vmax.f32 %v10336_v29, 0.0  ;;  %v10399_v23 = vadd.f32 %v10367_v51, %v21647_v31 }
 0x5d7   : > { %v10366_v15 = vmax.f32 %v10334_v17, 0.0  ;;  %v13658_v39 = vpop.f32.mrb[40].mxu1  ;;  %v10397_v55 = vadd.f32 %v10365_v58, %v21649_v41 }
 0x5d8   : > { %v10400_v25 = vadd.f32 %v10368_v14, %v21648_v1  ;;  %v10304_v33 = vmul.f32 %v13658_v39, %v21675_v7  ;;  %v10164_v62 = vpop.f32.mrb[41].mxu1 }
 0x5d9   : > { %v10398_v5 = vadd.f32 %v10366_v15, %v21650_v13  ;;  %v10302_v2 = vmul.f32 %v21675_v7, %v10164_v62  ;;  %v13659_v37 = vpop.f32.mrb[42].mxu1 }
 0x5da   : > { %v15005_v35 = vpack.i.bf16 %v10400_v25, %v10399_v23  ;;  %v10339_v45 = vadd.f32 %v21676_v3, %v10304_v33  ;;  %v10167_v30 = vpop.f32.mrb[43].mxu1  ;;  %v10305_v31 = vmul.f32 %v13659_v37, %v21675_v7 }
 0x5db   : > { %v15010_v20 = vpack.i.bf16 %v10398_v5, %v10397_v55  ;;  %v10337_v12 = vadd.f32 %v21676_v3, %v10302_v2  ;;  %v10303_v1 = vmul.f32 %v21675_v7, %v10167_v30 }
 0x5dc   : > { %15006 = vrot.lane.b32.xlu1 %v15005_v35, %s15230_s19  ;;  %v10371_v41 = vmax.f32 %v10339_v45, 0.0  ;;  %v10340_v13 = vadd.f32 %v21676_v3, %v10305_v31 }
 0x5dd   : > { %15011 = vrot.lane.b32.xlu0 %v15010_v20, %s15230_s19  ;;  %v10369_v36 = vmax.f32 %v10337_v12, 0.0  ;;  %v10338_v43 = vadd.f32 %v21676_v3, %v10303_v1 }
 0x5de   : > { %v10372_v29 = vmax.f32 %v10340_v13, 0.0  ;;  %v10403_v23 = vadd.f32 %v10371_v41, %v21651_v19 }
 0x5df   : > { %v13662_v51 = vpop.f32.mrb[44].mxu1  ;;  %v10370_v14 = vmax.f32 %v10338_v43, 0.0  ;;  %v10401_v62 = vadd.f32 %v10369_v36, %v21653_v56 }
 0x5e0   : > { %v10308_v58 = vmul.f32 %v13662_v51, %v21675_v7  ;;  %v10180_v17 = vpop.f32.mrb[45].mxu1  ;;  %v10404_v25 = vadd.f32 %v10372_v29, %v21652_v9 }
 0x5e1   : > { %v10306_v15 = vmul.f32 %v21675_v7, %v10180_v17  ;;  %v13663_v39 = vpop.f32.mrb[46].mxu1  ;;  %v10402_v55 = vadd.f32 %v10370_v14, %v21654_v60 }
 0x5e2   : > { %v10183_v33 = vpop.f32.mrb[47].mxu1  ;;  %v10343_v5 = vadd.f32 %v21676_v3, %v10308_v58  ;;  %v15015_v37 = vpack.i.bf16 %v10404_v25, %v10403_v23  ;;  %v10309_v45 = vmul.f32 %v13663_v39, %v21675_v7 }
 0x5e3   : > { %v10341_v2 = vadd.f32 %v21676_v3, %v10306_v15  ;;  %v15020_v35 = vpack.i.bf16 %v10402_v55, %v10401_v62  ;;  %v10307_v30 = vmul.f32 %v21675_v7, %v10183_v33 }
 0x5e4   : > { %15016 = vrot.lane.b32.xlu1 %v15015_v37, %s15230_s19  ;;  %v10375_v19 = vmax.f32 %v10343_v5, 0.0  ;;  %v10344_v9 = vadd.f32 %v21676_v3, %v10309_v45 }
 0x5e5   : > { %v10373_v20 = vmax.f32 %v10341_v2, 0.0  ;;  %v10342_v56 = vadd.f32 %v21676_v3, %v10307_v30  ;;  %15021 = vrot.lane.b32.xlu0 %v15020_v35, %s15230_s19 }
 0x5e6   : > { %v10376_v1 = vmax.f32 %v10344_v9, 0.0  ;;  %v10407_v29 = vadd.f32 %v10375_v19, %v21655_v44 }
 0x5e7   : > { %v13666_v60 = vpop.f32.mrb[48].mxu1  ;;  %v10374_v41 = vmax.f32 %v10342_v56, 0.0  ;;  %v10405_v58 = vadd.f32 %v10373_v20, %v21657_v46 }
 0x5e8   : > { %v10312_v12 = vmul.f32 %v13666_v60, %v21675_v7  ;;  %v10196_v31 = vpop.f32.mrb[49].mxu1  ;;  %v10408_v17 = vadd.f32 %v10376_v1, %v21656_v21 }
 0x5e9   : > { %v13667_v13 = vpop.f32.mrb[50].mxu1  ;;  %v10310_v43 = vmul.f32 %v21675_v7, %v10196_v31  ;;  %v10406_v14 = vadd.f32 %v10374_v41, %v21658_v38 }
 0x5ea   : > { %v10347_v36 = vadd.f32 %v21676_v3, %v10312_v12  ;;  %v10199_v51 = vpop.f32.mrb[51].mxu1  ;;  %v15025_v39 = vpack.i.bf16 %v10408_v17, %v10407_v29  ;;  %v10313_v25 = vmul.f32 %v13667_v13, %v21675_v7 }
 0x5eb   : > { %v10345_v15 = vadd.f32 %v21676_v3, %v10310_v43  ;;  %v15030_v23 = vpack.i.bf16 %v10406_v14, %v10405_v58  ;;  %v10311_v33 = vmul.f32 %v21675_v7, %v10199_v51 }
 0x5ec   : > { %v10379_v62 = vmax.f32 %v10347_v36, 0.0  ;;  %v10348_v5 = vadd.f32 %v21676_v3, %v10313_v25  ;;  %15026 = vrot.lane.b32.xlu1 %v15025_v39, %s15230_s19 }
 0x5ed   : > { %v10377_v55 = vmax.f32 %v10345_v15, 0.0  ;;  %v10346_v44 = vadd.f32 %v21676_v3, %v10311_v33  ;;  %15031 = vrot.lane.b32.xlu0 %v15030_v23, %s15230_s19 }
 0x5ee   : > { %v10380_v2 = vmax.f32 %v10348_v5, 0.0  ;;  %v10411_v45 = vadd.f32 %v10379_v62, %v21659_v54 }
 0x5ef   : > { %v13670_v21 = vpop.f32.mrb[52].mxu1  ;;  %v10378_v37 = vmax.f32 %v10346_v44, 0.0  ;;  %v10409_v20 = vadd.f32 %v10377_v55, %v21661_v16 }
 0x5f0   : > { %v10316_v46 = vmul.f32 %v13670_v21, %v21675_v7  ;;  %v10212_v38 = vpop.f32.mrb[53].mxu1  ;;  %v10412_v9 = vadd.f32 %v10380_v2, %v21660_v24 }
 0x5f1   : > { %v13671_v35 = vpop.f32.mrb[54].mxu1  ;;  %v10314_v30 = vmul.f32 %v21675_v7, %v10212_v38  ;;  %v10410_v56 = vadd.f32 %v10378_v37, %v21662_v11 }
 0x5f2   : > { %v10215_v19 = vpop.f32.mrb[55].mxu1  ;;  %v10351_v60 = vadd.f32 %v21676_v3, %v10316_v46  ;;  %v15035_v31 = vpack.i.bf16 %v10412_v9, %v10411_v45  ;;  %v10317_v41 = vmul.f32 %v13671_v35, %v21675_v7 }
 0x5f3   : > { %v10349_v12 = vadd.f32 %v21676_v3, %v10314_v30  ;;  %v15040_v1 = vpack.i.bf16 %v10410_v56, %v10409_v20  ;;  %v10315_v13 = vmul.f32 %v21675_v7, %v10215_v19 }
 0x5f4   : > { %v10383_v54 = vmax.f32 %v10351_v60, 0.0  ;;  %v10352_v43 = vadd.f32 %v21676_v3, %v10317_v41  ;;  %15036 = vrot.lane.b32.xlu1 %v15035_v31, %s15230_s19 }
 0x5f5   : > { %v10381_v36 = vmax.f32 %v10349_v12, 0.0  ;;  %v10350_v16 = vadd.f32 %v21676_v3, %v10315_v13  ;;  %15041 = vrot.lane.b32.xlu0 %v15040_v1, %s15230_s19 }
 0x5f6   : > { %v10384_v29 = vmax.f32 %v10352_v43, 0.0  ;;  %v10415_v23 = vadd.f32 %v10383_v54, %v21663_v47 }
 0x5f7   : > { %v13674_v24 = vpop.f32.mrb[56].mxu1  ;;  %v10382_v58 = vmax.f32 %v10350_v16, 0.0  ;;  %v10413_v25 = vadd.f32 %v10381_v36, %v21665_v42 }
 0x5f8   : > { %v10320_v11 = vmul.f32 %v13674_v24, %v21675_v7  ;;  %v10228_v51 = vpop.f32.mrb[57].mxu1  ;;  %v10416_v33 = vadd.f32 %v10384_v29, %v21664_v18 }
 0x5f9   : > { %v13675_v17 = vpop.f32.mrb[58].mxu1  ;;  %v10318_v15 = vmul.f32 %v21675_v7, %v10228_v51  ;;  %v10414_v62 = vadd.f32 %v10382_v58, %v21666_v32 }
 0x5fa   : > { %v10355_v14 = vadd.f32 %v21676_v3, %v10320_v11  ;;  %v10231_v39 = vpop.f32.mrb[59].mxu1  ;;  %v15045_v5 = vpack.i.bf16 %v10416_v33, %v10415_v23  ;;  %v10321_v21 = vmul.f32 %v13675_v17, %v21675_v7  ;;  %v19982_v17 = vpop.permute.xlu0 %14911  ;;  %v20001_v33 = vld [vmem:[%s20262_s2] ss:$0 sm:$0xff] }
 0x5fb   : > { %v10353_v55 = vadd.f32 %v21676_v3, %v10318_v15  ;;  %v15050_v44 = vpack.i.bf16 %v10414_v62, %v10413_v25  ;;  %v10319_v46 = vmul.f32 %v21675_v7, %v10231_v39  ;;  %v21677_v62 = vld [vmem:[#allocation34_spill] sm:$0xff] }
 0x5fc   : > { %v10387_v38 = vmax.f32 %v10355_v14, 0.0  ;;  %v10356_v37 = vadd.f32 %v21676_v3, %v10321_v21  ;;  %15046 = vrot.lane.b32.xlu1 %v15045_v5, %s15230_s19 }
 0x5fd   : > { %v10385_v2 = vmax.f32 %v10353_v55, 0.0  ;;  %v10354_v47 = vadd.f32 %v21676_v3, %v10319_v46  ;;  %15051 = vrot.lane.b32.xlu0 %v15050_v44, %s15230_s19  ;;  %v3131_v55 = vmul.f32 %v20001_v33, %v21677_v62  ;;  %v21678_v44 = vld [vmem:[#allocation5_spill] sm:$0xff]  ;;  %v21679_v46 = vld [vmem:[#allocation32_spill] sm:$0xff] }
 0x5fe   : > { %v10388_v35 = vmax.f32 %v10356_v37, 0.0  ;;  %v10419_v19 = vadd.f32 %v10387_v38, %v21667_v52  ;;  %v14922_v15 = vpop.permute.xlu0 %14921  ;;  %v3129_v21 = vmul.f32 %v20001_v33, %v21678_v44  ;;  %v3132_v38 = vmul.f32 %v20001_v33, %v21679_v46 }
 0x5ff   : > { %v13678_v18 = vpop.f32.mrb[60].mxu1  ;;  %v10386_v45 = vmax.f32 %v10354_v47, 0.0  ;;  %v10417_v56 = vadd.f32 %v10385_v2, %v21669_v34  ;;  %v21680_v2 = vld [vmem:[#allocation7_spill] sm:$0xff]  ;;  %v14924_v62 = vunpack.i.h.bf16 %v14922_v15 }
 0x600   : > { %v10324_v42 = vmul.f32 %v13678_v18, %v21675_v7  ;;  %v10244_v32 = vpop.f32.mrb[61].mxu1  ;;  %v10420_v60 = vadd.f32 %v10388_v35, %v21668_v57  ;;  %v3130_v37 = vmul.f32 %v20001_v33, %v21680_v2  ;;  %v20018_v18 = vld [vmem:[%s20263_s3] ss:$0 sm:$0xff] }
 0x601   : > { %v13679_v30 = vpop.f32.mrb[62].mxu1  ;;  %v10322_v20 = vmul.f32 %v21675_v7, %v10244_v32  ;;  %v10418_v12 = vadd.f32 %v10386_v45, %v21670_v22  ;;  %v3167_v35 = vadd.f32 %v20018_v18, %v3129_v21  ;;  %v3170_v45 = vadd.f32 %v20018_v18, %v3132_v38 }
 0x602   : > { %v10247_v9 = vpop.f32.mrb[63].mxu1  ;;  %v10359_v31 = vadd.f32 %v21676_v3, %v10324_v42  ;;  %v15055_v41 = vpack.i.bf16 %v10420_v60, %v10419_v19  ;;  %v10325_v54 = vmul.f32 %v13679_v30, %v21675_v7  ;;  %v3169_v42 = vadd.f32 %v20018_v18, %v3131_v55 }
 0x603   : > { %v10357_v1 = vadd.f32 %v21676_v3, %v10322_v20  ;;  %v15060_v13 = vpack.i.bf16 %v10418_v12, %v10417_v56  ;;  %v10323_v36 = vmul.f32 %v21675_v7, %v10247_v9  ;;  %v3168_v30 = vadd.f32 %v20018_v18, %v3130_v37 }
 0x604   : > { %v10391_v52 = vmax.f32 %v10359_v31, 0.0  ;;  %v10360_v16 = vadd.f32 %v21676_v3, %v10325_v54  ;;  %15056 = vrot.lane.b32.xlu1 %v15055_v41, %s15230_s19  ;;  %v3201_v20 = vmax.f32 %v3169_v42, 0.0  ;;  %v3199_v56 = vmax.f32 %v3167_v35, 0.0  ;;  %v21681_v31 = vld [vmem:[#allocation145_spill] sm:$0xff]  ;;  %v21682_v54 = vld [vmem:[#allocation82_spill] sm:$0xff] }
 0x605   : > { %v10389_v43 = vmax.f32 %v10357_v1, 0.0  ;;  %v10358_v34 = vadd.f32 %v21676_v3, %v10323_v36  ;;  %15061 = vrot.lane.b32.xlu0 %v15060_v13, %s15230_s19  ;;  %v19980_v3 = vpop.permute.xlu1 %14906  ;;  %v3202_v60 = vmax.f32 %v3170_v45, 0.0  ;;  %v3200_v12 = vmax.f32 %v3168_v30, 0.0 }
 0x606   : > { %v10392_v57 = vmax.f32 %v10360_v16, 0.0  ;;  %v10423_v24 = vadd.f32 %v10391_v52, %v21671_v61  ;;  %v19986_v61 = vpop.permute.xlu0 %14931  ;;  %v14839_v1 = vunpack.i.h.bf16 %v21681_v31  ;;  %v14838_v41 = vunpack.i.l.bf16 %v21681_v31  ;;  %v21683_v52 = vld [vmem:[#allocation8_spill] sm:$0xff] }
 0x607   : > { %v10390_v22 = vmax.f32 %v10358_v34, 0.0  ;;  %v10421_v11 = vadd.f32 %v10389_v43, %v21673_v10  ;;  %v3233_v36 = vadd.f32 %v21682_v54, %v3201_v20  ;;  %v14844_v43 = vunpack.i.h.bf16 %v21683_v52 }
 0x608   : > { %v10424_v51 = vadd.f32 %v10392_v57, %v21672_v53  ;;  %v14843_v16 = vunpack.i.l.bf16 %v21683_v52  ;;  %v21684_v57 = vld [vmem:[#allocation105_spill] sm:$0xff]  ;;  %v14923_v55 = vunpack.i.l.bf16 %v14922_v15 }
 0x609   : > { %v10422_v7 = vadd.f32 %v10390_v22, %v21674_v59  ;;  %v14917_v14 = vpop.permute.xlu1 %14916  ;;  %v3234_v22 = vadd.f32 %v21684_v57, %v3202_v60  ;;  %v10811_v44 = vsel %vm1074_vm5, %v3233_v36, %v14838_v41  ;;  %v14934_v57 = vunpack.i.h.bf16 %v19986_v61 }
 0x60a   : > { %v15070_v29 = vpack.i.bf16 %v10424_v51, %v10423_v24  ;;  %v19990_v53 = vpop.permute.xlu0 %14941  ;;  %v21685_v24 = vld [vmem:[#allocation83_spill] sm:$0xff]  ;;  %v14919_v51 = vunpack.i.h.bf16 %v14917_v14 }
 0x60b   : > { %v15065_v58 = vpack.i.bf16 %v10422_v7, %v10421_v11  ;;  %v3231_v11 = vadd.f32 %v21685_v24, %v3199_v56  ;;  %v14918_v7 = vunpack.i.l.bf16 %v14917_v14  ;;  %v10812_v21 = vsel %vm1074_vm5, %v3234_v22, %v14839_v1 }
 0x60c   : > { %15071 = vrot.lane.b32.xlu1 %v15070_v29, %s15230_s19  ;;  %v21686_v29 = vld [vmem:[#allocation3_spill] sm:$0xff]  ;;  %v10845_v14 = vsel %vm10841_vm11, %v10812_v21, %v14919_v51  ;;  %v14933_v22 = vunpack.i.l.bf16 %v19986_v61  ;;  %v21689_v21 = vld [vmem:[#allocation64_spill] sm:$0xff] }
 0x60d   : > { %15066 = vrot.lane.b32.xlu0 %v15065_v58, %s15230_s19  ;;  %v19984_v39 = vpop.permute.xlu1 %14926  ;;  %v3232_v58 = vadd.f32 %v21686_v29, %v3200_v12  ;;  %v10809_v38 = vsel %vm1074_vm5, %v3231_v11, %v14843_v16  ;;  %v10844_v45 = vsel %vm10841_vm11, %v10811_v44, %v14918_v7  ;;  %v21687_v29 = vld [vmem:[#allocation38_spill] sm:$0xff] }
 0x60e   : > { %v19994_v23 = vpop.permute.xlu0 %14951  ;;  %v10842_v56 = vsel %vm10841_vm11, %v10809_v38, %v14923_v55  ;;  %v14928_v16 = vunpack.i.l.bf16 %v19984_v39  ;;  %v21688_v55 = vld [vmem:[#allocation39_spill] sm:$0xff] }
 0x60f   : > { %v10810_v2 = vsel %vm1074_vm5, %v3232_v58, %v14844_v43  ;;  %v14929_v43 = vunpack.i.h.bf16 %v19984_v39  ;;  %v10847_v44 = vsel %vm10841_vm11, %v21688_v55, %v14934_v57 }
 0x610   : > { %v10843_v20 = vsel %vm10841_vm11, %v10810_v2, %v14924_v62  ;;  %v10848_v58 = vsel %vm10841_vm11, %v21687_v29, %v14928_v16  ;;  %v14953_v29 = vunpack.i.l.bf16 %v19994_v23 }
 0x611   : > { %v19988_v10 = vpop.permute.xlu1 %14936  ;;  %v10849_v39 = vsel %vm10841_vm11, %v19382_v6, %v14929_v43  ;;  %v21690_v43 = vld [vmem:[#allocation65_spill] sm:$0xff] }
 0x612   : > { %v20005_v5 = vpop.permute.xlu0 %14961 }
 0x615   : > { %v19992_v59 = vpop.permute.xlu1 %14946 }
 0x616   : > { %v20021_v32 = vpop.permute.xlu0 %14971 }
 0x619   : > { %v19996_v25 = vpop.permute.xlu1 %14956 }
 0x61a   : > { %v20028_v9 = vpop.permute.xlu0 %14981 }
 0x61d   : > { %v20013_v47 = vpop.permute.xlu1 %14966 }
 0x61e   : > { %v20037_v34 = vpop.permute.xlu0 %14991 }
 0x621   : > { %v20026_v19 = vpop.permute.xlu1 %14976 }
 0x625   : > { %v20032_v13 = vpop.permute.xlu1 %14986 }
 0x646   : > { %v14997_v46 = vpop.permute.xlu1 %14996 }
 0x647   : > { %v14999_v37 = vunpack.i.h.bf16 %v14997_v46  ;;  %v14998_v42 = vunpack.i.l.bf16 %v14997_v46  ;;  %v15002_v35 = vpop.permute.xlu0 %15001  ;;  %v10846_v46 = vsel %vm10841_vm11, %v21689_v21, %v14933_v22 }
 0x648   : > { %v15004_v30 = vunpack.i.h.bf16 %v15002_v35  ;;  %v15003_v15 = vunpack.i.l.bf16 %v15002_v35 }
 0x649   : > { %v10878_v60 = vsel %vm10874_vm12, %v10845_v14, %v14999_v37  ;;  %v10877_v12 = vsel %vm10874_vm12, %v10844_v45, %v14998_v42 }
 0x64a   : > { %v11815_v31 = vpack.c.bf16 %v10878_v60, %v10878_v60  ;;  %v11814_v1 = vpack.c.bf16 %v10877_v12, %v10877_v12  ;;  %v10876_v41 = vsel %vm10874_vm12, %v10843_v20, %v15004_v30  ;;  %v10875_v54 = vsel %vm10874_vm12, %v10842_v56, %v15003_v15 }
 0x64b   : > { %v11813_v36 = vpack.c.bf16 %v10876_v41, %v10876_v41  ;;  %v11812_v52 = vpack.c.bf16 %v10875_v54, %v10875_v54  ;;  %v14939_v30 = vunpack.i.h.bf16 %v19988_v10  ;;  %v14938_v15 = vunpack.i.l.bf16 %v19988_v10 }
 0x64c   : > { %11038 = vst.msk [vmem:[%s20055_s26 + $0xc] sm:$0xf] %vm427_vm3, %v11815_v31  ;;  %11037 = vst.msk [vmem:[%s20055_s26 + $0x8] sm:$0xf] %vm427_vm3, %v11814_v1  ;;  %v14944_v20 = vunpack.i.h.bf16 %v19990_v53  ;;  %v14943_v56 = vunpack.i.l.bf16 %v19990_v53 }
 0x64d   : > { %11036 = vst.msk [vmem:[%s20055_s26 + $0x4] sm:$0xf] %vm427_vm3, %v11813_v36  ;;  %11035 = vst.msk [vmem:[%s20055_s26] sm:$0xf] %vm427_vm3, %v11812_v52  ;;  %v10853_v41 = vsel %vm10841_vm11, %v19414_v0, %v14939_v30  ;;  %v10852_v54 = vsel %vm10841_vm11, %v19411_v40, %v14938_v15 }
 0x64e   : > { %v15007_v24 = vpop.permute.xlu1 %15006  ;;  %v10851_v10 = vsel %vm10841_vm11, %v19420_v48, %v14944_v20  ;;  %v10850_v53 = vsel %vm10841_vm11, %v21690_v43, %v14943_v56  ;;  %v14949_v48 = vunpack.i.h.bf16 %v19992_v59  ;;  %v14959_v56 = vunpack.i.h.bf16 %v19996_v25 }
 0x64f   : > { %v15009_v11 = vunpack.i.h.bf16 %v15007_v24  ;;  %v15008_v51 = vunpack.i.l.bf16 %v15007_v24  ;;  %v15012_v7 = vpop.permute.xlu0 %15011 }
 0x650   : > { %v15014_v62 = vunpack.i.h.bf16 %v15012_v7  ;;  %v15013_v61 = vunpack.i.l.bf16 %v15012_v7  ;;  %v14948_v7 = vunpack.i.l.bf16 %v19992_v59 }
 0x651   : > { %v10882_v38 = vsel %vm10874_vm12, %v10849_v39, %v15009_v11  ;;  %v10881_v2 = vsel %vm10874_vm12, %v10848_v58, %v15008_v51  ;;  %v14954_v39 = vunpack.i.h.bf16 %v19994_v23 }
 0x652   : > { %v11819_v37 = vpack.c.bf16 %v10882_v38, %v10882_v38  ;;  %v11818_v42 = vpack.c.bf16 %v10881_v2, %v10881_v2  ;;  %v10880_v6 = vsel %vm10874_vm12, %v10847_v44, %v15014_v62  ;;  %v10879_v35 = vsel %vm10874_vm12, %v10846_v46, %v15013_v61  ;;  %v21691_v38 = vld [vmem:[#allocation25_spill] sm:$0xff]  ;;  %v21692_v2 = vld [vmem:[#allocation10_spill] sm:$0xff] }
 0x653   : > { %v11817_v14 = vpack.c.bf16 %v10880_v6, %v10880_v6  ;;  %v11816_v45 = vpack.c.bf16 %v10879_v35, %v10879_v35  ;;  %v10857_v46 = vsel %vm10841_vm11, %v19454_v63, %v14949_v48  ;;  %v10856_v59 = vsel %vm10841_vm11, %v21691_v38, %v14948_v7 }
 0x654   : > { %11042 = vst.msk [vmem:[%s20055_s26 + $0x1c] sm:$0xf] %vm427_vm3, %v11819_v37  ;;  %11041 = vst.msk [vmem:[%s20055_s26 + $0x18] sm:$0xf] %vm427_vm3, %v11818_v42  ;;  %v10855_v23 = vsel %vm10841_vm11, %v21692_v2, %v14954_v39  ;;  %v21693_v37 = vld [vmem:[#allocation36_spill] sm:$0xff] }
 0x655   : > { %11040 = vst.msk [vmem:[%s20055_s26 + $0x14] sm:$0xf] %vm427_vm3, %v11817_v14  ;;  %11039 = vst.msk [vmem:[%s20055_s26 + $0x10] sm:$0xf] %vm427_vm3, %v11816_v45  ;;  %v10854_v42 = vsel %vm10841_vm11, %v21693_v37, %v14953_v29 }
 0x656   : > { %v15017_v60 = vpop.permute.xlu1 %15016 }
 0x657   : > { %v15019_v12 = vunpack.i.h.bf16 %v15017_v60  ;;  %v15018_v31 = vunpack.i.l.bf16 %v15017_v60  ;;  %v15022_v1 = vpop.permute.xlu0 %15021  ;;  %v14958_v60 = vunpack.i.l.bf16 %v19996_v25 }
 0x658   : > { %v15024_v36 = vunpack.i.h.bf16 %v15022_v1  ;;  %v15023_v52 = vunpack.i.l.bf16 %v15022_v1  ;;  %v21694_v1 = vld [vmem:[#allocation9_spill] sm:$0xff] }
 0x659   : > { %v10886_v16 = vsel %vm10874_vm12, %v10853_v41, %v15019_v12  ;;  %v10885_v57 = vsel %vm10874_vm12, %v10852_v54, %v15018_v31  ;;  %v14964_v12 = vunpack.i.h.bf16 %v20005_v5  ;;  %v14963_v31 = vunpack.i.l.bf16 %v20005_v5  ;;  %v21695_v54 = vld [vmem:[#allocation69_spill] sm:$0xff] }
 0x65a   : > { %v11823_v22 = vpack.c.bf16 %v10886_v16, %v10886_v16  ;;  %v11822_v24 = vpack.c.bf16 %v10885_v57, %v10885_v57  ;;  %v10884_v0 = vsel %vm10874_vm12, %v10851_v10, %v15024_v36  ;;  %v10883_v40 = vsel %vm10874_vm12, %v10850_v53, %v15023_v52  ;;  %v21696_v52 = vld [vmem:[#allocation11_spill] sm:$0xff]  ;;  %v21697_v10 = vld [vmem:[#allocation113_spill] sm:$0xff] }
 0x65b   : > { %v11821_v11 = vpack.c.bf16 %v10884_v0, %v10884_v0  ;;  %v11820_v51 = vpack.c.bf16 %v10883_v40, %v10883_v40  ;;  %v3159_v41 = vmul.f32 %v20001_v33, %v21694_v1  ;;  %v3157_v36 = vmul.f32 %v20001_v33, %v21695_v54 }
 0x65c   : > { %11046 = vst.msk [vmem:[%s20055_s26 + $0x2c] sm:$0xf] %vm427_vm3, %v11823_v22  ;;  %11045 = vst.msk [vmem:[%s20055_s26 + $0x28] sm:$0xf] %vm427_vm3, %v11822_v24  ;;  %v3160_v25 = vmul.f32 %v20001_v33, %v21696_v52  ;;  %v3158_v5 = vmul.f32 %v20001_v33, %v21697_v10  ;;  %v10861_v0 = vsel %vm10841_vm11, %v19486_v28, %v14959_v56  ;;  %v14979_v56 = vunpack.i.h.bf16 %v20026_v19 }
 0x65d   : > { %11044 = vst.msk [vmem:[%s20055_s26 + $0x24] sm:$0xf] %vm427_vm3, %v11821_v11  ;;  %11043 = vst.msk [vmem:[%s20055_s26 + $0x20] sm:$0xf] %vm427_vm3, %v11820_v51  ;;  %v10860_v40 = vsel %vm10841_vm11, %v19483_v4, %v14958_v60  ;;  %v10859_v11 = vsel %vm10841_vm11, %v19496_v49, %v14964_v12  ;;  %v10858_v33 = vsel %vm10841_vm11, %v19493_v26, %v14963_v31  ;;  %v14968_v49 = vunpack.i.l.bf16 %v20013_v47 }
 0x65e   : > { %v15027_v58 = vpop.permute.xlu1 %15026  ;;  %v14973_v26 = vunpack.i.l.bf16 %v20021_v32  ;;  %v14984_v60 = vunpack.i.h.bf16 %v20028_v9  ;;  %v14983_v12 = vunpack.i.l.bf16 %v20028_v9  ;;  %v14914_v52 = vunpack.i.h.bf16 %v19982_v17 }
 0x65f   : > { %v15032_v62 = vpop.permute.xlu0 %15031  ;;  %v15029_v61 = vunpack.i.h.bf16 %v15027_v58  ;;  %v15028_v55 = vunpack.i.l.bf16 %v15027_v58  ;;  %v14913_v9 = vunpack.i.l.bf16 %v19982_v17 }
 0x660   : > { %v15034_v44 = vunpack.i.h.bf16 %v15032_v62  ;;  %v15033_v21 = vunpack.i.l.bf16 %v15032_v62  ;;  %v14969_v62 = vunpack.i.h.bf16 %v20013_v47  ;;  %v3196_v47 = vadd.f32 %v20018_v18, %v3158_v5 }
 0x661   : > { %v10890_v6 = vsel %vm10874_vm12, %v10857_v46, %v15029_v61  ;;  %v10889_v35 = vsel %vm10874_vm12, %v10856_v59, %v15028_v55  ;;  %v14974_v61 = vunpack.i.h.bf16 %v20021_v32  ;;  %v3197_v55 = vadd.f32 %v20018_v18, %v3159_v41 }
 0x662   : > { %v10888_v14 = vsel %vm10874_vm12, %v10855_v23, %v15034_v44  ;;  %v10887_v63 = vsel %vm10874_vm12, %v10854_v42, %v15033_v21  ;;  %v11827_v45 = vpack.c.bf16 %v10890_v6, %v10890_v6  ;;  %v11826_v30 = vpack.c.bf16 %v10889_v35, %v10889_v35  ;;  %v21698_v35 = vld [vmem:[#allocation111_spill] sm:$0xff] }
 0x663   : > { %v11825_v15 = vpack.c.bf16 %v10888_v14, %v10888_v14  ;;  %v11824_v20 = vpack.c.bf16 %v10887_v63, %v10887_v63  ;;  %v3195_v44 = vadd.f32 %v20018_v18, %v3157_v36  ;;  %v3198_v21 = vadd.f32 %v20018_v18, %v3160_v25 }
 0x664   : > { %11050 = vst.msk [vmem:[%s20055_s26 + $0x3c] sm:$0xf] %vm427_vm3, %v11827_v45  ;;  %11049 = vst.msk [vmem:[%s20055_s26 + $0x38] sm:$0xf] %vm427_vm3, %v11826_v30  ;;  %v10865_v37 = vsel %vm10841_vm11, %v19522_v27, %v14969_v62  ;;  %v10864_v42 = vsel %vm10841_vm11, %v19519_v50, %v14968_v49  ;;  %v10863_v6 = vsel %vm10841_vm11, %v19528_v8, %v14974_v61  ;;  %v14978_v8 = vunpack.i.l.bf16 %v20026_v19  ;;  %v21704_v49 = vld [vmem:[#allocation74_spill] sm:$0xff] }
 0x665   : > { %11048 = vst.msk [vmem:[%s20055_s26 + $0x34] sm:$0xf] %vm427_vm3, %v11825_v15  ;;  %11047 = vst.msk [vmem:[%s20055_s26 + $0x30] sm:$0xf] %vm427_vm3, %v11824_v20  ;;  %v10862_v18 = vsel %vm10841_vm11, %v21698_v35, %v14973_v26  ;;  %v3229_v31 = vmax.f32 %v3197_v55, 0.0  ;;  %v3227_v1 = vmax.f32 %v3195_v44, 0.0  ;;  %v14909_v36 = vunpack.i.h.bf16 %v19980_v3 }
 0x666   : > { %v15037_v43 = vpop.permute.xlu1 %15036  ;;  %v3230_v41 = vmax.f32 %v3198_v21, 0.0  ;;  %v3228_v54 = vmax.f32 %v3196_v47, 0.0  ;;  %v14908_v19 = vunpack.i.l.bf16 %v19980_v3  ;;  %v21702_v3 = vld [vmem:[#allocation66_spill] sm:$0xff]  ;;  %v21705_v26 = vld [vmem:[#allocation73_spill] sm:$0xff]  ;;  %v21706_v44 = vld [vmem:[#allocation72_spill] sm:$0xff]  ;;  %v14989_v47 = vunpack.i.h.bf16 %v20032_v13 }
 0x667   : > { %v15042_v53 = vpop.permute.xlu0 %15041  ;;  %v15039_v16 = vunpack.i.h.bf16 %v15037_v43  ;;  %v15038_v57 = vunpack.i.l.bf16 %v15037_v43  ;;  %v3259_v55 = vadd.f32 %v21705_v26, %v3227_v1 }
 0x668   : > { %v15044_v22 = vunpack.i.h.bf16 %v15042_v53  ;;  %v15043_v24 = vunpack.i.l.bf16 %v15042_v53  ;;  %v3262_v61 = vadd.f32 %v21704_v49, %v3230_v41  ;;  %v3260_v21 = vadd.f32 %v21706_v44, %v3228_v54 }
 0x669   : > { %v10894_v51 = vsel %vm10874_vm12, %v10861_v0, %v15039_v16  ;;  %v10893_v48 = vsel %vm10874_vm12, %v10860_v40, %v15038_v57  ;;  %v21699_v57 = vld [vmem:[#allocation41_spill] sm:$0xff]  ;;  %v21701_v40 = vld [vmem:[#allocation114_spill] sm:$0xff] }
 0x66a   : > { %v10892_v7 = vsel %vm10874_vm12, %v10859_v11, %v15044_v22  ;;  %v10891_v28 = vsel %vm10874_vm12, %v10858_v33, %v15043_v24  ;;  %v11831_v39 = vpack.c.bf16 %v10894_v51, %v10894_v51  ;;  %v11830_v29 = vpack.c.bf16 %v10893_v48, %v10893_v48  ;;  %v21700_v24 = vld [vmem:[#allocation110_spill] sm:$0xff] }
 0x66b   : > { %v11829_v4 = vpack.c.bf16 %v10892_v7, %v10892_v7  ;;  %v11828_v58 = vpack.c.bf16 %v10891_v28, %v10891_v28  ;;  %v10869_v22 = vsel %vm10841_vm11, %v21699_v57, %v14979_v56  ;;  %v10868_v0 = vsel %vm10841_vm11, %v21700_v24, %v14978_v8 }
 0x66c   : > { %11054 = vst.msk [vmem:[%s20055_s26 + $0x4c] sm:$0xf] %vm427_vm3, %v11831_v39  ;;  %11053 = vst.msk [vmem:[%s20055_s26 + $0x48] sm:$0xf] %vm427_vm3, %v11830_v29  ;;  %v10867_v11 = vsel %vm10841_vm11, %v21701_v40, %v14984_v60  ;;  %v10866_v33 = vsel %vm10841_vm11, %v21702_v3, %v14983_v12 }
 0x66d   : > { %11052 = vst.msk [vmem:[%s20055_s26 + $0x44] sm:$0xf] %vm427_vm3, %v11829_v4  ;;  %11051 = vst.msk [vmem:[%s20055_s26 + $0x40] sm:$0xf] %vm427_vm3, %v11828_v58  ;;  %v21703_v58 = vld [vmem:[#allocation75_spill] sm:$0xff] }
 0x66e   : > { %v15047_v46 = vpop.permute.xlu1 %15046  ;;  %v3261_v62 = vadd.f32 %v21703_v58, %v3229_v31 }
 0x66f   : > { %v15052_v38 = vpop.permute.xlu0 %15051  ;;  %v15049_v59 = vunpack.i.h.bf16 %v15047_v46  ;;  %v15048_v32 = vunpack.i.l.bf16 %v15047_v46  ;;  %v14988_v46 = vunpack.i.l.bf16 %v20032_v13  ;;  %v10838_v13 = vsel %vm1074_vm5, %v3260_v21, %v14914_v52 }
 0x670   : > { %v15054_v2 = vunpack.i.h.bf16 %v15052_v38  ;;  %v15053_v23 = vunpack.i.l.bf16 %v15052_v38  ;;  %v14994_v38 = vunpack.i.h.bf16 %v20037_v34 }
 0x671   : > { %v10898_v14 = vsel %vm10874_vm12, %v10865_v37, %v15049_v59  ;;  %v10897_v63 = vsel %vm10874_vm12, %v10864_v42, %v15048_v32  ;;  %v14993_v59 = vunpack.i.l.bf16 %v20037_v34  ;;  %v10839_v32 = vsel %vm1074_vm5, %v3261_v62, %v14908_v19 }
 0x672   : > { %v10896_v45 = vsel %vm10874_vm12, %v10863_v6, %v15054_v2  ;;  %v10895_v27 = vsel %vm10874_vm12, %v10862_v18, %v15053_v23  ;;  %v11835_v30 = vpack.c.bf16 %v10898_v14, %v10898_v14  ;;  %v11834_v15 = vpack.c.bf16 %v10897_v63, %v10897_v63 }
 0x673   : > { %v11833_v50 = vpack.c.bf16 %v10896_v45, %v10896_v45  ;;  %v11832_v20 = vpack.c.bf16 %v10895_v27, %v10895_v27  ;;  %v10840_v2 = vsel %vm1074_vm5, %v3262_v61, %v14909_v36  ;;  %v10837_v23 = vsel %vm1074_vm5, %v3259_v55, %v14913_v9 }
 0x674   : > { %11058 = vst.msk [vmem:[%s20055_s26 + $0x5c] sm:$0xf] %vm427_vm3, %v11835_v30  ;;  %11057 = vst.msk [vmem:[%s20055_s26 + $0x58] sm:$0xf] %vm427_vm3, %v11834_v15  ;;  %v10873_v14 = vsel %vm10841_vm11, %v10840_v2, %v14989_v47  ;;  %v10872_v63 = vsel %vm10841_vm11, %v10839_v32, %v14988_v46  ;;  %v10870_v45 = vsel %vm10841_vm11, %v10837_v23, %v14993_v59 }
 0x675   : > { %11056 = vst.msk [vmem:[%s20055_s26 + $0x54] sm:$0xf] %vm427_vm3, %v11833_v50  ;;  %11055 = vst.msk [vmem:[%s20055_s26 + $0x50] sm:$0xf] %vm427_vm3, %v11832_v20  ;;  %v10871_v27 = vsel %vm10841_vm11, %v10838_v13, %v14994_v38 }
 0x676   : > { %v15057_v25 = vpop.permute.xlu1 %15056 }
 0x677   : > { %v15062_v10 = vpop.permute.xlu0 %15061  ;;  %v15059_v5 = vunpack.i.h.bf16 %v15057_v25  ;;  %v15058_v43 = vunpack.i.l.bf16 %v15057_v25 }
 0x678   : > { %v15064_v53 = vunpack.i.h.bf16 %v15062_v10  ;;  %v15063_v16 = vunpack.i.l.bf16 %v15062_v10 }
 0x679   : > { %v10902_v17 = vsel %vm10874_vm12, %v10869_v22, %v15059_v5  ;;  %v10901_v51 = vsel %vm10874_vm12, %v10868_v0, %v15058_v43 }
 0x67a   : > { %v10900_v48 = vsel %vm10874_vm12, %v10867_v11, %v15064_v53  ;;  %v10899_v7 = vsel %vm10874_vm12, %v10866_v33, %v15063_v16  ;;  %v11839_v28 = vpack.c.bf16 %v10902_v17, %v10902_v17  ;;  %v11838_v39 = vpack.c.bf16 %v10901_v51, %v10901_v51 }
 0x67b   : > { %v11837_v29 = vpack.c.bf16 %v10900_v48, %v10900_v48  ;;  %v11836_v4 = vpack.c.bf16 %v10899_v7, %v10899_v7 }
 0x67c   : > { %11062 = vst.msk [vmem:[%s20055_s26 + $0x6c] sm:$0xf] %vm427_vm3, %v11839_v28  ;;  %11061 = vst.msk [vmem:[%s20055_s26 + $0x68] sm:$0xf] %vm427_vm3, %v11838_v39 }
 0x67d   : > { %11060 = vst.msk [vmem:[%s20055_s26 + $0x64] sm:$0xf] %vm427_vm3, %v11837_v29  ;;  %11059 = vst.msk [vmem:[%s20055_s26 + $0x60] sm:$0xf] %vm427_vm3, %v11836_v4 }
 0x67e   : > { %v15072_v37 = vpop.permute.xlu1 %15071 }
 0x67f   : > { %v15067_v42 = vpop.permute.xlu0 %15066  ;;  %v15074_v6 = vunpack.i.h.bf16 %v15072_v37  ;;  %v15073_v34 = vunpack.i.l.bf16 %v15072_v37 }
 0x680   : > { %v15069_v35 = vunpack.i.h.bf16 %v15067_v42  ;;  %v15068_v18 = vunpack.i.l.bf16 %v15067_v42 }
 0x681   : > { %v10905_v30 = vsel %vm10874_vm12, %v10872_v63, %v15073_v34  ;;  %v10906_v15 = vsel %vm10874_vm12, %v10873_v14, %v15074_v6 }
 0x682   : > { %v10903_v50 = vsel %vm10874_vm12, %v10870_v45, %v15068_v18  ;;  %v10904_v20 = vsel %vm10874_vm12, %v10871_v27, %v15069_v35  ;;  %v11842_v56 = vpack.c.bf16 %v10905_v30, %v10905_v30  ;;  %v11843_v8 = vpack.c.bf16 %v10906_v15, %v10906_v15 }
 0x683   : > { %v11840_v60 = vpack.c.bf16 %v10903_v50, %v10903_v50  ;;  %v11841_v12 = vpack.c.bf16 %v10904_v20, %v10904_v20 }
 0x684   : > { %11065 = vst.msk [vmem:[%s20055_s26 + $0x78] sm:$0xf] %vm427_vm3, %v11842_v56  ;;  %11066 = vst.msk [vmem:[%s20055_s26 + $0x7c] sm:$0xf] %vm427_vm3, %v11843_v8 }
 0x685   : > { %11063 = vst.msk [vmem:[%s20055_s26 + $0x70] sm:$0xf] %vm427_vm3, %v11840_v60  ;;  %11064 = vst.msk [vmem:[%s20055_s26 + $0x74] sm:$0xf] %vm427_vm3, %v11841_v12 }
 0x686 PF: > { %s14_s15 = sadd.s32 1, %s15222_s15  }
 0x687   : > { %p11_p4 = scmp.ge.s32.totalorder %s14_s15, 4  }
 0x689   :  { %13 = sbr.rel (!%p11_p4) target bundleno = 1 (0x1), region = 102 }

</bundles_post_ra>
